<compile_context>
chip_gen: v5e
topology: v5e:2x2
jax: 0.10.0
libtpu: 0.0.40
codegen_flags: <defaults>
</compile_context>

<pallas_src>
import functools

import jax
import jax.numpy as jnp
from jax.experimental import pallas as pl
from jax.experimental.pallas import tpu as pltpu


def _round_up(x, m):
    return ((x + m - 1) // m) * m


# ----------------------------- Pallas kernel ------------------------------- #

def _attentivefp_readout_kernel(
    node_ref,      # (GB, N, Fp)   zero-padded node features
    maskbias_ref,  # (GB, N, 1)    0.0 for real nodes, -1e30 for padding
    w_proj_ref,    # (T, Fp, Fpp)  fused projection weight (w_x stashed at logit_col)
    b_proj_ref,    # (T, 1, Fp)
    w_g_ref,       # (T, 1, Fp)    graph-side logit weight (row vector)
    b_logit_ref,   # (T, 1, 1)
    w_gru_ref,     # (T, 2Fp, 4Fp) fused GRU weight -> [r | z | i_n | h_n]
    b_gru_ref,     # (T, 1, 4Fp)
    out_ref,       # (GB, Fp)
    *,
    logit_col,     # static: column of w_proj holding w_x
):
    GB, N, Fp = node_ref.shape
    T = w_proj_ref.shape[0]

    x3 = node_ref[...]                                   # (GB, N, Fp)
    x = x3.reshape(GB * N, Fp)                           # flat node slab for MXU
    mbias = maskbias_ref[...]                            # (GB, N, 1)

    # g_feats = dgl.sum_nodes(g, node_feats)  (padded nodes are exactly zero)
    g_feats = jnp.sum(x3, axis=1)                        # (GB, Fp)

    for t in range(T):                                   # static unroll over timesteps
        w_proj = w_proj_ref[t]                           # (Fp, Fpp)
        b_proj = b_proj_ref[t]                           # (1, Fp)
        w_g = w_g_ref[t]                                 # (1, Fp)
        b_log = b_logit_ref[t]                           # (1, 1)
        w_gru = w_gru_ref[t]                             # (2Fp, 4Fp)
        b_gru = b_gru_ref[t]                             # (1, 4Fp)

        # --- graph-level logit term: VPU mul + lane reduce (no skinny MXU pass)
        g_relu = jnp.maximum(g_feats, 0.0)               # (GB, Fp)
        z_graph = jnp.sum(g_relu * w_g, axis=-1, keepdims=True)   # (GB, 1)

        # --- fused node projection: one MXU pass gives hv AND per-node logits
        proj = jnp.dot(x, w_proj, preferred_element_type=jnp.float32)  # (GB*N, Fpp)
        hv = (proj[:, :Fp] + b_proj).reshape(GB, N, Fp)  # Dropout = identity (eval)
        z_node = proj[:, logit_col:logit_col + 1].reshape(GB, N, 1)

        # --- attention logits + masked softmax over nodes of each graph ---
        z = z_node + z_graph[:, None, :] + b_log         # (GB, N, 1)
        z = jnp.where(z > 0, z, 0.01 * z)                # LeakyReLU(0.01)
        z = z + mbias                                    # -1e30 on padded nodes
        z_max = jnp.max(z, axis=1, keepdims=True)        # (GB, 1, 1)
        e = jnp.exp(z - z_max)                           # exactly 0 on padding
        denom = jnp.sum(e, axis=1, keepdims=True)        # >= 1 always (no NaN for
        a = e * pl.reciprocal(denom, approx=True)        #  empty padded graphs)

        # --- weighted readout + ELU context ---
        g_repr = jnp.sum(a * hv, axis=1)                 # (GB, Fp)
        context = jnp.where(g_repr > 0, g_repr, jnp.exp(g_repr) - 1.0)

        # --- fused GRUCell(context, g_feats): one MXU pass for all gates ---
        gru_in = jnp.concatenate([context, g_feats], axis=1)            # (GB, 2Fp)
        gates = jnp.dot(gru_in, w_gru, preferred_element_type=jnp.float32) + b_gru
        r = jax.nn.sigmoid(gates[:, :Fp])
        zg = jax.nn.sigmoid(gates[:, Fp:2 * Fp])
        n = jnp.tanh(gates[:, 2 * Fp:3 * Fp] + r * gates[:, 3 * Fp:])
        g_feats = (1.0 - zg) * n + zg * g_feats          # (GB, Fp)

    out_ref[...] = g_feats


# ------------------------------ host wrapper -------------------------------- #

def _choose_graph_block(num_graphs, n_pad, f_pad):
    """Pick graphs-per-grid-step: >=256 node rows, <=~8MiB double-buffered slab."""
    rows_target = 256
    gb = -(-rows_target // n_pad)                        # ceil
    bytes_per_graph = n_pad * f_pad * 4
    gb = min(gb, max(1, (8 * 1024 * 1024) // (2 * bytes_per_graph)))
    gb = _round_up(max(1, gb), 8)                        # dense (8,128) sublane tiles
    gb = min(gb, _round_up(num_graphs, 8))
    return gb


def attentivefp_readout(node_feats, node_mask, params):
    """node_feats: (G, N, F) f32; node_mask: (G, N, 1) f32; returns (G, F) f32."""
    G, N, F = node_feats.shape
    T = params["w_logit"].shape[0]

    Fp = _round_up(F, 128)                               # lane-pad feature dim
    Np = _round_up(N, 8)                                 # sublane-pad node dim
    GB = _choose_graph_block(G, Np, Fp)
    Gp = _round_up(G, GB)

    # Where the per-node logit column lives inside the fused projection weight.
    if F < Fp:
        logit_col, Fpp = F, Fp                           # stash in a padding column
    else:
        logit_col, Fpp = Fp, Fp + 128                    # append one lane tile

    # ---- pad inputs ----
    x = (node_feats * node_mask).astype(jnp.float32)     # ensure padded nodes == 0
    x = jnp.pad(x, ((0, Gp - G), (0, Np - N), (0, Fp - F)))
    mask = jnp.pad(node_mask.astype(jnp.float32), ((0, Gp - G), (0, Np - N), (0, 0)))
    mask_bias = (mask - 1.0) * 1e30                      # 0 real, -1e30 padding

    # ---- fuse / pad weights ----
    w_logit = params["w_logit"].astype(jnp.float32)      # (T, 2F, 1)
    w_g = jnp.zeros((T, 1, Fp), jnp.float32).at[:, 0, :F].set(w_logit[:, :F, 0])
    b_logit = params["b_logit"].astype(jnp.float32)      # (T, 1, 1)

    w_proj_f = jnp.zeros((T, Fp, Fpp), jnp.float32)
    w_proj_f = w_proj_f.at[:, :F, :F].set(params["w_proj"])
    w_proj_f = w_proj_f.at[:, :F, logit_col].set(w_logit[:, F:, 0])
    b_proj_p = jnp.zeros((T, 1, Fp), jnp.float32).at[:, :, :F].set(params["b_proj"])

    w_ih, w_hh = params["w_ih"], params["w_hh"]          # (T, F, 3F)
    b_ih, b_hh = params["b_ih"], params["b_hh"]          # (T, 1, 3F)
    w_gru = jnp.zeros((T, 2 * Fp, 4 * Fp), jnp.float32)
    w_gru = w_gru.at[:, :F, 0:F].set(w_ih[:, :, 0:F])                       # r (input)
    w_gru = w_gru.at[:, Fp:Fp + F, 0:F].set(w_hh[:, :, 0:F])                # r (hidden)
    w_gru = w_gru.at[:, :F, Fp:Fp + F].set(w_ih[:, :, F:2 * F])             # z (input)
    w_gru = w_gru.at[:, Fp:Fp + F, Fp:Fp + F].set(w_hh[:, :, F:2 * F])      # z (hidden)
    w_gru = w_gru.at[:, :F, 2 * Fp:2 * Fp + F].set(w_ih[:, :, 2 * F:])      # i_n
    w_gru = w_gru.at[:, Fp:Fp + F, 3 * Fp:3 * Fp + F].set(w_hh[:, :, 2 * F:])  # h_n
    b_gru = jnp.zeros((T, 1, 4 * Fp), jnp.float32)
    b_gru = b_gru.at[:, :, 0:F].set(b_ih[:, :, 0:F] + b_hh[:, :, 0:F])
    b_gru = b_gru.at[:, :, Fp:Fp + F].set(b_ih[:, :, F:2 * F] + b_hh[:, :, F:2 * F])
    b_gru = b_gru.at[:, :, 2 * Fp:2 * Fp + F].set(b_ih[:, :, 2 * F:])
    b_gru = b_gru.at[:, :, 3 * Fp:3 * Fp + F].set(b_hh[:, :, 2 * F:])

    kernel = functools.partial(_attentivefp_readout_kernel, logit_col=logit_col)

    # Weight BlockSpecs have constant block indices, so they are DMA'd once;
    # (pl.Buffered(1) would additionally halve their VMEM footprint if needed.)
    def const_spec(shape):
        nd = len(shape)
        return pl.BlockSpec(shape, lambda g, _nd=nd: (0,) * _nd)

    out = pl.pallas_call(
        kernel,
        out_shape=jax.ShapeDtypeStruct((Gp, Fp), jnp.float32),
        grid_spec=pltpu.PrefetchScalarGridSpec(
            num_scalar_prefetch=0,
            grid=(Gp // GB,),
            in_specs=[
                pl.BlockSpec((GB, Np, Fp), lambda g: (g, 0, 0)),
                pl.BlockSpec((GB, Np, 1), lambda g: (g, 0, 0)),
                const_spec((T, Fp, Fpp)),
                const_spec((T, 1, Fp)),
                const_spec((T, 1, Fp)),
                const_spec((T, 1, 1)),
                const_spec((T, 2 * Fp, 4 * Fp)),
                const_spec((T, 1, 4 * Fp)),
            ],
            out_specs=pl.BlockSpec((GB, Fp), lambda g: (g, 0)),
        ),
        compiler_params=pltpu.CompilerParams(
            dimension_semantics=("parallel",),        # shards graph blocks across v7x's 2 TCs
            vmem_limit_bytes=32 * 1024 * 1024),
    )(x, mask_bias, w_proj_f, b_proj_p, w_g, b_logit, w_gru, b_gru)

    return out[:G, :F]


# ------------------------- pure-JAX reference check ------------------------- #

def reference_readout(node_feats, node_mask, params):
    G, N, F = node_feats.shape
    T = params["w_logit"].shape[0]
    m = node_mask
    g_feats = jnp.sum(node_feats * m, axis=1)                                   # (G, F)
    for t in range(T):
        w_g = params["w_logit"][t][:F]                                          # (F, 1)
        w_x = params["w_logit"][t][F:]                                          # (F, 1)
        b_l = params["b_logit"][t]                                              # (1, 1)
        g_relu = jax.nn.relu(g_feats)
        z = (g_relu @ w_g)[:, None, :] + node_feats @ w_x + b_l                 # (G, N, 1)
        z = jnp.where(z > 0, z, 0.01 * z)
        z_m = jnp.where(m > 0, z, -1e30)
        e = jnp.exp(z_m - jnp.max(z_m, axis=1, keepdims=True)) * m
        a = e / jnp.sum(e, axis=1, keepdims=True)                               # (G, N, 1)
        hv = node_feats @ params["w_proj"][t] + params["b_proj"][t]             # (G, N, F)
        g_repr = jnp.sum(a * hv, axis=1)                                        # (G, F)
        context = jnp.where(g_repr > 0, g_repr, jnp.exp(g_repr) - 1.0)
        gi = context @ params["w_ih"][t] + params["b_ih"][t][0]
        gh = g_feats @ params["w_hh"][t] + params["b_hh"][t][0]
        i_r, i_z, i_n = gi[:, :F], gi[:, F:2 * F], gi[:, 2 * F:]
        h_r, h_z, h_n = gh[:, :F], gh[:, F:2 * F], gh[:, 2 * F:]
        r = jax.nn.sigmoid(i_r + h_r)
        zg = jax.nn.sigmoid(i_z + h_z)
        n = jnp.tanh(i_n + r * h_n)
        g_feats = (1.0 - zg) * n + zg * g_feats
    return g_feats


# ---------------------------------- main ------------------------------------ #

if __name__ == "__main__":
    G, N_MAX, F, T = 64, 8, 32, 2   # graphs, padded nodes/graph, feat_size, timesteps

    key = jax.random.PRNGKey(0)
    ks = jax.random.split(key, 12)

    node_feats = jax.random.normal(ks[0], (G, N_MAX, F), dtype=jnp.float32)
    counts = jax.random.randint(ks[9], (G,), minval=1, maxval=N_MAX + 1)
    mask = (jnp.arange(N_MAX)[None, :] < counts[:, None]).astype(jnp.float32)[..., None]
    node_feats = node_feats * mask  # zero out padding

    s = 0.1  # small deterministic init scale
    params = {
        "w_logit": s * jax.random.normal(ks[1], (T, 2 * F, 1), dtype=jnp.float32),
        "b_logit": s * jax.random.normal(ks[2], (T, 1, 1), dtype=jnp.float32),
        "w_proj":  s * jax.random.normal(ks[3], (T, F, F), dtype=jnp.float32),
        "b_proj":  s * jax.random.normal(ks[4], (T, 1, F), dtype=jnp.float32),
        "w_ih":    s * jax.random.normal(ks[5], (T, F, 3 * F), dtype=jnp.float32),
        "w_hh":    s * jax.random.normal(ks[6], (T, F, 3 * F), dtype=jnp.float32),
        "b_ih":    s * jax.random.normal(ks[7], (T, 1, 3 * F), dtype=jnp.float32),
        "b_hh":    s * jax.random.normal(ks[8], (T, 1, 3 * F), dtype=jnp.float32),
    }

    out = attentivefp_readout(node_feats, mask, params)
    out = jax.block_until_ready(out)

    ref = reference_readout(node_feats, mask, params)
    assert out.shape == (G, F)
    # tolerance slightly loosened for pl.reciprocal(approx=True) in the softmax
    assert jnp.allclose(out, ref, rtol=2e-3, atol=2e-3), (
        f"max abs err = {jnp.max(jnp.abs(out - ref))}")

    print("KERNEL_OK")
</pallas_src>

<mosaic_0001>
module attributes {stable_mosaic.version = 11 : i64} {
  func.func @_attentivefp_readout_kernel(%arg0: i32, %arg1: memref<32x8x128xf32, #tpu.memory_space<vmem>>, %arg2: memref<32x8x1xf32, #tpu.memory_space<vmem>>, %arg3: memref<2x128x128xf32, #tpu.memory_space<vmem>>, %arg4: memref<2x1x128xf32, #tpu.memory_space<vmem>>, %arg5: memref<2x1x128xf32, #tpu.memory_space<vmem>>, %arg6: memref<2x1x1xf32, #tpu.memory_space<vmem>>, %arg7: memref<2x256x512xf32, #tpu.memory_space<vmem>>, %arg8: memref<2x1x512xf32, #tpu.memory_space<vmem>>, %arg9: memref<32x128xf32, #tpu.memory_space<vmem>>) attributes {dimension_semantics = [#tpu.dimension_semantics<parallel>], iteration_bounds = array<i64: 2>, scalar_prefetch = 0 : i64, scratch_operands = 0 : i64, tpu.core_type = #tpu.core_type<tc>, window_params = [{transform_indices = @transform_0, window_bounds = array<i64: 32, 8, 128>}, {transform_indices = @transform_1, window_bounds = array<i64: 32, 8, 1>}, {pipeline_mode = #tpu.pipeline_mode<synchronous>, transform_indices = @transform_2, window_bounds = array<i64: 2, 128, 128>}, {pipeline_mode = #tpu.pipeline_mode<synchronous>, transform_indices = @transform_3, window_bounds = array<i64: 2, 1, 128>}, {pipeline_mode = #tpu.pipeline_mode<synchronous>, transform_indices = @transform_4, window_bounds = array<i64: 2, 1, 128>}, {pipeline_mode = #tpu.pipeline_mode<synchronous>, transform_indices = @transform_5, window_bounds = array<i64: 2, 1, 1>}, {pipeline_mode = #tpu.pipeline_mode<synchronous>, transform_indices = @transform_6, window_bounds = array<i64: 2, 256, 512>}, {pipeline_mode = #tpu.pipeline_mode<synchronous>, transform_indices = @transform_7, window_bounds = array<i64: 2, 1, 512>}, {transform_indices = @transform_8, window_bounds = array<i64: 32, 128>}]} {
    %c0 = arith.constant 0 : index
    %c0_0 = arith.constant 0 : index
    %c0_1 = arith.constant 0 : index
    %0 = vector.load %arg1[%c0, %c0_0, %c0_1] : memref<32x8x128xf32, #tpu.memory_space<vmem>>, vector<32x8x128xf32>
    %1 = vector.shape_cast %0 : vector<32x8x128xf32> to vector<256x128xf32>
    %c0_2 = arith.constant 0 : index
    %c0_3 = arith.constant 0 : index
    %c0_4 = arith.constant 0 : index
    %2 = vector.load %arg2[%c0_2, %c0_3, %c0_4] : memref<32x8x1xf32, #tpu.memory_space<vmem>>, vector<32x8x1xf32>
    %cst = arith.constant dense<0.000000e+00> : vector<32x128xf32>
    %3 = vector.multi_reduction <add>, %0, %cst [1] : vector<32x8x128xf32> to vector<32x128xf32>
    %c0_5 = arith.constant 0 : index
    %c0_6 = arith.constant 0 : index
    %c0_7 = arith.constant 0 : index
    %4 = vector.load %arg3[%c0_5, %c0_6, %c0_7] : memref<2x128x128xf32, #tpu.memory_space<vmem>>, vector<1x128x128xf32>
    %5 = vector.shape_cast %4 : vector<1x128x128xf32> to vector<128x128xf32>
    %c0_8 = arith.constant 0 : index
    %c0_9 = arith.constant 0 : index
    %c0_10 = arith.constant 0 : index
    %6 = vector.load %arg4[%c0_8, %c0_9, %c0_10] : memref<2x1x128xf32, #tpu.memory_space<vmem>>, vector<1x1x128xf32>
    %7 = vector.shape_cast %6 : vector<1x1x128xf32> to vector<1x128xf32>
    %c0_11 = arith.constant 0 : index
    %c0_12 = arith.constant 0 : index
    %c0_13 = arith.constant 0 : index
    %8 = vector.load %arg5[%c0_11, %c0_12, %c0_13] : memref<2x1x128xf32, #tpu.memory_space<vmem>>, vector<1x1x128xf32>
    %9 = vector.shape_cast %8 : vector<1x1x128xf32> to vector<1x128xf32>
    %c0_14 = arith.constant 0 : index
    %c0_15 = arith.constant 0 : index
    %c0_16 = arith.constant 0 : index
    %10 = vector.load %arg6[%c0_14, %c0_15, %c0_16] : memref<2x1x1xf32, #tpu.memory_space<vmem>>, vector<1x1x1xf32>
    %11 = vector.shape_cast %10 : vector<1x1x1xf32> to vector<1x1xf32>
    %c0_17 = arith.constant 0 : index
    %c0_18 = arith.constant 0 : index
    %c0_19 = arith.constant 0 : index
    %12 = vector.load %arg7[%c0_17, %c0_18, %c0_19] : memref<2x256x512xf32, #tpu.memory_space<vmem>>, vector<1x256x512xf32>
    %13 = vector.shape_cast %12 : vector<1x256x512xf32> to vector<256x512xf32>
    %c0_20 = arith.constant 0 : index
    %c0_21 = arith.constant 0 : index
    %c0_22 = arith.constant 0 : index
    %14 = vector.load %arg8[%c0_20, %c0_21, %c0_22] : memref<2x1x512xf32, #tpu.memory_space<vmem>>, vector<1x1x512xf32>
    %15 = vector.shape_cast %14 : vector<1x1x512xf32> to vector<1x512xf32>
    %cst_23 = arith.constant 0.000000e+00 : f32
    %16 = vector.broadcast %cst_23 : f32 to vector<32x128xf32>
    %17 = arith.maximumf %3, %16 : vector<32x128xf32>
    %18 = vector.broadcast %9 : vector<1x128xf32> to vector<32x128xf32>
    %19 = arith.mulf %17, %18 : vector<32x128xf32>
    %cst_24 = arith.constant dense<0.000000e+00> : vector<32xf32>
    %20 = vector.multi_reduction <add>, %19, %cst_24 [1] : vector<32x128xf32> to vector<32xf32>
    %21 = vector.shape_cast %20 : vector<32xf32> to vector<32x1xf32>
    %cst_25 = arith.constant dense<0.000000e+00> : vector<256x128xf32>
    %22 = tpu.matmul %1, %5, %cst_25 {dimension_numbers = #tpu.dot_dimension_numbers<[1], [0], [0], [1], [0, 0, 1, 1], [], []>} : vector<256x128xf32>, vector<128x128xf32>, vector<256x128xf32> -> vector<256x128xf32>
    %23 = vector.broadcast %7 : vector<1x128xf32> to vector<256x128xf32>
    %24 = arith.addf %22, %23 : vector<256x128xf32>
    %25 = vector.shape_cast %24 : vector<256x128xf32> to vector<32x8x128xf32>
    %26 = vector.extract_strided_slice %22 {offsets = [0, 32], sizes = [256, 1], strides = [1, 1]} : vector<256x128xf32> to vector<256x1xf32>
    %27 = vector.shape_cast %26 : vector<256x1xf32> to vector<32x8x1xf32>
    %28 = vector.shape_cast %21 : vector<32x1xf32> to vector<32x1x1xf32>
    %29 = vector.broadcast %28 : vector<32x1x1xf32> to vector<32x8x1xf32>
    %30 = arith.addf %27, %29 : vector<32x8x1xf32>
    %31 = vector.shape_cast %11 : vector<1x1xf32> to vector<1x1x1xf32>
    %32 = vector.broadcast %31 : vector<1x1x1xf32> to vector<32x8x1xf32>
    %33 = arith.addf %30, %32 : vector<32x8x1xf32>
    %cst_26 = arith.constant 0.000000e+00 : f32
    %34 = vector.broadcast %cst_26 : f32 to vector<32x8x1xf32>
    %35 = arith.cmpf ogt, %33, %34 : vector<32x8x1xf32>
    %cst_27 = arith.constant 0.00999999977 : f32
    %36 = vector.broadcast %cst_27 : f32 to vector<32x8x1xf32>
    %37 = arith.mulf %36, %33 : vector<32x8x1xf32>
    %38 = arith.select %35, %33, %37 : vector<32x8x1xi1>, vector<32x8x1xf32>
    %39 = arith.addf %38, %2 : vector<32x8x1xf32>
    %cst_28 = arith.constant dense<0xFF800000> : vector<32x1xf32>
    %40 = vector.multi_reduction <maximumf>, %39, %cst_28 [1] : vector<32x8x1xf32> to vector<32x1xf32>
    %41 = vector.shape_cast %40 : vector<32x1xf32> to vector<32x1x1xf32>
    %42 = vector.broadcast %41 : vector<32x1x1xf32> to vector<32x8x1xf32>
    %43 = arith.subf %39, %42 : vector<32x8x1xf32>
    %44 = math.exp %43 : vector<32x8x1xf32>
    %cst_29 = arith.constant dense<0.000000e+00> : vector<32x1xf32>
    %45 = vector.multi_reduction <add>, %44, %cst_29 [1] : vector<32x8x1xf32> to vector<32x1xf32>
    %46 = vector.shape_cast %45 : vector<32x1xf32> to vector<32x1x1xf32>
    %47 = tpu.reciprocal %46 {approx = true} : vector<32x1x1xf32> -> vector<32x1x1xf32>
    %48 = vector.broadcast %47 : vector<32x1x1xf32> to vector<32x8x1xf32>
    %49 = arith.mulf %44, %48 : vector<32x8x1xf32>
    %50 = vector.broadcast %49 : vector<32x8x1xf32> to vector<32x8x128xf32>
    %51 = arith.mulf %50, %25 : vector<32x8x128xf32>
    %cst_30 = arith.constant dense<0.000000e+00> : vector<32x128xf32>
    %52 = vector.multi_reduction <add>, %51, %cst_30 [1] : vector<32x8x128xf32> to vector<32x128xf32>
    %cst_31 = arith.constant 0.000000e+00 : f32
    %53 = vector.broadcast %cst_31 : f32 to vector<32x128xf32>
    %54 = arith.cmpf ogt, %52, %53 : vector<32x128xf32>
    %55 = math.exp %52 : vector<32x128xf32>
    %cst_32 = arith.constant 1.000000e+00 : f32
    %56 = vector.broadcast %cst_32 : f32 to vector<32x128xf32>
    %57 = arith.subf %55, %56 : vector<32x128xf32>
    %58 = arith.select %54, %52, %57 : vector<32x128xi1>, vector<32x128xf32>
    %59 = tpu.concatenate %58, %3 in 1 : vector<32x128xf32>, vector<32x128xf32> -> vector<32x256xf32>
    %cst_33 = arith.constant dense<0.000000e+00> : vector<32x512xf32>
    %60 = tpu.matmul %59, %13, %cst_33 {dimension_numbers = #tpu.dot_dimension_numbers<[1], [0], [0], [1], [0, 0, 1, 1], [], []>} : vector<32x256xf32>, vector<256x512xf32>, vector<32x512xf32> -> vector<32x512xf32>
    %61 = vector.broadcast %15 : vector<1x512xf32> to vector<32x512xf32>
    %62 = arith.addf %60, %61 : vector<32x512xf32>
    %63 = vector.extract_strided_slice %62 {offsets = [0, 0], sizes = [32, 128], strides = [1, 1]} : vector<32x512xf32> to vector<32x128xf32>
    %64 = arith.negf %63 : vector<32x128xf32>
    %65 = math.exp %64 : vector<32x128xf32>
    %cst_34 = arith.constant 1.000000e+00 : f32
    %66 = vector.broadcast %cst_34 : f32 to vector<32x128xf32>
    %67 = arith.addf %66, %65 : vector<32x128xf32>
    %68 = arith.divf %66, %67 : vector<32x128xf32>
    %69 = vector.extract_strided_slice %62 {offsets = [0, 128], sizes = [32, 128], strides = [1, 1]} : vector<32x512xf32> to vector<32x128xf32>
    %70 = arith.negf %69 : vector<32x128xf32>
    %71 = math.exp %70 : vector<32x128xf32>
    %cst_35 = arith.constant 1.000000e+00 : f32
    %72 = vector.broadcast %cst_35 : f32 to vector<32x128xf32>
    %73 = arith.addf %72, %71 : vector<32x128xf32>
    %74 = arith.divf %72, %73 : vector<32x128xf32>
    %75 = vector.extract_strided_slice %62 {offsets = [0, 256], sizes = [32, 128], strides = [1, 1]} : vector<32x512xf32> to vector<32x128xf32>
    %76 = vector.extract_strided_slice %62 {offsets = [0, 384], sizes = [32, 128], strides = [1, 1]} : vector<32x512xf32> to vector<32x128xf32>
    %77 = arith.mulf %68, %76 : vector<32x128xf32>
    %78 = arith.addf %75, %77 : vector<32x128xf32>
    %79 = math.tanh %78 : vector<32x128xf32>
    %cst_36 = arith.constant 1.000000e+00 : f32
    %80 = vector.broadcast %cst_36 : f32 to vector<32x128xf32>
    %81 = arith.subf %80, %74 : vector<32x128xf32>
    %82 = arith.mulf %81, %79 : vector<32x128xf32>
    %83 = arith.mulf %74, %3 : vector<32x128xf32>
    %84 = arith.addf %82, %83 : vector<32x128xf32>
    %c1 = arith.constant 1 : index
    %c0_37 = arith.constant 0 : index
    %c0_38 = arith.constant 0 : index
    %85 = vector.load %arg3[%c1, %c0_37, %c0_38] : memref<2x128x128xf32, #tpu.memory_space<vmem>>, vector<1x128x128xf32>
    %86 = vector.shape_cast %85 : vector<1x128x128xf32> to vector<128x128xf32>
    %c1_39 = arith.constant 1 : index
    %c0_40 = arith.constant 0 : index
    %c0_41 = arith.constant 0 : index
    %87 = vector.load %arg4[%c1_39, %c0_40, %c0_41] : memref<2x1x128xf32, #tpu.memory_space<vmem>>, vector<1x1x128xf32>
    %88 = vector.shape_cast %87 : vector<1x1x128xf32> to vector<1x128xf32>
    %c1_42 = arith.constant 1 : index
    %c0_43 = arith.constant 0 : index
    %c0_44 = arith.constant 0 : index
    %89 = vector.load %arg5[%c1_42, %c0_43, %c0_44] : memref<2x1x128xf32, #tpu.memory_space<vmem>>, vector<1x1x128xf32>
    %90 = vector.shape_cast %89 : vector<1x1x128xf32> to vector<1x128xf32>
    %c1_45 = arith.constant 1 : index
    %c0_46 = arith.constant 0 : index
    %c0_47 = arith.constant 0 : index
    %91 = vector.load %arg6[%c1_45, %c0_46, %c0_47] : memref<2x1x1xf32, #tpu.memory_space<vmem>>, vector<1x1x1xf32>
    %92 = vector.shape_cast %91 : vector<1x1x1xf32> to vector<1x1xf32>
    %c1_48 = arith.constant 1 : index
    %c0_49 = arith.constant 0 : index
    %c0_50 = arith.constant 0 : index
    %93 = vector.load %arg7[%c1_48, %c0_49, %c0_50] : memref<2x256x512xf32, #tpu.memory_space<vmem>>, vector<1x256x512xf32>
    %94 = vector.shape_cast %93 : vector<1x256x512xf32> to vector<256x512xf32>
    %c1_51 = arith.constant 1 : index
    %c0_52 = arith.constant 0 : index
    %c0_53 = arith.constant 0 : index
    %95 = vector.load %arg8[%c1_51, %c0_52, %c0_53] : memref<2x1x512xf32, #tpu.memory_space<vmem>>, vector<1x1x512xf32>
    %96 = vector.shape_cast %95 : vector<1x1x512xf32> to vector<1x512xf32>
    %cst_54 = arith.constant 0.000000e+00 : f32
    %97 = vector.broadcast %cst_54 : f32 to vector<32x128xf32>
    %98 = arith.maximumf %84, %97 : vector<32x128xf32>
    %99 = vector.broadcast %90 : vector<1x128xf32> to vector<32x128xf32>
    %100 = arith.mulf %98, %99 : vector<32x128xf32>
    %cst_55 = arith.constant dense<0.000000e+00> : vector<32xf32>
    %101 = vector.multi_reduction <add>, %100, %cst_55 [1] : vector<32x128xf32> to vector<32xf32>
    %102 = vector.shape_cast %101 : vector<32xf32> to vector<32x1xf32>
    %cst_56 = arith.constant dense<0.000000e+00> : vector<256x128xf32>
    %103 = tpu.matmul %1, %86, %cst_56 {dimension_numbers = #tpu.dot_dimension_numbers<[1], [0], [0], [1], [0, 0, 1, 1], [], []>} : vector<256x128xf32>, vector<128x128xf32>, vector<256x128xf32> -> vector<256x128xf32>
    %104 = vector.broadcast %88 : vector<1x128xf32> to vector<256x128xf32>
    %105 = arith.addf %103, %104 : vector<256x128xf32>
    %106 = vector.shape_cast %105 : vector<256x128xf32> to vector<32x8x128xf32>
    %107 = vector.extract_strided_slice %103 {offsets = [0, 32], sizes = [256, 1], strides = [1, 1]} : vector<256x128xf32> to vector<256x1xf32>
    %108 = vector.shape_cast %107 : vector<256x1xf32> to vector<32x8x1xf32>
    %109 = vector.shape_cast %102 : vector<32x1xf32> to vector<32x1x1xf32>
    %110 = vector.broadcast %109 : vector<32x1x1xf32> to vector<32x8x1xf32>
    %111 = arith.addf %108, %110 : vector<32x8x1xf32>
    %112 = vector.shape_cast %92 : vector<1x1xf32> to vector<1x1x1xf32>
    %113 = vector.broadcast %112 : vector<1x1x1xf32> to vector<32x8x1xf32>
    %114 = arith.addf %111, %113 : vector<32x8x1xf32>
    %cst_57 = arith.constant 0.000000e+00 : f32
    %115 = vector.broadcast %cst_57 : f32 to vector<32x8x1xf32>
    %116 = arith.cmpf ogt, %114, %115 : vector<32x8x1xf32>
    %cst_58 = arith.constant 0.00999999977 : f32
    %117 = vector.broadcast %cst_58 : f32 to vector<32x8x1xf32>
    %118 = arith.mulf %117, %114 : vector<32x8x1xf32>
    %119 = arith.select %116, %114, %118 : vector<32x8x1xi1>, vector<32x8x1xf32>
    %120 = arith.addf %119, %2 : vector<32x8x1xf32>
    %cst_59 = arith.constant dense<0xFF800000> : vector<32x1xf32>
    %121 = vector.multi_reduction <maximumf>, %120, %cst_59 [1] : vector<32x8x1xf32> to vector<32x1xf32>
    %122 = vector.shape_cast %121 : vector<32x1xf32> to vector<32x1x1xf32>
    %123 = vector.broadcast %122 : vector<32x1x1xf32> to vector<32x8x1xf32>
    %124 = arith.subf %120, %123 : vector<32x8x1xf32>
    %125 = math.exp %124 : vector<32x8x1xf32>
    %cst_60 = arith.constant dense<0.000000e+00> : vector<32x1xf32>
    %126 = vector.multi_reduction <add>, %125, %cst_60 [1] : vector<32x8x1xf32> to vector<32x1xf32>
    %127 = vector.shape_cast %126 : vector<32x1xf32> to vector<32x1x1xf32>
    %128 = tpu.reciprocal %127 {approx = true} : vector<32x1x1xf32> -> vector<32x1x1xf32>
    %129 = vector.broadcast %128 : vector<32x1x1xf32> to vector<32x8x1xf32>
    %130 = arith.mulf %125, %129 : vector<32x8x1xf32>
    %131 = vector.broadcast %130 : vector<32x8x1xf32> to vector<32x8x128xf32>
    %132 = arith.mulf %131, %106 : vector<32x8x128xf32>
    %cst_61 = arith.constant dense<0.000000e+00> : vector<32x128xf32>
    %133 = vector.multi_reduction <add>, %132, %cst_61 [1] : vector<32x8x128xf32> to vector<32x128xf32>
    %cst_62 = arith.constant 0.000000e+00 : f32
    %134 = vector.broadcast %cst_62 : f32 to vector<32x128xf32>
    %135 = arith.cmpf ogt, %133, %134 : vector<32x128xf32>
    %136 = math.exp %133 : vector<32x128xf32>
    %cst_63 = arith.constant 1.000000e+00 : f32
    %137 = vector.broadcast %cst_63 : f32 to vector<32x128xf32>
    %138 = arith.subf %136, %137 : vector<32x128xf32>
    %139 = arith.select %135, %133, %138 : vector<32x128xi1>, vector<32x128xf32>
    %140 = tpu.concatenate %139, %84 in 1 : vector<32x128xf32>, vector<32x128xf32> -> vector<32x256xf32>
    %cst_64 = arith.constant dense<0.000000e+00> : vector<32x512xf32>
    %141 = tpu.matmul %140, %94, %cst_64 {dimension_numbers = #tpu.dot_dimension_numbers<[1], [0], [0], [1], [0, 0, 1, 1], [], []>} : vector<32x256xf32>, vector<256x512xf32>, vector<32x512xf32> -> vector<32x512xf32>
    %142 = vector.broadcast %96 : vector<1x512xf32> to vector<32x512xf32>
    %143 = arith.addf %141, %142 : vector<32x512xf32>
    %144 = vector.extract_strided_slice %143 {offsets = [0, 0], sizes = [32, 128], strides = [1, 1]} : vector<32x512xf32> to vector<32x128xf32>
    %145 = arith.negf %144 : vector<32x128xf32>
    %146 = math.exp %145 : vector<32x128xf32>
    %cst_65 = arith.constant 1.000000e+00 : f32
    %147 = vector.broadcast %cst_65 : f32 to vector<32x128xf32>
    %148 = arith.addf %147, %146 : vector<32x128xf32>
    %149 = arith.divf %147, %148 : vector<32x128xf32>
    %150 = vector.extract_strided_slice %143 {offsets = [0, 128], sizes = [32, 128], strides = [1, 1]} : vector<32x512xf32> to vector<32x128xf32>
    %151 = arith.negf %150 : vector<32x128xf32>
    %152 = math.exp %151 : vector<32x128xf32>
    %cst_66 = arith.constant 1.000000e+00 : f32
    %153 = vector.broadcast %cst_66 : f32 to vector<32x128xf32>
    %154 = arith.addf %153, %152 : vector<32x128xf32>
    %155 = arith.divf %153, %154 : vector<32x128xf32>
    %156 = vector.extract_strided_slice %143 {offsets = [0, 256], sizes = [32, 128], strides = [1, 1]} : vector<32x512xf32> to vector<32x128xf32>
    %157 = vector.extract_strided_slice %143 {offsets = [0, 384], sizes = [32, 128], strides = [1, 1]} : vector<32x512xf32> to vector<32x128xf32>
    %158 = arith.mulf %149, %157 : vector<32x128xf32>
    %159 = arith.addf %156, %158 : vector<32x128xf32>
    %160 = math.tanh %159 : vector<32x128xf32>
    %cst_67 = arith.constant 1.000000e+00 : f32
    %161 = vector.broadcast %cst_67 : f32 to vector<32x128xf32>
    %162 = arith.subf %161, %155 : vector<32x128xf32>
    %163 = arith.mulf %162, %160 : vector<32x128xf32>
    %164 = arith.mulf %155, %84 : vector<32x128xf32>
    %165 = arith.addf %163, %164 : vector<32x128xf32>
    %c0_68 = arith.constant 0 : index
    %c0_69 = arith.constant 0 : index
    %166 = vector.load %arg9[%c0_68, %c0_69] : memref<32x128xf32, #tpu.memory_space<vmem>>, vector<32x128xf32>
    tpu.vector_store %arg9[%c0_68, %c0_69], %165 {strides = array<i32>} : memref<32x128xf32, #tpu.memory_space<vmem>>, vector<32x128xf32>,
    return
  }
  func.func @transform_0(%arg0: i32) -> (i32, i32, i32) {
    %c0_i32 = arith.constant 0 : i32
    %c0_i32_0 = arith.constant 0 : i32
    %c0_i32_1 = arith.constant 0 : i32
    return %arg0, %c0_i32, %c0_i32_0 : i32, i32, i32
  }
  func.func @transform_1(%arg0: i32) -> (i32, i32, i32) {
    %c0_i32 = arith.constant 0 : i32
    %c0_i32_0 = arith.constant 0 : i32
    %c0_i32_1 = arith.constant 0 : i32
    return %arg0, %c0_i32, %c0_i32_0 : i32, i32, i32
  }
  func.func @transform_2(%arg0: i32) -> (i32, i32, i32) {
    %c0_i32 = arith.constant 0 : i32
    %c0_i32_0 = arith.constant 0 : i32
    %c0_i32_1 = arith.constant 0 : i32
    %c0_i32_2 = arith.constant 0 : i32
    return %c0_i32, %c0_i32_0, %c0_i32_1 : i32, i32, i32
  }
  func.func @transform_3(%arg0: i32) -> (i32, i32, i32) {
    %c0_i32 = arith.constant 0 : i32
    %c0_i32_0 = arith.constant 0 : i32
    %c0_i32_1 = arith.constant 0 : i32
    %c0_i32_2 = arith.constant 0 : i32
    return %c0_i32, %c0_i32_0, %c0_i32_1 : i32, i32, i32
  }
  func.func @transform_4(%arg0: i32) -> (i32, i32, i32) {
    %c0_i32 = arith.constant 0 : i32
    %c0_i32_0 = arith.constant 0 : i32
    %c0_i32_1 = arith.constant 0 : i32
    %c0_i32_2 = arith.constant 0 : i32
    return %c0_i32, %c0_i32_0, %c0_i32_1 : i32, i32, i32
  }
  func.func @transform_5(%arg0: i32) -> (i32, i32, i32) {
    %c0_i32 = arith.constant 0 : i32
    %c0_i32_0 = arith.constant 0 : i32
    %c0_i32_1 = arith.constant 0 : i32
    %c0_i32_2 = arith.constant 0 : i32
    return %c0_i32, %c0_i32_0, %c0_i32_1 : i32, i32, i32
  }
  func.func @transform_6(%arg0: i32) -> (i32, i32, i32) {
    %c0_i32 = arith.constant 0 : i32
    %c0_i32_0 = arith.constant 0 : i32
    %c0_i32_1 = arith.constant 0 : i32
    %c0_i32_2 = arith.constant 0 : i32
    return %c0_i32, %c0_i32_0, %c0_i32_1 : i32, i32, i32
  }
  func.func @transform_7(%arg0: i32) -> (i32, i32, i32) {
    %c0_i32 = arith.constant 0 : i32
    %c0_i32_0 = arith.constant 0 : i32
    %c0_i32_1 = arith.constant 0 : i32
    %c0_i32_2 = arith.constant 0 : i32
    return %c0_i32, %c0_i32_0, %c0_i32_1 : i32, i32, i32
  }
  func.func @transform_8(%arg0: i32) -> (i32, i32) {
    %c0_i32 = arith.constant 0 : i32
    %c0_i32_0 = arith.constant 0 : i32
    return %arg0, %c0_i32 : i32, i32
  }
}

</mosaic_0001>

<bundles_post_ra>
// kernel: tpu_custom_call.1
= control target key start
LH: loop header
LB: loop body
LE: loop exit
PB: predicated region body
PF: predicated region fallthrough
CT: control target
= control target key end

     0   :  { %s9474_s0 = inlined_call_operand.vmem [shape: f32[64,8,128], index: 0, kind: input, shape index: {}]   ;;  %s9475_s1 = inlined_call_operand.vmem [shape: f32[64,8,1], index: 1, kind: input, shape index: {}]   ;;  %s9476_s2 = inlined_call_operand.hbm [shape: f32[2,128,128], index: 2, kind: input, shape index: {}]   ;;  %s9477_s3 = inlined_call_operand.vmem [shape: f32[2,1,128], index: 3, kind: input, shape index: {}]   ;;  %s9478_s4 = inlined_call_operand.hbm [shape: f32[2,1,128], index: 4, kind: input, shape index: {}]   ;;  %s9479_s5 = inlined_call_operand.vmem [shape: f32[2,1,1], index: 5, kind: input, shape index: {}]   ;;  %s9480_s6 = inlined_call_operand.hbm [shape: f32[2,256,512], index: 6, kind: input, shape index: {}]   ;;  %s9481_s7 = inlined_call_operand.vmem [shape: f32[2,1,512], index: 7, kind: input, shape index: {}]   ;;  %s9482_s8 = inlined_call_operand.hbm [shape: f32[64,128], index: 8, kind: output, shape index: {}]  }
   0x1   :  { %9571 = sst [smem:[#allocation81_spill]] %s9476_s2 }
   0x2   :  { %9572 = sst [smem:[#allocation82_spill]] %s9478_s4 }
   0x3   :  { %13 = vsyncpa [#allocation3], 0 }
   0x4   :  { %14 = vsyncpa [#allocation6], 0 }
   0x5   :  { %15 = vsyncpa [#allocation4], 0 }
   0x6   :  { %17 = vsyncpa [#allocation4 + $0x1], 0  ;;  %s6459_s27 = smov 0   ;;  %s6461_s28 = smov 0  }
   0x7   :  { %s6463_s29 = smov 0   ;;  %s6465_s30 = smov 0  }
   0x8 LB: > { %9573 = sst [smem:[#allocation12_spill]] %s6395_s29  ;;  %s6480_s9 = sadd.s32 4294967295, %s6399_s30   ;;  %s6399_s30 = sphi %s6465_s30, %s9812_s30   ;;  %s6395_s29 = sphi %s6463_s29, %s9814_s29   ;;  %s6391_s28 = sphi %s6461_s28, %s9816_s28   ;;  %s6387_s27 = sphi %s6459_s27, %s9815_s27  }
   0x9   : > { %s5548_s10 = sadd.s32 4294967294, %s6399_s30   ;;  %s6484_s11 = sadd.s32 1, %s6399_s30  }
   0xa   : > { %9574 = sst [smem:[#allocation13_spill]] %s6484_s11  ;;  %s208_s12 = sadd.s32 1, %s6395_s29 }
   0xb   : > { %s205_s13 = ssub.s32 %s6399_s30, %s6484_s11  ;;  %p218_p0 = scmp.ne.s32.totalorder %s6395_s29, %s6391_s28 }
   0xc   : > { %p206_p1 = scmp.eq.s32.totalorder %s205_s13, 0  ;;  %p219_p2 = scmp.eq.s32.totalorder %s6480_s9, 1 }
   0xd   : > { %p224_p3 = scmp.ne.s32.totalorder %s6391_s28, %s6387_s27  ;;  %p225_p4 = scmp.eq.s32.totalorder %s5548_s10, 1 }
   0xe   : > { %s6495_s14 = scalar_select %p206_p1, %s6395_s29, %s208_s12  }
   0xf   : > { %p6497_p5 = por %p219_p2, %p218_p0  ;;  %p6501_p6 = por %p225_p4, %p224_p3 }
  0x10   : > { %9575 = sst [smem:[#allocation14_spill]] %s6495_s14  ;;  %p5549_p7 = scmp.ge.s32.totalorder %s6399_s30, 1 }
  0x11   : > { %p232_p8 = scmp.lt.s32.totalorder %s6399_s30, 3  ;;  %p5680_p9 = scmp.eq.s32.totalorder %s6480_s9, 0 }
  0x12   : > { %s9579_s4 = sld [smem:[#allocation82_spill]]  ;;  %s6401_s21 = smov [#allocation5]  }
  0x13   : > { %p6508_p10 = pnand %p5549_p7, %p232_p8  ;;  %s262_s22 = sshll.u32 %s6401_s21, 4  ;;  %s263_s22 = int_to_ptr.vmem [resolvable:$true] %s262_s22 }
  0x14   : > { %s9581_s2 = sld [smem:[#allocation81_spill]]  ;;  %s6402_s10 = smov 16  }
  0x15   : > { %p5666_p11 = pneg %p6508_p10  ;;  %s6403_s12 = smov 1  }
  0x16   : > { %s6404_s13 = smov [#allocation2]   ;;  %s6405_s19 = smov 128  }
  0x17   : > { %p6519_p12 = pnand %p5680_p9, %p5666_p11  ;;  %s245_s18 = sshll.u32 %s6404_s13, 4  ;;  %s246_s18 = int_to_ptr.vmem [resolvable:$true] %s245_s18 }
  0x18   : > { %s260_s20 = sshll.u32 %s9579_s4, 4  ;;  %s6406_s21 = smov 8   ;;  %s261_s20 = int_to_ptr.hbm [resolvable:$true] %s260_s20 }
  0x19   : > { %5672 = dma.hbm_to_vmem [thread:$0]  (!%p6519_p12), %s261_s20, 32, %s263_s22, [#allocation6], %s6402_s10, %s6402_s10, %s6403_s12  }
  0x1a   : > { %s243_s26 = sshll.u32 %s9581_s2, 4  ;;  %s277_s24 = sshll.u32 %s9480_s6, 4  ;;  %s244_s26 = int_to_ptr.hbm [resolvable:$true] %s243_s26  ;;  %s278_s24 = int_to_ptr.hbm [resolvable:$true] %s277_s24 }
  0x1b   : > { %5669 = dma.hbm_to_vmem [thread:$0]  (!%p6519_p12), %s244_s26, 4096, %s246_s18, [#allocation3], %s6405_s19, %s6405_s19, %s6406_s21  }
  0x1c   : > { %s6407_s25 = smov [#allocation7]   ;;  %s6408_s29 = smov 512  }
  0x1d   : > { %s279_s2 = sshll.u32 %s6407_s25, 4  ;;  %s6409_s11 = smov 32   ;;  %s280_s2 = int_to_ptr.vmem [resolvable:$true] %s279_s2 }
  0x1e   : > { %5675 = dma.hbm_to_vmem [thread:$0]  (!%p6519_p12), %s278_s24, 32768, %s280_s2, [#allocation6], %s6408_s29, %s6408_s29, %s6409_s11  }
  0x1f   : > { %316 = sbr.rel (%p6508_p10) target bundleno = 1635 (0x663), region = 52 }
  0x24   : > { %6374 = dma.done.wait (%p5680_p9), [#allocation3], 4096  }
  0x25   : > { %6376 = vsyncadd (%p5680_p9), [#allocation3], 4294963200 }
  0x26   : > { %6378 = dma.done.wait (%p5680_p9), [#allocation6], 32800  }
  0x27   : > { %6380 = vsyncadd (%p5680_p9), [#allocation6], 4294934496  ;;  %s6546_s4 = sshll.u32 %s6480_s9, 5  ;;  %v650_v0 = vld [vmem:[#allocation2 + $0x78] sm:$0xff]  ;;  %v5735_v1 = vld [vmem:[%s9479_s5] ss:$0 sm:$0xff] }
  0x28   : > { %p367_p13 = scmp.lt.s32.totalorder %s6546_s4, 63  ;;  %957 = vmatpush.msra.mxu0 %v650_v0  ;;  %v649_v2 = vld [vmem:[#allocation2 + $0x70] sm:$0xff]  ;;  %s6410_s17 = smov 32   ;;  %v648_v3 = vld [vmem:[#allocation2 + $0x68] sm:$0xff]  ;;  %v647_v4 = vld [vmem:[#allocation2 + $0x60] sm:$0xff]  ;;  %vm883_vm0 = vcmask 1041409  }
  0x29   : > { %1207 = vrot.lane.b32.xlu0 %v5735_v1, %s6410_s17  ;;  %v646_v5 = vld [vmem:[#allocation2 + $0x58] sm:$0xff]  ;;  %v645_v6 = vld [vmem:[#allocation2 + $0x50] sm:$0xff]  ;;  %v644_v17 = vld [vmem:[#allocation2 + $0x48] sm:$0xff]  ;;  %vm886_vm1 = vcmask 1042434   ;;  %vm889_vm2 = vcmask 1043459   ;;  %vm892_vm3 = vcmask 1044484  }
  0x2a   : > { %s368_s2 = scalar_select %p367_p13, %s6546_s4, 63  ;;  %958 = vmatpush.msra.mxu0 %v649_v2  ;;  %v643_v31 = vld [vmem:[#allocation2 + $0x40] sm:$0xff]  ;;  %v642_v38 = vld [vmem:[#allocation2 + $0x38] sm:$0xff]  ;;  %v641_v45 = vld [vmem:[#allocation2 + $0x30] sm:$0xff]  ;;  %vm895_vm4 = vcmask 1045509   ;;  %vm898_vm5 = vcmask 1046534  }
  0x2b   : > { %v640_v51 = vld [vmem:[#allocation2 + $0x28] sm:$0xff]  ;;  %v6606_v56 = vld [vmem:[#allocation5] ss:$0 sm:$0xff]  ;;  %v638_v1 = vld [vmem:[#allocation2 + $0x18] sm:$0xff]  ;;  %vm901_vm6 = vcmask 1047559   ;;  %vm1498_vm9 = vcmask 269568  }
  0x2c   : > { %s5560_s14 = sshll.u32 %s368_s2, 3  ;;  %959 = vmatpush.msra.mxu0 %v648_v3  ;;  %v639_v58 = vld [vmem:[#allocation2 + $0x20] sm:$0xff]  ;;  %s363_s9 = sand.u32 1, %s6391_s28  }
  0x2d   : > { %s6557_s22 = scalar_lea.vmem %s9475_s1, %s5560_s14  ;;  %s6562_s10 = scalar_lea.vmem %s9474_s0, %s5560_s14 }
  0x2e   : > { %v6565_v7 = vld [vmem:[%s6562_s10] sm:$0xff]  ;;  %960 = vmatpush.msra.mxu0 %v647_v4  ;;  %v416_v8 = vld [vmem:[%s6557_s22 + $0x28] sm:$0xff]  ;;  %v6573_v11 = vld [vmem:[%s6562_s10 + $0x10] sm:$0xff]  ;;  %s5558_s20 = sshll.u32 %s363_s9, 5  ;;  %s5428_s18 = scalar_lea.sflag [#allocation4], %s363_s9 }
  0x2f   : > { %v443_v9 = vrot.slane %v6565_v7, 4  ;;  %v6570_v10 = vld [vmem:[%s6562_s10 + $0x8] sm:$0xff]  ;;  %v455_v13 = vrot.slane %v6573_v11, 4  ;;  %v6578_v14 = vld [vmem:[%s6562_s10 + $0x18] sm:$0xff]  ;;  %v6581_v15 = vld [vmem:[%s6562_s10 + $0x20] sm:$0xff]  ;;  %s6349_s25 = scalar_lea.hbm %s9482_s8, 64 }
  0x30   : > { %v449_v12 = vrot.slane %v6570_v10, 4  ;;  %v6584_v16 = vld [vmem:[%s6562_s10 + $0x28] sm:$0xff]  ;;  %961 = vmatpush.msra.mxu0 %v646_v5  ;;  %v6588_v19 = vld [vmem:[%s6562_s10 + $0x30] sm:$0xff]  ;;  %v461_v20 = vrot.slane %v6578_v14, 4  ;;  %v467_v21 = vrot.slane %v6581_v15, 4  ;;  %v6597_v25 = vld [vmem:[%s6562_s10 + $0x38] sm:$0xff] }
  0x31   : > { %v444_v18 = vadd.f32 %v443_v9, %v6565_v7  ;;  %v473_v22 = vrot.slane %v6584_v16, 4  ;;  %1380 = vrot.lane.b32.xlu0 %v416_v8, %s6410_s17  ;;  %v456_v24 = vadd.f32 %v455_v13, %v6573_v11  ;;  %v479_v26 = vrot.slane %v6588_v19, 4  ;;  %v637_v8 = vld [vmem:[#allocation2 + $0x10] sm:$0xff] }
  0x32   : > { %v450_v23 = vadd.f32 %v449_v12, %v6570_v10  ;;  %962 = vmatpush.msra.mxu0 %v645_v6  ;;  %v462_v28 = vadd.f32 %v461_v20, %v6578_v14  ;;  %v468_v29 = vadd.f32 %v467_v21, %v6581_v15  ;;  %v485_v37 = vrot.slane %v6597_v25, 4  ;;  %v411_v12 = vld [vmem:[%s6557_s22] sm:$0xff] }
  0x33   : > { %v445_v27 = vrot.slane %v444_v18, 2  ;;  %v474_v30 = vadd.f32 %v473_v22, %v6584_v16  ;;  %v457_v33 = vrot.slane %v456_v24, 2  ;;  %v480_v41 = vadd.f32 %v479_v26, %v6588_v19  ;;  %1370 = vrot.lane.b32.xlu1 %v411_v12, %s6410_s17  ;;  %v635_v26 = vld [vmem:[#allocation2] sm:$0xff] }
  0x34   : > { %v451_v32 = vrot.slane %v450_v23, 2  ;;  %963 = vmatpush.msra.mxu0 %v644_v17  ;;  %v463_v35 = vrot.slane %v462_v28, 2  ;;  %v469_v36 = vrot.slane %v468_v29, 2  ;;  %v486_v50 = vadd.f32 %v485_v37, %v6597_v25 }
  0x35   : > { %v446_v34 = vadd.f32 %v445_v27, %v444_v18  ;;  %v458_v40 = vadd.f32 %v457_v33, %v456_v24  ;;  %v475_v44 = vrot.slane %v474_v30, 2  ;;  %v481_v55 = vrot.slane %v480_v41, 2  ;;  %v636_v18 = vld [vmem:[#allocation2 + $0x8] sm:$0xff] }
  0x36   : > { %v452_v39 = vadd.f32 %v451_v32, %v450_v23  ;;  %964 = vmatpush.msra.mxu0 %v643_v31  ;;  %v464_v43 = vadd.f32 %v463_v35, %v462_v28  ;;  %v470_v48 = vadd.f32 %v469_v36, %v468_v29  ;;  %v487_v0 = vrot.slane %v486_v50, 2 }
  0x37   : > { %v447_v42 = vrot.slane %v446_v34, 1  ;;  %v459_v47 = vrot.slane %v458_v40, 1  ;;  %v476_v57 = vadd.f32 %v475_v44, %v474_v30  ;;  %v482_v3 = vadd.f32 %v481_v55, %v480_v41 }
  0x38   : > { %v453_v46 = vrot.slane %v452_v39, 1  ;;  %965 = vmatpush.msra.mxu0 %v642_v38  ;;  %v465_v49 = vrot.slane %v464_v43, 1  ;;  %v471_v61 = vrot.slane %v470_v48, 1  ;;  %v488_v13 = vadd.f32 %v487_v0, %v486_v50  ;;  %v6646_v50 = vld [vmem:[%s6562_s10 + $0x48] sm:$0xff] }
  0x39   : > { %v448_v52 = vadd.f32 %v447_v42, %v446_v34  ;;  %v460_v54 = vadd.f32 %v459_v47, %v458_v40  ;;  %v477_v6 = vrot.slane %v476_v57, 1  ;;  %v483_v21 = vrot.slane %v482_v3, 1 }
  0x3a   : > { %v454_v53 = vadd.f32 %v453_v46, %v452_v39  ;;  %966 = vmatpush.msra.mxu0 %v641_v45  ;;  %v6612_v63 = vadd.f32 %v465_v49, %v464_v43  ;;  %v6615_v9 = vadd.f32 %v471_v61, %v470_v48  ;;  %v489_v28 = vrot.slane %v488_v13, 1  ;;  %v6670_v61 = vld [vmem:[%s6562_s10 + $0x68] sm:$0xff] }
  0x3b   : > { %v785_v2 = vmax.f32 %v460_v54, 0.0  ;;  %v783_v4 = vmax.f32 %v448_v52, 0.0  ;;  %v6622_v24 = vadd.f32 %v477_v6, %v476_v57  ;;  %v6626_v31 = vadd.f32 %v483_v21, %v482_v3 }
  0x3c   : > { %v784_v59 = vmax.f32 %v454_v53, 0.0  ;;  %v2747_v60 = vsel %vm883_vm0, %v454_v53, %v448_v52  ;;  %967 = vmatpush.msra.mxu0 %v640_v51  ;;  %v786_v17 = vmax.f32 %v6612_v63, 0.0  ;;  %v787_v27 = vmax.f32 %v6615_v9, 0.0  ;;  %v6650_v51 = vld [vmem:[%s6562_s10 + $0x50] sm:$0xff]  ;;  %v412_v52 = vld [vmem:[%s6557_s22 + $0x8] sm:$0xff]  ;;  %v6655_v53 = vld [vmem:[%s6562_s10 + $0x40] sm:$0xff] }
  0x3d   : > { %v6610_v62 = vsel %vm886_vm1, %v460_v54, %v2747_v60  ;;  %v820_v20 = vmul.f32 %v6606_v56, %v785_v2  ;;  %v818_v22 = vmul.f32 %v6606_v56, %v783_v4  ;;  %v788_v32 = vmax.f32 %v6622_v24, 0.0  ;;  %v6658_v54 = vld [vmem:[%s6562_s10 + $0x58] sm:$0xff]  ;;  %1372 = vrot.lane.b32.xlu2 %v412_v52, %s6410_s17  ;;  %v6666_v60 = vld [vmem:[%s6562_s10 + $0x60] sm:$0xff]  ;;  %v6676_v4 = vld [vmem:[%s6562_s10 + $0x70] sm:$0xff] }
  0x3e   : > { %968 = vmatpush.msra.mxu0 %v639_v58  ;;  %v819_v5 = vmul.f32 %v6606_v56, %v784_v59  ;;  %v821_v29 = vmul.f32 %v6606_v56, %v786_v17  ;;  %v822_v34 = vmul.f32 %v6606_v56, %v787_v27  ;;  %v6632_v35 = vadd.f32 %v489_v28, %v488_v13 }
  0x3f   : > { %v885_v30 = vrot.slane %v820_v20, 6  ;;  %v789_v37 = vmax.f32 %v6626_v31, 0.0  ;;  %v823_v39 = vmul.f32 %v6606_v56, %v788_v32  ;;  %v503_v55 = vrot.slane %v6650_v51, 4 }
  0x40   : > { %969 = vmatpush.msra.mxu0 %v638_v1  ;;  %v882_v23 = vrot.slane %v819_v5, 7  ;;  %v888_v36 = vrot.slane %v821_v29, 5  ;;  %v891_v40 = vrot.slane %v822_v34, 4  ;;  %v790_v41 = vmax.f32 %v6632_v35, 0.0  ;;  %v413_v34 = vld [vmem:[%s6557_s22 + $0x10] sm:$0xff] }
  0x41   : > { %v894_v43 = vrot.slane %v823_v39, 3  ;;  %v491_v58 = vrot.slane %v6655_v53, 4  ;;  %v504_v0 = vadd.f32 %v503_v55, %v6650_v51  ;;  %v515_v1 = vrot.slane %v6666_v60, 4 }
  0x42   : > { %970 = vmatpush.msra.mxu0 %v637_v8  ;;  %v884_v33 = vsel %vm883_vm0, %v882_v23, %v818_v22  ;;  %v825_v45 = vmul.f32 %v6606_v56, %v790_v41  ;;  %v521_v6 = vrot.slane %v6670_v61, 4  ;;  %v6681_v8 = vld [vmem:[%s6562_s10 + $0x78] sm:$0xff]  ;;  %v527_v17 = vrot.slane %v6676_v4, 4 }
  0x43   : > { %v887_v38 = vsel %vm886_vm1, %v885_v30, %v884_v33  ;;  %v492_v2 = vadd.f32 %v491_v58, %v6655_v53  ;;  %v505_v12 = vrot.slane %v504_v0, 2  ;;  %v516_v13 = vadd.f32 %v515_v1, %v6666_v60 }
  0x44   : > { %971 = vmatpush.msra.mxu0 %v636_v18  ;;  %v890_v42 = vsel %vm889_vm2, %v888_v36, %v887_v38  ;;  %v900_v48 = vrot.slane %v825_v45, 1  ;;  %v522_v22 = vadd.f32 %v521_v6, %v6670_v61  ;;  %v528_v27 = vadd.f32 %v527_v17, %v6676_v4 }
  0x45   : > { %v893_v44 = vsel %vm892_vm3, %v891_v40, %v890_v42  ;;  %v493_v18 = vrot.slane %v492_v2, 2  ;;  %v506_v23 = vadd.f32 %v505_v12, %v504_v0  ;;  %v533_v28 = vrot.slane %v6681_v8, 4  ;;  %1374 = vrot.lane.b32.xlu2 %v413_v34, %s6410_s17 }
  0x46   : > { %972 = vmatpush.msra.mxu0 %v635_v26  ;;  %v896_v47 = vsel %vm895_vm4, %v894_v43, %v893_v44  ;;  %v517_v26 = vrot.slane %v516_v13, 2  ;;  %v523_v33 = vrot.slane %v522_v22, 2  ;;  %v529_v38 = vrot.slane %v528_v27, 2 }
  0x47   : > { %973 = vmatmul.f32.vlgmr.msra.gmra.mxu0 %v6565_v7  ;;  %v824_v7 = vmul.f32 %v6606_v56, %v789_v37  ;;  %v494_v29 = vadd.f32 %v493_v18, %v492_v2  ;;  %v507_v36 = vrot.slane %v506_v23, 1  ;;  %v534_v39 = vadd.f32 %v533_v28, %v6681_v8 }
  0x48   : > { %v518_v37 = vadd.f32 %v517_v26, %v516_v13  ;;  %v530_v45 = vadd.f32 %v529_v38, %v528_v27 }
  0x49   : > { %v897_v46 = vrot.slane %v824_v7, 2  ;;  %v495_v40 = vrot.slane %v494_v29, 1  ;;  %v524_v7 = vadd.f32 %v523_v33, %v522_v22  ;;  %v6692_v43 = vadd.f32 %v507_v36, %v506_v23 }
  0x4a   : > { %v519_v44 = vrot.slane %v518_v37, 1  ;;  %v531_v52 = vrot.slane %v530_v45, 1 }
  0x4b   : > { %v899_v49 = vsel %vm898_vm5, %v897_v46, %v896_v47  ;;  %9582 = vst [vmem:[#allocation15_spill] sm:$0xff] %v6692_v43  ;;  %v535_v46 = vrot.slane %v534_v39, 2  ;;  %v496_v47 = vadd.f32 %v495_v40, %v494_v29 }
  0x4c   : > { %v902_v57 = vsel %vm901_vm6, %v900_v48, %v899_v49  ;;  %v6703_v1 = vadd.f32 %v531_v52, %v530_v45  ;;  %v418_v45 = vld [vmem:[%s6557_s22 + $0x38] sm:$0xff]  ;;  %v421_v52 = vld [vmem:[%s6557_s22 + $0x50] sm:$0xff] }
  0x4d   : > { %v536_v55 = vadd.f32 %v535_v46, %v534_v39  ;;  %v791_v58 = vmax.f32 %v496_v47, 0.0  ;;  %v417_v46 = vld [vmem:[%s6557_s22 + $0x30] sm:$0xff] }
  0x4e   : > { %9586 = vst [vmem:[#allocation19_spill] sm:$0xff] %v6703_v1  ;;  %v797_v22 = vmax.f32 %v6703_v1, 0.0 }
  0x4f   : > { %976 = vmatmul.f32.gmra.mxu0 %v6570_v10  ;;  %v497_v10 = vrot.slane %v6646_v50, 4  ;;  %v537_v2 = vrot.slane %v536_v55, 1  ;;  %v826_v6 = vmul.f32 %v6606_v56, %v791_v58  ;;  %v6762_v58 = vld [vmem:[%s6562_s10 + $0xa0] sm:$0xff] }
  0x51   : > { %v498_v59 = vadd.f32 %v497_v10, %v6646_v50  ;;  %v6696_v10 = vadd.f32 %v519_v44, %v518_v37  ;;  %v415_v44 = vld [vmem:[%s6557_s22 + $0x20] sm:$0xff] }
  0x53   : > { %v499_v3 = vrot.slane %v498_v59, 2  ;;  %9584 = vst [vmem:[#allocation17_spill] sm:$0xff] %v6696_v10 }
  0x55   : > { %v500_v20 = vadd.f32 %v499_v3, %v498_v59  ;;  %v795_v3 = vmax.f32 %v6696_v10, 0.0 }
  0x57   : > { %979 = vmatmul.f32.gmra.mxu0 %v6573_v11  ;;  %v509_v11 = vrot.slane %v6658_v54, 4  ;;  %v501_v30 = vrot.slane %v500_v20, 1  ;;  %v830_v23 = vmul.f32 %v6606_v56, %v795_v3  ;;  %v6768_v3 = vld [vmem:[%s6562_s10 + $0xa8] sm:$0xff] }
  0x59   : > { %v510_v5 = vadd.f32 %v509_v11, %v6658_v54  ;;  %v502_v41 = vadd.f32 %v501_v30, %v500_v20  ;;  %v414_v20 = vld [vmem:[%s6557_s22 + $0x18] sm:$0xff]  ;;  %v832_v30 = vmul.f32 %v6606_v56, %v797_v22 }
  0x5a   : > { %1376 = vrot.lane.b32.xlu2 %v414_v20, %s6410_s17  ;;  %v569_v20 = vrot.slane %v6768_v3, 4  ;;  %v6779_v22 = vld [vmem:[%s6562_s10 + $0xb8] sm:$0xff] }
  0x5b   : > { %949 = vadd.xlane.f32.xlu0 %v902_v57  ;;  %v511_v21 = vrot.slane %v510_v5, 2  ;;  %v792_v49 = vmax.f32 %v502_v41, 0.0  ;;  %v793_v57 = vmax.f32 %v6692_v43, 0.0  ;;  %v6712_v18 = vsel %vm883_vm0, %v502_v41, %v496_v47  ;;  %v419_v47 = vld [vmem:[%s6557_s22 + $0x40] sm:$0xff] }
  0x5c   : > { %v913_v38 = vrot.slane %v832_v30, 2  ;;  %v570_v30 = vadd.f32 %v569_v20, %v6768_v3 }
  0x5d   : > { %v512_v32 = vadd.f32 %v511_v21, %v510_v5  ;;  %v827_v0 = vmul.f32 %v6606_v56, %v792_v49  ;;  %v828_v5 = vmul.f32 %v6606_v56, %v793_v57  ;;  %v6715_v21 = vadd.f32 %v537_v2, %v536_v55  ;;  %v6748_v49 = vld [vmem:[%s6562_s10 + $0x90] sm:$0xff]  ;;  %v6754_v55 = vld [vmem:[%s6562_s10 + $0x80] sm:$0xff] }
  0x5e   : > { %v551_v57 = vrot.slane %v6748_v49, 4 }
  0x5f   : > { %982 = vmatmul.f32.gmra.mxu0 %v6578_v14  ;;  %v513_v42 = vrot.slane %v512_v32, 1  ;;  %v525_v14 = vrot.slane %v524_v7, 1  ;;  %v903_v17 = vrot.slane %v827_v0, 7  ;;  %9587 = vst [vmem:[#allocation20_spill] sm:$0xff] %v6715_v21  ;;  %v905_v28 = vrot.slane %v828_v5, 6 }
  0x60   : > { %v563_v5 = vrot.slane %v6762_v58, 4 }
  0x61   : > { %v6694_v48 = vadd.f32 %v513_v42, %v512_v32  ;;  %v6699_v59 = vadd.f32 %v525_v14, %v524_v7  ;;  %v904_v27 = vsel %vm883_vm0, %v903_v17, %v826_v6  ;;  %v909_v32 = vrot.slane %v830_v23, 4  ;;  %v6745_v14 = vld [vmem:[%s6562_s10 + $0x88] sm:$0xff]  ;;  %v6773_v6 = vld [vmem:[%s6562_s10 + $0xb0] sm:$0xff] }
  0x62   : > { %v906_v33 = vsel %vm886_vm1, %v905_v28, %v904_v27  ;;  %1378 = vrot.lane.b32.xlu2 %v415_v44, %s6410_s17  ;;  %v575_v27 = vrot.slane %v6773_v6, 4 }
  0x63   : > { %9583 = vst [vmem:[#allocation16_spill] sm:$0xff] %v6694_v48  ;;  %v794_v11 = vmax.f32 %v6694_v48, 0.0  ;;  %v796_v12 = vmax.f32 %v6699_v59, 0.0 }
  0x64   : > { %9585 = vst [vmem:[#allocation18_spill] sm:$0xff] %v6699_v59 }
  0x65   : > { %v829_v13 = vmul.f32 %v6606_v56, %v794_v11  ;;  %v831_v26 = vmul.f32 %v6606_v56, %v796_v12  ;;  %v539_v11 = vrot.slane %v6754_v55, 4 }
  0x67   : > { %985 = vmatmul.f32.gmra.mxu0 %v6581_v15  ;;  %v907_v29 = vrot.slane %v829_v13, 5  ;;  %v798_v15 = vmax.f32 %v6715_v21, 0.0  ;;  %v911_v34 = vrot.slane %v831_v26, 3  ;;  %v540_v12 = vadd.f32 %v539_v11, %v6754_v55 }
  0x68   : > { %v564_v26 = vadd.f32 %v563_v5, %v6762_v58 }
  0x69   : > { %v833_v36 = vmul.f32 %v6606_v56, %v798_v15  ;;  %v908_v37 = vsel %vm889_vm2, %v907_v29, %v906_v33  ;;  %v541_v28 = vrot.slane %v540_v12, 2 }
  0x6a   : > { %v910_v39 = vsel %vm892_vm3, %v909_v32, %v908_v37  ;;  %1382 = vrot.lane.b32.xlu2 %v417_v46, %s6410_s17  ;;  %v565_v33 = vrot.slane %v564_v26, 2 }
  0x6b   : > { %v912_v40 = vsel %vm895_vm4, %v911_v34, %v910_v39  ;;  %v915_v41 = vrot.slane %v833_v36, 1  ;;  %v576_v34 = vadd.f32 %v575_v27, %v6773_v6  ;;  %v581_v36 = vrot.slane %v6779_v22, 4 }
  0x6c   : > { %v914_v42 = vsel %vm898_vm5, %v913_v38, %v912_v40  ;;  %v542_v37 = vadd.f32 %v541_v28, %v540_v12  ;;  %v571_v40 = vrot.slane %v570_v30, 2  ;;  %v566_v44 = vadd.f32 %v565_v33, %v564_v26 }
  0x6d   : > { %v916_v7 = vsel %vm901_vm6, %v915_v41, %v914_v42  ;;  %v422_v41 = vld [vmem:[%s6557_s22 + $0x58] sm:$0xff]  ;;  %v423_v42 = vld [vmem:[%s6557_s22 + $0x60] sm:$0xff]  ;;  %v582_v46 = vadd.f32 %v581_v36, %v6779_v22 }
  0x6e   : > { %951 = vadd.xlane.f32.xlu1 %v916_v7  ;;  %v567_v11 = vrot.slane %v566_v44, 1 }
  0x6f   : > { %988 = vmatmul.f32.gmra.mxu0 %v6584_v16  ;;  %1384 = vrot.lane.b32.xlu0 %v418_v45, %s6410_s17  ;;  %v420_v16 = vld [vmem:[%s6557_s22 + $0x48] sm:$0xff]  ;;  %v577_v45 = vrot.slane %v576_v34, 2 }
  0x72   : > { %1386 = vrot.lane.b32.xlu2 %v419_v47, %s6410_s17 }
  0x77   : > { %991 = vmatmul.f32.gmra.mxu0 %v6588_v19  ;;  %1388 = vrot.lane.b32.xlu0 %v420_v16, %s6410_s17  ;;  %v545_v19 = vrot.slane %v6745_v14, 4  ;;  %v543_v16 = vrot.slane %v542_v37, 1 }
  0x79   : > { %v546_v0 = vadd.f32 %v545_v19, %v6745_v14 }
  0x7a   : > { %1390 = vrot.lane.b32.xlu2 %v421_v52, %s6410_s17  ;;  %v572_v52 = vadd.f32 %v571_v40, %v570_v30  ;;  %v425_v40 = vld [vmem:[%s6557_s22 + $0x70] sm:$0xff] }
  0x7b   : > { %v547_v13 = vrot.slane %v546_v0, 2 }
  0x7c   : > { %v573_v5 = vrot.slane %v572_v52, 1 }
  0x7d   : > { %v548_v29 = vadd.f32 %v547_v13, %v546_v0  ;;  %v583_v0 = vrot.slane %v582_v46, 2  ;;  %v6801_v13 = vadd.f32 %v567_v11, %v566_v44 }
  0x7e   : > { %v6804_v26 = vadd.f32 %v573_v5, %v572_v52 }
  0x7f   : > { %994 = vmatmul.f32.gmra.mxu0 %v6597_v25  ;;  %v6757_v25 = vld [vmem:[%s6562_s10 + $0x98] sm:$0xff]  ;;  %v549_v38 = vrot.slane %v548_v29, 1  ;;  %1392 = vrot.lane.b32.xlu0 %v422_v41, %s6410_s17  ;;  %9592 = vst [vmem:[#allocation25_spill] sm:$0xff] %v6801_v13  ;;  %v584_v20 = vadd.f32 %v583_v0, %v582_v46 }
  0x80   : > { %v557_v2 = vrot.slane %v6757_v25, 4  ;;  %9593 = vst [vmem:[#allocation26_spill] sm:$0xff] %v6804_v26 }
  0x81   : > { %v6792_v47 = vadd.f32 %v549_v38, %v548_v29  ;;  %v585_v30 = vrot.slane %v584_v20, 1 }
  0x82   : > { %v558_v17 = vadd.f32 %v557_v2, %v6757_v25  ;;  %1394 = vrot.lane.b32.xlu2 %v423_v42, %s6410_s17  ;;  %v6796_v2 = vadd.f32 %v543_v16, %v542_v37 }
  0x83   : > { %9588 = vst [vmem:[#allocation21_spill] sm:$0xff] %v6792_v47  ;;  %v800_v12 = vmax.f32 %v6792_v47, 0.0  ;;  %v6819_v41 = vadd.f32 %v585_v30, %v584_v20  ;;  %v428_v30 = vld [vmem:[%s6557_s22 + $0x88] sm:$0xff] }
  0x84   : > { %v559_v15 = vrot.slane %v558_v17, 2  ;;  %9590 = vst [vmem:[#allocation23_spill] sm:$0xff] %v6796_v2  ;;  %v799_v27 = vmax.f32 %v6796_v2, 0.0 }
  0x85   : > { %v835_v29 = vmul.f32 %v6606_v56, %v800_v12  ;;  %9595 = vst [vmem:[#allocation28_spill] sm:$0xff] %v6819_v41 }
  0x86   : > { %v560_v39 = vadd.f32 %v559_v15, %v558_v17  ;;  %v834_v36 = vmul.f32 %v6606_v56, %v799_v27 }
  0x87   : > { %997 = vmatmul.f32.gmra.mxu0 %v6655_v53  ;;  %v552_v53 = vadd.f32 %v551_v57, %v6748_v49  ;;  %v917_v38 = vrot.slane %v835_v29, 7  ;;  %v426_v29 = vld [vmem:[%s6557_s22 + $0x78] sm:$0xff] }
  0x88   : > { %v561_v19 = vrot.slane %v560_v39, 1 }
  0x89   : > { %v553_v23 = vrot.slane %v552_v53, 2  ;;  %v918_v46 = vsel %vm883_vm0, %v917_v38, %v834_v36  ;;  %v6853_v36 = vld [vmem:[%s6562_s10 + $0xd8] sm:$0xff]  ;;  %v6857_v38 = vld [vmem:[%s6562_s10 + $0xe0] sm:$0xff] }
  0x8a   : > { %1398 = vrot.lane.b32.xlu2 %v425_v40, %s6410_s17  ;;  %v605_v40 = vrot.slane %v6853_v36, 4 }
  0x8b   : > { %v554_v32 = vadd.f32 %v553_v23, %v552_v53  ;;  %v6798_v53 = vadd.f32 %v561_v19, %v560_v39  ;;  %v424_v39 = vld [vmem:[%s6557_s22 + $0x68] sm:$0xff] }
  0x8c   : > { %1396 = vrot.lane.b32.xlu0 %v424_v39, %s6410_s17 }
  0x8d   : > { %v555_v7 = vrot.slane %v554_v32, 1  ;;  %9591 = vst [vmem:[#allocation24_spill] sm:$0xff] %v6798_v53  ;;  %v802_v28 = vmax.f32 %v6798_v53, 0.0 }
  0x8f   : > { %1000 = vmatmul.f32.gmra.mxu0 %v6646_v50  ;;  %v6794_v57 = vadd.f32 %v555_v7, %v554_v32  ;;  %v578_v50 = vadd.f32 %v577_v45, %v576_v34  ;;  %v803_v32 = vmax.f32 %v6801_v13, 0.0  ;;  %v804_v34 = vmax.f32 %v6804_v26, 0.0 }
  0x90   : > { %v837_v37 = vmul.f32 %v6606_v56, %v802_v28 }
  0x91   : > { %9589 = vst [vmem:[#allocation22_spill] sm:$0xff] %v6794_v57  ;;  %v579_v17 = vrot.slane %v578_v50, 1  ;;  %v801_v23 = vmax.f32 %v6794_v57, 0.0  ;;  %v838_v7 = vmul.f32 %v6606_v56, %v803_v32  ;;  %v839_v45 = vmul.f32 %v6606_v56, %v804_v34  ;;  %v6843_v32 = vld [vmem:[%s6562_s10 + $0xc8] sm:$0xff] }
  0x92   : > { %v921_v16 = vrot.slane %v837_v37, 5  ;;  %1400 = vrot.lane.b32.xlu2 %v426_v29, %s6410_s17  ;;  %v593_v34 = vrot.slane %v6843_v32, 4 }
  0x93   : > { %v6809_v15 = vadd.f32 %v579_v17, %v578_v50  ;;  %v836_v33 = vmul.f32 %v6606_v56, %v801_v23  ;;  %v923_v11 = vrot.slane %v838_v7, 4  ;;  %v925_v0 = vrot.slane %v839_v45, 3  ;;  %v6869_v45 = vld [vmem:[%s6562_s10 + $0xf0] sm:$0xff] }
  0x94   : > { %v594_v39 = vadd.f32 %v593_v34, %v6843_v32 }
  0x95   : > { %9594 = vst [vmem:[#allocation27_spill] sm:$0xff] %v6809_v15  ;;  %v805_v42 = vmax.f32 %v6809_v15, 0.0  ;;  %v919_v44 = vrot.slane %v836_v33, 6  ;;  %v6846_v33 = vld [vmem:[%s6562_s10 + $0xd0] sm:$0xff] }
  0x96   : > { %v599_v37 = vrot.slane %v6846_v33, 4 }
  0x97   : > { %1003 = vmatmul.f32.gmra.mxu0 %v6650_v51  ;;  %v806_v51 = vmax.f32 %v6819_v41, 0.0  ;;  %v840_v19 = vmul.f32 %v6606_v56, %v805_v42  ;;  %v920_v52 = vsel %vm886_vm1, %v919_v44, %v918_v46  ;;  %v6864_v42 = vld [vmem:[%s6562_s10 + $0xe8] sm:$0xff]  ;;  %v611_v44 = vrot.slane %v6857_v38, 4 }
  0x98   : > { %v922_v50 = vsel %vm889_vm2, %v921_v16, %v920_v52  ;;  %v600_v7 = vadd.f32 %v599_v37, %v6846_v33  ;;  %v595_v16 = vrot.slane %v594_v39, 2  ;;  %v410_v52 = vld [vmem:[%s6562_s10 + $0xf8] sm:$0xff] }
  0x99   : > { %v841_v5 = vmul.f32 %v6606_v56, %v806_v51  ;;  %v924_v12 = vsel %vm892_vm3, %v923_v11, %v922_v50  ;;  %v927_v17 = vrot.slane %v840_v19, 2  ;;  %v606_v51 = vadd.f32 %v605_v40, %v6853_v36  ;;  %v6881_v40 = vpop.permute.xlu2 %1372 }
  0x9a   : > { %v926_v20 = vsel %vm895_vm4, %v925_v0, %v924_v12  ;;  %1404 = vrot.lane.b32.xlu2 %v428_v30, %s6410_s17  ;;  %v617_v19 = vrot.slane %v6864_v42, 4  ;;  %v601_v11 = vrot.slane %v600_v7, 2  ;;  %v623_v50 = vrot.slane %v6869_v45, 4  ;;  %9596 = vst [vmem:[#allocation29_spill] sm:$0xff] %v6881_v40 }
  0x9b   : > { %v928_v23 = vsel %vm898_vm5, %v927_v17, %v926_v20  ;;  %v929_v27 = vrot.slane %v841_v5, 1  ;;  %v596_v5 = vadd.f32 %v595_v16, %v594_v39  ;;  %v607_v12 = vrot.slane %v606_v51, 2  ;;  %v429_v20 = vld [vmem:[%s6557_s22 + $0x90] sm:$0xff] }
  0x9c   : > { %v618_v17 = vadd.f32 %v617_v19, %v6864_v42  ;;  %v629_v29 = vrot.slane %v410_v52, 4 }
  0x9d   : > { %v930_v28 = vsel %vm901_vm6, %v929_v27, %v928_v23  ;;  %v602_v23 = vadd.f32 %v601_v11, %v600_v7  ;;  %v597_v34 = vrot.slane %v596_v5, 1  ;;  %v608_v37 = vadd.f32 %v607_v12, %v606_v51  ;;  %v427_v12 = vld [vmem:[%s6557_s22 + $0x80] sm:$0xff] }
  0x9e   : > { %953 = vadd.xlane.f32.xlu1 %v930_v28  ;;  %v624_v28 = vadd.f32 %v623_v50, %v6869_v45  ;;  %v630_v41 = vadd.f32 %v629_v29, %v410_v52 }
  0x9f   : > { %1006 = vmatmul.f32.gmra.mxu0 %v6658_v54  ;;  %v6850_v54 = vld [vmem:[%s6562_s10 + $0xc0] sm:$0xff]  ;;  %v6883_v15 = vadd.f32 %v597_v34, %v596_v5  ;;  %v609_v7 = vrot.slane %v608_v37, 1 }
  0xa0   : > { %v625_v16 = vrot.slane %v624_v28, 2  ;;  %v631_v51 = vrot.slane %v630_v41, 2 }
  0xa1   : > { %9597 = vst [vmem:[#allocation30_spill] sm:$0xff] %v6883_v15  ;;  %v6891_v26 = vadd.f32 %v609_v7, %v608_v37  ;;  %v808_v52 = vmax.f32 %v6883_v15, 0.0  ;;  %v442_v15 = vld [vmem:[%s6557_s22 + $0xf8] sm:$0xff] }
  0xa2   : > { %1406 = vrot.lane.b32.xlu2 %v429_v20, %s6410_s17 }
  0xa3   : > { %9600 = vst [vmem:[#allocation33_spill] sm:$0xff] %v6891_v26  ;;  %v843_v34 = vmul.f32 %v6606_v56, %v808_v52 }
  0xa7   : > { %1009 = vmatmul.f32.gmra.mxu0 %v6666_v60  ;;  %v587_v60 = vrot.slane %v6850_v54, 4 }
  0xa9   : > { %v588_v46 = vadd.f32 %v587_v60, %v6850_v54  ;;  %v619_v60 = vrot.slane %v618_v17, 2 }
  0xab   : > { %v589_v0 = vrot.slane %v588_v46, 2  ;;  %v620_v11 = vadd.f32 %v619_v60, %v618_v17 }
  0xad   : > { %v590_v30 = vadd.f32 %v589_v0, %v588_v46  ;;  %v626_v0 = vadd.f32 %v625_v16, %v624_v28 }
  0xaf   : > { %1012 = vmatmul.f32.gmra.mxu0 %v6670_v61  ;;  %v612_v61 = vadd.f32 %v611_v44, %v6857_v38  ;;  %v603_v44 = vrot.slane %v602_v23, 1  ;;  %v591_v19 = vrot.slane %v590_v30, 1  ;;  %v627_v17 = vrot.slane %v626_v0, 1 }
  0xb1   : > { %v613_v27 = vrot.slane %v612_v61, 2  ;;  %v6886_v50 = vadd.f32 %v603_v44, %v602_v23  ;;  %v6889_v20 = vadd.f32 %v591_v19, %v590_v30  ;;  %v810_v30 = vmax.f32 %v6891_v26, 0.0 }
  0xb2   : > { %v6905_v37 = vadd.f32 %v627_v17, %v626_v0 }
  0xb3   : > { %v614_v39 = vadd.f32 %v613_v27, %v612_v61  ;;  %9598 = vst [vmem:[#allocation31_spill] sm:$0xff] %v6886_v50  ;;  %v621_v61 = vrot.slane %v620_v11, 1  ;;  %v809_v23 = vmax.f32 %v6886_v50, 0.0  ;;  %v6898_v27 = vpop.permute.xlu0 %1207  ;;  %v807_v29 = vmax.f32 %v6889_v20, 0.0 }
  0xb4   : > { %9599 = vst [vmem:[#allocation32_spill] sm:$0xff] %v6889_v20  ;;  %v845_v7 = vmul.f32 %v6606_v56, %v810_v30  ;;  %v813_v0 = vmax.f32 %v6905_v37, 0.0 }
  0xb5   : > { %v615_v46 = vrot.slane %v614_v39, 1  ;;  %v6900_v28 = vadd.f32 %v621_v61, %v620_v11  ;;  %9603 = vst [vmem:[#allocation36_spill] sm:$0xff] %v6905_v37  ;;  %v842_v19 = vmul.f32 %v6606_v56, %v807_v29  ;;  %v931_v11 = vrot.slane %v843_v34, 7 }
  0xb6   : > { %v935_v17 = vrot.slane %v845_v7, 5 }
  0xb7   : > { %1015 = vmatmul.f32.gmra.mxu0 %v6676_v4  ;;  %1402 = vrot.lane.b32.xlu1 %v427_v12, %s6410_s17  ;;  %v6895_v5 = vadd.f32 %v615_v46, %v614_v39  ;;  %v632_v4 = vadd.f32 %v631_v51, %v630_v41  ;;  %9602 = vst [vmem:[#allocation35_spill] sm:$0xff] %v6900_v28  ;;  %v430_v41 = vld [vmem:[%s6557_s22 + $0x98] sm:$0xff]  ;;  %v812_v16 = vmax.f32 %v6900_v28, 0.0 }
  0xb8   : > { %v844_v39 = vmul.f32 %v6606_v56, %v809_v23  ;;  %1408 = vrot.lane.b32.xlu2 %v430_v41, %s6410_s17  ;;  %v932_v52 = vsel %vm883_vm0, %v931_v11, %v842_v19  ;;  %v6921_v23 = vpop.permute.xlu2 %1374 }
  0xb9   : > { %9601 = vst [vmem:[#allocation34_spill] sm:$0xff] %v6895_v5  ;;  %v633_v60 = vrot.slane %v632_v4, 1  ;;  %v811_v44 = vmax.f32 %v6895_v5, 0.0  ;;  %v847_v61 = vmul.f32 %v6606_v56, %v812_v16  ;;  %v440_v5 = vld [vmem:[%s6557_s22 + $0xe8] sm:$0xff] }
  0xba   : > { %v933_v12 = vrot.slane %v844_v39, 6  ;;  %9605 = vst [vmem:[#allocation38_spill] sm:$0xff] %v6921_v23 }
  0xbb   : > { %v6914_v46 = vadd.f32 %v633_v60, %v632_v4  ;;  %v846_v51 = vmul.f32 %v6606_v56, %v811_v44  ;;  %v848_v4 = vmul.f32 %v6606_v56, %v813_v0  ;;  %v431_v60 = vld [vmem:[%s6557_s22 + $0xa0] sm:$0xff]  ;;  %v939_v39 = vrot.slane %v847_v61, 3 }
  0xbc   : > { %v934_v30 = vsel %vm886_vm1, %v933_v12, %v932_v52  ;;  %v432_v12 = vld [vmem:[%s6557_s22 + $0xa8] sm:$0xff] }
  0xbd   : > { %9604 = vst [vmem:[#allocation37_spill] sm:$0xff] %v6914_v46  ;;  %v814_v29 = vmax.f32 %v6914_v46, 0.0  ;;  %v937_v34 = vrot.slane %v846_v51, 4  ;;  %v936_v44 = vsel %vm889_vm2, %v935_v17, %v934_v30  ;;  %v941_v16 = vrot.slane %v848_v4, 2  ;;  %v6935_v51 = vpop.permute.xlu0 %1380 }
  0xbe   : > { %9606 = vst [vmem:[#allocation39_spill] sm:$0xff] %v6935_v51 }
  0xbf   : > { %1018 = vmatmul.f32.gmra.mxu0 %v6681_v8  ;;  %1410 = vrot.lane.b32.xlu1 %v431_v60, %s6410_s17  ;;  %v849_v41 = vmul.f32 %v6606_v56, %v814_v29  ;;  %v938_v8 = vsel %vm892_vm3, %v937_v34, %v936_v44  ;;  %v433_v56 = vld [vmem:[%s6557_s22 + $0xb0] sm:$0xff]  ;;  %v435_v29 = vld [vmem:[%s6557_s22 + $0xc0] sm:$0xff] }
  0xc0   : > { %v940_v19 = vsel %vm895_vm4, %v939_v39, %v938_v8  ;;  %1412 = vrot.lane.b32.xlu2 %v432_v12, %s6410_s17  ;;  %v6942_v52 = vpop.permute.xlu2 %1376  ;;  %v6968_v12 = vpop.permute.xlu1 %1370 }
  0xc1   : > { %v942_v7 = vsel %vm898_vm5, %v941_v16, %v940_v19  ;;  %v943_v11 = vrot.slane %v849_v41, 1  ;;  %9607 = vst [vmem:[#allocation40_spill] sm:$0xff] %v6942_v52  ;;  %v437_v19 = vld [vmem:[%s6557_s22 + $0xd0] sm:$0xff] }
  0xc2   : > { %9609 = vst [vmem:[#allocation42_spill] sm:$0xff] %v6968_v12 }
  0xc3   : > { %v944_v61 = vsel %vm901_vm6, %v943_v11, %v942_v7 }
  0xc4   : > { %v6933_v0 = vpop.f32.mrf.mxu0  ;;  %955 = vadd.xlane.f32.xlu0 %v944_v61 }
  0xc7   : > { %1021 = vmatmul.f32.gmra.mxu0 %v6754_v55  ;;  %1414 = vrot.lane.b32.xlu1 %v433_v56, %s6410_s17  ;;  %v436_v55 = vld [vmem:[%s6557_s22 + $0xc8] sm:$0xff] }
  0xc8   : > { %1418 = vrot.lane.b32.xlu2 %v435_v29, %s6410_s17  ;;  %v6961_v16 = vpop.permute.xlu2 %1378 }
  0xc9   : > { %9608 = vst [vmem:[#allocation41_spill] sm:$0xff] %v6961_v16 }
  0xcc   : > { %v6945_v17 = vpop.f32.mrf.mxu0 }
  0xce   : > { %v6949_v4 = vpop.xlane.xlu0 %949 }
  0xcf   : > { %1024 = vmatmul.f32.gmra.mxu0 %v6745_v14  ;;  %v1110_v30 = vperm.slane %v6949_v4, 1  ;;  %v1109_v34 = vperm.slane %v6949_v4, 0  ;;  %v1111_v44 = vperm.slane %v6949_v4, 2  ;;  %1420 = vrot.lane.b32.xlu1 %v436_v55, %s6410_s17  ;;  %v438_v55 = vld [vmem:[%s6557_s22 + $0xd8] sm:$0xff] }
  0xd0   : > { %1422 = vrot.lane.b32.xlu2 %v437_v19, %s6410_s17  ;;  %v1112_v19 = vperm.slane %v6949_v4, 3 }
  0xd1   : > { %v1174_v60 = vadd.f32 %v1110_v30, %v6945_v17  ;;  %v1173_v39 = vadd.f32 %v1109_v34, %v6933_v0 }
  0xd3   : > { %v1211_v41 = vadd.f32 %v6898_v27, %v1174_v60  ;;  %v1210_v8 = vadd.f32 %v6898_v27, %v1173_v39  ;;  %v434_v60 = vld [vmem:[%s6557_s22 + $0xb8] sm:$0xff] }
  0xd4   : > { %v6963_v14 = vpop.f32.mrf.mxu0 }
  0xd5   : > { %vm1243_vm7 = vcmp.gt.f32.partialorder %v1211_v41, 0.0  ;;  %v1275_v7 = vmul.f32 0.01, %v1211_v41  ;;  %v1175_v11 = vadd.f32 %v1111_v44, %v6963_v14  ;;  %vm1242_vm8 = vcmp.gt.f32.partialorder %v1210_v8, 0.0 }
  0xd6   : > { %v1274_v61 = vmul.f32 0.01, %v1210_v8 }
  0xd7   : > { %v1307_v56 = vsel %vm1243_vm7, %v1211_v41, %v1275_v7  ;;  %v1212_v29 = vadd.f32 %v6898_v27, %v1175_v11  ;;  %1027 = vmatmul.f32.gmra.mxu0 %v6748_v49  ;;  %1424 = vrot.lane.b32.xlu1 %v438_v55, %s6410_s17  ;;  %v6984_v11 = vpop.permute.xlu2 %1382 }
  0xd8   : > { %v1467_v30 = vadd.f32 %v6881_v40, %v1307_v56  ;;  %v1306_v34 = vsel %vm1242_vm8, %v1210_v8, %v1274_v61  ;;  %1416 = vrot.lane.b32.xlu0 %v434_v60, %s6410_s17  ;;  %9610 = vst [vmem:[#allocation43_spill] sm:$0xff] %v6984_v11  ;;  %v439_v40 = vld [vmem:[%s6557_s22 + $0xe0] sm:$0xff] }
  0xd9   : > { %v6976_v44 = vadd.f32 %v6968_v12, %v1306_v34  ;;  %vm1244_vm10 = vcmp.gt.f32.partialorder %v1212_v29, 0.0  ;;  %v1276_v39 = vmul.f32 0.01, %v1212_v29  ;;  %1426 = vrot.lane.b32.xlu2 %v439_v40, %s6410_s17 }
  0xda   : > { %v1506_v41 = vsel %vm1498_vm9, %v1467_v30, -inf }
  0xdb   : > { %v1507_v49 = vrot.slane %v1506_v41, 4  ;;  %v1499_v8 = vsel %vm1498_vm9, %v6976_v44, -inf  ;;  %v1308_v7 = vsel %vm1244_vm10, %v1212_v29, %v1276_v39 }
  0xdc   : > { %v1500_v61 = vrot.slane %v1499_v8, 4  ;;  %v1468_v56 = vadd.f32 %v6921_v23, %v1308_v7  ;;  %v6987_v34 = vpop.f32.mrf.mxu0  ;;  %v1113_v7 = vperm.slane %v6949_v4, 4  ;;  %v441_v23 = vld [vmem:[%s6557_s22 + $0xf0] sm:$0xff]  ;;  %s9396_s22 = scalar_lea.vmem [#allocation8], %s5558_s20 }
  0xdd   : > { %v1508_v55 = vmax.f32 %v1506_v41, %v1507_v49  ;;  %v1176_v12 = vadd.f32 %v1112_v19, %v6987_v34  ;;  %s5440_s12 = sshll.u32 %s9396_s22, 4  ;;  %s5441_s12 = int_to_ptr.vmem [resolvable:$true] %s5440_s12 }
  0xde   : > { %v1501_v60 = vmax.f32 %v1499_v8, %v1500_v61  ;;  %v1513_v46 = vsel %vm1498_vm9, %v1468_v56, -inf }
  0xdf   : > { %v1509_v37 = vrot.slane %v1508_v55, 2  ;;  %v1514_v29 = vrot.slane %v1513_v46, 4  ;;  %v1213_v39 = vadd.f32 %v6898_v27, %v1176_v12  ;;  %1030 = vmatmul.f32.gmra.mxu0 %v6757_v25  ;;  %1430 = vrot.lane.b32.xlu1 %v441_v23, %s6410_s17 }
  0xe0   : > { %v1502_v28 = vrot.slane %v1501_v60, 2  ;;  %1428 = vrot.lane.b32.xlu0 %v440_v5, %s6410_s17 }
  0xe1   : > { %v1510_v41 = vmax.f32 %v1508_v55, %v1509_v37  ;;  %v1515_v49 = vmax.f32 %v1513_v46, %v1514_v29  ;;  %vm1245_vm11 = vcmp.gt.f32.partialorder %v1213_v39, 0.0  ;;  %v1277_v19 = vmul.f32 0.01, %v1213_v39  ;;  %v7005_v46 = vpop.permute.xlu2 %1386  ;;  %1432 = vrot.lane.b32.xlu2 %v442_v15, %s6410_s17 }
  0xe2   : > { %v1503_v40 = vmax.f32 %v1501_v60, %v1502_v28  ;;  %9611 = vst [vmem:[#allocation44_spill] sm:$0xff] %v7005_v46 }
  0xe3   : > { %v1511_v8 = vrot.slane %v1510_v41, 1  ;;  %v1516_v61 = vrot.slane %v1515_v49, 2  ;;  %v1309_v12 = vsel %vm1245_vm11, %v1213_v39, %v1277_v19 }
  0xe4   : > { %v1504_v26 = vrot.slane %v1503_v40, 1  ;;  %v1469_v25 = vadd.f32 %v6942_v52, %v1309_v12  ;;  %v7001_v50 = vpop.f32.mrf.mxu0 }
  0xe5   : > { %v1512_v20 = vmax.f32 %v1510_v41, %v1511_v8  ;;  %v1517_v13 = vmax.f32 %v1515_v49, %v1516_v61  ;;  %v1177_v37 = vadd.f32 %v1113_v7, %v7001_v50  ;;  %v1114_v41 = vperm.slane %v6949_v4, 5 }
  0xe6   : > { %v1505_v28 = vmax.f32 %v1503_v40, %v1504_v26  ;;  %v1520_v5 = vsel %vm1498_vm9, %v1469_v25, -inf  ;;  %v6411_v8 = vmov 32  }
  0xe7   : > { %v1724_v23 = vsub.f32 %v1467_v30, %v1512_v20  ;;  %v1518_v55 = vrot.slane %v1517_v13, 1  ;;  %v1521_v60 = vrot.slane %v1520_v5, 4  ;;  %v1214_v29 = vadd.f32 %v6898_v27, %v1177_v37  ;;  %1033 = vmatmul.f32.gmra.mxu0 %v6762_v58  ;;  %5733 = vset.pattern.permute.xlu1 %v6411_v8 }
  0xe8   : > { %v1723_v39 = vsub.f32 %v6976_v44, %v1505_v28  ;;  %5732 = vset.pattern.permute.xlu0 %v6411_v8  ;;  %5734 = vset.pattern.permute.xlu2 %v6411_v8 }
  0xe9   : > { %v1757_v49 = vmul.f32 1.442695, %v1724_v23  ;;  %v1519_v7 = vmax.f32 %v1517_v13, %v1518_v55  ;;  %v1522_v19 = vmax.f32 %v1520_v5, %v1521_v60  ;;  %vm1246_vm12 = vcmp.gt.f32.partialorder %v1214_v29, 0.0 }
  0xea   : > { %v1755_v26 = vmul.f32 1.442695, %v1723_v39  ;;  %v1278_v15 = vmul.f32 0.01, %v1214_v29  ;;  %v1115_v39 = vperm.slane %v6949_v4, 6 }
  0xeb   : > { %5741 = vpow2.f32 %v1757_v49  ;;  %v1725_v20 = vsub.f32 %v1468_v56, %v1519_v7  ;;  %v1523_v30 = vrot.slane %v1522_v19, 2  ;;  %v7023_v56 = vpop.permute.xlu2 %1390 }
  0xec   : > { %5743 = vpow2.f32 %v1755_v26  ;;  %v1310_v40 = vsel %vm1246_vm12, %v1214_v29, %v1278_v15  ;;  %v7013_v58 = vpop.f32.mrf.mxu0  ;;  %9612 = vst [vmem:[#allocation45_spill] sm:$0xff] %v7023_v56 }
  0xed   : > { %v1759_v44 = vmul.f32 1.442695, %v1725_v20  ;;  %v1524_v61 = vmax.f32 %v1522_v19, %v1523_v30  ;;  %v7016_v12 = vadd.f32 %v6961_v16, %v1310_v40  ;;  %v1178_v13 = vadd.f32 %v1114_v41, %v7013_v58 }
  0xef   : > { %5745 = vpow2.f32 %v1759_v44  ;;  %v1525_v37 = vrot.slane %v1524_v61, 1  ;;  %v1527_v28 = vsel %vm1498_vm9, %v7016_v12, -inf  ;;  %v1215_v5 = vadd.f32 %v6898_v27, %v1178_v13  ;;  %1036 = vmatmul.f32.gmra.mxu0 %v6768_v3 }
  0xf0   : > { %v1528_v23 = vrot.slane %v1527_v28, 4 }
  0xf1   : > { %v7025_v55 = vpop.eup %5741  ;;  %v1526_v60 = vmax.f32 %v1524_v61, %v1525_v37  ;;  %vm1247_vm13 = vcmp.gt.f32.partialorder %v1215_v5, 0.0  ;;  %v1279_v29 = vmul.f32 0.01, %v1215_v5 }
  0xf2   : > { %v7028_v41 = vpop.eup %5743  ;;  %v1826_v49 = vsel %vm1498_vm9, %v7025_v55, 0.0  ;;  %v1529_v7 = vmax.f32 %v1527_v28, %v1528_v23 }
  0xf3   : > { %v1827_v19 = vrot.slane %v1826_v49, 4  ;;  %v1819_v3 = vsel %vm1498_vm9, %v7028_v41, 0.0  ;;  %v1726_v8 = vsub.f32 %v1469_v25, %v1526_v60  ;;  %v1311_v26 = vsel %vm1247_vm13, %v1215_v5, %v1279_v29 }
  0xf4   : > { %v1820_v15 = vrot.slane %v1819_v3, 4  ;;  %v1530_v20 = vrot.slane %v1529_v7, 2  ;;  %v7035_v30 = vadd.f32 %v6935_v51, %v1311_v26  ;;  %v7037_v40 = vpop.f32.mrf.mxu0 }
  0xf5   : > { %v7039_v44 = vpop.eup %5745  ;;  %v1828_v61 = vadd.f32 %v1827_v19, %v1826_v49  ;;  %v1761_v13 = vmul.f32 1.442695, %v1726_v8  ;;  %v1179_v37 = vadd.f32 %v1115_v39, %v7037_v40 }
  0xf6   : > { %v1821_v28 = vadd.f32 %v1820_v15, %v1819_v3  ;;  %v1833_v23 = vsel %vm1498_vm9, %v7039_v44, 0.0  ;;  %v1531_v52 = vmax.f32 %v1529_v7, %v1530_v20  ;;  %v1534_v25 = vsel %vm1498_vm9, %v7035_v30, -inf  ;;  %v7049_v15 = vpop.permute.xlu2 %1394 }
  0xf7   : > { %v1829_v5 = vrot.slane %v1828_v61, 2  ;;  %v1834_v60 = vrot.slane %v1833_v23, 4  ;;  %5747 = vpow2.f32 %v1761_v13  ;;  %v1535_v29 = vrot.slane %v1534_v25, 4  ;;  %1039 = vmatmul.f32.gmra.mxu0 %v6773_v6  ;;  %9613 = vst [vmem:[#allocation46_spill] sm:$0xff] %v7049_v15  ;;  %v7051_v13 = vpop.xlane.xlu1 %951 }
  0xf8   : > { %v1822_v26 = vrot.slane %v1821_v28, 2  ;;  %v1532_v16 = vrot.slane %v1531_v52, 1  ;;  %v1216_v49 = vadd.f32 %v6898_v27, %v1179_v37  ;;  %v1116_v3 = vperm.slane %v6949_v4, 7 }
  0xf9   : > { %v1835_v19 = vadd.f32 %v1834_v60, %v1833_v23  ;;  %v1536_v39 = vmax.f32 %v1534_v25, %v1535_v29  ;;  %v1830_v8 = vadd.f32 %v1829_v5, %v1828_v61 }
  0xfa   : > { %v1533_v7 = vmax.f32 %v1531_v52, %v1532_v16  ;;  %vm1248_vm14 = vcmp.gt.f32.partialorder %v1216_v49, 0.0  ;;  %v1280_v20 = vmul.f32 0.01, %v1216_v49  ;;  %v1823_v51 = vadd.f32 %v1822_v26, %v1821_v28 }
  0xfb   : > { %v1836_v53 = vrot.slane %v1835_v19, 2  ;;  %v1831_v57 = vrot.slane %v1830_v8, 1  ;;  %v1537_v47 = vrot.slane %v1536_v39, 2 }
  0xfc   : > { %v1727_v6 = vsub.f32 %v7016_v12, %v1533_v7  ;;  %v1312_v2 = vsel %vm1248_vm14, %v1216_v49, %v1280_v20  ;;  %v7054_v37 = vpop.f32.mrf.mxu0  ;;  %v1824_v23 = vrot.slane %v1823_v51, 1  ;;  %v1117_v12 = vperm.slane %v7051_v13, 0 }
  0xfd   : > { %v7056_v25 = vpop.eup %5747  ;;  %v7059_v4 = vadd.f32 %v6984_v11, %v1312_v2  ;;  %v1180_v52 = vadd.f32 %v1116_v3, %v7054_v37  ;;  %v1832_v16 = vadd.f32 %v1831_v57, %v1830_v8  ;;  %v1837_v61 = vadd.f32 %v1836_v53, %v1835_v19  ;;  %v7069_v8 = vpop.permute.xlu0 %1384 }
  0xfe   : > { %v1840_v28 = vsel %vm1498_vm9, %v7056_v25, 0.0  ;;  %v1763_v5 = vmul.f32 1.442695, %v1727_v6  ;;  %v1825_v60 = vadd.f32 %v1824_v23, %v1823_v51  ;;  %v1538_v53 = vmax.f32 %v1536_v39, %v1537_v47  ;;  %9614 = vst [vmem:[#allocation47_spill] sm:$0xff] %v7069_v8  ;;  %v7071_v11 = vpop.permute.xlu2 %1398 }
  0xff   : > { %v1841_v29 = vrot.slane %v1840_v28, 4  ;;  %v1541_v26 = vsel %vm1498_vm9, %v7059_v4, -inf  ;;  %v1217_v49 = vadd.f32 %v6898_v27, %v1180_v52  ;;  %1042 = vmatmul.f32.gmra.mxu0 %v6779_v22  ;;  %5749 = vrcp.f32 %v1832_v16  ;;  %9615 = vst [vmem:[#allocation48_spill] sm:$0xff] %v7071_v11 }
 0x100   : > { %5751 = vpow2.f32 %v1763_v5  ;;  %v1542_v2 = vrot.slane %v1541_v26, 4  ;;  %v1838_v57 = vrot.slane %v1837_v61, 1  ;;  %v1539_v20 = vrot.slane %v1538_v53, 1 }
 0x101   : > { %v1842_v19 = vadd.f32 %v1841_v29, %v1840_v28  ;;  %vm1249_vm15 = vcmp.gt.f32.partialorder %v1217_v49, 0.0  ;;  %v1281_v3 = vmul.f32 0.01, %v1217_v49  ;;  %5753 = vrcp.f32 %v1825_v60 }
 0x102   : > { %v1543_v51 = vmax.f32 %v1541_v26, %v1542_v2  ;;  %v1839_v7 = vadd.f32 %v1838_v57, %v1837_v61  ;;  %v1540_v47 = vmax.f32 %v1538_v53, %v1539_v20  ;;  %v1118_v5 = vperm.slane %v7051_v13, 1 }
 0x103   : > { %v1843_v6 = vrot.slane %v1842_v19, 2  ;;  %v1313_v23 = vsel %vm1249_vm15, %v1217_v49, %v1281_v3 }
 0x104   : > { %v1544_v52 = vrot.slane %v1543_v51, 2  ;;  %v7074_v22 = vadd.f32 %v7069_v8, %v1313_v23  ;;  %v7076_v16 = vpop.f32.mrf.mxu0  ;;  %5755 = vrcp.f32 %v1839_v7  ;;  %v1728_v2 = vsub.f32 %v7035_v30, %v1540_v47 }
 0x105   : > { %v5750_v39 = vpop.eup %5749  ;;  %v1181_v28 = vadd.f32 %v1117_v12, %v7076_v16  ;;  %v1844_v60 = vadd.f32 %v1843_v6, %v1842_v19 }
 0x106   : > { %v7080_v61 = vpop.eup %5751  ;;  %v1545_v29 = vmax.f32 %v1543_v51, %v1544_v52  ;;  %v1548_v26 = vsel %vm1498_vm9, %v7074_v22, -inf  ;;  %v2076_v49 = vmul.f32 %v5750_v39, %v7025_v55  ;;  %v1765_v6 = vmul.f32 1.442695, %v1728_v2 }
 0x107   : > { %v5754_v57 = vpop.eup %5753  ;;  %v1847_v53 = vsel %vm1498_vm9, %v7080_v61, 0.0  ;;  %v1549_v3 = vrot.slane %v1548_v26, 4  ;;  %v1218_v12 = vadd.f32 %v6898_v27, %v1181_v28  ;;  %1045 = vmatmul.f32.gmra.mxu0 %v6850_v54  ;;  %v1845_v19 = vrot.slane %v1844_v60, 1 }
 0x108   : > { %v1848_v7 = vrot.slane %v1847_v53, 4  ;;  %v1546_v20 = vrot.slane %v1545_v29, 1  ;;  %2114 = vperm.xlu1 %5733, %v2076_v49   ;;  %v2075_v51 = vmul.f32 %v5754_v57, %v7028_v41  ;;  %5757 = vpow2.f32 %v1765_v6 }
 0x109   : > { %v1550_v23 = vmax.f32 %v1548_v26, %v1549_v3  ;;  %vm1250_vm7 = vcmp.gt.f32.partialorder %v1218_v12, 0.0  ;;  %v1282_v55 = vmul.f32 0.01, %v1218_v12  ;;  %v1846_v30 = vadd.f32 %v1845_v19, %v1844_v60 }
 0x10a   : > { %v5756_v52 = vpop.eup %5755  ;;  %v1849_v47 = vadd.f32 %v1848_v7, %v1847_v53  ;;  %v1547_v39 = vmax.f32 %v1545_v29, %v1546_v20  ;;  %2109 = vperm.xlu0 %5732, %v2075_v51   ;;  %v7099_v29 = vpop.permute.xlu2 %1400 }
 0x10b   : > { %v1551_v8 = vrot.slane %v1550_v23, 2  ;;  %v1314_v28 = vsel %vm1250_vm7, %v1218_v12, %v1282_v55  ;;  %v2077_v54 = vmul.f32 %v5756_v52, %v7039_v44  ;;  %5759 = vrcp.f32 %v1846_v30  ;;  %9616 = vst [vmem:[#allocation49_spill] sm:$0xff] %v7099_v29 }
 0x10c   : > { %v1850_v21 = vrot.slane %v1849_v47, 2  ;;  %v1729_v49 = vsub.f32 %v7059_v4, %v1547_v39  ;;  %v7094_v41 = vadd.f32 %v7005_v46, %v1314_v28  ;;  %v7096_v26 = vpop.f32.mrf.mxu0 }
 0x10d   : > { %v1552_v2 = vmax.f32 %v1550_v23, %v1551_v8  ;;  %v1182_v60 = vadd.f32 %v1118_v5, %v7096_v26  ;;  %2119 = vperm.xlu2 %5734, %v2077_v54   ;;  %v1119_v8 = vperm.slane %v7051_v13, 2  ;;  %v7108_v23 = vpop.permute.xlu0 %1388 }
 0x10e   : > { %v1767_v57 = vmul.f32 1.442695, %v1729_v49  ;;  %v1555_v53 = vsel %vm1498_vm9, %v7094_v41, -inf  ;;  %v1851_v44 = vadd.f32 %v1850_v21, %v1849_v47  ;;  %v7105_v19 = vpop.eup %5757  ;;  %9617 = vst [vmem:[#allocation50_spill] sm:$0xff] %v7108_v23 }
 0x10f   : > { %v1553_v3 = vrot.slane %v1552_v2, 1  ;;  %v1556_v12 = vrot.slane %v1555_v53, 4  ;;  %v1219_v4 = vadd.f32 %v6898_v27, %v1182_v60  ;;  %1048 = vmatmul.f32.gmra.mxu0 %v6843_v32  ;;  %v1854_v30 = vsel %vm1498_vm9, %v7105_v19, 0.0 }
 0x110   : > { %5761 = vpow2.f32 %v1767_v57  ;;  %v1852_v5 = vrot.slane %v1851_v44, 1  ;;  %v1855_v39 = vrot.slane %v1854_v30, 4 }
 0x111   : > { %v5760_v7 = vpop.eup %5759  ;;  %v1554_v20 = vmax.f32 %v1552_v2, %v1553_v3  ;;  %v1557_v51 = vmax.f32 %v1555_v53, %v1556_v12  ;;  %vm1251_vm8 = vcmp.gt.f32.partialorder %v1219_v4, 0.0  ;;  %v1283_v6 = vmul.f32 0.01, %v1219_v4 }
 0x112   : > { %v2078_v21 = vmul.f32 %v5760_v7, %v7056_v25  ;;  %v1853_v55 = vadd.f32 %v1852_v5, %v1851_v44  ;;  %v7127_v12 = vpop.permute.xlu2 %1404 }
 0x113   : > { %v1730_v32 = vsub.f32 %v7074_v22, %v1554_v20  ;;  %v1558_v52 = vrot.slane %v1557_v51, 2  ;;  %v1315_v47 = vsel %vm1251_vm8, %v1219_v4, %v1283_v6  ;;  %v1856_v22 = vadd.f32 %v1855_v39, %v1854_v30  ;;  %9618 = vst [vmem:[#allocation51_spill] sm:$0xff] %v7127_v12 }
 0x114   : > { %v7115_v28 = vadd.f32 %v7108_v23, %v1315_v47  ;;  %v7117_v54 = vpop.f32.mrf.mxu0  ;;  %2124 = vperm.xlu1 %5733, %v2078_v21   ;;  %5763 = vrcp.f32 %v1853_v55 }
 0x115   : > { %v1769_v49 = vmul.f32 1.442695, %v1730_v32  ;;  %v1559_v2 = vmax.f32 %v1557_v51, %v1558_v52  ;;  %v1183_v25 = vadd.f32 %v1119_v8, %v7117_v54  ;;  %v1857_v8 = vrot.slane %v1856_v22, 2 }
 0x116   : > { %v7120_v60 = vpop.eup %5761  ;;  %v1562_v57 = vsel %vm1498_vm9, %v7115_v28, -inf  ;;  %v1120_v51 = vperm.slane %v7051_v13, 3 }
 0x117   : > { %v1861_v53 = vsel %vm1498_vm9, %v7120_v60, 0.0  ;;  %5765 = vpow2.f32 %v1769_v49  ;;  %v1560_v44 = vrot.slane %v1559_v2, 1  ;;  %v1563_v3 = vrot.slane %v1562_v57, 4  ;;  %1051 = vmatmul.f32.gmra.mxu0 %v6846_v33 }
 0x118   : > { %v1862_v4 = vrot.slane %v1861_v53, 4  ;;  %v1220_v5 = vadd.f32 %v6898_v27, %v1183_v25  ;;  %v1858_v30 = vadd.f32 %v1857_v8, %v1856_v22 }
 0x119   : > { %v1561_v7 = vmax.f32 %v1559_v2, %v1560_v44  ;;  %v1564_v20 = vmax.f32 %v1562_v57, %v1563_v3 }
 0x11a   : > { %v5764_v6 = vpop.eup %5763  ;;  %v1863_v21 = vadd.f32 %v1862_v4, %v1861_v53  ;;  %vm1252_vm10 = vcmp.gt.f32.partialorder %v1220_v5, 0.0  ;;  %v1284_v55 = vmul.f32 0.01, %v1220_v5  ;;  %v1859_v25 = vrot.slane %v1858_v30, 1 }
 0x11b   : > { %v1731_v32 = vsub.f32 %v7094_v41, %v1561_v7  ;;  %v1565_v52 = vrot.slane %v1564_v20, 2  ;;  %v2079_v33 = vmul.f32 %v5764_v6, %v7080_v61 }
 0x11c   : > { %v1864_v47 = vrot.slane %v1863_v21, 2  ;;  %v1316_v39 = vsel %vm1252_vm10, %v1220_v5, %v1284_v55  ;;  %v7133_v49 = vpop.f32.mrf.mxu0  ;;  %v1860_v22 = vadd.f32 %v1859_v25, %v1858_v30 }
 0x11d   : > { %v7135_v23 = vpop.eup %5765  ;;  %v1566_v2 = vmax.f32 %v1564_v20, %v1565_v52  ;;  %v7138_v57 = vadd.f32 %v7023_v56, %v1316_v39  ;;  %v1184_v53 = vadd.f32 %v1120_v51, %v7133_v49  ;;  %2129 = vperm.xlu2 %5734, %v2079_v33   ;;  %v1771_v61 = vmul.f32 1.442695, %v1731_v32  ;;  %v7150_v32 = vpop.permute.xlu2 %1406 }
 0x11e   : > { %v1868_v41 = vsel %vm1498_vm9, %v7135_v23, 0.0  ;;  %v1865_v44 = vadd.f32 %v1864_v47, %v1863_v21  ;;  %v1121_v20 = vperm.slane %v7051_v13, 4  ;;  %5767 = vrcp.f32 %v1860_v22  ;;  %v7148_v21 = vpop.permute.xlu0 %1392  ;;  %9620 = vst [vmem:[#allocation53_spill] sm:$0xff] %v7150_v32 }
 0x11f   : > { %v1869_v3 = vrot.slane %v1868_v41, 4  ;;  %v1567_v4 = vrot.slane %v1566_v2, 1  ;;  %v1569_v5 = vsel %vm1498_vm9, %v7138_v57, -inf  ;;  %v1221_v8 = vadd.f32 %v6898_v27, %v1184_v53  ;;  %1054 = vmatmul.f32.gmra.mxu0 %v6853_v36  ;;  %9619 = vst [vmem:[#allocation52_spill] sm:$0xff] %v7148_v21 }
 0x120   : > { %v1570_v7 = vrot.slane %v1569_v5, 4  ;;  %v1866_v51 = vrot.slane %v1865_v44, 1  ;;  %5769 = vpow2.f32 %v1771_v61 }
 0x121   : > { %v1870_v6 = vadd.f32 %v1869_v3, %v1868_v41  ;;  %v1568_v55 = vmax.f32 %v1566_v2, %v1567_v4  ;;  %vm1253_vm11 = vcmp.gt.f32.partialorder %v1221_v8, 0.0  ;;  %v1285_v30 = vmul.f32 0.01, %v1221_v8 }
 0x122   : > { %v1571_v52 = vmax.f32 %v1569_v5, %v1570_v7  ;;  %v1867_v33 = vadd.f32 %v1866_v51, %v1865_v44  ;;  %v1122_v51 = vperm.slane %v7051_v13, 5 }
 0x123   : > { %v1871_v47 = vrot.slane %v1870_v6, 2  ;;  %v1732_v39 = vsub.f32 %v7115_v28, %v1568_v55  ;;  %v1317_v36 = vsel %vm1253_vm11, %v1221_v8, %v1285_v30 }
 0x124   : > { %v1572_v25 = vrot.slane %v1571_v52, 2  ;;  %v7154_v53 = vadd.f32 %v7148_v21, %v1317_v36  ;;  %v7156_v22 = vpop.f32.mrf.mxu0  ;;  %5771 = vrcp.f32 %v1867_v33  ;;  %v5768_v4 = vpop.eup %5767 }
 0x125   : > { %v1773_v2 = vmul.f32 1.442695, %v1732_v39  ;;  %v1185_v41 = vadd.f32 %v1121_v20, %v7156_v22  ;;  %v1872_v3 = vadd.f32 %v1871_v47, %v1870_v6  ;;  %v2080_v5 = vmul.f32 %v5768_v4, %v7105_v19 }
 0x126   : > { %v1573_v56 = vmax.f32 %v1571_v52, %v1572_v25  ;;  %v1576_v44 = vsel %vm1498_vm9, %v7154_v53, -inf  ;;  %v7164_v8 = vpop.eup %5769  ;;  %v7170_v25 = vpop.permute.xlu2 %1408 }
 0x127   : > { %5773 = vpow2.f32 %v1773_v2  ;;  %v1577_v61 = vrot.slane %v1576_v44, 4  ;;  %v1222_v28 = vadd.f32 %v6898_v27, %v1185_v41  ;;  %1057 = vmatmul.f32.gmra.mxu0 %v6857_v38  ;;  %v1873_v20 = vrot.slane %v1872_v3, 1  ;;  %2134 = vperm.xlu0 %5732, %v2080_v5   ;;  %9621 = vst [vmem:[#allocation54_spill] sm:$0xff] %v7170_v25 }
 0x128   : > { %v1574_v7 = vrot.slane %v1573_v56, 1  ;;  %v1875_v30 = vsel %vm1498_vm9, %v7164_v8, 0.0 }
 0x129   : > { %v1578_v6 = vmax.f32 %v1576_v44, %v1577_v61  ;;  %vm1254_vm12 = vcmp.gt.f32.partialorder %v1222_v28, 0.0  ;;  %v1286_v55 = vmul.f32 0.01, %v1222_v28  ;;  %v1874_v47 = vadd.f32 %v1873_v20, %v1872_v3 }
 0x12a   : > { %v5772_v52 = vpop.eup %5771  ;;  %v1575_v33 = vmax.f32 %v1573_v56, %v1574_v7  ;;  %v1876_v39 = vrot.slane %v1875_v30, 4 }
 0x12b   : > { %v1579_v19 = vrot.slane %v1578_v6, 2  ;;  %v1318_v36 = vsel %vm1254_vm12, %v1222_v28, %v1286_v55  ;;  %v2081_v38 = vmul.f32 %v5772_v52, %v7120_v60  ;;  %5775 = vrcp.f32 %v1874_v47 }
 0x12c   : > { %v1733_v2 = vsub.f32 %v7138_v57, %v1575_v33  ;;  %v7174_v41 = vadd.f32 %v7049_v15, %v1318_v36  ;;  %v7176_v4 = vpop.f32.mrf.mxu0  ;;  %v1877_v44 = vadd.f32 %v1876_v39, %v1875_v30  ;;  %v1123_v36 = vperm.slane %v7051_v13, 6 }
 0x12d   : > { %v7178_v61 = vpop.eup %5773  ;;  %v1580_v56 = vmax.f32 %v1578_v6, %v1579_v19  ;;  %v1186_v3 = vadd.f32 %v1122_v51, %v7176_v4  ;;  %2139 = vperm.xlu1 %5733, %v2081_v38   ;;  %v7187_v19 = vpop.permute.xlu0 %1396 }
 0x12e   : > { %v1882_v60 = vsel %vm1498_vm9, %v7178_v61, 0.0  ;;  %v1583_v28 = vsel %vm1498_vm9, %v7174_v41, -inf  ;;  %v1878_v57 = vrot.slane %v1877_v44, 2  ;;  %v1775_v5 = vmul.f32 1.442695, %v1733_v2  ;;  %9622 = vst [vmem:[#allocation55_spill] sm:$0xff] %v7187_v19 }
 0x12f   : > { %v1883_v7 = vrot.slane %v1882_v60, 4  ;;  %v1581_v20 = vrot.slane %v1580_v56, 1  ;;  %v1584_v55 = vrot.slane %v1583_v28, 4  ;;  %v1223_v52 = vadd.f32 %v6898_v27, %v1186_v3  ;;  %1060 = vmatmul.f32.gmra.mxu0 %v6864_v42 }
 0x130   : > { %v1879_v30 = vadd.f32 %v1878_v57, %v1877_v44  ;;  %5777 = vpow2.f32 %v1775_v5 }
 0x131   : > { %v1884_v6 = vadd.f32 %v1883_v7, %v1882_v60  ;;  %v1582_v51 = vmax.f32 %v1580_v56, %v1581_v20  ;;  %v1585_v33 = vmax.f32 %v1583_v28, %v1584_v55  ;;  %vm1255_vm13 = vcmp.gt.f32.partialorder %v1223_v52, 0.0  ;;  %v5776_v47 = vpop.eup %5775  ;;  %v7194_v56 = vpop.xlane.xlu1 %953 }
 0x132   : > { %v1287_v39 = vmul.f32 0.01, %v1223_v52  ;;  %v1880_v38 = vrot.slane %v1879_v30, 1  ;;  %v2082_v3 = vmul.f32 %v5776_v47, %v7135_v23  ;;  %v7199_v7 = vpop.permute.xlu2 %1412 }
 0x133   : > { %v1885_v2 = vrot.slane %v1884_v6, 2  ;;  %v1734_v15 = vsub.f32 %v7154_v53, %v1582_v51  ;;  %v1586_v21 = vrot.slane %v1585_v33, 2  ;;  %9623 = vst [vmem:[#allocation56_spill] sm:$0xff] %v7199_v7 }
 0x134   : > { %v1319_v42 = vsel %vm1255_vm13, %v1223_v52, %v1287_v39  ;;  %v7192_v44 = vpop.f32.mrf.mxu0  ;;  %v1881_v60 = vadd.f32 %v1880_v38, %v1879_v30  ;;  %2144 = vperm.xlu2 %5734, %v2082_v3   ;;  %v1124_v39 = vperm.slane %v7051_v13, 7 }
 0x135   : > { %v1777_v28 = vmul.f32 1.442695, %v1734_v15  ;;  %v1587_v57 = vmax.f32 %v1585_v33, %v1586_v21  ;;  %v7197_v5 = vadd.f32 %v7187_v19, %v1319_v42  ;;  %v1187_v53 = vadd.f32 %v1123_v36, %v7192_v44 }
 0x136   : > { %v7201_v20 = vpop.eup %5777  ;;  %5779 = vrcp.f32 %v1881_v60  ;;  %v1886_v23 = vadd.f32 %v1885_v2, %v1884_v6 }
 0x137   : > { %5781 = vpow2.f32 %v1777_v28  ;;  %v1588_v55 = vrot.slane %v1587_v57, 1  ;;  %v1590_v52 = vsel %vm1498_vm9, %v7197_v5, -inf  ;;  %1063 = vmatmul.f32.gmra.mxu0 %v6869_v45  ;;  %v1889_v15 = vsel %vm1498_vm9, %v7201_v20, 0.0 }
 0x138   : > { %v1591_v21 = vrot.slane %v1590_v52, 4  ;;  %v1224_v30 = vadd.f32 %v6898_v27, %v1187_v53  ;;  %v1887_v51 = vrot.slane %v1886_v23, 1  ;;  %v1890_v33 = vrot.slane %v1889_v15, 4 }
 0x139   : > { %v1589_v47 = vmax.f32 %v1587_v57, %v1588_v55 }
 0x13a   : > { %v1592_v36 = vmax.f32 %v1590_v52, %v1591_v21  ;;  %vm1256_vm14 = vcmp.gt.f32.partialorder %v1224_v30, 0.0  ;;  %v1288_v6 = vmul.f32 0.01, %v1224_v30  ;;  %v1888_v38 = vadd.f32 %v1887_v51, %v1886_v23  ;;  %v7223_v52 = vpop.permute.xlu1 %1402 }
 0x13b   : > { %v1735_v2 = vsub.f32 %v7174_v41, %v1589_v47  ;;  %v1891_v3 = vadd.f32 %v1890_v33, %v1889_v15  ;;  %9625 = vst [vmem:[#allocation58_spill] sm:$0xff] %v7223_v52  ;;  %v6205_v47 = vld [vmem:[%s6562_s10 + $0xf8] sm:$0xff] }
 0x13c   : > { %v5780_v42 = vpop.eup %5779  ;;  %v1593_v45 = vrot.slane %v1592_v36, 2  ;;  %v1320_v60 = vsel %vm1256_vm14, %v1224_v30, %v1288_v6  ;;  %v7212_v28 = vpop.f32.mrf.mxu0  ;;  %5783 = vrcp.f32 %v1888_v38  ;;  %v1125_v38 = vperm.slane %v7194_v56, 0 }
 0x13d   : > { %9624 = vst [vmem:[#allocation57_spill] sm:$0xff] %v7212_v28  ;;  %v7214_v53 = vpop.eup %5781  ;;  %v7217_v57 = vadd.f32 %v7071_v11, %v1320_v60  ;;  %v1188_v13 = vadd.f32 %v1124_v39, %v7212_v28  ;;  %v2083_v55 = vmul.f32 %v5780_v42, %v7164_v8  ;;  %v1892_v15 = vrot.slane %v1891_v3, 2  ;;  %v7229_v39 = vpop.permute.xlu2 %1418 }
 0x13e   : > { %v1896_v41 = vsel %vm1498_vm9, %v7214_v53, 0.0  ;;  %v1594_v23 = vmax.f32 %v1592_v36, %v1593_v45  ;;  %v1779_v21 = vmul.f32 1.442695, %v1735_v2  ;;  %9626 = vst [vmem:[#allocation59_spill] sm:$0xff] %v7229_v39 }
 0x13f   : > { %v1897_v30 = vrot.slane %v1896_v41, 4  ;;  %v1597_v51 = vsel %vm1498_vm9, %v7217_v57, -inf  ;;  %v1225_v33 = vadd.f32 %v6898_v27, %v1188_v13  ;;  %2149 = vperm.xlu0 %5732, %v2083_v55   ;;  %1066 = vmatmul.f32.gmra.mxu0 %v6205_v47  ;;  %v1893_v36 = vadd.f32 %v1892_v15, %v1891_v3 }
 0x140   : > { %v1595_v8 = vrot.slane %v1594_v23, 1  ;;  %v1598_v6 = vrot.slane %v1597_v51, 4  ;;  %5785 = vpow2.f32 %v1779_v21 }
 0x141   : > { %v1898_v42 = vadd.f32 %v1897_v30, %v1896_v41  ;;  %vm1257_vm15 = vcmp.gt.f32.partialorder %v1225_v33, 0.0  ;;  %v1289_v45 = vmul.f32 0.01, %v1225_v33  ;;  %v1894_v11 = vrot.slane %v1893_v36, 1 }
 0x142   : > { %v5784_v2 = vpop.eup %5783  ;;  %v1596_v60 = vmax.f32 %v1594_v23, %v1595_v8  ;;  %v1599_v19 = vmax.f32 %v1597_v51, %v1598_v6  ;;  %v7246_v6 = vpop.permute.xlu1 %1410 }
 0x143   : > { %v1899_v46 = vrot.slane %v1898_v42, 2  ;;  %v1321_v13 = vsel %vm1257_vm15, %v1225_v33, %v1289_v45  ;;  %v2084_v55 = vmul.f32 %v5784_v2, %v7178_v61  ;;  %v1895_v3 = vadd.f32 %v1894_v11, %v1893_v36  ;;  %9627 = vst [vmem:[#allocation60_spill] sm:$0xff] %v7246_v6 }
 0x144   : > { %v1736_v47 = vsub.f32 %v7197_v5, %v1596_v60  ;;  %v1600_v28 = vrot.slane %v1599_v19, 2  ;;  %v7235_v1 = vadd.f32 %v7099_v29, %v1321_v13  ;;  %v7237_v59 = vpop.f32.mrf.mxu0  ;;  %v1126_v11 = vperm.slane %v7194_v56, 1 }
 0x145   : > { %v1189_v41 = vadd.f32 %v1125_v38, %v7237_v59  ;;  %2154 = vperm.xlu1 %5733, %v2084_v55   ;;  %v1900_v15 = vadd.f32 %v1899_v46, %v1898_v42  ;;  %5787 = vrcp.f32 %v1895_v3  ;;  %v7250_v38 = vpop.permute.xlu2 %1422 }
 0x146   : > { %v1781_v23 = vmul.f32 1.442695, %v1736_v47  ;;  %v1601_v21 = vmax.f32 %v1599_v19, %v1600_v28  ;;  %v1604_v30 = vsel %vm1498_vm9, %v7235_v1, -inf  ;;  %v7242_v61 = vpop.eup %5785  ;;  %9628 = vst [vmem:[#allocation61_spill] sm:$0xff] %v7250_v38 }
 0x147   : > { %v1605_v5 = vrot.slane %v1604_v30, 4  ;;  %v1226_v51 = vadd.f32 %v6898_v27, %v1189_v41  ;;  %v1901_v33 = vrot.slane %v1900_v15, 1  ;;  %v1903_v46 = vsel %vm1498_vm9, %v7242_v61, 0.0 }
 0x148   : > { %5789 = vpow2.f32 %v1781_v23  ;;  %v1602_v8 = vrot.slane %v1601_v21, 1  ;;  %v1904_v45 = vrot.slane %v1903_v46, 4 }
 0x149   : > { %v1606_v19 = vmax.f32 %v1604_v30, %v1605_v5  ;;  %vm1258_vm7 = vcmp.gt.f32.partialorder %v1226_v51, 0.0  ;;  %v1290_v28 = vmul.f32 0.01, %v1226_v51  ;;  %v1902_v36 = vadd.f32 %v1901_v33, %v1900_v15 }
 0x14a   : > { %v1603_v42 = vmax.f32 %v1601_v21, %v1602_v8  ;;  %v1905_v41 = vadd.f32 %v1904_v45, %v1903_v46 }
 0x14b   : > { %v1607_v2 = vrot.slane %v1606_v19, 2  ;;  %v1322_v60 = vsel %vm1258_vm7, %v1226_v51, %v1290_v28  ;;  %5791 = vrcp.f32 %v1902_v36  ;;  %v5788_v13 = vpop.eup %5787 }
 0x14c   : > { %v1737_v55 = vsub.f32 %v7217_v57, %v1603_v42  ;;  %v7254_v47 = vadd.f32 %v7223_v52, %v1322_v60  ;;  %v7256_v3 = vpop.f32.mrf.mxu0  ;;  %v2085_v5 = vmul.f32 %v5788_v13, %v7201_v20  ;;  %v1906_v51 = vrot.slane %v1905_v41, 2 }
 0x14d   : > { %9629 = vst [vmem:[#allocation62_spill] sm:$0xff] %v7256_v3  ;;  %v1608_v23 = vmax.f32 %v1606_v19, %v1607_v2  ;;  %v1190_v30 = vadd.f32 %v1126_v11, %v7256_v3  ;;  %v1127_v11 = vperm.slane %v7194_v56, 2  ;;  %v7272_v3 = vpop.permute.xlu2 %1426 }
 0x14e   : > { %v7260_v15 = vpop.eup %5789  ;;  %v1611_v21 = vsel %vm1498_vm9, %v7254_v47, -inf  ;;  %v1783_v33 = vmul.f32 1.442695, %v1737_v55  ;;  %2159 = vperm.xlu2 %5734, %v2085_v5   ;;  %v1907_v19 = vadd.f32 %v1906_v51, %v1905_v41  ;;  %v7269_v55 = vpop.permute.xlu1 %1414  ;;  %9631 = vst [vmem:[#allocation64_spill] sm:$0xff] %v7272_v3 }
 0x14f   : > { %v1910_v57 = vsel %vm1498_vm9, %v7260_v15, 0.0  ;;  %v1609_v8 = vrot.slane %v1608_v23, 1  ;;  %v1612_v28 = vrot.slane %v1611_v21, 4  ;;  %v1227_v36 = vadd.f32 %v6898_v27, %v1190_v30  ;;  %9630 = vst [vmem:[#allocation63_spill] sm:$0xff] %v7269_v55 }
 0x150   : > { %v1911_v46 = vrot.slane %v1910_v57, 4  ;;  %5793 = vpow2.f32 %v1783_v33  ;;  %v1908_v29 = vrot.slane %v1907_v19, 1 }
 0x151   : > { %v5792_v20 = vpop.eup %5791  ;;  %v1610_v42 = vmax.f32 %v1608_v23, %v1609_v8  ;;  %v1613_v45 = vmax.f32 %v1611_v21, %v1612_v28  ;;  %vm1259_vm8 = vcmp.gt.f32.partialorder %v1227_v36, 0.0  ;;  %v1291_v2 = vmul.f32 0.01, %v1227_v36 }
 0x152   : > { %v1912_v60 = vadd.f32 %v1911_v46, %v1910_v57  ;;  %v2086_v13 = vmul.f32 %v5792_v20, %v7214_v53  ;;  %v1909_v21 = vadd.f32 %v1908_v29, %v1907_v19  ;;  %v1128_v29 = vperm.slane %v7194_v56, 3 }
 0x153   : > { %v1738_v52 = vsub.f32 %v7235_v1, %v1610_v42  ;;  %v1614_v30 = vrot.slane %v1613_v45, 2  ;;  %v1323_v5 = vsel %vm1259_vm8, %v1227_v36, %v1291_v2 }
 0x154   : > { %v1913_v10 = vrot.slane %v1912_v60, 2  ;;  %v7275_v41 = vadd.f32 %v7127_v12, %v1323_v5  ;;  %v7277_v23 = vpop.f32.mrf.mxu0  ;;  %2164 = vperm.xlu0 %5732, %v2086_v13   ;;  %5795 = vrcp.f32 %v1909_v21 }
 0x155   : > { %9632 = vst [vmem:[#allocation65_spill] sm:$0xff] %v7277_v23  ;;  %v1615_v51 = vmax.f32 %v1613_v45, %v1614_v30  ;;  %v1191_v53 = vadd.f32 %v1127_v11, %v7277_v23  ;;  %v1785_v33 = vmul.f32 1.442695, %v1738_v52 }
 0x156   : > { %v7280_v57 = vpop.eup %5793  ;;  %v1618_v1 = vsel %vm1498_vm9, %v7275_v41, -inf  ;;  %v1914_v8 = vadd.f32 %v1913_v10, %v1912_v60  ;;  %v7294_v12 = vpop.permute.xlu1 %1420 }
 0x157   : > { %v1616_v28 = vrot.slane %v1615_v51, 1  ;;  %v1619_v36 = vrot.slane %v1618_v1, 4  ;;  %v1228_v46 = vadd.f32 %v6898_v27, %v1191_v53  ;;  %v1917_v20 = vsel %vm1498_vm9, %v7280_v57, 0.0  ;;  %9634 = vst [vmem:[#allocation67_spill] sm:$0xff] %v7294_v12 }
 0x158   : > { %v1915_v19 = vrot.slane %v1914_v8, 1  ;;  %v1918_v42 = vrot.slane %v1917_v20, 4  ;;  %5797 = vpow2.f32 %v1785_v33 }
 0x159   : > { %v1617_v52 = vmax.f32 %v1615_v51, %v1616_v28  ;;  %v1620_v11 = vmax.f32 %v1618_v1, %v1619_v36  ;;  %vm1260_vm10 = vcmp.gt.f32.partialorder %v1228_v46, 0.0  ;;  %v1292_v45 = vmul.f32 0.01, %v1228_v46 }
 0x15a   : > { %v1916_v2 = vadd.f32 %v1915_v19, %v1914_v8  ;;  %v1919_v13 = vadd.f32 %v1918_v42, %v1917_v20  ;;  %v5796_v5 = vpop.eup %5795  ;;  %v7297_v8 = vpop.permute.xlu2 %1432 }
 0x15b   : > { %v1739_v10 = vsub.f32 %v7254_v47, %v1617_v52  ;;  %v1621_v60 = vrot.slane %v1620_v11, 2  ;;  %v1324_v30 = vsel %vm1260_vm10, %v1228_v46, %v1292_v45  ;;  %9635 = vst [vmem:[#allocation68_spill] sm:$0xff] %v7297_v8  ;;  %v2087_v46 = vmul.f32 %v5796_v5, %v7242_v61  ;;  %v7304_v20 = vpop.xlane.xlu0 %955 }
 0x15c   : > { %v7290_v21 = vadd.f32 %v7150_v32, %v1324_v30  ;;  %v7292_v53 = vpop.f32.mrf.mxu0  ;;  %5799 = vrcp.f32 %v1916_v2  ;;  %v1920_v33 = vrot.slane %v1919_v13, 2 }
 0x15d   : > { %9633 = vst [vmem:[#allocation66_spill] sm:$0xff] %v7292_v53  ;;  %v1787_v51 = vmul.f32 1.442695, %v1739_v10  ;;  %v1622_v1 = vmax.f32 %v1620_v11, %v1621_v60  ;;  %v1192_v28 = vadd.f32 %v1128_v29, %v7292_v53  ;;  %2169 = vperm.xlu1 %5733, %v2087_v46   ;;  %v1129_v29 = vperm.slane %v7194_v56, 4  ;;  %v778_v10 = vld [vmem:[#allocation7 + $0x3e0] sm:$0xff] }
 0x15e   : > { %v7299_v36 = vpop.eup %5797  ;;  %v1625_v47 = vsel %vm1498_vm9, %v7290_v21, -inf  ;;  %v1921_v19 = vadd.f32 %v1920_v33, %v1919_v13  ;;  %2817 = vmatpush.msra.mxu2 %v778_v10  ;;  %v7315_v53 = vld [vmem:[%s9477_s3] ss:$0 sm:$0xff] }
 0x15f   : > { %5801 = vpow2.f32 %v1787_v51  ;;  %v1623_v42 = vrot.slane %v1622_v1, 1  ;;  %v1626_v52 = vrot.slane %v1625_v47, 4  ;;  %v1229_v45 = vadd.f32 %v6898_v27, %v1192_v28  ;;  %v774_v51 = vld [vmem:[#allocation7 + $0x3c0] sm:$0xff] }
 0x160   : > { %v1922_v11 = vrot.slane %v1921_v19, 1  ;;  %v1924_v2 = vsel %vm1498_vm9, %v7299_v36, 0.0  ;;  %2818 = vmatpush.msra.mxu2 %v774_v51 }
 0x161   : > { %v1624_v60 = vmax.f32 %v1622_v1, %v1623_v42  ;;  %v1627_v30 = vmax.f32 %v1625_v47, %v1626_v52  ;;  %vm1261_vm11 = vcmp.gt.f32.partialorder %v1229_v45, 0.0  ;;  %v1293_v61 = vmul.f32 0.01, %v1229_v45  ;;  %v770_v42 = vld [vmem:[#allocation7 + $0x3a0] sm:$0xff] }
 0x162   : > { %v5800_v5 = vpop.eup %5799  ;;  %v1923_v13 = vadd.f32 %v1922_v11, %v1921_v19  ;;  %v1925_v33 = vrot.slane %v1924_v2, 4  ;;  %2819 = vmatpush.msra.mxu2 %v770_v42 }
 0x163   : > { %v1740_v32 = vsub.f32 %v7275_v41, %v1624_v60  ;;  %v1628_v28 = vrot.slane %v1627_v30, 2  ;;  %v1325_v46 = vsel %vm1261_vm11, %v1229_v45, %v1293_v61  ;;  %v2088_v23 = vmul.f32 %v5800_v5, %v7260_v15  ;;  %v7331_v61 = vpop.permute.xlu1 %1424  ;;  %v766_v5 = vld [vmem:[#allocation7 + $0x380] sm:$0xff]  ;;  %v7334_v51 = vpop.permute.xlu0 %1416 }
 0x164   : > { %v7318_v1 = vadd.f32 %v7170_v25, %v1325_v46  ;;  %v7320_v47 = vpop.f32.mrf.mxu0  ;;  %5803 = vrcp.f32 %v1923_v13  ;;  %v1926_v19 = vadd.f32 %v1925_v33, %v1924_v2  ;;  %v1075_v60 = vadd.f32 %v7315_v53, %v6963_v14  ;;  %9637 = vst [vmem:[#allocation70_spill] sm:$0xff] %v7331_v61  ;;  %2820 = vmatpush.msra.mxu2 %v766_v5  ;;  %v762_v46 = vld [vmem:[#allocation7 + $0x360] sm:$0xff] }
 0x165   : > { %9636 = vst [vmem:[#allocation69_spill] sm:$0xff] %v7320_v47  ;;  %v7322_v52 = vpop.eup %5801  ;;  %v1629_v41 = vmax.f32 %v1627_v30, %v1628_v28  ;;  %v1193_v45 = vadd.f32 %v1129_v29, %v7320_v47  ;;  %2174 = vperm.xlu2 %5734, %v2088_v23   ;;  %v1789_v15 = vmul.f32 1.442695, %v1740_v32  ;;  %v1130_v14 = vperm.slane %v7194_v56, 5  ;;  %v758_v61 = vld [vmem:[#allocation7 + $0x340] sm:$0xff] }
 0x166   : > { %v1931_v11 = vsel %vm1498_vm9, %v7322_v52, 0.0  ;;  %v1632_v10 = vsel %vm1498_vm9, %v7318_v1, -inf  ;;  %v1927_v2 = vrot.slane %v1926_v19, 2  ;;  %9638 = vst [vmem:[#allocation71_spill] sm:$0xff] %v7334_v51  ;;  %2821 = vmatpush.msra.mxu2 %v762_v46 }
 0x167   : > { %v1932_v13 = vrot.slane %v1931_v11, 4  ;;  %v1630_v30 = vrot.slane %v1629_v41, 1  ;;  %v1633_v33 = vrot.slane %v1632_v10, 4  ;;  %v1230_v23 = vadd.f32 %v6898_v27, %v1193_v45  ;;  %v2120_v29 = vpop.permute.xlu2 %2119 }
 0x168   : > { %v2269_v32 = vmul.f32 %v2120_v29, %v1075_v60  ;;  %v1928_v28 = vadd.f32 %v1927_v2, %v1926_v19  ;;  %5805 = vpow2.f32 %v1789_v15  ;;  %2822 = vmatpush.msra.mxu2 %v758_v61 }
 0x169   : > { %v1933_v42 = vadd.f32 %v1932_v13, %v1931_v11  ;;  %vm1262_vm12 = vcmp.gt.f32.partialorder %v1230_v23, 0.0  ;;  %v1294_v47 = vmul.f32 0.01, %v1230_v23  ;;  %v1631_v45 = vmax.f32 %v1629_v41, %v1630_v30  ;;  %v754_v11 = vld [vmem:[#allocation7 + $0x320] sm:$0xff] }
 0x16a   : > { %v5804_v25 = vpop.eup %5803  ;;  %v2311_v8 = vrot.slane %v2269_v32, 4  ;;  %v1929_v3 = vrot.slane %v1928_v28, 1  ;;  %v1634_v43 = vmax.f32 %v1632_v10, %v1633_v33  ;;  %2823 = vmatpush.msra.mxu2 %v754_v11  ;;  %v750_v10 = vld [vmem:[#allocation7 + $0x300] sm:$0xff]  ;;  %v7363_v11 = vadd.f32 %v7315_v53, %v6987_v34 }
 0x16b   : > { %v1934_v48 = vrot.slane %v1933_v42, 2  ;;  %v2089_v60 = vmul.f32 %v5804_v25, %v7280_v57  ;;  %v1326_v5 = vsel %vm1262_vm12, %v1230_v23, %v1294_v47  ;;  %v1741_v25 = vsub.f32 %v7290_v21, %v1631_v45  ;;  %v7350_v61 = vpop.permute.xlu1 %1430  ;;  %v746_v23 = vld [vmem:[#allocation7 + $0x2e0] sm:$0xff] }
 0x16c   : > { %v7338_v19 = vpop.f32.mrf.mxu0  ;;  %v1930_v15 = vadd.f32 %v1929_v3, %v1928_v28  ;;  %v7341_v2 = vadd.f32 %v7246_v6, %v1326_v5  ;;  %v2312_v13 = vadd.f32 %v2311_v8, %v2269_v32  ;;  %v1635_v57 = vrot.slane %v1634_v43, 2  ;;  %9640 = vst [vmem:[#allocation73_spill] sm:$0xff] %v7350_v61  ;;  %2824 = vmatpush.msra.mxu2 %v750_v10  ;;  %v7355_v28 = vpop.permute.xlu0 %1428 }
 0x16d   : > { %9639 = vst [vmem:[#allocation72_spill] sm:$0xff] %v7338_v19  ;;  %v1194_v29 = vadd.f32 %v1130_v14, %v7338_v19  ;;  %2179 = vperm.xlu0 %5732, %v2089_v60   ;;  %v1935_v41 = vadd.f32 %v1934_v48, %v1933_v42  ;;  %v1131_v8 = vperm.slane %v7194_v56, 6  ;;  %v1074_v42 = vadd.f32 %v7315_v53, %v6945_v17 }
 0x16e   : > { %v7344_v46 = vpop.eup %5805  ;;  %5807 = vrcp.f32 %v1930_v15  ;;  %v1639_v48 = vsel %vm1498_vm9, %v7341_v2, -inf  ;;  %v2313_v32 = vrot.slane %v2312_v13, 2  ;;  %v1073_v14 = vadd.f32 %v7315_v53, %v6933_v0  ;;  %2825 = vmatpush.msra.mxu2 %v746_v23 }
 0x16f   : > { %v1231_v47 = vadd.f32 %v6898_v27, %v1194_v29  ;;  %v1938_v3 = vsel %vm1498_vm9, %v7344_v46, 0.0  ;;  %v1936_v30 = vrot.slane %v1935_v41, 1  ;;  %v1636_v5 = vmax.f32 %v1634_v43, %v1635_v57 }
 0x170   : > { %v1939_v33 = vrot.slane %v1938_v3, 4  ;;  %v1791_v29 = vmul.f32 1.442695, %v1741_v25  ;;  %v1640_v6 = vrot.slane %v1639_v48, 4  ;;  %v1077_v17 = vadd.f32 %v7315_v53, %v7001_v50 }
 0x171   : > { %vm1263_vm13 = vcmp.gt.f32.partialorder %v1231_v47, 0.0  ;;  %v1295_v21 = vmul.f32 0.01, %v1231_v47  ;;  %v1937_v45 = vadd.f32 %v1936_v30, %v1935_v41  ;;  %v7371_v0 = vadd.f32 %v7315_v53, %v7013_v58 }
 0x172   : > { %v1940_v60 = vadd.f32 %v1939_v33, %v1938_v3  ;;  %v2314_v41 = vadd.f32 %v2313_v32, %v2312_v13  ;;  %v7377_v25 = vadd.f32 %v7315_v53, %v7076_v16  ;;  %v7384_v50 = vadd.f32 %v7315_v53, %v7054_v37 }
 0x173   : > { %v1327_v15 = vsel %vm1263_vm13, %v1231_v47, %v1295_v21  ;;  %5809 = vrcp.f32 %v1937_v45  ;;  %v7388_v58 = vadd.f32 %v7315_v53, %v7037_v40  ;;  %v1637_v13 = vrot.slane %v1636_v5, 1 }
 0x174   : > { %v5808_v10 = vpop.eup %5807  ;;  %v7365_v19 = vpop.f32.mrf.mxu0  ;;  %v1941_v34 = vrot.slane %v1940_v60, 2  ;;  %v7380_v47 = vadd.f32 %v7199_v7, %v1327_v15  ;;  %5811 = vpow2.f32 %v1791_v29  ;;  %v7393_v16 = vadd.f32 %v7315_v53, %v7096_v26 }
 0x175   : > { %9641 = vst [vmem:[#allocation74_spill] sm:$0xff] %v7365_v19  ;;  %v1195_v43 = vadd.f32 %v1131_v8, %v7365_v19  ;;  %v2090_v57 = vmul.f32 %v5808_v10, %v7299_v36  ;;  %v7397_v30 = vadd.f32 %v7315_v53, %v7117_v54  ;;  %v1641_v37 = vmax.f32 %v1639_v48, %v1640_v6 }
 0x176   : > { %v1942_v8 = vadd.f32 %v1941_v34, %v1940_v60  ;;  %v2315_v23 = vrot.slane %v2314_v41, 1  ;;  %v7401_v45 = vadd.f32 %v7315_v53, %v7133_v49  ;;  %v1646_v60 = vsel %vm1498_vm9, %v7380_v47, -inf }
 0x177   : > { %v1232_v3 = vadd.f32 %v6898_v27, %v1195_v43  ;;  %2184 = vperm.xlu1 %5733, %v2090_v57   ;;  %v2130_v36 = vpop.permute.xlu2 %2129  ;;  %v1132_v29 = vperm.slane %v7194_v56, 7  ;;  %v1638_v54 = vmax.f32 %v1636_v5, %v1637_v13 }
 0x178   : > { %v2271_v33 = vmul.f32 %v2130_v36, %v1077_v17  ;;  %v1943_v32 = vrot.slane %v1942_v8, 1  ;;  %9642 = vst [vmem:[#allocation75_spill] sm:$0xff] %v7401_v45  ;;  %v1642_v17 = vrot.slane %v1641_v37, 2  ;;  %v7414_v19 = vadd.f32 %v2315_v23, %v2314_v41 }
 0x179   : > { %vm1264_vm14 = vcmp.gt.f32.partialorder %v1232_v3, 0.0  ;;  %v1296_v40 = vmul.f32 0.01, %v1232_v3  ;;  %v5810_v21 = vpop.eup %5809  ;;  %v1647_v45 = vrot.slane %v1646_v60, 4 }
 0x17a   : > { %v2323_v26 = vrot.slane %v2271_v33, 4  ;;  %v2115_v15 = vpop.permute.xlu1 %2114  ;;  %v2091_v48 = vmul.f32 %v5810_v21, %v7322_v52  ;;  %v1944_v36 = vadd.f32 %v1943_v32, %v1942_v8  ;;  %v7412_v7 = vpop.eup %5811  ;;  %v1133_v8 = vperm.slane %v7304_v20, 0  ;;  %v742_v32 = vld [vmem:[#allocation7 + $0x2c0] sm:$0xff] }
 0x17b   : > { %v1328_v10 = vsel %vm1264_vm14, %v1232_v3, %v1296_v40  ;;  %v2268_v6 = vmul.f32 %v2115_v15, %v1074_v42  ;;  %v1742_v3 = vsub.f32 %v7318_v1, %v1638_v54  ;;  %2826 = vmatpush.msra.mxu2 %v742_v32  ;;  %v2527_v15 = vmul.f32 1.442695, %v7414_v19 }
 0x17c   : > { %v7408_v43 = vadd.f32 %v7269_v55, %v1328_v10  ;;  %v2324_v57 = vadd.f32 %v2323_v26, %v2271_v33  ;;  %v2110_v34 = vpop.permute.xlu0 %2109  ;;  %v7410_v49 = vpop.f32.mrf.mxu0  ;;  %2189 = vperm.xlu2 %5734, %v2091_v48   ;;  %5813 = vrcp.f32 %v1944_v36  ;;  %v1643_v26 = vmax.f32 %v1641_v37, %v1642_v17  ;;  %v738_v48 = vld [vmem:[#allocation7 + $0x2a0] sm:$0xff] }
 0x17d   : > { %9643 = vst [vmem:[#allocation76_spill] sm:$0xff] %v7410_v49  ;;  %v2305_v56 = vrot.slane %v2268_v6, 4  ;;  %v2267_v5 = vmul.f32 %v2110_v34, %v1073_v14  ;;  %v1196_v13 = vadd.f32 %v1132_v29, %v7410_v49  ;;  %v1945_v14 = vsel %vm1498_vm9, %v7412_v7, 0.0  ;;  %2827 = vmatpush.msra.mxu2 %v738_v48 }
 0x17e   : > { %v1653_v52 = vsel %vm1498_vm9, %v7408_v43, -inf  ;;  %v2325_v42 = vrot.slane %v2324_v57, 2  ;;  %v1648_v29 = vmax.f32 %v1646_v60, %v1647_v45  ;;  %v7431_v37 = vadd.f32 %v7315_v53, %v7176_v4 }
 0x17f   : > { %v1654_v33 = vrot.slane %v1653_v52, 4  ;;  %v2306_v40 = vadd.f32 %v2305_v56, %v2268_v6  ;;  %v2299_v23 = vrot.slane %v2267_v5, 4  ;;  %v1233_v21 = vadd.f32 %v6898_v27, %v1196_v13 }
 0x180   : > { %v2326_v41 = vadd.f32 %v2325_v42, %v2324_v57  ;;  %v7427_v57 = vadd.f32 %v7315_v53, %v7156_v22  ;;  %v1946_v56 = vrot.slane %v1945_v14, 4  ;;  %v734_v42 = vld [vmem:[#allocation7 + $0x280] sm:$0xff]  ;;  %5815 = vpow2.f32 %v2527_v15 }
 0x181   : > { %v2307_v10 = vrot.slane %v2306_v40, 2  ;;  %v2300_v54 = vadd.f32 %v2299_v23, %v2267_v5  ;;  %vm1265_vm15 = vcmp.gt.f32.partialorder %v1233_v21, 0.0  ;;  %v1297_v6 = vmul.f32 0.01, %v1233_v21  ;;  %2828 = vmatpush.msra.mxu2 %v734_v42 }
 0x182   : > { %v2327_v1 = vrot.slane %v2326_v41, 1  ;;  %v1655_v34 = vmax.f32 %v1653_v52, %v1654_v33  ;;  %v5814_v13 = vpop.eup %5813  ;;  %v1793_v5 = vmul.f32 1.442695, %v1742_v3  ;;  %v1649_v32 = vrot.slane %v1648_v29, 2  ;;  %v730_v52 = vld [vmem:[#allocation7 + $0x260] sm:$0xff] }
 0x183   : > { %v2308_v36 = vadd.f32 %v2307_v10, %v2306_v40  ;;  %v2301_v45 = vrot.slane %v2300_v54, 2  ;;  %v1329_v60 = vsel %vm1265_vm15, %v1233_v21, %v1297_v6  ;;  %v1644_v33 = vrot.slane %v1643_v26, 1  ;;  %2829 = vmatpush.msra.mxu2 %v730_v52 }
 0x184   : > { %v7433_v17 = vpop.f32.mrf.mxu0  ;;  %v7436_v22 = vadd.f32 %v7334_v51, %v1329_v60  ;;  %v7438_v40 = vadd.f32 %v2327_v1, %v2326_v41  ;;  %v1656_v21 = vrot.slane %v1655_v34, 2  ;;  %v2092_v3 = vmul.f32 %v5814_v13, %v7344_v46 }
 0x185   : > { %9644 = vst [vmem:[#allocation77_spill] sm:$0xff] %v7433_v17  ;;  %v2309_v23 = vrot.slane %v2308_v36, 1  ;;  %v2302_v10 = vadd.f32 %v2301_v45, %v2300_v54  ;;  %v1197_v4 = vadd.f32 %v1133_v8, %v7433_v17  ;;  %v1947_v15 = vadd.f32 %v1946_v56, %v1945_v14 }
 0x186   : > { %v2125_v48 = vpop.permute.xlu1 %2124  ;;  %v1660_v6 = vsel %vm1498_vm9, %v7436_v22, -inf  ;;  %v1650_v41 = vmax.f32 %v1648_v29, %v1649_v32  ;;  %2194 = vperm.xlu0 %5732, %v2092_v3   ;;  %v1134_v8 = vperm.slane %v7304_v20, 1  ;;  %5817 = vpow2.f32 %v1793_v5  ;;  %v5816_v14 = vpop.eup %5815 }
 0x187   : > { %v7444_v42 = vadd.f32 %v2309_v23, %v2308_v36  ;;  %v2303_v60 = vrot.slane %v2302_v10, 1  ;;  %v1661_v55 = vrot.slane %v1660_v6, 4  ;;  %v1234_v51 = vadd.f32 %v6898_v27, %v1197_v4 }
 0x188   : > { %v2270_v1 = vmul.f32 %v2125_v48, %v7363_v11  ;;  %v2531_v54 = vmul.f32 1.442695, %v7438_v40  ;;  %v7454_v36 = vadd.f32 %v7315_v53, %v7192_v44  ;;  %v1948_v29 = vrot.slane %v1947_v15, 2 }
 0x189   : > { %v7450_v45 = vadd.f32 %v2303_v60, %v2302_v10  ;;  %vm1266_vm7 = vcmp.gt.f32.partialorder %v1234_v51, 0.0  ;;  %v1298_v46 = vmul.f32 0.01, %v1234_v51  ;;  %v1662_v56 = vmax.f32 %v1660_v6, %v1661_v55  ;;  %v726_v10 = vld [vmem:[#allocation7 + $0x240] sm:$0xff] }
 0x18a   : > { %v2317_v13 = vrot.slane %v2270_v1, 4  ;;  %v7456_v32 = vmax.f32 %v1643_v26, %v1644_v33  ;;  %v1657_v11 = vmax.f32 %v1655_v34, %v1656_v21  ;;  %v2525_v23 = vmul.f32 1.442695, %v7444_v42  ;;  %2830 = vmatpush.msra.mxu2 %v726_v10 }
 0x18b   : > { %v1330_v5 = vsel %vm1266_vm7, %v1234_v51, %v1298_v46  ;;  %v1651_v4 = vrot.slane %v1650_v41, 1  ;;  %v5565_v55 = vadd.f32 -1.0, %v5816_v14  ;;  %5819 = vpow2.f32 %v2531_v54 }
 0x18c   : > { %v7459_v52 = vpop.f32.mrf.mxu0  ;;  %v7462_v48 = vadd.f32 %v7229_v39, %v1330_v5  ;;  %v2318_v3 = vadd.f32 %v2317_v13, %v2270_v1  ;;  %v2523_v26 = vmul.f32 1.442695, %v7450_v45  ;;  %v1949_v33 = vadd.f32 %v1948_v29, %v1947_v15  ;;  %v7466_v34 = vpop.eup %5817  ;;  %v722_v5 = vld [vmem:[#allocation7 + $0x220] sm:$0xff] }
 0x18d   : > { %9645 = vst [vmem:[#allocation78_spill] sm:$0xff] %v7459_v52  ;;  %v1198_v44 = vadd.f32 %v1134_v8, %v7459_v52  ;;  %v1663_v21 = vrot.slane %v1662_v56, 2  ;;  %v1658_v1 = vrot.slane %v1657_v11, 1  ;;  %5821 = vpow2.f32 %v2525_v23  ;;  %2831 = vmatpush.msra.mxu2 %v722_v5  ;;  %v718_v29 = vld [vmem:[#allocation7 + $0x200] sm:$0xff] }
 0x18e   : > { %v1667_v51 = vsel %vm1498_vm9, %v7462_v48, -inf  ;;  %v2319_v6 = vrot.slane %v2318_v3, 2  ;;  %v2145_v46 = vpop.permute.xlu2 %2144  ;;  %v1950_v8 = vrot.slane %v1949_v33, 1  ;;  %v7472_v54 = vmax.f32 %v1650_v41, %v1651_v4 }
 0x18f   : > { %v1235_v60 = vadd.f32 %v6898_v27, %v1198_v44  ;;  %v2274_v14 = vmul.f32 %v2145_v46, %v7384_v50  ;;  %v1668_v15 = vrot.slane %v1667_v51, 4  ;;  %v1135_v17 = vperm.slane %v7304_v20, 2  ;;  %2832 = vmatpush.msra.mxu2 %v718_v29  ;;  %v714_v50 = vld [vmem:[#allocation7 + $0x1e0] sm:$0xff]  ;;  %v716_v46 = vld [vmem:[#allocation7 + $0x1f0] sm:$0xff] }
 0x190   : > { %v2320_v10 = vadd.f32 %v2319_v6, %v2318_v3  ;;  %v1951_v39 = vadd.f32 %v1950_v8, %v1949_v33  ;;  %v1952_v44 = vsel %vm1498_vm9, %v7466_v34, 0.0  ;;  %5823 = vpow2.f32 %v2523_v26  ;;  %2788 = vmatpush.msra.mxu1 %v714_v50 }
 0x191   : > { %vm1267_vm8 = vcmp.gt.f32.partialorder %v1235_v60, 0.0  ;;  %v1299_v13 = vmul.f32 0.01, %v1235_v60  ;;  %v1664_v23 = vmax.f32 %v1662_v56, %v1663_v21  ;;  %v2341_v52 = vrot.slane %v2274_v14, 4  ;;  %v5820_v41 = vpop.eup %5819  ;;  %2904 = vmatpush.msrb.mxu2 %v716_v46 }
 0x192   : > { %v7479_v4 = vadd.f32 %v7315_v53, %v7237_v59  ;;  %vm2493_vm10 = vcmp.gt.f32.partialorder %v7414_v19, 0.0  ;;  %v7482_v3 = vmax.f32 %v1657_v11, %v1658_v1  ;;  %v1669_v26 = vmax.f32 %v1667_v51, %v1668_v15 }
 0x193   : > { %v1331_v49 = vsel %vm1267_vm8, %v1235_v60, %v1299_v13  ;;  %5825 = vrcp.f32 %v1951_v39  ;;  %v1953_v21 = vrot.slane %v1952_v44, 4  ;;  %v5822_v60 = vpop.eup %5821  ;;  %v7492_v59 = vsel %vm2493_vm10, %v7414_v19, %v5565_v55 }
 0x194   : > { %v7485_v33 = vadd.f32 %v7294_v12, %v1331_v49  ;;  %v7487_v6 = vpop.f32.mrf.mxu0  ;;  %v2321_v11 = vrot.slane %v2320_v10, 1  ;;  %vm2495_vm11 = vcmp.gt.f32.partialorder %v7438_v40, 0.0  ;;  %v1665_v5 = vrot.slane %v1664_v23, 1 }
 0x195   : > { %9646 = vst [vmem:[#allocation79_spill] sm:$0xff] %v7487_v6  ;;  %v1199_v49 = vadd.f32 %v1135_v17, %v7487_v6  ;;  %v2342_v8 = vadd.f32 %v2341_v52, %v2274_v14  ;;  %v5567_v51 = vadd.f32 -1.0, %v5820_v41  ;;  %vm2492_vm12 = vcmp.gt.f32.partialorder %v7444_v42, 0.0 }
 0x196   : > { %v1674_v1 = vsel %vm1498_vm9, %v7485_v33, -inf  ;;  %v5824_v55 = vpop.eup %5823  ;;  %v5564_v15 = vadd.f32 -1.0, %v5822_v60  ;;  %vm2491_vm13 = vcmp.gt.f32.partialorder %v7450_v45, 0.0  ;;  %v1670_v17 = vrot.slane %v1669_v26, 2 }
 0x197   : > { %v1236_v19 = vadd.f32 %v6898_v27, %v1199_v49  ;;  %v1954_v13 = vadd.f32 %v1953_v21, %v1952_v44  ;;  %v2749_v29 = vsel %vm889_vm2, %v6612_v63, %v6610_v62  ;;  %v7508_v50 = vadd.f32 %v2321_v11, %v2320_v10 }
 0x198   : > { %v1675_v52 = vrot.slane %v1674_v1, 4  ;;  %v7510_v41 = vmax.f32 %v1664_v23, %v1665_v5  ;;  %v2343_v39 = vrot.slane %v2342_v8, 2  ;;  %v2750_v60 = vsel %vm892_vm3, %v6615_v9, %v2749_v29 }
 0x199   : > { %vm1268_vm14 = vcmp.gt.f32.partialorder %v1236_v19, 0.0  ;;  %v1300_v14 = vmul.f32 0.01, %v1236_v19  ;;  %v5826_v46 = vpop.eup %5825  ;;  %v1955_v49 = vrot.slane %v1954_v13, 2  ;;  %v2135_v53 = vpop.permute.xlu0 %2134  ;;  %v5563_v56 = vadd.f32 -1.0, %v5824_v55 }
 0x19a   : > { %v2093_v44 = vmul.f32 %v5826_v46, %v7412_v7  ;;  %v1136_v62 = vperm.slane %v7304_v20, 3  ;;  %v1671_v63 = vmax.f32 %v1669_v26, %v1670_v17  ;;  %v2272_v11 = vmul.f32 %v2135_v53, %v7371_v0 }
 0x19b   : > { %v1332_v21 = vsel %vm1268_vm14, %v1236_v19, %v1300_v14  ;;  %v1956_v23 = vadd.f32 %v1955_v49, %v1954_v13  ;;  %v2529_v5 = vmul.f32 1.442695, %v7508_v50  ;;  %v1676_v6 = vmax.f32 %v1674_v1, %v1675_v52  ;;  %v712_v52 = vld [vmem:[#allocation7 + $0x1d0] sm:$0xff]  ;;  %v706_v14 = vld [vmem:[#allocation7 + $0x1a0] sm:$0xff] }
 0x19c   : > { %v7515_v12 = vpop.f32.mrf.mxu0  ;;  %v7519_v10 = vadd.f32 %v7250_v38, %v1332_v21  ;;  %2199 = vperm.xlu1 %5733, %v2093_v44   ;;  %v2751_v9 = vsel %vm895_vm4, %v6622_v24, %v2750_v60  ;;  %v2344_v19 = vadd.f32 %v2343_v39, %v2342_v8  ;;  %v2329_v17 = vrot.slane %v2272_v11, 4  ;;  %2905 = vmatpush.msrb.mxu2 %v712_v52  ;;  %v684_v24 = vld [vmem:[#allocation7 + $0xf0] sm:$0xff] }
 0x19d   : > { %v1200_v7 = vadd.f32 %v1136_v62, %v7515_v12  ;;  %v1957_v26 = vrot.slane %v1956_v23, 1  ;;  %v7531_v13 = vsel %vm2495_vm11, %v7438_v40, %v5567_v51  ;;  %v2620_v0 = vsel %vm2492_vm12, %v7444_v42, %v5564_v15  ;;  %v710_v15 = vld [vmem:[#allocation7 + $0x1c0] sm:$0xff] }
 0x19e   : > { %v1681_v55 = vsel %vm1498_vm9, %v7519_v10, -inf  ;;  %v2752_v53 = vsel %vm898_vm5, %v6626_v31, %v2751_v9  ;;  %v2330_v39 = vadd.f32 %v2329_v17, %v2272_v11  ;;  %v2619_v40 = vsel %vm2491_vm13, %v7450_v45, %v5563_v56  ;;  %2789 = vmatpush.msra.mxu1 %v710_v15  ;;  %v708_v45 = vld [vmem:[#allocation7 + $0x1b0] sm:$0xff]  ;;  %v702_v62 = vld [vmem:[#allocation7 + $0x180] sm:$0xff] }
 0x19f   : > { %v1682_v1 = vrot.slane %v1681_v55, 4  ;;  %v1958_v8 = vadd.f32 %v1957_v26, %v1956_v23  ;;  %v7542_v29 = vsel %vm901_vm6, %v6632_v35, %v2752_v53  ;;  %v1672_v51 = vrot.slane %v1671_v63, 1  ;;  %v2140_v31 = vpop.permute.xlu1 %2139  ;;  %v704_v23 = vld [vmem:[#allocation7 + $0x190] sm:$0xff]  ;;  %2906 = vmatpush.msrb.mxu2 %v708_v45  ;;  %v9654_v45 = vld [vmem:[#allocation19_spill] sm:$0xff] }
 0x1a0   : > { %9647 = vst [vmem:[#allocation80_spill] sm:$0xff] %v7542_v29  ;;  %5827 = vpow2.f32 %v2529_v5  ;;  %2833 = vmatmul.f32.vlgmr.msra.gmra.mxu2 %v7542_v29  ;;  %v1237_v42 = vadd.f32 %v6898_v27, %v1200_v7  ;;  %v1677_v46 = vrot.slane %v1676_v6, 2  ;;  %v2345_v49 = vrot.slane %v2344_v19, 1  ;;  %2790 = vmatpush.msra.mxu1 %v706_v14  ;;  %v700_v15 = vld [vmem:[#allocation7 + $0x170] sm:$0xff]  ;;  %v9653_v14 = vld [vmem:[#allocation18_spill] sm:$0xff] }
 0x1a1   : > { %5829 = vrcp.f32 %v1958_v8  ;;  %v9648_v35 = vsub.f32 %v7341_v2, %v7456_v32  ;;  %v2331_v56 = vrot.slane %v2330_v39, 2  ;;  %v2273_v21 = vmul.f32 %v2140_v31, %v7388_v58  ;;  %v9649_v2 = vld [vmem:[#allocation15_spill] sm:$0xff]  ;;  %v9650_v58 = vld [vmem:[#allocation16_spill] sm:$0xff]  ;;  %2907 = vmatpush.msrb.mxu2 %v704_v23 }
 0x1a2   : > { %vm1269_vm15 = vcmp.gt.f32.partialorder %v1237_v42, 0.0  ;;  %v1301_v44 = vmul.f32 0.01, %v1237_v42  ;;  %v7556_v5 = vsel %vm883_vm0, %v2620_v0, %v2619_v40  ;;  %v1683_v9 = vmax.f32 %v1681_v55, %v1682_v1  ;;  %v698_v8 = vld [vmem:[#allocation7 + $0x160] sm:$0xff]  ;;  %v9651_v0 = vld [vmem:[#allocation70_spill] sm:$0xff]  ;;  %2791 = vmatpush.msra.mxu1 %v702_v62  ;;  %v9652_v1 = vld [vmem:[#allocation17_spill] sm:$0xff] }
 0x1a3   : > { %v1795_v60 = vmul.f32 1.442695, %v9648_v35  ;;  %v2755_v32 = vsel %vm886_vm1, %v9649_v2, %v6712_v18  ;;  %v7561_v7 = vmax.f32 %v1671_v63, %v1672_v51  ;;  %v2335_v17 = vrot.slane %v2273_v21, 4  ;;  %2908 = vmatpush.msrb.mxu2 %v700_v15 }
 0x1a4   : > { %v7553_v11 = vpop.f32.mrf.mxu0  ;;  %v1333_v26 = vsel %vm1269_vm15, %v1237_v42, %v1301_v44  ;;  %v2756_v53 = vsel %vm889_vm2, %v9650_v58, %v2755_v32  ;;  %v7565_v52 = vmax.f32 %v1676_v6, %v1677_v46  ;;  %v1137_v18 = vperm.slane %v7304_v20, 4  ;;  %2792 = vmatpush.msra.mxu1 %v698_v8 }
 0x1a5   : > { %5831 = vpow2.f32 %v1795_v60  ;;  %v7568_v55 = vadd.f32 %v9651_v0, %v1333_v26  ;;  %v2757_v40 = vsel %vm892_vm3, %v9652_v1, %v2756_v53  ;;  %v7573_v51 = vadd.f32 %v2345_v49, %v2344_v19  ;;  %v9656_v26 = vld [vmem:[#allocation20_spill] sm:$0xff]  ;;  %v694_v53 = vld [vmem:[#allocation7 + $0x140] sm:$0xff] }
 0x1a6   : > { %v5828_v63 = vpop.eup %5827  ;;  %v2332_v42 = vadd.f32 %v2331_v56, %v2330_v39  ;;  %v2336_v31 = vadd.f32 %v2335_v17, %v2273_v21  ;;  %v2758_v35 = vsel %vm895_vm4, %v9653_v14, %v2757_v40  ;;  %v1684_v46 = vrot.slane %v1683_v9, 2  ;;  %v690_v40 = vld [vmem:[#allocation7 + $0x120] sm:$0xff]  ;;  %2793 = vmatpush.msra.mxu1 %v694_v53 }
 0x1a7   : > { %v5830_v6 = vpop.eup %5829  ;;  %v1688_v60 = vsel %vm1498_vm9, %v7568_v55, -inf  ;;  %v2759_v44 = vsel %vm898_vm5, %v9654_v45, %v2758_v35  ;;  %v1201_v62 = vadd.f32 %v1137_v18, %v7553_v11  ;;  %v9655_v56 = vsub.f32 %v7380_v47, %v7472_v54  ;;  %v692_v18 = vld [vmem:[#allocation7 + $0x130] sm:$0xff]  ;;  %v9665_v0 = vld [vmem:[#allocation27_spill] sm:$0xff] }
 0x1a8   : > { %v2094_v19 = vmul.f32 %v5830_v6, %v7466_v34  ;;  %v1689_v49 = vrot.slane %v1688_v60, 4  ;;  %v2337_v39 = vrot.slane %v2336_v31, 2  ;;  %v7588_v2 = vadd.f32 -1.0, %v5828_v63  ;;  %v696_v34 = vld [vmem:[#allocation7 + $0x150] sm:$0xff]  ;;  %v2160_v8 = vpop.permute.xlu2 %2159  ;;  %2794 = vmatpush.msra.mxu1 %v690_v40  ;;  %v9661_v40 = vld [vmem:[#allocation22_spill] sm:$0xff] }
 0x1a9   : > { %v1797_v21 = vmul.f32 1.442695, %v9655_v56  ;;  %v1679_v32 = vrot.slane %v7565_v52, 1  ;;  %v7593_v17 = vsel %vm901_vm6, %v9656_v26, %v2759_v44  ;;  %v1238_v58 = vadd.f32 %v6898_v27, %v1201_v62  ;;  %2909 = vmatpush.msrb.mxu2 %v696_v34  ;;  %v686_v44 = vld [vmem:[#allocation7 + $0x100] sm:$0xff]  ;;  %v688_v62 = vld [vmem:[#allocation7 + $0x110] sm:$0xff] }
 0x1aa   : > { %9657 = vst [vmem:[#allocation15_spill] sm:$0xff] %v7593_v17  ;;  %2204 = vperm.xlu2 %5734, %v2094_v19   ;;  %v2333_v15 = vrot.slane %v2332_v42, 1  ;;  %v1690_v1 = vmax.f32 %v1688_v60, %v1689_v49  ;;  %v2338_v54 = vadd.f32 %v2337_v39, %v2336_v31  ;;  %2836 = vmatmul.f32.gmra.mxu2 %v7593_v17  ;;  %v2537_v63 = vmul.f32 1.442695, %v7573_v51  ;;  %v9658_v39 = vld [vmem:[#allocation23_spill] sm:$0xff]  ;;  %v9659_v56 = vld [vmem:[#allocation21_spill] sm:$0xff] }
 0x1ab   : > { %v7586_v23 = vpop.eup %5831  ;;  %vm1270_vm7 = vcmp.gt.f32.partialorder %v1238_v58, 0.0  ;;  %v1302_v35 = vmul.f32 0.01, %v1238_v58  ;;  %v7600_v6 = vmax.f32 %v1683_v9, %v1684_v46  ;;  %5833 = vpow2.f32 %v1797_v21  ;;  %2910 = vmatpush.msrb.mxu2 %v692_v18  ;;  %v9660_v21 = vld [vmem:[#allocation64_spill] sm:$0xff]  ;;  %2795 = vmatpush.msra.mxu1 %v686_v44  ;;  %v674_v17 = vld [vmem:[#allocation7 + $0xa0] sm:$0xff] }
 0x1ac   : > { %v1959_v47 = vsel %vm1498_vm9, %v7586_v23, 0.0  ;;  %v1691_v45 = vrot.slane %v1690_v1, 2  ;;  %v2277_v60 = vmul.f32 %v2160_v8, %v7397_v30  ;;  %v7603_v31 = vpop.f32.mrf.mxu0  ;;  %v2761_v26 = vsel %vm883_vm0, %v9659_v56, %v9658_v39  ;;  %v682_v8 = vld [vmem:[#allocation7 + $0xe0] sm:$0xff]  ;;  %v9662_v56 = vld [vmem:[#allocation24_spill] sm:$0xff] }
 0x1ad   : > { %v1960_v14 = vrot.slane %v1959_v47, 4  ;;  %v1334_v49 = vsel %vm1270_vm7, %v1238_v58, %v1302_v35  ;;  %v1138_v53 = vperm.slane %v7304_v20, 5  ;;  %v7609_v9 = vadd.f32 %v2333_v15, %v2332_v42  ;;  %2911 = vmatpush.msrb.mxu2 %v688_v62  ;;  %2796 = vmatpush.msra.mxu1 %v682_v8 }
 0x1ae   : > { %v2339_v46 = vrot.slane %v2338_v54, 1  ;;  %v7612_v34 = vadd.f32 %v9660_v21, %v1334_v49  ;;  %v2359_v30 = vrot.slane %v2277_v60, 4  ;;  %v2762_v18 = vsel %vm886_vm1, %v9661_v40, %v2761_v26  ;;  %v9664_v40 = vld [vmem:[#allocation26_spill] sm:$0xff]  ;;  %v9666_v21 = vld [vmem:[#allocation28_spill] sm:$0xff] }
 0x1af   : > { %v1961_v19 = vadd.f32 %v1960_v14, %v1959_v47  ;;  %v7615_v47 = vmax.f32 %v7565_v52, %v1679_v32  ;;  %v1202_v14 = vadd.f32 %v1138_v53, %v7603_v31  ;;  %5835 = vpow2.f32 %v2537_v63  ;;  %2912 = vmatpush.msrb.mxu2 %v684_v24  ;;  %v9663_v53 = vld [vmem:[#allocation25_spill] sm:$0xff] }
 0x1b0   : > { %v1692_v42 = vmax.f32 %v1690_v1, %v1691_v45  ;;  %v1695_v15 = vsel %vm1498_vm9, %v7612_v34, -inf  ;;  %v2360_v35 = vadd.f32 %v2359_v30, %v2277_v60  ;;  %v2763_v52 = vsel %vm889_vm2, %v9662_v56, %v2762_v18 }
 0x1b1   : > { %v1962_v58 = vrot.slane %v1961_v19, 2  ;;  %v1696_v39 = vrot.slane %v1695_v15, 4  ;;  %v1239_v32 = vadd.f32 %v6898_v27, %v1202_v14  ;;  %v7625_v44 = vpop.eup %5833  ;;  %v1686_v62 = vrot.slane %v7600_v6, 1 }
 0x1b2   : > { %v2533_v63 = vmul.f32 1.442695, %v7609_v9  ;;  %v7629_v1 = vadd.f32 %v2339_v46, %v2338_v54  ;;  %v2361_v45 = vrot.slane %v2360_v35, 2  ;;  %v2764_v30 = vsel %vm892_vm3, %v9663_v53, %v2763_v52  ;;  %v678_v53 = vld [vmem:[#allocation7 + $0xc0] sm:$0xff] }
 0x1b3   : > { %v1963_v49 = vadd.f32 %v1962_v58, %v1961_v19  ;;  %v1697_v60 = vmax.f32 %v1695_v15, %v1696_v39  ;;  %v1966_v19 = vsel %vm1498_vm9, %v7625_v44, 0.0  ;;  %v1693_v58 = vrot.slane %v1692_v42, 1  ;;  %2797 = vmatpush.msra.mxu1 %v678_v53  ;;  %v666_v53 = vld [vmem:[#allocation7 + $0x60] sm:$0xff] }
 0x1b4   : > { %v1967_v8 = vrot.slane %v1966_v19, 4  ;;  %v2362_v24 = vadd.f32 %v2361_v45, %v2360_v35  ;;  %v2765_v18 = vsel %vm895_vm4, %v9664_v40, %v2764_v30  ;;  %vm1271_vm8 = vcmp.gt.f32.partialorder %v1239_v32, 0.0  ;;  %v680_v35 = vld [vmem:[#allocation7 + $0xd0] sm:$0xff]  ;;  %v2150_v45 = vpop.permute.xlu0 %2149 }
 0x1b5   : > { %v1964_v26 = vrot.slane %v1963_v49, 1  ;;  %v1698_v56 = vrot.slane %v1697_v60, 2  ;;  %v2766_v54 = vsel %vm898_vm5, %v9665_v0, %v2765_v18  ;;  %v7639_v46 = vpop.eup %5835  ;;  %v1303_v52 = vmul.f32 0.01, %v1239_v32  ;;  %v676_v30 = vld [vmem:[#allocation7 + $0xb0] sm:$0xff]  ;;  %2913 = vmatpush.msrb.mxu2 %v680_v35  ;;  %v670_v18 = vld [vmem:[#allocation7 + $0x80] sm:$0xff]  ;;  %2798 = vmatpush.msra.mxu1 %v674_v17 }
 0x1b6   : > { %v1968_v15 = vadd.f32 %v1967_v8, %v1966_v19  ;;  %v2363_v39 = vrot.slane %v2362_v24, 1  ;;  %v7643_v38 = vsel %vm901_vm6, %v9666_v21, %v2766_v54  ;;  %v9668_v0 = vsub.f32 %v7408_v43, %v7482_v3  ;;  %v9670_v54 = vld [vmem:[#allocation30_spill] sm:$0xff]  ;;  %v672_v3 = vld [vmem:[#allocation7 + $0x90] sm:$0xff] }
 0x1b7   : > { %v1965_v14 = vadd.f32 %v1964_v26, %v1963_v49  ;;  %9667 = vst [vmem:[#allocation16_spill] sm:$0xff] %v7643_v38  ;;  %v2535_v49 = vmul.f32 1.442695, %v7629_v1  ;;  %2839 = vmatmul.f32.gmra.mxu2 %v7643_v38  ;;  %v2275_v19 = vmul.f32 %v2150_v45, %v7377_v25  ;;  %v7651_v21 = vmax.f32 %v1697_v60, %v1698_v56  ;;  %v9671_v56 = vld [vmem:[#allocation31_spill] sm:$0xff]  ;;  %v9672_v45 = vld [vmem:[#allocation33_spill] sm:$0xff] }
 0x1b8   : > { %v1799_v26 = vmul.f32 1.442695, %v9668_v0  ;;  %v1969_v8 = vrot.slane %v1968_v15, 2  ;;  %v1335_v40 = vsel %vm1271_vm8, %v1239_v32, %v1303_v52  ;;  %vm2494_vm10 = vcmp.gt.f32.partialorder %v7508_v50, 0.0  ;;  %2914 = vmatpush.msrb.mxu2 %v676_v30  ;;  %2799 = vmatpush.msra.mxu1 %v670_v18  ;;  %v668_v0 = vld [vmem:[#allocation7 + $0x70] sm:$0xff]  ;;  %v9674_v30 = vld [vmem:[#allocation35_spill] sm:$0xff] }
 0x1b9   : > { %5837 = vrcp.f32 %v1965_v14  ;;  %v9669_v14 = vld [vmem:[#allocation32_spill] sm:$0xff]  ;;  %v7658_v38 = vadd.f32 %v2363_v39, %v2362_v24  ;;  %v7661_v43 = vadd.f32 %v7355_v28, %v1335_v40  ;;  %v2347_v25 = vrot.slane %v2275_v19, 4 }
 0x1ba   : > { %v2768_v29 = vsel %vm883_vm0, %v9670_v54, %v9669_v14  ;;  %5839 = vpow2.f32 %v1799_v26  ;;  %v7664_v60 = vmax.f32 %v7600_v6, %v1686_v62  ;;  %v1970_v32 = vadd.f32 %v1969_v8, %v1968_v15  ;;  %2915 = vmatpush.msrb.mxu2 %v672_v3  ;;  %2800 = vmatpush.msra.mxu1 %v666_v53  ;;  %v9675_v18 = vld [vmem:[#allocation36_spill] sm:$0xff]  ;;  %v7683_v54 = vpop.f32.mrf.mxu0  ;;  %v664_v3 = vld [vmem:[#allocation7 + $0x50] sm:$0xff] }
 0x1bb   : > { %5841 = vpow2.f32 %v2533_v63  ;;  %v2769_v52 = vsel %vm886_vm1, %v9671_v56, %v2768_v29  ;;  %v7668_v35 = vmax.f32 %v1692_v42, %v1693_v58  ;;  %v1702_v24 = vsel %vm1498_vm9, %v7661_v43, -inf  ;;  %v9673_v63 = vld [vmem:[#allocation34_spill] sm:$0xff]  ;;  %v2155_v56 = vpop.permute.xlu1 %2154 }
 0x1bc   : > { %v2348_v39 = vadd.f32 %v2347_v25, %v2275_v19  ;;  %v2770_v17 = vsel %vm889_vm2, %v9672_v45, %v2769_v52  ;;  %5843 = vpow2.f32 %v2535_v49  ;;  %v1971_v6 = vrot.slane %v1970_v32, 1  ;;  %2916 = vmatpush.msrb.mxu2 %v668_v0  ;;  %v662_v25 = vld [vmem:[#allocation7 + $0x40] sm:$0xff] }
 0x1bd   : > { %v1703_v62 = vrot.slane %v1702_v24, 4  ;;  %v2771_v15 = vsel %vm892_vm3, %v9673_v63, %v2770_v17  ;;  %v1700_v42 = vrot.slane %v7651_v21, 1  ;;  %v2543_v58 = vmul.f32 1.442695, %v7658_v38  ;;  %v658_v52 = vld [vmem:[#allocation7 + $0x20] sm:$0xff]  ;;  %v9676_v63 = vld [vmem:[#allocation37_spill] sm:$0xff]  ;;  %2801 = vmatpush.msra.mxu1 %v662_v25 }
 0x1be   : > { %v2349_v26 = vrot.slane %v2348_v39, 2  ;;  %v2772_v19 = vsel %vm895_vm4, %v9674_v30, %v2771_v15  ;;  %v1972_v40 = vadd.f32 %v1971_v6, %v1970_v32  ;;  %v9677_v32 = vsub.f32 %v7436_v22, %v7510_v41  ;;  %v660_v15 = vld [vmem:[#allocation7 + $0x30] sm:$0xff]  ;;  %2917 = vmatpush.msrb.mxu2 %v664_v3 }
 0x1bf   : > { %v5838_v29 = vpop.eup %5837  ;;  %v1704_v49 = vmax.f32 %v1702_v24, %v1703_v62  ;;  %v2773_v14 = vsel %vm898_vm5, %v9675_v18, %v2772_v19  ;;  %2802 = vmatpush.msra.mxu1 %v658_v52  ;;  %v1747_v41 = vsub.f32 %v7462_v48, %v7561_v7  ;;  %v656_v18 = vld [vmem:[#allocation7 + $0x10] sm:$0xff]  ;;  %vm2496_vm11 = vcmp.gt.f32.partialorder %v7609_v9, 0.0 }
 0x1c0   : > { %v2095_v8 = vmul.f32 %v5838_v29, %v7586_v23  ;;  %v7685_v45 = vpop.eup %5839  ;;  %v2350_v17 = vadd.f32 %v2349_v26, %v2348_v39  ;;  %v7689_v53 = vsel %vm901_vm6, %v9676_v63, %v2773_v14  ;;  %v1139_v23 = vperm.slane %v7304_v20, 6  ;;  %v654_v29 = vld [vmem:[#allocation7] sm:$0xff]  ;;  %2918 = vmatpush.msrb.mxu2 %v660_v15 }
 0x1c1   : > { %v1801_v24 = vmul.f32 1.442695, %v9677_v32  ;;  %v5842_v6 = vpop.eup %5841  ;;  %5845 = vrcp.f32 %v1972_v40  ;;  %v1705_v0 = vrot.slane %v1704_v49, 2  ;;  %v1973_v62 = vsel %vm1498_vm9, %v7685_v45, 0.0  ;;  %2842 = vmatmul.f32.gmra.mxu2 %v7689_v53  ;;  %2803 = vmatpush.msra.mxu1 %v654_v29 }
 0x1c2   : > { %2209 = vperm.xlu0 %5732, %v2095_v8   ;;  %v2276_v39 = vmul.f32 %v2155_v56, %v7393_v16  ;;  %v1974_v26 = vrot.slane %v1973_v62, 4  ;;  %v2351_v30 = vrot.slane %v2350_v17, 1  ;;  %v1203_v19 = vadd.f32 %v1139_v23, %v7683_v54  ;;  %v5844_v22 = vpop.eup %5843  ;;  %2919 = vmatpush.msrb.mxu2 %v656_v18 }
 0x1c3   : > { %5847 = vpow2.f32 %v1801_v24  ;;  %v2622_v8 = vsel %vm2494_vm10, %v7508_v50, %v7588_v2  ;;  %v1748_v16 = vsub.f32 %v7485_v33, %v7615_v47  ;;  %v1749_v48 = vsub.f32 %v7519_v10, %v7664_v60  ;;  %v9679_v60 = vld [vmem:[#allocation68_spill] sm:$0xff] }
 0x1c4   : > { %v2353_v40 = vrot.slane %v2276_v39, 4  ;;  %v1975_v14 = vadd.f32 %v1974_v26, %v1973_v62  ;;  %v7709_v25 = vadd.f32 %v2351_v30, %v2350_v17  ;;  %v1240_v3 = vadd.f32 %v6898_v27, %v1203_v19 }
 0x1c5   : > { %v5568_v7 = vadd.f32 -1.0, %v5842_v6  ;;  %v1750_v50 = vsub.f32 %v7568_v55, %v7668_v35  ;;  %v7717_v56 = vmax.f32 %v7651_v21, %v1700_v42  ;;  %5849 = vpow2.f32 %v2543_v58 }
 0x1c6   : > { %v2354_v2 = vadd.f32 %v2353_v40, %v2276_v39  ;;  %v1706_v52 = vmax.f32 %v1704_v49, %v1705_v0  ;;  %v1976_v63 = vrot.slane %v1975_v14, 2  ;;  %v2539_v23 = vmul.f32 1.442695, %v7709_v25 }
 0x1c7   : > { %v5846_v17 = vpop.eup %5845  ;;  %vm1272_vm12 = vcmp.gt.f32.partialorder %v1240_v3, 0.0  ;;  %v1304_v32 = vmul.f32 0.01, %v1240_v3  ;;  %vm2497_vm13 = vcmp.gt.f32.partialorder %v7629_v1, 0.0  ;;  %vm2498_vm14 = vcmp.gt.f32.partialorder %v7573_v51, 0.0 }
 0x1c8   : > { %v2355_v24 = vrot.slane %v2354_v2, 2  ;;  %v2096_v6 = vmul.f32 %v5846_v17, %v7625_v44  ;;  %v1977_v15 = vadd.f32 %v1976_v63, %v1975_v14  ;;  %v5569_v49 = vadd.f32 -1.0, %v5844_v22 }
 0x1c9   : > { %v7720_v62 = vpop.eup %5847  ;;  %v1336_v21 = vsel %vm1272_vm12, %v1240_v3, %v1304_v32  ;;  %v5570_v26 = vadd.f32 -1.0, %v7639_v46  ;;  %5851 = vpow2.f32 %v2539_v23  ;;  %v2624_v30 = vsel %vm2496_vm11, %v7609_v9, %v5568_v7 }
 0x1ca   : > { %v1980_v42 = vsel %vm1498_vm9, %v7720_v62, 0.0  ;;  %v2356_v58 = vadd.f32 %v2355_v24, %v2354_v2  ;;  %2214 = vperm.xlu1 %5733, %v2096_v6   ;;  %v1978_v0 = vrot.slane %v1977_v15, 1  ;;  %v7728_v39 = vadd.f32 %v7350_v61, %v1336_v21 }
 0x1cb   : > { %v1981_v29 = vrot.slane %v1980_v42, 4  ;;  %v2684_v19 = vsel %vm886_vm1, %v7492_v59, %v7556_v5  ;;  %v7737_v40 = vpop.eup %5849  ;;  %v1707_v46 = vrot.slane %v1706_v52, 1  ;;  %v2625_v9 = vsel %vm2497_vm13, %v7629_v1, %v5569_v49  ;;  %v7749_v59 = vpop.f32.mrf.mxu0 }
 0x1cc   : > { %v2357_v44 = vrot.slane %v2356_v58, 1  ;;  %v1979_v22 = vadd.f32 %v1978_v0, %v1977_v15  ;;  %v1709_v18 = vsel %vm1498_vm9, %v7728_v39, -inf  ;;  %v2685_v3 = vsel %vm889_vm2, %v2622_v8, %v2684_v19  ;;  %v2175_v1 = vpop.permute.xlu2 %2174  ;;  %v2165_v0 = vpop.permute.xlu0 %2164 }
 0x1cd   : > { %v1982_v14 = vadd.f32 %v1981_v29, %v1980_v42  ;;  %v2686_v7 = vsel %vm892_vm3, %v7531_v13, %v2685_v3  ;;  %v1140_v63 = vperm.slane %v7304_v20, 7  ;;  %v1803_v17 = vmul.f32 1.442695, %v1747_v41 }
 0x1ce   : > { %v7742_v2 = vadd.f32 %v2357_v44, %v2356_v58  ;;  %5853 = vrcp.f32 %v1979_v22  ;;  %v1710_v23 = vrot.slane %v1709_v18, 4  ;;  %v2626_v32 = vsel %vm2498_vm14, %v7573_v51, %v5570_v26  ;;  %v9678_v44 = vld [vmem:[#allocation75_spill] sm:$0xff] }
 0x1cf   : > { %v1983_v5 = vrot.slane %v1982_v14, 2  ;;  %v2687_v24 = vsel %vm895_vm4, %v2624_v30, %v2686_v7  ;;  %v1204_v15 = vadd.f32 %v1140_v63, %v7749_v59  ;;  %5855 = vpow2.f32 %v1803_v17  ;;  %v5852_v21 = vpop.eup %5851 }
 0x1d0   : > { %v2541_v8 = vmul.f32 1.442695, %v7742_v2  ;;  %v2688_v13 = vsel %vm898_vm5, %v2625_v9, %v2687_v24  ;;  %v1751_v20 = vsub.f32 %v7612_v34, %v7717_v56  ;;  %vm2499_vm15 = vcmp.gt.f32.partialorder %v7709_v25, 0.0 }
 0x1d1   : > { %v1984_v6 = vadd.f32 %v1983_v5, %v1982_v14  ;;  %v7763_v41 = vsel %vm901_vm6, %v2626_v32, %v2688_v13  ;;  %v1241_v42 = vadd.f32 %v6898_v27, %v1204_v15  ;;  %v2280_v58 = vmul.f32 %v2175_v1, %v7431_v37 }
 0x1d2   : > { %5857 = vpow2.f32 %v2541_v8  ;;  %2804 = vmatmul.f32.vlgmr.msra.gmra.mxu1 %v7763_v41  ;;  %2920 = vmatmul.f32.vlgmr.msrb.gmra.mxu2 %v7763_v41  ;;  %v1805_v49 = vmul.f32 1.442695, %v1748_v16  ;;  %v7772_v29 = vmax.f32 %v1706_v52, %v1707_v46  ;;  %v1711_v26 = vmax.f32 %v1709_v18, %v1710_v23  ;;  %v2170_v18 = vpop.permute.xlu1 %2169 }
 0x1d3   : > { %v1985_v51 = vrot.slane %v1984_v6, 1  ;;  %v2278_v30 = vmul.f32 %v2165_v0, %v9678_v44  ;;  %v1807_v19 = vmul.f32 1.442695, %v1749_v48  ;;  %vm1273_vm7 = vcmp.gt.f32.partialorder %v1241_v42, 0.0 }
 0x1d4   : > { %v5854_v22 = vpop.eup %5853  ;;  %v1305_v27 = vmul.f32 0.01, %v1241_v42  ;;  %v2377_v3 = vrot.slane %v2280_v58, 4  ;;  %v5571_v9 = vadd.f32 -1.0, %v5852_v21  ;;  %5859 = vpow2.f32 %v1805_v49 }
 0x1d5   : > { %v1986_v14 = vadd.f32 %v1985_v51, %v1984_v6  ;;  %v2097_v37 = vmul.f32 %v5854_v22, %v7685_v45  ;;  %v2365_v33 = vrot.slane %v2278_v30, 4  ;;  %v7779_v47 = vpop.eup %5855  ;;  %vm2500_vm8 = vcmp.gt.f32.partialorder %v7742_v2, 0.0 }
 0x1d6   : > { %v1337_v16 = vsel %vm1273_vm7, %v1241_v42, %v1305_v27  ;;  %v2378_v52 = vadd.f32 %v2377_v3, %v2280_v58  ;;  %v1987_v46 = vsel %vm1498_vm9, %v7779_v47, 0.0  ;;  %v1809_v7 = vmul.f32 1.442695, %v1750_v50 }
 0x1d7   : > { %5861 = vrcp.f32 %v1986_v14  ;;  %2219 = vperm.xlu2 %5734, %v2097_v37   ;;  %v7783_v48 = vadd.f32 %v9679_v60, %v1337_v16  ;;  %v2366_v45 = vadd.f32 %v2365_v33, %v2278_v30  ;;  %v1712_v5 = vrot.slane %v1711_v26, 2 }
 0x1d8   : > { %v5858_v10 = vpop.eup %5857  ;;  %v1988_v17 = vrot.slane %v1987_v46, 4  ;;  %5863 = vpow2.f32 %v1807_v19  ;;  %v2627_v23 = vsel %vm2499_vm15, %v7709_v25, %v5571_v9  ;;  %v2279_v24 = vmul.f32 %v2170_v18, %v7427_v57 }
 0x1d9   : > { %v5572_v63 = vadd.f32 -1.0, %v5858_v10  ;;  %v1716_v8 = vsel %vm1498_vm9, %v7783_v48, -inf  ;;  %v2367_v32 = vrot.slane %v2366_v45, 2  ;;  %v2379_v50 = vrot.slane %v2378_v52, 2 }
 0x1da   : > { %v1717_v55 = vrot.slane %v1716_v8, 4  ;;  %v1989_v35 = vadd.f32 %v1988_v17, %v1987_v46  ;;  %v7799_v6 = vpop.eup %5859  ;;  %v2371_v25 = vrot.slane %v2279_v24, 4  ;;  %5865 = vpow2.f32 %v1809_v7 }
 0x1db   : > { %v2628_v1 = vsel %vm2500_vm8, %v7742_v2, %v5572_v63  ;;  %v2368_v15 = vadd.f32 %v2367_v32, %v2366_v45  ;;  %v1713_v51 = vmax.f32 %v1711_v26, %v1712_v5  ;;  %v1994_v57 = vsel %vm1498_vm9, %v7799_v6, 0.0 }
 0x1dc   : > { %v7802_v13 = vsel %vm883_vm0, %v2628_v1, %v2627_v23  ;;  %v1718_v42 = vmax.f32 %v1716_v8, %v1717_v55  ;;  %v1990_v58 = vrot.slane %v1989_v35, 2  ;;  %v1995_v49 = vrot.slane %v1994_v57, 4 }
 0x1dd   : > { %v5862_v21 = vpop.eup %5861  ;;  %v2369_v0 = vrot.slane %v2368_v15, 1  ;;  %v2372_v44 = vadd.f32 %v2371_v25, %v2279_v24  ;;  %v5573_v19 = vadd.f32 -1.0, %v7737_v40  ;;  %v2380_v27 = vadd.f32 %v2379_v50, %v2378_v52 }
 0x1de   : > { %v2098_v2 = vmul.f32 %v5862_v21, %v7720_v62  ;;  %v7807_v30 = vpop.eup %5863  ;;  %v1719_v22 = vrot.slane %v1718_v42, 2  ;;  %v1991_v14 = vadd.f32 %v1990_v58, %v1989_v35  ;;  %v1996_v3 = vadd.f32 %v1995_v49, %v1994_v57 }
 0x1df   : > { %v7810_v26 = vadd.f32 %v2369_v0, %v2368_v15  ;;  %v2001_v37 = vsel %vm1498_vm9, %v7807_v30, 0.0  ;;  %v2373_v9 = vrot.slane %v2372_v44, 2  ;;  %v1752_v62 = vsub.f32 %v7661_v43, %v7772_v29  ;;  %v2180_v8 = vpop.permute.xlu0 %2179  ;;  %v2190_v15 = vpop.permute.xlu2 %2189 }
 0x1e0   : > { %2224 = vperm.xlu0 %5732, %v2098_v2   ;;  %v1714_v33 = vrot.slane %v1713_v51, 1  ;;  %v1720_v16 = vmax.f32 %v1718_v42, %v1719_v22  ;;  %v1992_v18 = vrot.slane %v1991_v14, 1  ;;  %v7816_v10 = vpop.eup %5865  ;;  %v1997_v40 = vrot.slane %v1996_v3, 2  ;;  %v9680_v2 = vld [vmem:[#allocation57_spill] sm:$0xff] }
 0x1e1   : > { %v2545_v46 = vmul.f32 1.442695, %v7810_v26  ;;  %v2002_v52 = vrot.slane %v2001_v37, 4  ;;  %v1811_v45 = vmul.f32 1.442695, %v1751_v20  ;;  %v2381_v63 = vrot.slane %v2380_v27, 1 }
 0x1e2   : > { %v1721_v7 = vrot.slane %v1720_v16, 1  ;;  %v1993_v5 = vadd.f32 %v1992_v18, %v1991_v14  ;;  %v2374_v17 = vadd.f32 %v2373_v9, %v2372_v44  ;;  %v1998_v23 = vadd.f32 %v1997_v40, %v1996_v3 }
 0x1e3   : > { %5867 = vpow2.f32 %v2545_v46  ;;  %v2003_v43 = vadd.f32 %v2002_v52, %v2001_v37  ;;  %v2008_v29 = vsel %vm1498_vm9, %v7816_v10, 0.0  ;;  %v1715_v55 = vmax.f32 %v1713_v51, %v1714_v33  ;;  %v7833_v51 = vld [vmem:[%s9477_s3] ss:$0 sm:$0xff] }
 0x1e4   : > { %v1722_v32 = vmax.f32 %v1720_v16, %v1721_v7  ;;  %5869 = vrcp.f32 %v1993_v5  ;;  %v2375_v24 = vrot.slane %v2374_v17, 1  ;;  %v2009_v1 = vrot.slane %v2008_v29, 4 }
 0x1e5   : > { %v1999_v35 = vrot.slane %v1998_v23, 1  ;;  %v2004_v50 = vrot.slane %v2003_v43, 2  ;;  %5871 = vpow2.f32 %v1811_v45  ;;  %v2281_v25 = vmul.f32 %v2180_v8, %v7454_v36 }
 0x1e6   : > { %v1754_v34 = vsub.f32 %v7783_v48, %v1722_v32  ;;  %v7825_v56 = vadd.f32 %v2375_v24, %v2374_v17  ;;  %v2010_v20 = vadd.f32 %v2009_v1, %v2008_v29  ;;  %v7828_v21 = vadd.f32 %v2381_v63, %v2380_v27 }
 0x1e7   : > { %v2000_v42 = vadd.f32 %v1999_v35, %v1998_v23  ;;  %v2005_v58 = vadd.f32 %v2004_v50, %v2003_v43  ;;  %v1813_v57 = vmul.f32 1.442695, %v1752_v62  ;;  %v1088_v49 = vadd.f32 %v7833_v51, %v9680_v2 }
 0x1e8   : > { %vm2501_vm10 = vcmp.gt.f32.partialorder %v7658_v38, 0.0  ;;  %v2547_v48 = vmul.f32 1.442695, %v7825_v56  ;;  %v2011_v0 = vrot.slane %v2010_v20, 2  ;;  %v2283_v14 = vmul.f32 %v2190_v15, %v7479_v4 }
 0x1e9   : > { %v5868_v44 = vpop.eup %5867  ;;  %v2629_v36 = vsel %vm2501_vm10, %v7658_v38, %v5573_v19  ;;  %5873 = vrcp.f32 %v2000_v42  ;;  %v2006_v22 = vrot.slane %v2005_v58, 1  ;;  %v1753_v3 = vsub.f32 %v7728_v39, %v1715_v55  ;;  %v2185_v33 = vpop.permute.xlu1 %2184 }
 0x1ea   : > { %v5870_v27 = vpop.eup %5869  ;;  %v1817_v37 = vmul.f32 1.442695, %v1754_v34  ;;  %v2012_v9 = vadd.f32 %v2011_v0, %v2010_v20  ;;  %v2383_v62 = vrot.slane %v2281_v25, 4  ;;  %v2549_v40 = vmul.f32 1.442695, %v7828_v21 }
 0x1eb   : > { %v7842_v16 = vpop.eup %5871  ;;  %v2099_v18 = vmul.f32 %v5870_v27, %v7779_v47  ;;  %v2007_v46 = vadd.f32 %v2006_v22, %v2005_v58  ;;  %5875 = vpow2.f32 %v1813_v57  ;;  %v2395_v39 = vrot.slane %v2283_v14, 4 }
 0x1ec   : > { %5877 = vpow2.f32 %v2547_v48  ;;  %v2013_v38 = vrot.slane %v2012_v9, 1  ;;  %v2015_v4 = vsel %vm1498_vm9, %v7842_v16, 0.0  ;;  %v2384_v19 = vadd.f32 %v2383_v62, %v2281_v25 }
 0x1ed   : > { %2229 = vperm.xlu1 %5733, %v2099_v18   ;;  %5879 = vrcp.f32 %v2007_v46  ;;  %v2016_v52 = vrot.slane %v2015_v4, 4  ;;  %v2282_v45 = vmul.f32 %v2185_v33, %v1088_v49  ;;  %v1815_v63 = vmul.f32 1.442695, %v1753_v3 }
 0x1ee   : > { %v2014_v7 = vadd.f32 %v2013_v38, %v2012_v9  ;;  %v2385_v5 = vrot.slane %v2384_v19, 2  ;;  %5881 = vpow2.f32 %v1817_v37  ;;  %v5574_v17 = vadd.f32 -1.0, %v5868_v44 }
 0x1ef   : > { %v5874_v47 = vpop.eup %5873  ;;  %5883 = vpow2.f32 %v2549_v40  ;;  %v2017_v23 = vadd.f32 %v2016_v52, %v2015_v4  ;;  %v2389_v43 = vrot.slane %v2282_v45, 4  ;;  %v2691_v32 = vsel %vm886_vm1, %v2629_v36, %v7802_v13 }
 0x1f0   : > { %v2100_v29 = vmul.f32 %v5874_v47, %v7799_v6  ;;  %5885 = vrcp.f32 %v2014_v7  ;;  %v2386_v8 = vadd.f32 %v2385_v5, %v2384_v19  ;;  %vm2502_vm11 = vcmp.gt.f32.partialorder %v7810_v26, 0.0  ;;  %v9681_v47 = vld [vmem:[#allocation62_spill] sm:$0xff] }
 0x1f1   : > { %v7851_v24 = vpop.eup %5875  ;;  %v2396_v1 = vadd.f32 %v2395_v39, %v2283_v14  ;;  %v2018_v55 = vrot.slane %v2017_v23, 2  ;;  %v2390_v20 = vadd.f32 %v2389_v43, %v2282_v45  ;;  %5887 = vpow2.f32 %v1815_v63 }
 0x1f2   : > { %v5878_v35 = vpop.eup %5877  ;;  %2234 = vperm.xlu2 %5734, %v2100_v29   ;;  %v2387_v50 = vrot.slane %v2386_v8, 1  ;;  %v2022_v34 = vsel %vm1498_vm9, %v7851_v24, 0.0  ;;  %v2630_v15 = vsel %vm2502_vm11, %v7810_v26, %v5574_v17  ;;  %vm2503_vm12 = vcmp.gt.f32.partialorder %v7825_v56, 0.0 }
 0x1f3   : > { %v5880_v6 = vpop.eup %5879  ;;  %v2019_v25 = vadd.f32 %v2018_v55, %v2017_v23  ;;  %v2023_v42 = vrot.slane %v2022_v34, 4  ;;  %v2391_v57 = vrot.slane %v2390_v20, 2  ;;  %v2397_v49 = vrot.slane %v2396_v1, 2 }
 0x1f4   : > { %v7857_v13 = vpop.eup %5881  ;;  %v2101_v58 = vmul.f32 %v5880_v6, %v7807_v30  ;;  %v7862_v22 = vadd.f32 %v2387_v50, %v2386_v8  ;;  %v2692_v27 = vsel %vm889_vm2, %v2630_v15, %v2691_v32  ;;  %v5575_v3 = vadd.f32 -1.0, %v5878_v35 }
 0x1f5   : > { %v5884_v2 = vpop.eup %5883  ;;  %v2020_v48 = vrot.slane %v2019_v25, 1  ;;  %v2024_v0 = vadd.f32 %v2023_v42, %v2022_v34  ;;  %v2036_v44 = vsel %vm1498_vm9, %v7857_v13, 0.0  ;;  %v2392_v14 = vadd.f32 %v2391_v57, %v2390_v20 }
 0x1f6   : > { %v5886_v36 = vpop.eup %5885  ;;  %2239 = vperm.xlu0 %5732, %v2101_v58   ;;  %v2037_v26 = vrot.slane %v2036_v44, 4  ;;  %v5576_v40 = vadd.f32 -1.0, %v5884_v2  ;;  %v2551_v4 = vmul.f32 1.442695, %v7862_v22  ;;  %v2631_v52 = vsel %vm2503_vm12, %v7825_v56, %v5575_v3  ;;  %v9682_v58 = vld [vmem:[#allocation66_spill] sm:$0xff] }
 0x1f7   : > { %v2102_v37 = vmul.f32 %v5886_v36, %v7816_v10  ;;  %v2021_v30 = vadd.f32 %v2020_v48, %v2019_v25  ;;  %v2025_v9 = vrot.slane %v2024_v0, 2  ;;  %v7866_v62 = vpop.eup %5887  ;;  %v2393_v33 = vrot.slane %v2392_v14, 1 }
 0x1f8   : > { %v2038_v18 = vadd.f32 %v2037_v26, %v2036_v44  ;;  %v2029_v38 = vsel %vm1498_vm9, %v7866_v62, 0.0  ;;  %v2398_v45 = vadd.f32 %v2397_v49, %v2396_v1  ;;  %vm2504_vm13 = vcmp.gt.f32.partialorder %v7828_v21, 0.0  ;;  %v2195_v35 = vpop.permute.xlu0 %2194 }
 0x1f9   : > { %2244 = vperm.xlu1 %5733, %v2102_v37   ;;  %5889 = vrcp.f32 %v2021_v30  ;;  %v2026_v46 = vadd.f32 %v2025_v9, %v2024_v0  ;;  %v7872_v19 = vadd.f32 %v2393_v33, %v2392_v14  ;;  %v2030_v10 = vrot.slane %v2029_v38, 4 }
 0x1fa   : > { %v2039_v39 = vrot.slane %v2038_v18, 2  ;;  %v1090_v17 = vadd.f32 %v7833_v51, %v9681_v47  ;;  %v2632_v29 = vsel %vm2504_vm13, %v7828_v21, %v5576_v40  ;;  %5891 = vpow2.f32 %v2551_v4 }
 0x1fb   : > { %v2027_v7 = vrot.slane %v2026_v46, 1  ;;  %v2031_v5 = vadd.f32 %v2030_v10, %v2029_v38  ;;  %v2553_v43 = vmul.f32 1.442695, %v7872_v19  ;;  %v2693_v55 = vsel %vm892_vm3, %v2631_v52, %v2692_v27 }
 0x1fc   : > { %v2040_v63 = vadd.f32 %v2039_v39, %v2038_v18  ;;  %v2399_v1 = vrot.slane %v2398_v45, 1  ;;  %v2694_v50 = vsel %vm895_vm4, %v2632_v29, %v2693_v55  ;;  %v2284_v15 = vmul.f32 %v2195_v35, %v1090_v17 }
 0x1fd   : > { %v2028_v23 = vadd.f32 %v2027_v7, %v2026_v46  ;;  %v2032_v8 = vrot.slane %v2031_v5, 2  ;;  %v1092_v57 = vadd.f32 %v7833_v51, %v9682_v58  ;;  %vm2505_vm14 = vcmp.gt.f32.partialorder %v7862_v22, 0.0 }
 0x1fe   : > { %v2041_v32 = vrot.slane %v2040_v63, 1  ;;  %v2401_v21 = vrot.slane %v2284_v15, 4  ;;  %v2400_v2 = vadd.f32 %v2399_v1, %v2398_v45  ;;  %vm2506_vm15 = vcmp.gt.f32.partialorder %v7872_v19, 0.0  ;;  %v9683_v45 = vld [vmem:[#allocation65_spill] sm:$0xff] }
 0x1ff   : > { %v5890_v56 = vpop.eup %5889  ;;  %5893 = vrcp.f32 %v2028_v23  ;;  %v2033_v20 = vadd.f32 %v2032_v8, %v2031_v5  ;;  %v1091_v7 = vadd.f32 %v7833_v51, %v9683_v45 }
 0x200   : > { %v2103_v34 = vmul.f32 %v5890_v56, %v7842_v16  ;;  %v2042_v6 = vadd.f32 %v2041_v32, %v2040_v63  ;;  %5895 = vpow2.f32 %v2553_v43  ;;  %v5892_v42 = vpop.eup %5891  ;;  %v2402_v48 = vadd.f32 %v2401_v21, %v2284_v15 }
 0x201   : > { %v2034_v25 = vrot.slane %v2033_v20, 1  ;;  %v2555_v3 = vmul.f32 1.442695, %v2400_v2  ;;  %v5577_v40 = vadd.f32 -1.0, %v5892_v42  ;;  %vm2507_vm7 = vcmp.gt.f32.partialorder %v2400_v2, 0.0 }
 0x202   : > { %2249 = vperm.xlu2 %5734, %v2103_v34   ;;  %5897 = vrcp.f32 %v2042_v6  ;;  %v2403_v14 = vrot.slane %v2402_v48, 2 }
 0x203   : > { %v2035_v49 = vadd.f32 %v2034_v25, %v2033_v20  ;;  %v2633_v4 = vsel %vm2505_vm14, %v7862_v22, %v5577_v40 }
 0x204   : > { %v2205_v44 = vpop.permute.xlu2 %2204  ;;  %v2404_v30 = vadd.f32 %v2403_v14, %v2402_v48  ;;  %v9685_v14 = vld [vmem:[#allocation69_spill] sm:$0xff] }
 0x205   : > { %v5894_v0 = vpop.eup %5893  ;;  %5899 = vrcp.f32 %v2035_v49  ;;  %v2286_v16 = vmul.f32 %v2205_v44, %v1092_v57  ;;  %v9684_v44 = vld [vmem:[#allocation74_spill] sm:$0xff] }
 0x206   : > { %v2104_v36 = vmul.f32 %v5894_v0, %v7851_v24  ;;  %v5896_v26 = vpop.eup %5895  ;;  %v2405_v18 = vrot.slane %v2404_v30, 1  ;;  %5901 = vpow2.f32 %v2555_v3 }
 0x207   : > { %v2413_v37 = vrot.slane %v2286_v16, 4  ;;  %v5578_v46 = vadd.f32 -1.0, %v5896_v26  ;;  %v1093_v26 = vadd.f32 %v7833_v51, %v9685_v14 }
 0x208   : > { %v5898_v27 = vpop.eup %5897  ;;  %2254 = vperm.xlu0 %5732, %v2104_v36   ;;  %v2406_v24 = vadd.f32 %v2405_v18, %v2404_v30  ;;  %v1095_v36 = vadd.f32 %v7833_v51, %v9684_v44 }
 0x209   : > { %v2106_v9 = vmul.f32 %v5898_v27, %v7857_v13  ;;  %v2414_v33 = vadd.f32 %v2413_v37, %v2286_v16  ;;  %v2634_v52 = vsel %vm2506_vm15, %v7872_v19, %v5578_v46  ;;  %v2695_v13 = vsel %vm898_vm5, %v2633_v4, %v2694_v50 }
 0x20a   : > { %v2557_v5 = vmul.f32 1.442695, %v2406_v24  ;;  %v7896_v63 = vsel %vm901_vm6, %v2634_v52, %v2695_v13  ;;  %vm2508_vm8 = vcmp.gt.f32.partialorder %v2406_v24, 0.0 }
 0x20b   : > { %2264 = vperm.xlu2 %5734, %v2106_v9   ;;  %v5900_v38 = vpop.eup %5899  ;;  %v2415_v39 = vrot.slane %v2414_v33, 2  ;;  %2807 = vmatmul.f32.gmra.mxu1 %v7896_v63 }
 0x20c   : > { %v2105_v10 = vmul.f32 %v5900_v38, %v7866_v62  ;;  %5903 = vpow2.f32 %v2557_v5  ;;  %2923 = vmatmul.f32.gmra.mxu2 %v7896_v63  ;;  %v5902_v17 = vpop.eup %5901 }
 0x20d   : > { %v2416_v62 = vadd.f32 %v2415_v39, %v2414_v33  ;;  %v5579_v43 = vadd.f32 -1.0, %v5902_v17 }
 0x20e   : > { %2259 = vperm.xlu1 %5733, %v2105_v10   ;;  %v2200_v47 = vpop.permute.xlu1 %2199 }
 0x20f   : > { %v2285_v22 = vmul.f32 %v2200_v47, %v1091_v7  ;;  %v2417_v29 = vrot.slane %v2416_v62, 1  ;;  %v2635_v1 = vsel %vm2507_vm7, %v2400_v2, %v5579_v43 }
 0x211   : > { %v2407_v19 = vrot.slane %v2285_v22, 4  ;;  %v2418_v35 = vadd.f32 %v2417_v29, %v2416_v62 }
 0x212   : > { %v5904_v8 = vpop.eup %5903 }
 0x213   : > { %v2408_v23 = vadd.f32 %v2407_v19, %v2285_v22  ;;  %v5580_v55 = vadd.f32 -1.0, %v5904_v8  ;;  %v2561_v15 = vmul.f32 1.442695, %v2418_v35  ;;  %vm2510_vm11 = vcmp.gt.f32.partialorder %v2418_v35, 0.0 }
 0x215   : > { %v2409_v32 = vrot.slane %v2408_v23, 2  ;;  %v2636_v50 = vsel %vm2508_vm8, %v2406_v24, %v5580_v55  ;;  %v9686_v24 = vld [vmem:[#allocation72_spill] sm:$0xff] }
 0x216   : > { %v2697_v34 = vsel %vm883_vm0, %v2636_v50, %v2635_v1  ;;  %v1094_v4 = vadd.f32 %v7833_v51, %v9686_v24 }
 0x217   : > { %v2410_v56 = vadd.f32 %v2409_v32, %v2408_v23  ;;  %v9687_v32 = vld [vmem:[#allocation78_spill] sm:$0xff] }
 0x218   : > { %v1098_v55 = vadd.f32 %v7833_v51, %v9687_v32 }
 0x219   : > { %v2411_v20 = vrot.slane %v2410_v56, 1 }
 0x21b   : > { %v2412_v6 = vadd.f32 %v2411_v20, %v2410_v56 }
 0x21d   : > { %v2559_v25 = vmul.f32 1.442695, %v2412_v6  ;;  %vm2509_vm10 = vcmp.gt.f32.partialorder %v2412_v6, 0.0 }
 0x21f   : > { %5905 = vpow2.f32 %v2559_v25  ;;  %v9688_v25 = vld [vmem:[#allocation76_spill] sm:$0xff] }
 0x220   : > { %5907 = vpow2.f32 %v2561_v15 }
 0x225   : > { %v5906_v21 = vpop.eup %5905 }
 0x226   : > { %v5908_v42 = vpop.eup %5907  ;;  %v5581_v58 = vadd.f32 -1.0, %v5906_v21  ;;  %v1096_v21 = vadd.f32 %v7833_v51, %v9688_v25 }
 0x227   : > { %v5582_v49 = vadd.f32 -1.0, %v5908_v42 }
 0x228   : > { %v2637_v57 = vsel %vm2509_vm10, %v2412_v6, %v5581_v58 }
 0x229   : > { %v2698_v48 = vsel %vm886_vm1, %v2637_v57, %v2697_v34  ;;  %v2638_v2 = vsel %vm2510_vm11, %v2418_v35, %v5582_v49 }
 0x22a   : > { %v2699_v0 = vsel %vm889_vm2, %v2638_v2, %v2698_v48 }
 0x231   : > { %v2220_v16 = vpop.permute.xlu2 %2219 }
 0x232   : > { %v2289_v27 = vmul.f32 %v2220_v16, %v1095_v36 }
 0x234   : > { %v2210_v3 = vpop.permute.xlu0 %2209  ;;  %v2431_v37 = vrot.slane %v2289_v27, 4 }
 0x235   : > { %v2287_v30 = vmul.f32 %v2210_v3, %v1093_v26 }
 0x236   : > { %v2432_v9 = vadd.f32 %v2431_v37, %v2289_v27 }
 0x237   : > { %v2419_v33 = vrot.slane %v2287_v30, 4 }
 0x238   : > { %v2433_v18 = vrot.slane %v2432_v9, 2 }
 0x239   : > { %v2420_v40 = vadd.f32 %v2419_v33, %v2287_v30  ;;  %v1101_v30 = vadd.f32 %v7833_v51, %v7553_v11 }
 0x23a   : > { %v2434_v46 = vadd.f32 %v2433_v18, %v2432_v9 }
 0x23b   : > { %v2421_v38 = vrot.slane %v2420_v40, 2 }
 0x23c   : > { %v2215_v39 = vpop.permute.xlu1 %2214  ;;  %v2435_v13 = vrot.slane %v2434_v46, 1 }
 0x23d   : > { %v2422_v10 = vadd.f32 %v2421_v38, %v2420_v40  ;;  %v2288_v52 = vmul.f32 %v2215_v39, %v1094_v4 }
 0x23e   : > { %v2436_v22 = vadd.f32 %v2435_v13, %v2434_v46  ;;  %v9689_v46 = vld [vmem:[#allocation77_spill] sm:$0xff] }
 0x23f   : > { %v2423_v45 = vrot.slane %v2422_v10, 1  ;;  %v2425_v7 = vrot.slane %v2288_v52, 4  ;;  %v1097_v38 = vadd.f32 %v7833_v51, %v9689_v46  ;;  %v715_v46 = vld [vmem:[#allocation7 + $0x1e8] sm:$0xff] }
 0x240   : > { %v2567_v23 = vmul.f32 1.442695, %v2436_v22  ;;  %vm2513_vm14 = vcmp.gt.f32.partialorder %v2436_v22, 0.0  ;;  %2846 = vmatpush.msrb.mxu1 %v715_v46 }
 0x241   : > { %v2424_v5 = vadd.f32 %v2423_v45, %v2422_v10  ;;  %v2426_v47 = vadd.f32 %v2425_v7, %v2288_v52  ;;  %v3216_v52 = vld [vmem:[#allocation2 + $0xf8] sm:$0xff] }
 0x242   : > { %3373 = vmatpush.msra.mxu3 %v3216_v52 }
 0x243   : > { %v2563_v62 = vmul.f32 1.442695, %v2424_v5  ;;  %v2427_v17 = vrot.slane %v2426_v47, 2  ;;  %vm2511_vm12 = vcmp.gt.f32.partialorder %v2424_v5, 0.0 }
 0x245   : > { %5909 = vpow2.f32 %v2563_v62  ;;  %v2428_v19 = vadd.f32 %v2427_v17, %v2426_v47 }
 0x246   : > { %5911 = vpow2.f32 %v2567_v23  ;;  %v3212_v23 = vld [vmem:[#allocation2 + $0xd8] sm:$0xff] }
 0x247   : > { %v2429_v43 = vrot.slane %v2428_v19, 1 }
 0x249   : > { %v2430_v29 = vadd.f32 %v2429_v43, %v2428_v19  ;;  %v3213_v19 = vld [vmem:[#allocation2 + $0xe0] sm:$0xff] }
 0x24b   : > { %v5910_v8 = vpop.eup %5909  ;;  %v2565_v1 = vmul.f32 1.442695, %v2430_v29  ;;  %vm2512_vm13 = vcmp.gt.f32.partialorder %v2430_v29, 0.0 }
 0x24c   : > { %v5583_v56 = vadd.f32 -1.0, %v5910_v8  ;;  %v2235_v35 = vpop.permute.xlu2 %2234  ;;  %v5912_v15 = vpop.eup %5911 }
 0x24d   : > { %5913 = vpow2.f32 %v2565_v1  ;;  %v2292_v34 = vmul.f32 %v2235_v35, %v1098_v55  ;;  %v5585_v48 = vadd.f32 -1.0, %v5912_v15  ;;  %v3211_v55 = vld [vmem:[#allocation2 + $0xd0] sm:$0xff] }
 0x24e   : > { %v2639_v50 = vsel %vm2511_vm12, %v2424_v5, %v5583_v56  ;;  %v3215_v5 = vld [vmem:[#allocation2 + $0xf0] sm:$0xff] }
 0x24f   : > { %v2700_v20 = vsel %vm892_vm3, %v2639_v50, %v2699_v0  ;;  %v2449_v6 = vrot.slane %v2292_v34, 4  ;;  %v2641_v26 = vsel %vm2513_vm14, %v2436_v22, %v5585_v48  ;;  %3374 = vmatpush.msra.mxu3 %v3215_v5  ;;  %v3214_v22 = vld [vmem:[#allocation2 + $0xe8] sm:$0xff] }
 0x251   : > { %v2450_v49 = vadd.f32 %v2449_v6, %v2292_v34  ;;  %3375 = vmatpush.msra.mxu3 %v3214_v22  ;;  %v1100_v6 = vadd.f32 %v7833_v51, %v7515_v12  ;;  %v1104_v12 = vadd.f32 %v7833_v51, %v7749_v59  ;;  %v3204_v22 = vld [vmem:[#allocation2 + $0x98] sm:$0xff] }
 0x252   : > { %v2225_v42 = vpop.permute.xlu0 %2224 }
 0x253   : > { %v2290_v58 = vmul.f32 %v2225_v42, %v1096_v21  ;;  %v5914_v57 = vpop.eup %5913  ;;  %v2451_v14 = vrot.slane %v2450_v49, 2  ;;  %3376 = vmatpush.msra.mxu3 %v3213_v19 }
 0x254   : > { %v5584_v2 = vadd.f32 -1.0, %v5914_v57 }
 0x255   : > { %v2437_v44 = vrot.slane %v2290_v58, 4  ;;  %v2452_v9 = vadd.f32 %v2451_v14, %v2450_v49  ;;  %3377 = vmatpush.msra.mxu3 %v3212_v23  ;;  %v703_v23 = vld [vmem:[#allocation7 + $0x188] sm:$0xff] }
 0x256   : > { %v2640_v16 = vsel %vm2512_vm13, %v2430_v29, %v5584_v2  ;;  %v9690_v29 = vld [vmem:[#allocation79_spill] sm:$0xff] }
 0x257   : > { %v2438_v36 = vadd.f32 %v2437_v44, %v2290_v58  ;;  %v2701_v0 = vsel %vm895_vm4, %v2640_v16, %v2700_v20  ;;  %v2453_v4 = vrot.slane %v2452_v9, 1  ;;  %v1099_v8 = vadd.f32 %v7833_v51, %v9690_v29  ;;  %3378 = vmatpush.msra.mxu3 %v3211_v55  ;;  %v3210_v58 = vld [vmem:[#allocation2 + $0xc8] sm:$0xff]  ;;  %v3209_v16 = vld [vmem:[#allocation2 + $0xc0] sm:$0xff]  ;;  %v768_v55 = vld [vmem:[#allocation7 + $0x390] sm:$0xff] }
 0x258   : > { %v2702_v3 = vsel %vm898_vm5, %v2641_v26, %v2701_v0 }
 0x259   : > { %v2439_v27 = vrot.slane %v2438_v36, 2  ;;  %v7920_v11 = vadd.f32 %v2453_v4, %v2452_v9  ;;  %3379 = vmatpush.msra.mxu3 %v3210_v58  ;;  %v3205_v4 = vld [vmem:[#allocation2 + $0xa0] sm:$0xff] }
 0x25b   : > { %v2440_v37 = vadd.f32 %v2439_v27, %v2438_v36  ;;  %v2573_v32 = vmul.f32 1.442695, %v7920_v11  ;;  %3380 = vmatpush.msra.mxu3 %v3209_v16  ;;  %vm2516_vm7 = vcmp.gt.f32.partialorder %v7920_v11, 0.0 }
 0x25c   : > { %v2250_v18 = vpop.permute.xlu2 %2249 }
 0x25d   : > { %v2441_v33 = vrot.slane %v2440_v37, 1  ;;  %v2295_v40 = vmul.f32 %v2250_v18, %v1101_v30 }
 0x25f   : > { %v2442_v24 = vadd.f32 %v2441_v33, %v2440_v37  ;;  %v2230_v10 = vpop.permute.xlu1 %2229  ;;  %v2467_v39 = vrot.slane %v2295_v40, 4  ;;  %v3207_v33 = vld [vmem:[#allocation2 + $0xb0] sm:$0xff] }
 0x260   : > { %v2291_v45 = vmul.f32 %v2230_v10, %v1097_v38  ;;  %v780_v10 = vld [vmem:[#allocation7 + $0x3f0] sm:$0xff] }
 0x261   : > { %v2569_v13 = vmul.f32 1.442695, %v2442_v24  ;;  %v2468_v7 = vadd.f32 %v2467_v39, %v2295_v40  ;;  %vm2514_vm15 = vcmp.gt.f32.partialorder %v2442_v24, 0.0  ;;  %v3206_v40 = vld [vmem:[#allocation2 + $0xa8] sm:$0xff]  ;;  %2933 = vmatpush.msra.mxu2 %v780_v10 }
 0x262   : > { %v2443_v47 = vrot.slane %v2291_v45, 4  ;;  %v711_v39 = vld [vmem:[#allocation7 + $0x1c8] sm:$0xff] }
 0x263   : > { %5915 = vpow2.f32 %v2569_v13  ;;  %v2469_v17 = vrot.slane %v2468_v7, 2  ;;  %2847 = vmatpush.msrb.mxu1 %v711_v39 }
 0x264   : > { %v2444_v62 = vadd.f32 %v2443_v47, %v2291_v45  ;;  %5917 = vpow2.f32 %v2573_v32  ;;  %v776_v45 = vld [vmem:[#allocation7 + $0x3d0] sm:$0xff] }
 0x265   : > { %v2470_v35 = vadd.f32 %v2469_v17, %v2468_v7  ;;  %v2265_v44 = vpop.permute.xlu2 %2264  ;;  %v707_v7 = vld [vmem:[#allocation7 + $0x1a8] sm:$0xff]  ;;  %2934 = vmatpush.msra.mxu2 %v776_v45 }
 0x266   : > { %v2445_v43 = vrot.slane %v2444_v62, 2  ;;  %v2298_v27 = vmul.f32 %v2265_v44, %v1104_v12  ;;  %v3203_v32 = vld [vmem:[#allocation2 + $0x90] sm:$0xff]  ;;  %2848 = vmatpush.msrb.mxu1 %v707_v7 }
 0x267   : > { %v2471_v49 = vrot.slane %v2470_v35, 1  ;;  %v756_v44 = vld [vmem:[#allocation7 + $0x330] sm:$0xff]  ;;  %v675_v45 = vld [vmem:[#allocation7 + $0xa8] sm:$0xff] }
 0x268   : > { %v2446_v1 = vadd.f32 %v2445_v43, %v2444_v62  ;;  %v2240_v50 = vpop.permute.xlu0 %2239  ;;  %v772_v62 = vld [vmem:[#allocation7 + $0x3b0] sm:$0xff]  ;;  %2849 = vmatpush.msrb.mxu1 %v703_v23 }
 0x269   : > { %v5916_v56 = vpop.eup %5915  ;;  %v2293_v34 = vmul.f32 %v2240_v50, %v1099_v8  ;;  %v7937_v37 = vadd.f32 %v2471_v49, %v2470_v35  ;;  %2935 = vmatpush.msra.mxu2 %v772_v62  ;;  %v1102_v35 = vadd.f32 %v7833_v51, %v7603_v31  ;;  %v760_v31 = vld [vmem:[#allocation7 + $0x350] sm:$0xff] }
 0x26a   : > { %v5586_v20 = vadd.f32 -1.0, %v5916_v56  ;;  %v2447_v15 = vrot.slane %v2446_v1, 1  ;;  %v5918_v9 = vpop.eup %5917 }
 0x26b   : > { %v2455_v25 = vrot.slane %v2293_v34, 4  ;;  %v2245_v42 = vpop.permute.xlu1 %2244  ;;  %v2579_v52 = vmul.f32 1.442695, %v7937_v37  ;;  %v5588_v5 = vadd.f32 -1.0, %v5918_v9  ;;  %2936 = vmatpush.msra.mxu2 %v768_v55  ;;  %v683_v9 = vld [vmem:[#allocation7 + $0xe8] sm:$0xff]  ;;  %vm2519_vm12 = vcmp.gt.f32.partialorder %v7937_v37, 0.0 }
 0x26c   : > { %v2642_v21 = vsel %vm2514_vm15, %v2442_v24, %v5586_v20  ;;  %v7927_v57 = vadd.f32 %v2447_v15, %v2446_v1  ;;  %v2294_v2 = vmul.f32 %v2245_v42, %v1100_v6  ;;  %v2485_v24 = vrot.slane %v2298_v27, 4  ;;  %v699_v1 = vld [vmem:[#allocation7 + $0x168] sm:$0xff]  ;;  %v764_v6 = vld [vmem:[#allocation7 + $0x370] sm:$0xff] }
 0x26d   : > { %v7930_v48 = vsel %vm901_vm6, %v2642_v21, %v2702_v3  ;;  %v2456_v36 = vadd.f32 %v2455_v25, %v2293_v34  ;;  %v3208_v3 = vld [vmem:[#allocation2 + $0xb8] sm:$0xff]  ;;  %v2644_v50 = vsel %vm2516_vm7, %v7920_v11, %v5588_v5  ;;  %v3202_v20 = vld [vmem:[#allocation2 + $0x88] sm:$0xff]  ;;  %2850 = vmatpush.msrb.mxu1 %v699_v1  ;;  %2937 = vmatpush.msra.mxu2 %v764_v6 }
 0x26e   : > { %2810 = vmatmul.f32.gmra.mxu1 %v7930_v48  ;;  %2926 = vmatmul.f32.gmra.mxu2 %v7930_v48  ;;  %v2571_v14 = vmul.f32 1.442695, %v7927_v57  ;;  %v2461_v26 = vrot.slane %v2294_v2, 4  ;;  %v2486_v8 = vadd.f32 %v2485_v24, %v2298_v27  ;;  %vm2515_vm8 = vcmp.gt.f32.partialorder %v7927_v57, 0.0  ;;  %v695_v42 = vld [vmem:[#allocation7 + $0x148] sm:$0xff]  ;;  %v752_v27 = vld [vmem:[#allocation7 + $0x310] sm:$0xff] }
 0x26f   : > { %v2457_v0 = vrot.slane %v2456_v36, 2  ;;  %3381 = vmatpush.msra.mxu3 %v3208_v3  ;;  %v691_v11 = vld [vmem:[#allocation7 + $0x128] sm:$0xff]  ;;  %2851 = vmatpush.msrb.mxu1 %v695_v42  ;;  %v1103_v3 = vadd.f32 %v7833_v51, %v7683_v54 }
 0x270   : > { %5919 = vpow2.f32 %v2571_v14  ;;  %v2462_v30 = vadd.f32 %v2461_v26, %v2294_v2  ;;  %v2487_v58 = vrot.slane %v2486_v8, 2  ;;  %v3201_v2 = vld [vmem:[#allocation2 + $0x80] sm:$0xff]  ;;  %2938 = vmatpush.msra.mxu2 %v760_v31  ;;  %v655_v42 = vld [vmem:[#allocation7 + $0x8] sm:$0xff] }
 0x271   : > { %v2458_v59 = vadd.f32 %v2457_v0, %v2456_v36  ;;  %3382 = vmatpush.msra.mxu3 %v3207_v33  ;;  %5921 = vpow2.f32 %v2579_v52  ;;  %v687_v36 = vld [vmem:[#allocation7 + $0x108] sm:$0xff]  ;;  %v6207_v0 = vld [vmem:[%s6562_s10] sm:$0xff]  ;;  %2852 = vmatpush.msrb.mxu1 %v691_v11  ;;  %v744_v52 = vld [vmem:[#allocation7 + $0x2d0] sm:$0xff] }
 0x272   : > { %v2463_v18 = vrot.slane %v2462_v30, 2  ;;  %v2488_v14 = vadd.f32 %v2487_v58, %v2486_v8  ;;  %2939 = vmatpush.msra.mxu2 %v756_v44  ;;  %v736_v8 = vld [vmem:[#allocation7 + $0x290] sm:$0xff] }
 0x273   : > { %v2459_v38 = vrot.slane %v2458_v59, 1  ;;  %3383 = vmatpush.msra.mxu3 %v3206_v40  ;;  %2853 = vmatpush.msrb.mxu1 %v687_v36  ;;  %v6209_v58 = vld [vmem:[%s6562_s10 + $0x10] sm:$0xff] }
 0x274   : > { %v2464_v13 = vadd.f32 %v2463_v18, %v2462_v30  ;;  %v748_v18 = vld [vmem:[#allocation7 + $0x2f0] sm:$0xff]  ;;  %2940 = vmatpush.msra.mxu2 %v752_v27  ;;  %v2489_v54 = vrot.slane %v2488_v14, 1  ;;  %v763_v27 = vld [vmem:[#allocation7 + $0x368] sm:$0xff] }
 0x275   : > { %v7940_v47 = vadd.f32 %v2459_v38, %v2458_v59  ;;  %3384 = vmatpush.msra.mxu3 %v3205_v4  ;;  %v679_v4 = vld [vmem:[#allocation7 + $0xc8] sm:$0xff]  ;;  %2854 = vmatpush.msrb.mxu1 %v683_v9 }
 0x276   : > { %v5920_v17 = vpop.eup %5919  ;;  %v2465_v19 = vrot.slane %v2464_v13, 1  ;;  %2941 = vmatpush.msra.mxu2 %v748_v18  ;;  %v7964_v23 = vadd.f32 %v2489_v54, %v2488_v14  ;;  %v747_v54 = vld [vmem:[#allocation7 + $0x2e8] sm:$0xff] }
 0x277   : > { %v5587_v43 = vadd.f32 -1.0, %v5920_v17  ;;  %v2575_v29 = vmul.f32 1.442695, %v7940_v47  ;;  %3385 = vmatpush.msra.mxu3 %v3204_v22  ;;  %v5922_v12 = vpop.eup %5921  ;;  %vm2517_vm10 = vcmp.gt.f32.partialorder %v7940_v47, 0.0  ;;  %2855 = vmatpush.msrb.mxu1 %v679_v4  ;;  %v671_v17 = vld [vmem:[#allocation7 + $0x88] sm:$0xff]  ;;  %v6211_v4 = vld [vmem:[%s6562_s10 + $0x20] sm:$0xff] }
 0x278   : > { %v7945_v56 = vadd.f32 %v2465_v19, %v2464_v13  ;;  %v5591_v46 = vadd.f32 -1.0, %v5922_v12  ;;  %2942 = vmatpush.msra.mxu2 %v744_v52  ;;  %v771_v12 = vld [vmem:[#allocation7 + $0x3a8] sm:$0xff]  ;;  %vm2522_vm15 = vcmp.gt.f32.partialorder %v7964_v23, 0.0 }
 0x279   : > { %v2643_v34 = vsel %vm2515_vm8, %v7927_v57, %v5587_v43  ;;  %5923 = vpow2.f32 %v2575_v29  ;;  %3386 = vmatpush.msra.mxu3 %v3203_v32  ;;  %v6208_v29 = vld [vmem:[%s6562_s10 + $0x8] sm:$0xff]  ;;  %2856 = vmatpush.msrb.mxu1 %v675_v45 }
 0x27a   : > { %v2704_v15 = vsel %vm883_vm0, %v2644_v50, %v2643_v34  ;;  %v2577_v25 = vmul.f32 1.442695, %v7945_v56  ;;  %v2255_v21 = vpop.permute.xlu0 %2254  ;;  %vm2518_vm11 = vcmp.gt.f32.partialorder %v7945_v56, 0.0  ;;  %v2647_v22 = vsel %vm2519_vm12, %v7937_v37, %v5591_v46  ;;  %v732_v37 = vld [vmem:[#allocation7 + $0x270] sm:$0xff]  ;;  %v663_v50 = vld [vmem:[#allocation7 + $0x48] sm:$0xff] }
 0x27b   : > { %v2296_v49 = vmul.f32 %v2255_v21, %v1102_v35  ;;  %3387 = vmatpush.msra.mxu3 %v3202_v20  ;;  %2857 = vmatpush.msrb.mxu1 %v671_v17  ;;  %v2585_v34 = vmul.f32 1.442695, %v7964_v23  ;;  %v728_v20 = vld [vmem:[#allocation7 + $0x250] sm:$0xff]  ;;  %v755_v46 = vld [vmem:[#allocation7 + $0x328] sm:$0xff] }
 0x27c   : > { %5925 = vpow2.f32 %v2577_v25  ;;  %v724_v25 = vld [vmem:[#allocation7 + $0x230] sm:$0xff]  ;;  %v739_v52 = vld [vmem:[#allocation7 + $0x2a8] sm:$0xff] }
 0x27d   : > { %v2473_v57 = vrot.slane %v2296_v49, 4  ;;  %3388 = vmatpush.msra.mxu3 %v3201_v2  ;;  %v779_v2 = vld [vmem:[#allocation7 + $0x3e8] sm:$0xff] }
 0x27e   : > { %3389 = vmatmul.f32.vlgmr.msra.gmra.mxu3 %v6207_v0  ;;  %v6210_v0 = vld [vmem:[%s6562_s10 + $0x18] sm:$0xff]  ;;  %v735_v45 = vld [vmem:[#allocation7 + $0x288] sm:$0xff] }
 0x27f   : > { %v5924_v16 = vpop.eup %5923  ;;  %v2474_v26 = vadd.f32 %v2473_v57, %v2296_v49  ;;  %v720_v49 = vld [vmem:[#allocation7 + $0x210] sm:$0xff]  ;;  %v775_v57 = vld [vmem:[#allocation7 + $0x3c8] sm:$0xff] }
 0x280   : > { %v5589_v30 = vadd.f32 -1.0, %v5924_v16  ;;  %v2260_v33 = vpop.permute.xlu1 %2259  ;;  %v727_v17 = vld [vmem:[#allocation7 + $0x248] sm:$0xff] }
 0x281   : > { %v2475_v59 = vrot.slane %v2474_v26, 2  ;;  %v2297_v24 = vmul.f32 %v2260_v33, %v1103_v3 }
 0x282   : > { %v5926_v40 = vpop.eup %5925  ;;  %v2645_v38 = vsel %vm2517_vm10, %v7940_v47, %v5589_v30  ;;  %v740_v47 = vld [vmem:[#allocation7 + $0x2b0] sm:$0xff] }
 0x283   : > { %v2705_v10 = vsel %vm886_vm1, %v2645_v38, %v2704_v15  ;;  %v5590_v39 = vadd.f32 -1.0, %v5926_v40  ;;  %v2476_v51 = vadd.f32 %v2475_v59, %v2474_v26  ;;  %v2479_v13 = vrot.slane %v2297_v24, 4  ;;  %2943 = vmatpush.msra.mxu2 %v740_v47  ;;  %v659_v15 = vld [vmem:[#allocation7 + $0x28] sm:$0xff]  ;;  %v769_v47 = vld [vmem:[#allocation7 + $0x398] sm:$0xff] }
 0x284   : > { %v767_v26 = vld [vmem:[#allocation7 + $0x388] sm:$0xff] }
 0x285   : > { %v2646_v7 = vsel %vm2518_vm11, %v7945_v56, %v5590_v39  ;;  %v2477_v5 = vrot.slane %v2476_v51, 1  ;;  %v2480_v62 = vadd.f32 %v2479_v13, %v2297_v24  ;;  %v667_v56 = vld [vmem:[#allocation7 + $0x68] sm:$0xff]  ;;  %2944 = vmatpush.msra.mxu2 %v736_v8  ;;  %v777_v39 = vld [vmem:[#allocation7 + $0x3d8] sm:$0xff] }
 0x286   : > { %v2706_v19 = vsel %vm889_vm2, %v2646_v7, %v2705_v10  ;;  %3392 = vmatmul.f32.gmra.mxu3 %v6208_v29  ;;  %2858 = vmatpush.msrb.mxu1 %v667_v56  ;;  %v759_v59 = vld [vmem:[#allocation7 + $0x348] sm:$0xff]  ;;  %v781_v10 = vld [vmem:[#allocation7 + $0x3f8] sm:$0xff] }
 0x287   : > { %v2478_v43 = vadd.f32 %v2477_v5, %v2476_v51  ;;  %v2707_v32 = vsel %vm892_vm3, %v2647_v22, %v2706_v19  ;;  %v2481_v55 = vrot.slane %v2480_v62, 2  ;;  %2945 = vmatpush.msra.mxu2 %v732_v37  ;;  %v751_v24 = vld [vmem:[#allocation7 + $0x308] sm:$0xff]  ;;  %v773_v7 = vld [vmem:[#allocation7 + $0x3b8] sm:$0xff] }
 0x288   : > { %2859 = vmatpush.msrb.mxu1 %v663_v50  ;;  %v743_v51 = vld [vmem:[#allocation7 + $0x2c8] sm:$0xff]  ;;  %v713_v56 = vld [vmem:[#allocation7 + $0x1d8] sm:$0xff] }
 0x289   : > { %v2581_v1 = vmul.f32 1.442695, %v2478_v43  ;;  %v2482_v35 = vadd.f32 %v2481_v55, %v2480_v62  ;;  %2946 = vmatpush.msra.mxu2 %v728_v20  ;;  %vm2520_vm13 = vcmp.gt.f32.partialorder %v2478_v43, 0.0  ;;  %v9691_v13 = vld [vmem:[#allocation80_spill] sm:$0xff]  ;;  %v765_v62 = vld [vmem:[#allocation7 + $0x378] sm:$0xff] }
 0x28a   : > { %2860 = vmatpush.msrb.mxu1 %v659_v15  ;;  %v6212_v5 = vld [vmem:[%s6562_s10 + $0x28] sm:$0xff]  ;;  %v6213_v8 = vld [vmem:[%s6562_s10 + $0x30] sm:$0xff]  ;;  %v757_v55 = vld [vmem:[#allocation7 + $0x338] sm:$0xff] }
 0x28b   : > { %5927 = vpow2.f32 %v2581_v1  ;;  %v2483_v6 = vrot.slane %v2482_v35, 1  ;;  %2947 = vmatpush.msra.mxu2 %v724_v25  ;;  %v731_v22 = vld [vmem:[#allocation7 + $0x268] sm:$0xff]  ;;  %v753_v1 = vld [vmem:[#allocation7 + $0x318] sm:$0xff] }
 0x28c   : > { %5929 = vpow2.f32 %v2585_v34  ;;  %2861 = vmatpush.msrb.mxu1 %v655_v42  ;;  %v723_v19 = vld [vmem:[#allocation7 + $0x228] sm:$0xff]  ;;  %v709_v37 = vld [vmem:[#allocation7 + $0x1b8] sm:$0xff] }
 0x28d   : > { %v2484_v21 = vadd.f32 %v2483_v6, %v2482_v35  ;;  %2948 = vmatpush.msra.mxu2 %v720_v49  ;;  %v719_v29 = vld [vmem:[#allocation7 + $0x208] sm:$0xff]  ;;  %v749_v35 = vld [vmem:[#allocation7 + $0x2f8] sm:$0xff] }
 0x28e   : > { %3395 = vmatmul.f32.gmra.mxu3 %v6209_v58  ;;  %2875 = vmatpush.msra.mxu1 %v779_v2  ;;  %v9693_v50 = vld [vmem:[#allocation16_spill] sm:$0xff]  ;;  %v705_v34 = vld [vmem:[#allocation7 + $0x198] sm:$0xff] }
 0x28f   : > { %v2583_v31 = vmul.f32 1.442695, %v2484_v21  ;;  %vm2521_vm14 = vcmp.gt.f32.partialorder %v2484_v21, 0.0  ;;  %2991 = vmatpush.msrb.mxu2 %v781_v10  ;;  %v6214_v20 = vld [vmem:[%s6562_s10 + $0x38] sm:$0xff]  ;;  %v6215_v2 = vld [vmem:[%s6562_s10 + $0x40] sm:$0xff] }
 0x290   : > { %2876 = vmatpush.msra.mxu1 %v775_v57  ;;  %v745_v6 = vld [vmem:[#allocation7 + $0x2d8] sm:$0xff] }
 0x291   : > { %v5928_v11 = vpop.eup %5927  ;;  %5931 = vpow2.f32 %v2583_v31  ;;  %2992 = vmatpush.msrb.mxu2 %v777_v39  ;;  %v701_v15 = vld [vmem:[#allocation7 + $0x178] sm:$0xff] }
 0x292   : > { %v5592_v44 = vadd.f32 -1.0, %v5928_v11  ;;  %v5930_v16 = vpop.eup %5929  ;;  %2877 = vmatpush.msra.mxu1 %v771_v12  ;;  %v741_v25 = vld [vmem:[#allocation7 + $0x2b8] sm:$0xff] }
 0x293   : > { %v5594_v30 = vadd.f32 -1.0, %v5930_v16  ;;  %2993 = vmatpush.msrb.mxu2 %v773_v7  ;;  %v693_v42 = vld [vmem:[#allocation7 + $0x138] sm:$0xff] }
 0x294   : > { %v2648_v36 = vsel %vm2520_vm13, %v2478_v43, %v5592_v44  ;;  %2878 = vmatpush.msra.mxu1 %v767_v26  ;;  %v9692_v43 = vld [vmem:[#allocation15_spill] sm:$0xff]  ;;  %v737_v58 = vld [vmem:[#allocation7 + $0x298] sm:$0xff] }
 0x295   : > { %v2708_v14 = vsel %vm895_vm4, %v2648_v36, %v2707_v32  ;;  %v2650_v18 = vsel %vm2522_vm15, %v7964_v23, %v5594_v30  ;;  %2994 = vmatpush.msrb.mxu2 %v769_v47  ;;  %v761_v23 = vld [vmem:[#allocation7 + $0x358] sm:$0xff]  ;;  %v6216_v26 = vld [vmem:[%s6562_s10 + $0x48] sm:$0xff] }
 0x296   : > { %3398 = vmatmul.f32.gmra.mxu3 %v6210_v0  ;;  %2879 = vmatpush.msra.mxu1 %v763_v27  ;;  %v717_v32 = vld [vmem:[#allocation7 + $0x1f8] sm:$0xff] }
 0x297   : > { %v5932_v3 = vpop.eup %5931  ;;  %2995 = vmatpush.msrb.mxu2 %v765_v62  ;;  %v689_v49 = vld [vmem:[#allocation7 + $0x118] sm:$0xff] }
 0x298   : > { %v5593_v9 = vadd.f32 -1.0, %v5932_v3  ;;  %2880 = vmatpush.msra.mxu1 %v759_v59  ;;  %v733_v31 = vld [vmem:[#allocation7 + $0x278] sm:$0xff]  ;;  %v6217_v3 = vld [vmem:[%s6562_s10 + $0x50] sm:$0xff] }
 0x299   : > { %2996 = vmatpush.msrb.mxu2 %v761_v23  ;;  %v685_v11 = vld [vmem:[#allocation7 + $0xf8] sm:$0xff] }
 0x29a   : > { %v2649_v33 = vsel %vm2521_vm14, %v2484_v21, %v5593_v9  ;;  %2881 = vmatpush.msra.mxu1 %v755_v46  ;;  %v697_v21 = vld [vmem:[#allocation7 + $0x158] sm:$0xff]  ;;  %v6221_v46 = vld [vmem:[%s6562_s10 + $0x70] sm:$0xff] }
 0x29b   : > { %v2709_v40 = vsel %vm898_vm5, %v2649_v33, %v2708_v14  ;;  %2997 = vmatpush.msrb.mxu2 %v757_v55  ;;  %v729_v57 = vld [vmem:[#allocation7 + $0x258] sm:$0xff] }
 0x29c   : > { %v7976_v38 = vsel %vm901_vm6, %v2650_v18, %v2709_v40  ;;  %2882 = vmatpush.msra.mxu1 %v751_v24  ;;  %v681_v44 = vld [vmem:[#allocation7 + $0xd8] sm:$0xff]  ;;  %v6220_v18 = vld [vmem:[%s6562_s10 + $0x68] sm:$0xff]  ;;  %v2834_v40 = vpop.f32.mrf.mxu2 }
 0x29d   : > { %2813 = vmatmul.f32.gmra.mxu1 %v7976_v38  ;;  %2929 = vmatmul.f32.gmra.mxu2 %v7976_v38  ;;  %v725_v12 = vld [vmem:[#allocation7 + $0x238] sm:$0xff] }
 0x29e   : > { %3401 = vmatmul.f32.gmra.mxu3 %v6211_v4  ;;  %2883 = vmatpush.msra.mxu1 %v747_v54  ;;  %v677_v36 = vld [vmem:[#allocation7 + $0xb8] sm:$0xff]  ;;  %v2805_v54 = vpop.f32.mrf.mxu1 }
 0x29f   : > { %2998 = vmatpush.msrb.mxu2 %v753_v1  ;;  %v721_v16 = vld [vmem:[#allocation7 + $0x218] sm:$0xff] }
 0x2a0   : > { %2884 = vmatpush.msra.mxu1 %v743_v51  ;;  %v673_v14 = vld [vmem:[#allocation7 + $0x98] sm:$0xff]  ;;  %v6224_v51 = vld [vmem:[%s6562_s10 + $0x88] sm:$0xff] }
 0x2a1   : > { %2999 = vmatpush.msrb.mxu2 %v749_v35  ;;  %v669_v0 = vld [vmem:[#allocation7 + $0x78] sm:$0xff] }
 0x2a2   : > { %2885 = vmatpush.msra.mxu1 %v739_v52  ;;  %v665_v27 = vld [vmem:[#allocation7 + $0x58] sm:$0xff] }
 0x2a3   : > { %3000 = vmatpush.msrb.mxu2 %v745_v6  ;;  %v661_v30 = vld [vmem:[#allocation7 + $0x38] sm:$0xff] }
 0x2a4   : > { %2886 = vmatpush.msra.mxu1 %v735_v45  ;;  %v657_v9 = vld [vmem:[#allocation7 + $0x18] sm:$0xff]  ;;  %v2837_v24 = vpop.f32.mrf.mxu2  ;;  %v6225_v45 = vld [vmem:[%s6562_s10 + $0x90] sm:$0xff] }
 0x2a5   : > { %2862 = vmatmul.f32.vlgmr.msrb.gmra.mxu1 %v7763_v41  ;;  %2949 = vmatmul.f32.vlgmr.msra.gmra.mxu2 %v9691_v13  ;;  %v6218_v59 = vld [vmem:[%s6562_s10 + $0x58] sm:$0xff]  ;;  %v6219_v33 = vld [vmem:[%s6562_s10 + $0x60] sm:$0xff] }
 0x2a6   : > { %3404 = vmatmul.f32.gmra.mxu3 %v6212_v5  ;;  %2887 = vmatpush.msra.mxu1 %v731_v22  ;;  %v6222_v4 = vld [vmem:[%s6562_s10 + $0x78] sm:$0xff]  ;;  %v6223_v10 = vld [vmem:[%s6562_s10 + $0x80] sm:$0xff] }
 0x2a7   : > { %3001 = vmatpush.msrb.mxu2 %v741_v25  ;;  %v6226_v47 = vld [vmem:[%s6562_s10 + $0x98] sm:$0xff]  ;;  %v8039_v55 = vld [vmem:[%s9481_s7] sm:$0xf] }
 0x2a8   : > { %2888 = vmatpush.msra.mxu1 %v727_v17 }
 0x2a9   : > { %3002 = vmatpush.msrb.mxu2 %v737_v58 }
 0x2aa   : > { %2889 = vmatpush.msra.mxu1 %v723_v19  ;;  %v6227_v19 = vld [vmem:[%s6562_s10 + $0xa0] sm:$0xff] }
 0x2ab   : > { %3003 = vmatpush.msrb.mxu2 %v733_v31 }
 0x2ac   : > { %2890 = vmatpush.msra.mxu1 %v719_v29 }
 0x2ad   : > { %2865 = vmatmul.f32.gmra.mxu1 %v7896_v63  ;;  %2952 = vmatmul.f32.gmra.mxu2 %v9692_v43 }
 0x2ae   : > { %3407 = vmatmul.f32.gmra.mxu3 %v6213_v8  ;;  %2962 = vmatpush.msrb.mxu1 %v717_v32  ;;  %v6228_v32 = vld [vmem:[%s6562_s10 + $0xa8] sm:$0xff] }
 0x2af   : > { %3004 = vmatpush.msrb.mxu2 %v729_v57  ;;  %v8057_v57 = vperm.slane %v8039_v55, 1 }
 0x2b0   : > { %2963 = vmatpush.msrb.mxu1 %v713_v56 }
 0x2b1   : > { %3005 = vmatpush.msrb.mxu2 %v725_v12 }
 0x2b2   : > { %2964 = vmatpush.msrb.mxu1 %v709_v37  ;;  %v2780_v37 = vperm.slane %v8039_v55, 0 }
 0x2b3   : > { %3006 = vmatpush.msrb.mxu2 %v721_v16 }
 0x2b4   : > { %2965 = vmatpush.msrb.mxu1 %v705_v34  ;;  %v6229_v34 = vld [vmem:[%s6562_s10 + $0xb0] sm:$0xff] }
 0x2b5   : > { %2868 = vmatmul.f32.gmra.mxu1 %v7930_v48  ;;  %2955 = vmatmul.f32.gmra.mxu2 %v9693_v50 }
 0x2b6   : > { %3410 = vmatmul.f32.gmra.mxu3 %v6214_v20  ;;  %2966 = vmatpush.msrb.mxu1 %v701_v15  ;;  %v2806_v20 = vadd.f32 %v2805_v54, %v2780_v37 }
 0x2b8   : > { %2967 = vmatpush.msrb.mxu1 %v697_v21  ;;  %v2835_v25 = vadd.f32 %v2834_v40, %v2806_v20  ;;  %v3348_v40 = vld [vmem:[#allocation7 + $0x7e0] sm:$0xff]  ;;  %v5739_v20 = vld [vmem:[%s9479_s5 + $0x1] ss:$0 sm:$0xff] }
 0x2b9   : > { %5040 = vmatpush.msra.mxu2 %v3348_v40  ;;  %3623 = vrot.lane.b32.xlu1 %v5739_v20, %s6410_s17  ;;  %v3316_v40 = vld [vmem:[#allocation7 + $0x6e0] sm:$0xff] }
 0x2ba   : > { %2968 = vmatpush.msrb.mxu1 %v693_v42  ;;  %v6230_v42 = vld [vmem:[%s6562_s10 + $0xb8] sm:$0xff]  ;;  %v5595_v58 = vmul.f32 -1.442695, %v2835_v25 }
 0x2bc   : > { %2969 = vmatpush.msrb.mxu1 %v689_v49  ;;  %5933 = vpow2.f32 %v5595_v58 }
 0x2bd   : > { %2871 = vmatmul.f32.gmra.mxu1 %v7976_v38  ;;  %2958 = vmatmul.f32.gmra.mxu2 %v7689_v53 }
 0x2be   : > { %3413 = vmatmul.f32.gmra.mxu3 %v6215_v2  ;;  %2970 = vmatpush.msrb.mxu1 %v685_v11 }
 0x2c0   : > { %2971 = vmatpush.msrb.mxu1 %v681_v44  ;;  %v6231_v44 = vld [vmem:[%s6562_s10 + $0xc0] sm:$0xff] }
 0x2c2   : > { %2972 = vmatpush.msrb.mxu1 %v677_v36 }
 0x2c4   : > { %2973 = vmatpush.msrb.mxu1 %v673_v14  ;;  %v5934_v14 = vpop.eup %5933 }
 0x2c5   : > { %2891 = vmatmul.f32.vlgmr.msra.gmra.mxu1 %v9691_v13  ;;  %3007 = vmatmul.f32.vlgmr.msrb.gmra.mxu2 %v9691_v13 }
 0x2c6   : > { %3416 = vmatmul.f32.gmra.mxu3 %v6216_v26  ;;  %2974 = vmatpush.msrb.mxu1 %v669_v0 }
 0x2c8   : > { %2975 = vmatpush.msrb.mxu1 %v665_v27 }
 0x2ca   : > { %2976 = vmatpush.msrb.mxu1 %v661_v30 }
 0x2cc   : > { %2977 = vmatpush.msrb.mxu1 %v657_v9  ;;  %v8065_v9 = vadd.f32 1.0, %v5934_v14 }
 0x2cd   : > { %2894 = vmatmul.f32.gmra.mxu1 %v9692_v43  ;;  %3010 = vmatmul.f32.gmra.mxu2 %v9692_v43 }
 0x2ce   : > { %3419 = vmatmul.f32.gmra.mxu3 %v6217_v3  ;;  %vm3041_vm8 = vweird.f32 %v8065_v9 }
 0x2d5   : > { %2897 = vmatmul.f32.gmra.mxu1 %v9693_v50  ;;  %3013 = vmatmul.f32.gmra.mxu2 %v9693_v50 }
 0x2d6   : > { %3422 = vmatmul.f32.gmra.mxu3 %v6218_v59 }
 0x2dd   : > { %2900 = vmatmul.f32.gmra.mxu1 %v7689_v53  ;;  %3016 = vmatmul.f32.gmra.mxu2 %v7689_v53 }
 0x2de   : > { %3425 = vmatmul.f32.gmra.mxu3 %v6219_v33  ;;  %v6232_v33 = vld [vmem:[%s6562_s10 + $0xc8] sm:$0xff] }
 0x2e5   : > { %2978 = vmatmul.f32.vlgmr.msrb.gmra.mxu1 %v7763_v41  ;;  %v2840_v41 = vpop.f32.mrf.mxu2 }
 0x2e6   : > { %3428 = vmatmul.f32.gmra.mxu3 %v6220_v18 }
 0x2ed   : > { %2981 = vmatmul.f32.gmra.mxu1 %v7896_v63  ;;  %v8018_v52 = vpop.f32.mrf.mxu2 }
 0x2ee   : > { %3431 = vmatmul.f32.gmra.mxu3 %v6221_v46 }
 0x2f5   : > { %2984 = vmatmul.f32.gmra.mxu1 %v7930_v48  ;;  %v2808_v48 = vpop.f32.mrf.mxu1  ;;  %v8023_v5 = vpop.f32.mrf.mxu2 }
 0x2f6   : > { %3434 = vmatmul.f32.gmra.mxu3 %v6222_v4  ;;  %v2809_v49 = vadd.f32 %v2808_v48, %v2780_v37 }
 0x2f8   : > { %v2838_v11 = vadd.f32 %v2837_v24, %v2809_v49 }
 0x2fa   : > { %v5596_v12 = vmul.f32 -1.442695, %v2838_v11 }
 0x2fc   : > { %5935 = vpow2.f32 %v5596_v12 }
 0x2fd   : > { %2987 = vmatmul.f32.gmra.mxu1 %v7976_v38  ;;  %v2811_v38 = vpop.f32.mrf.mxu1  ;;  %v8028_v17 = vpop.f32.mrf.mxu2 }
 0x2fe   : > { %3437 = vmatmul.f32.gmra.mxu3 %v6223_v10  ;;  %v2812_v36 = vadd.f32 %v2811_v38, %v2780_v37  ;;  %v3340_v38 = vld [vmem:[#allocation7 + $0x7a0] sm:$0xff] }
 0x300   : > { %v2841_v3 = vadd.f32 %v2840_v41, %v2812_v36 }
 0x301   : > { %v8013_v39 = vpop.f32.mrf.mxu3 }
 0x302   : > { %9694 = vst [vmem:[#allocation17_spill] sm:$0xff] %v8013_v39  ;;  %v5597_v18 = vmul.f32 -1.442695, %v2841_v3  ;;  %v5936_v46 = vpop.eup %5935 }
 0x305   : > { %v8033_v8 = vpop.f32.mrf.mxu2 }
 0x306   : > { %3440 = vmatmul.f32.gmra.mxu3 %v6224_v51  ;;  %v3344_v51 = vld [vmem:[#allocation7 + $0x7c0] sm:$0xff] }
 0x307   : > { %5041 = vmatpush.msra.mxu2 %v3344_v51 }
 0x309   : > { %v8016_v63 = vpop.f32.mrf.mxu3  ;;  %5042 = vmatpush.msra.mxu2 %v3340_v38 }
 0x30a   : > { %9695 = vst [vmem:[#allocation18_spill] sm:$0xff] %v8016_v63 }
 0x30e   : > { %3443 = vmatmul.f32.gmra.mxu3 %v6225_v45  ;;  %v8074_v45 = vadd.f32 1.0, %v5936_v46 }
 0x310   : > { %vm3056_vm14 = vweird.f32 %v8074_v45 }
 0x311   : > { %v8021_v7 = vpop.f32.mrf.mxu3 }
 0x312   : > { %9696 = vst [vmem:[#allocation19_spill] sm:$0xff] %v8021_v7 }
 0x316   : > { %3446 = vmatmul.f32.gmra.mxu3 %v6226_v47 }
 0x319   : > { %v8026_v22 = vpop.f32.mrf.mxu3 }
 0x31a   : > { %9697 = vst [vmem:[#allocation20_spill] sm:$0xff] %v8026_v22  ;;  %v2814_v62 = vpop.f32.mrf.mxu1 }
 0x31b   : > { %v2815_v24 = vadd.f32 %v2814_v62, %v2780_v37  ;;  %v3336_v37 = vld [vmem:[#allocation7 + $0x780] sm:$0xff] }
 0x31c   : > { %5043 = vmatpush.msra.mxu2 %v3336_v37 }
 0x31e   : > { %3449 = vmatmul.f32.gmra.mxu3 %v6227_v19  ;;  %v2844_v19 = vadd.f32 %v8018_v52, %v2815_v24  ;;  %v3312_v24 = vld [vmem:[#allocation7 + $0x6c0] sm:$0xff] }
 0x320   : > { %v8044_v35 = vpop.f32.mrf.mxu2  ;;  %v5598_v52 = vmul.f32 -1.442695, %v2844_v19  ;;  %v3308_v19 = vld [vmem:[#allocation7 + $0x6a0] sm:$0xff] }
 0x321   : > { %v8031_v23 = vpop.f32.mrf.mxu3 }
 0x322   : > { %9698 = vst [vmem:[#allocation23_spill] sm:$0xff] %v8031_v23  ;;  %v2863_v29 = vpop.f32.mrf.mxu1 }
 0x323   : > { %v2864_v26 = vadd.f32 %v2863_v29, %v8057_v57 }
 0x326   : > { %3452 = vmatmul.f32.gmra.mxu3 %v6228_v32 }
 0x328   : > { %v8049_v21 = vpop.f32.mrf.mxu2 }
 0x329   : > { %v8041_v56 = vpop.f32.mrf.mxu3 }
 0x32a   : > { %9699 = vst [vmem:[#allocation21_spill] sm:$0xff] %v8041_v56  ;;  %v2866_v1 = vpop.f32.mrf.mxu1 }
 0x32b   : > { %v2867_v4 = vadd.f32 %v2866_v1, %v8057_v57  ;;  %v6233_v1 = vld [vmem:[%s6562_s10 + $0xd0] sm:$0xff] }
 0x32e   : > { %3455 = vmatmul.f32.gmra.mxu3 %v6229_v34  ;;  %v3332_v34 = vld [vmem:[#allocation7 + $0x760] sm:$0xff] }
 0x32f   : > { %5044 = vmatpush.msra.mxu2 %v3332_v34 }
 0x330   : > { %v8060_v16 = vpop.f32.mrf.mxu2 }
 0x331   : > { %v8047_v6 = vpop.f32.mrf.mxu3 }
 0x332   : > { %9700 = vst [vmem:[#allocation22_spill] sm:$0xff] %v8047_v6  ;;  %v2869_v15 = vpop.f32.mrf.mxu1 }
 0x336   : > { %3458 = vmatmul.f32.gmra.mxu3 %v6230_v42  ;;  %v2870_v42 = vadd.f32 %v2869_v15, %v8057_v57  ;;  %v3324_v15 = vld [vmem:[#allocation7 + $0x720] sm:$0xff] }
 0x338   : > { %v8072_v41 = vpop.f32.mrf.mxu2 }
 0x339   : > { %v8052_v2 = vpop.f32.mrf.mxu3 }
 0x33a   : > { %9701 = vst [vmem:[#allocation24_spill] sm:$0xff] %v8052_v2  ;;  %v8054_v31 = vpop.f32.mrf.mxu1 }
 0x33e   : > { %3461 = vmatmul.f32.gmra.mxu3 %v6231_v44  ;;  %v3328_v44 = vld [vmem:[#allocation7 + $0x740] sm:$0xff] }
 0x33f   : > { %5045 = vmatpush.msra.mxu2 %v3328_v44  ;;  %v3047_v44 = vand.u32 2147483648, %v8065_v9 }
 0x340   : > { %v8095_v14 = vpop.f32.mrf.mxu2 }
 0x341   : > { %v8063_v0 = vpop.f32.mrf.mxu3  ;;  %5046 = vmatpush.msra.mxu2 %v3324_v15  ;;  %v3300_v15 = vld [vmem:[#allocation7 + $0x660] sm:$0xff] }
 0x342   : > { %9702 = vst [vmem:[#allocation25_spill] sm:$0xff] %v8063_v0  ;;  %v2892_v27 = vpop.f32.mrf.mxu1 }
 0x343   : > { %v2893_v30 = vadd.f32 %v2892_v27, %v2864_v26 }
 0x345   : > { %v5599_v59 = vmul.f32 -1.442695, %v2893_v30  ;;  %v3320_v30 = vld [vmem:[#allocation7 + $0x700] sm:$0xff] }
 0x346   : > { %3464 = vmatmul.f32.gmra.mxu3 %v6232_v33  ;;  %5047 = vmatpush.msra.mxu2 %v3320_v30  ;;  %v8133_v30 = vperm.slane %v8039_v55, 2 }
 0x347   : > { %5937 = vpow2.f32 %v5599_v59 }
 0x348   : > { %5939 = vrcp.f32 %v8065_v9  ;;  %5048 = vmatpush.msra.mxu2 %v3316_v40  ;;  %v3296_v40 = vld [vmem:[#allocation7 + $0x640] sm:$0xff] }
 0x349   : > { %v8070_v10 = vpop.f32.mrf.mxu3  ;;  %5941 = vpow2.f32 %v5597_v18  ;;  %v6234_v18 = vld [vmem:[%s6562_s10 + $0xd8] sm:$0xff] }
 0x34a   : > { %v2895_v54 = vpop.f32.mrf.mxu1  ;;  %5049 = vmatpush.msra.mxu2 %v3312_v24 }
 0x34b   : > { %v2896_v48 = vadd.f32 %v2895_v54, %v2867_v4  ;;  %v2873_v4 = vadd.f32 %v8054_v31, %v8057_v57  ;;  %v3008_v31 = vpop.f32.mrf.mxu2  ;;  %v3304_v57 = vld [vmem:[#allocation7 + $0x680] sm:$0xff] }
 0x34c   : > { %5050 = vmatpush.msra.mxu2 %v3308_v19  ;;  %v3292_v19 = vld [vmem:[#allocation7 + $0x620] sm:$0xff] }
 0x34d   : > { %v5938_v47 = vpop.eup %5937  ;;  %v5600_v62 = vmul.f32 -1.442695, %v2896_v48 }
 0x34e   : > { %v8077_v29 = vpop.eup %5939  ;;  %v8079_v32 = vadd.f32 1.0, %v5938_v47  ;;  %3467 = vmatmul.f32.gmra.mxu3 %v6233_v1  ;;  %5051 = vmatpush.msra.mxu2 %v3304_v57  ;;  %v3060_v57 = vand.u32 2147483647, %v8074_v45 }
 0x34f   : > { %5943 = vpow2.f32 %v5600_v62  ;;  %v5942_v25 = vpop.eup %5941  ;;  %v3037_v49 = vmul.f32 %v8077_v29, %v8065_v9  ;;  %vm3042_vm7 = vweird.f32 %v8077_v29 }
 0x350   : > { %5945 = vrcp.f32 %v8074_v45  ;;  %v8093_v36 = vadd.f32 1.0, %v5942_v25  ;;  %vm8137_vm10 = vmor %vm3041_vm8, %vm3042_vm7  ;;  %5052 = vmatpush.msra.mxu2 %v3300_v15  ;;  %vm3117_vm15 = vweird.f32 %v8079_v32  ;;  %vm8183_vm8 = vcmp.eq.f32.partialorder %v3060_v57, 8.507059e+37 }
 0x351   : > { %5947 = vrcp.f32 %v8079_v32  ;;  %v8088_v58 = vpop.f32.mrf.mxu3  ;;  %v3038_v3 = vsub.f32 1.0, %v3037_v49 }
 0x352   : > { %v2898_v11 = vpop.f32.mrf.mxu1  ;;  %5949 = vpow2.f32 %v5598_v52  ;;  %5053 = vmatpush.msra.mxu2 %v3296_v40  ;;  %v6236_v40 = vld [vmem:[%s6562_s10 + $0xe8] sm:$0xff] }
 0x353   : > { %v2899_v12 = vadd.f32 %v2898_v11, %v2870_v42  ;;  %v3039_v54 = vmul.f32 %v8077_v29, %v3038_v3  ;;  %v3045_v3 = vand.u32 2147483647, %v8065_v9 }
 0x354   : > { %5054 = vmatpush.msra.mxu2 %v3292_v19 }
 0x355   : > { %v5944_v26 = vpop.eup %5943  ;;  %v5601_v27 = vmul.f32 -1.442695, %v2899_v12  ;;  %v3040_v20 = vadd.f32 %v8077_v29, %v3039_v54  ;;  %v6235_v12 = vld [vmem:[%s6562_s10 + $0xe0] sm:$0xff]  ;;  %vm3046_vm11 = vcmp.eq.f32.partialorder %v3045_v3, 8.507059e+37 }
 0x356   : > { %v8097_v59 = vpop.eup %5945  ;;  %v8099_v33 = vadd.f32 1.0, %v5944_v26  ;;  %3470 = vmatmul.f32.gmra.mxu3 %v6234_v18  ;;  %v3011_v18 = vpop.f32.mrf.mxu2 }
 0x357   : > { %v8102_v46 = vpop.eup %5947  ;;  %5951 = vpow2.f32 %v5601_v27  ;;  %v3052_v48 = vmul.f32 %v8097_v59, %v8074_v45  ;;  %v8128_v27 = vperm.slane %v8039_v55, 3  ;;  %v3044_v24 = vsel %vm8137_vm10, %v8077_v29, %v3040_v20 }
 0x358   : > { %5953 = vrcp.f32 %v8093_v36  ;;  %v3113_v38 = vmul.f32 %v8102_v46, %v8079_v32  ;;  %v5950_v62 = vpop.eup %5949  ;;  %vm3057_vm12 = vweird.f32 %v8097_v59  ;;  %vm3118_vm13 = vweird.f32 %v8102_v46 }
 0x359   : > { %5955 = vrcp.f32 %v8099_v33  ;;  %v8109_v51 = vpop.f32.mrf.mxu3  ;;  %v3053_v25 = vsub.f32 1.0, %v3052_v48  ;;  %v8119_v42 = vadd.f32 1.0, %v5950_v62  ;;  %v2922_v62 = vadd.f32 %v8023_v5, %v8133_v30  ;;  %vm8179_vm7 = vmor %vm3056_vm14, %vm3057_vm12 }
 0x35a   : > { %9703 = vst [vmem:[#allocation26_spill] sm:$0xff] %v8109_v51  ;;  %v2901_v47 = vpop.f32.mrf.mxu1  ;;  %v3114_v49 = vsub.f32 1.0, %v3113_v38  ;;  %vm8189_vm10 = vmor %vm3117_vm15, %vm3118_vm13  ;;  %vm3071_vm14 = vweird.f32 %v8093_v36  ;;  %vm3132_vm15 = vweird.f32 %v8099_v33 }
 0x35b   : > { %v2902_v1 = vadd.f32 %v2901_v47, %v2873_v4  ;;  %v3054_v4 = vmul.f32 %v8097_v59, %v3053_v25  ;;  %v3048_v47 = vor.u32 1.1754944e-38, %v3047_v44 }
 0x35c   : > { %v3115_v54 = vmul.f32 %v8102_v46, %v3114_v49 }
 0x35d   : > { %v5952_v37 = vpop.eup %5951  ;;  %v5602_v34 = vmul.f32 -1.442695, %v2902_v1  ;;  %v3049_v1 = vsel %vm3046_vm11, %v3048_v47, %v3044_v24  ;;  %v3055_v49 = vadd.f32 %v8097_v59, %v3054_v4  ;;  %v3123_v4 = vand.u32 2147483648, %v8079_v32 }
 0x35e   : > { %v8117_v52 = vpop.eup %5953  ;;  %v8121_v11 = vadd.f32 1.0, %v5952_v37  ;;  %3473 = vmatmul.f32.gmra.mxu3 %v6235_v12  ;;  %v3062_v37 = vand.u32 2147483648, %v8074_v45  ;;  %v3349_v12 = vld [vmem:[#allocation7 + $0x7e8] sm:$0xff]  ;;  %v3116_v15 = vadd.f32 %v8102_v46, %v3115_v54  ;;  %v3121_v47 = vand.u32 2147483647, %v8079_v32 }
 0x35f   : > { %v8125_v26 = vpop.eup %5955  ;;  %5957 = vpow2.f32 %v5602_v34  ;;  %v3067_v55 = vmul.f32 %v8117_v52, %v8093_v36  ;;  %v3288_v34 = vld [vmem:[#allocation7 + $0x600] sm:$0xff]  ;;  %v3059_v32 = vsel %vm8179_vm7, %v8097_v59, %v3055_v49  ;;  %vm3072_vm12 = vweird.f32 %v8117_v52 }
 0x360   : > { %5959 = vrcp.f32 %v8121_v11  ;;  %v3128_v48 = vmul.f32 %v8125_v26, %v8099_v33  ;;  %5055 = vmatpush.msra.mxu2 %v3288_v34  ;;  %vm3122_vm11 = vcmp.eq.f32.partialorder %v3121_v47, 8.507059e+37  ;;  %vm3133_vm13 = vweird.f32 %v8125_v26  ;;  %vm8227_vm7 = vmor %vm3071_vm14, %vm3072_vm12 }
 0x361   : > { %v8146_v9 = vpop.f32.mrf.mxu3  ;;  %5961 = vrcp.f32 %v8119_v42  ;;  %v3068_v44 = vsub.f32 1.0, %v3067_v55  ;;  %v3345_v55 = vld [vmem:[#allocation7 + $0x7c8] sm:$0xff]  ;;  %vm3147_vm14 = vweird.f32 %v8121_v11 }
 0x362   : > { %v2979_v38 = vpop.f32.mrf.mxu1  ;;  %v3129_v5 = vsub.f32 1.0, %v3128_v48  ;;  %v2925_v48 = vadd.f32 %v8028_v17, %v8133_v30  ;;  %5098 = vmatpush.msrb.mxu2 %v3349_v12  ;;  %v3063_v12 = vor.u32 1.1754944e-38, %v3062_v37 }
 0x363   : > { %v2980_v29 = vadd.f32 %v2979_v38, %v8128_v27 }
 0x364   : > { %v3130_v57 = vmul.f32 %v8125_v26, %v3129_v5  ;;  %5099 = vmatpush.msrb.mxu2 %v3345_v55  ;;  %v3075_v5 = vand.u32 2147483647, %v8093_v36  ;;  %v2954_v45 = vadd.f32 %v8060_v16, %v2925_v48 }
 0x365   : > { %v5958_v20 = vpop.eup %5957  ;;  %v3009_v25 = vadd.f32 %v3008_v31, %v2980_v29  ;;  %v2951_v31 = vadd.f32 %v8049_v21, %v2922_v62  ;;  %v3069_v29 = vmul.f32 %v8117_v52, %v3068_v44  ;;  %v3064_v44 = vsel %vm8183_vm8, %v3063_v12, %v3059_v32  ;;  %v6237_v21 = vld [vmem:[%s6562_s10 + $0xf0] sm:$0xff] }
 0x366   : > { %v8163_v3 = vadd.f32 1.0, %v5958_v20  ;;  %3476 = vmatmul.f32.gmra.mxu3 %v6236_v40  ;;  %v8166_v24 = vpop.eup %5959  ;;  %v3120_v20 = vsel %vm8189_vm10, %v8102_v46, %v3116_v15  ;;  %v3124_v40 = vor.u32 1.1754944e-38, %v3123_v4  ;;  %v3337_v46 = vld [vmem:[#allocation7 + $0x788] sm:$0xff]  ;;  %v3131_v55 = vadd.f32 %v8125_v26, %v3130_v57  ;;  %vm8237_vm10 = vmor %vm3132_vm15, %vm3133_vm13 }
 0x367   : > { %v3172_v38 = vmul.f32 %v3049_v1, %v3009_v25  ;;  %v8171_v54 = vpop.eup %5961  ;;  %v3341_v1 = vld [vmem:[#allocation7 + $0x7a8] sm:$0xff]  ;;  %v3143_v34 = vmul.f32 %v8166_v24, %v8121_v11  ;;  %v3070_v4 = vadd.f32 %v8117_v52, %v3069_v29  ;;  %vm8231_vm8 = vcmp.eq.f32.partialorder %v3075_v5, 8.507059e+37 }
 0x368   : > { %5963 = vrcp.f32 %v8163_v3  ;;  %v3082_v49 = vmul.f32 %v8171_v54, %v8119_v42  ;;  %5100 = vmatpush.msrb.mxu2 %v3341_v1  ;;  %v3125_v37 = vsel %vm3122_vm11, %v3124_v40, %v3120_v20  ;;  %v3329_v29 = vld [vmem:[#allocation7 + $0x748] sm:$0xff]  ;;  %v3136_v1 = vand.u32 2147483647, %v8099_v33 }
 0x369   : > { %v3176_v17 = vadd.f32 %v3172_v38, %v2951_v31  ;;  %v8198_v62 = vpop.f32.mrf.mxu3  ;;  %v3077_v31 = vand.u32 2147483648, %v8093_v36  ;;  %v3333_v38 = vld [vmem:[#allocation7 + $0x768] sm:$0xff]  ;;  %v3144_v47 = vsub.f32 1.0, %v3143_v34  ;;  %v3184_v57 = vsub.f32 1.0, %v3125_v37  ;;  %v3014_v34 = vpop.f32.mrf.mxu2 }
 0x36a   : > { %v2982_v25 = vpop.f32.mrf.mxu1  ;;  %5101 = vmatpush.msrb.mxu2 %v3337_v46  ;;  %v3083_v32 = vsub.f32 1.0, %v3082_v49  ;;  %v3074_v12 = vsel %vm8227_vm7, %v8117_v52, %v3070_v4  ;;  %v3325_v49 = vld [vmem:[#allocation7 + $0x728] sm:$0xff]  ;;  %v2928_v4 = vadd.f32 %v8033_v8, %v8133_v30  ;;  %vm3137_vm11 = vcmp.eq.f32.partialorder %v3136_v1, 8.507059e+37 }
 0x36b   : > { %5965 = vtanh.f32 %v3176_v17  ;;  %v2983_v59 = vadd.f32 %v2982_v25, %v8128_v27  ;;  %v3078_v40 = vor.u32 1.1754944e-38, %v3077_v31  ;;  %vm3087_vm12 = vweird.f32 %v8171_v54  ;;  %v3317_v1 = vld [vmem:[#allocation7 + $0x6e8] sm:$0xff] }
 0x36c   : > { %5102 = vmatpush.msrb.mxu2 %v3333_v38  ;;  %v3084_v31 = vmul.f32 %v8171_v54, %v3083_v32  ;;  %vm3148_vm13 = vweird.f32 %v8166_v24  ;;  %vm3086_vm7 = vweird.f32 %v8119_v42 }
 0x36d   : > { %v3012_v15 = vadd.f32 %v3011_v18, %v2983_v59  ;;  %v3138_v18 = vand.u32 2147483648, %v8099_v33  ;;  %v3192_v33 = vmul.f32 %v3125_v37, %v9691_v13  ;;  %vm8278_vm15 = vmor %vm3147_vm14, %vm3148_vm13  ;;  %vm3162_vm13 = vweird.f32 %v8163_v3 }
 0x36e   : > { %3479 = vmatmul.f32.gmra.mxu3 %v6237_v21  ;;  %v8219_v19 = vpop.eup %5963  ;;  %5103 = vmatpush.msrb.mxu2 %v3329_v29  ;;  %v8261_v21 = vld [vmem:[#allocation5 + $0x1] ss:$0 sm:$0xff]  ;;  %v6238_v29 = vld [vmem:[%s6562_s10 + $0xf8] sm:$0xff]  ;;  %v3085_v20 = vadd.f32 %v8171_v54, %v3084_v31  ;;  %s5439_s10 = scalar_lea.hbm %s9482_s8, %s6546_s4 }
 0x36f   : > { %v3173_v17 = vmul.f32 %v3064_v44, %v3012_v15  ;;  %v3145_v44 = vmul.f32 %v8166_v24, %v3144_v47  ;;  %v3158_v5 = vmul.f32 %v8219_v19, %v8163_v3  ;;  %v3135_v15 = vsel %vm8237_vm10, %v8125_v26, %v3131_v55  ;;  %v3321_v26 = vld [vmem:[#allocation7 + $0x708] sm:$0xff]  ;;  %s5442_s13 = sshll.u32 %s5439_s10, 4  ;;  %s5443_s13 = int_to_ptr.hbm [resolvable:$true] %s5442_s13 }
 0x370   : > { %v3139_v37 = vor.u32 1.1754944e-38, %v3138_v18  ;;  %v3079_v47 = vsel %vm8231_vm8, %v3078_v40, %v3074_v12  ;;  %5104 = vmatpush.msrb.mxu2 %v3325_v49  ;;  %v3092_v18 = vand.u32 2147483648, %v8119_v42  ;;  %v3090_v49 = vand.u32 2147483647, %v8119_v42  ;;  %vm8293_vm8 = vmor %vm3086_vm7, %vm3087_vm12  ;;  %v3309_v42 = vld [vmem:[#allocation7 + $0x6a8] sm:$0xff]  ;;  %s6343_s19 = sshra.s32 %s5443_s13, 4  ;;  %s6344_s19 = int_to_ptr.hbm [resolvable:$true] %s6343_s19 }
 0x371   : > { %v5966_v16 = vpop.eup %5965  ;;  %v3177_v25 = vadd.f32 %v3173_v17, %v2954_v45  ;;  %v8245_v59 = vpop.f32.mrf.mxu3  ;;  %v3146_v17 = vadd.f32 %v8166_v24, %v3145_v44  ;;  %v3159_v8 = vsub.f32 1.0, %v3158_v5  ;;  %vm3163_vm12 = vweird.f32 %v8219_v19  ;;  %s6345_s21 = scalar_lea.hbm %s6344_s19, 32  ;;  %p6350_p3 = scmp.lt.s32.totalorder %s6344_s19, %s9482_s8 }
 0x372   : > { %v3188_v46 = vmul.f32 %v5966_v16, %v3184_v57  ;;  %v2985_v13 = vpop.f32.mrf.mxu1  ;;  %v3140_v55 = vsel %vm3137_vm11, %v3139_v37, %v3135_v15  ;;  %v2957_v57 = vadd.f32 %v8072_v41, %v2928_v4  ;;  %5105 = vmatpush.msrb.mxu2 %v3321_v26  ;;  %v3151_v16 = vand.u32 2147483647, %v8121_v11  ;;  %v3017_v37 = vpop.f32.mrf.mxu2  ;;  %v3305_v26 = vld [vmem:[#allocation7 + $0x688] sm:$0xff]  ;;  %vm8316_vm14 = vmor %vm3162_vm13, %vm3163_vm12  ;;  %p6346_p0 = scmp.ne.s32.totalorder %s6344_s19, %s6345_s21  ;;  %p6351_p4 = scmp.lt.s32.totalorder %s6349_s25, %s6345_s21 }
 0x373   : > { %5967 = vtanh.f32 %v3177_v25  ;;  %v2986_v52 = vadd.f32 %v2985_v13, %v8128_v27  ;;  %v3185_v48 = vsub.f32 1.0, %v3140_v55  ;;  %v3313_v25 = vld [vmem:[#allocation7 + $0x6c8] sm:$0xff]  ;;  %v3150_v15 = vsel %vm8278_vm15, %v8166_v24, %v3146_v17 }
 0x374   : > { %v8257_v38 = vadd.f32 %v3192_v33, %v3188_v46  ;;  %5106 = vmatpush.msrb.mxu2 %v3317_v1  ;;  %v3193_v46 = vmul.f32 %v3140_v55, %v9692_v43  ;;  %v3089_v43 = vsel %vm8293_vm8, %v8171_v54, %v3085_v20  ;;  %vm3152_vm10 = vcmp.eq.f32.partialorder %v3151_v16, 8.507059e+37  ;;  %v3343_v20 = vld [vmem:[#allocation7 + $0x7b8] sm:$0xff]  ;;  %p6347_p1 = pnand %p6346_p0, %p6497_p5  ;;  %p6352_p7 = por %p6351_p4, %p6350_p3 }
 0x375   : > { %v3015_v45 = vadd.f32 %v3014_v34, %v2986_v52  ;;  %v3153_v34 = vand.u32 2147483648, %v8121_v11  ;;  %v3160_v11 = vmul.f32 %v8219_v19, %v3159_v8  ;;  %v2931_v55 = vadd.f32 %v8044_v35, %v8133_v30 }
 0x376   : > { %9718 = vst [vmem:[#allocation27_spill] sm:$0xff] %v8257_v38  ;;  %5056 = vmatmul.f32.vlgmr.msra.gmra.mxu2 %v8257_v38  ;;  %v3354_v32 = vmax.f32 %v8257_v38, 0.0  ;;  %3482 = vmatmul.f32.gmra.mxu3 %v6238_v29  ;;  %vm3091_vm11 = vcmp.eq.f32.partialorder %v3090_v49, 8.507059e+37  ;;  %v3168_v29 = vand.u32 2147483648, %v8163_v3  ;;  %v3166_v35 = vand.u32 2147483647, %v8163_v3  ;;  %p6348_p2 = pneg %p6347_p1 }
 0x377   : > { %v3174_v36 = vmul.f32 %v3079_v47, %v3015_v45  ;;  %v3154_v31 = vor.u32 1.1754944e-38, %v3153_v34  ;;  %5107 = vmatpush.msrb.mxu2 %v3313_v25  ;;  %v3093_v47 = vor.u32 1.1754944e-38, %v3092_v18  ;;  %v3161_v8 = vadd.f32 %v8219_v19, %v3160_v11  ;;  %v3297_v34 = vld [vmem:[#allocation7 + $0x648] sm:$0xff]  ;;  %v3350_v11 = vld [vmem:[#allocation7 + $0x7f0] sm:$0xff] }
 0x378   : > { %v3361_v33 = vmul.f32 %v8261_v21, %v3354_v32  ;;  %v3301_v32 = vld [vmem:[#allocation7 + $0x668] sm:$0xff]  ;;  %v2960_v18 = vadd.f32 %v8095_v14, %v2931_v55  ;;  %vm3167_vm15 = vcmp.eq.f32.partialorder %v3166_v35, 8.507059e+37  ;;  %v3330_v55 = vld [vmem:[#allocation7 + $0x750] sm:$0xff]  ;;  %p6353_p8 = pnand %p6352_p7, %p6348_p2 }
 0x379   : > { %v5968_v12 = vpop.eup %5967  ;;  %v3178_v41 = vadd.f32 %v3174_v36, %v2957_v57  ;;  %v8284_v44 = vpop.f32.mrf.mxu3  ;;  %v3155_v45 = vsel %vm3152_vm10, %v3154_v31, %v3150_v15  ;;  %5108 = vmatpush.msrb.mxu2 %v3309_v42  ;;  %v3165_v3 = vsel %vm8316_vm14, %v8219_v19, %v3161_v8  ;;  %v3293_v25 = vld [vmem:[#allocation7 + $0x628] sm:$0xff]  ;;  %v3318_v8 = vld [vmem:[#allocation7 + $0x6f0] sm:$0xff] }
 0x37a   : > { %v3189_v5 = vmul.f32 %v5968_v12, %v3185_v48  ;;  %v2988_v13 = vpop.f32.mrf.mxu1  ;;  %3365 = vadd.xlane.f32.xlu0 %v3361_v33  ;;  %v3186_v30 = vsub.f32 1.0, %v3155_v45  ;;  %v3194_v33 = vmul.f32 %v3155_v45, %v9693_v50  ;;  %v3169_v12 = vor.u32 1.1754944e-38, %v3168_v29  ;;  %v3298_v29 = vld [vmem:[#allocation7 + $0x650] sm:$0xff] }
 0x37b   : > { %5969 = vtanh.f32 %v3178_v41  ;;  %v2989_v4 = vadd.f32 %v2988_v13, %v8128_v27  ;;  %v3094_v27 = vsel %vm3091_vm11, %v3093_v47, %v3089_v43  ;;  %5109 = vmatpush.msrb.mxu2 %v3305_v26  ;;  %v3289_v41 = vld [vmem:[#allocation7 + $0x608] sm:$0xff]  ;;  %v3334_v47 = vld [vmem:[#allocation7 + $0x770] sm:$0xff] }
 0x37c   : > { %v8301_v24 = vadd.f32 %v3193_v46, %v3189_v5  ;;  %v3170_v49 = vsel %vm3167_vm15, %v3169_v12, %v3165_v3  ;;  %v3346_v5 = vld [vmem:[#allocation7 + $0x7d0] sm:$0xff]  ;;  %v3323_v12 = vld [vmem:[#allocation7 + $0x718] sm:$0xff] }
 0x37d   : > { %v3018_v17 = vadd.f32 %v3017_v37, %v2989_v4  ;;  %5110 = vmatpush.msrb.mxu2 %v3301_v32  ;;  %v3187_v46 = vsub.f32 1.0, %v3170_v49  ;;  %v3342_v37 = vld [vmem:[#allocation7 + $0x7b0] sm:$0xff]  ;;  %v3195_v42 = vmul.f32 %v3170_v49, %v7689_v53  ;;  %v3315_v49 = vld [vmem:[#allocation7 + $0x6d8] sm:$0xff] }
 0x37e   : > { %9723 = vst [vmem:[#allocation28_spill] sm:$0xff] %v8301_v24  ;;  %5059 = vmatmul.f32.gmra.mxu2 %v8301_v24  ;;  %v3355_v54 = vmax.f32 %v8301_v24, 0.0  ;;  %v3338_v4 = vld [vmem:[#allocation7 + $0x790] sm:$0xff] }
 0x37f   : > { %v3175_v1 = vmul.f32 %v3094_v27, %v3018_v17  ;;  %5111 = vmatpush.msrb.mxu2 %v3297_v34  ;;  %v3326_v53 = vld [vmem:[#allocation7 + $0x730] sm:$0xff]  ;;  %v3347_v34 = vld [vmem:[#allocation7 + $0x7d8] sm:$0xff] }
 0x380   : > { %v3362_v57 = vmul.f32 %v8261_v21, %v3355_v54  ;;  %v3322_v17 = vld [vmem:[#allocation7 + $0x710] sm:$0xff] }
 0x381   : > { %v5970_v36 = vpop.eup %5969  ;;  %v3179_v14 = vadd.f32 %v3175_v1, %v2960_v18  ;;  %v8320_v16 = vpop.f32.mrf.mxu3  ;;  %5112 = vmatpush.msrb.mxu2 %v3293_v25  ;;  %v3314_v27 = vld [vmem:[#allocation7 + $0x6d0] sm:$0xff]  ;;  %v3327_v25 = vld [vmem:[#allocation7 + $0x738] sm:$0xff] }
 0x382   : > { %v3190_v48 = vmul.f32 %v5970_v36, %v3186_v30  ;;  %3367 = vadd.xlane.f32.xlu2 %v3362_v57  ;;  %v3310_v32 = vld [vmem:[#allocation7 + $0x6b0] sm:$0xff]  ;;  %v3351_v57 = vld [vmem:[#allocation7 + $0x7f8] sm:$0xff] }
 0x383   : > { %5971 = vtanh.f32 %v3179_v14  ;;  %5113 = vmatpush.msrb.mxu2 %v3289_v41  ;;  %v3302_v18 = vld [vmem:[#allocation7 + $0x670] sm:$0xff]  ;;  %v3339_v14 = vld [vmem:[#allocation7 + $0x798] sm:$0xff] }
 0x384   : > { %v8326_v40 = vadd.f32 %v3194_v33, %v3190_v48  ;;  %v3294_v35 = vld [vmem:[#allocation7 + $0x630] sm:$0xff]  ;;  %v3335_v48 = vld [vmem:[#allocation7 + $0x778] sm:$0xff] }
 0x385   : > { %5156 = vmatpush.msra.mxu2 %v3350_v11  ;;  %v3290_v30 = vld [vmem:[#allocation7 + $0x610] sm:$0xff]  ;;  %v3331_v33 = vld [vmem:[#allocation7 + $0x758] sm:$0xff] }
 0x386   : > { %9726 = vst [vmem:[#allocation32_spill] sm:$0xff] %v8326_v40  ;;  %5062 = vmatmul.f32.gmra.mxu2 %v8326_v40  ;;  %v3356_v50 = vmax.f32 %v8326_v40, 0.0  ;;  %v3319_v41 = vld [vmem:[#allocation7 + $0x6f8] sm:$0xff] }
 0x387   : > { %5157 = vmatpush.msra.mxu2 %v3346_v5  ;;  %v3307_v5 = vld [vmem:[#allocation7 + $0x698] sm:$0xff] }
 0x388   : > { %v3363_v19 = vmul.f32 %v8261_v21, %v3356_v50  ;;  %v3311_v50 = vld [vmem:[#allocation7 + $0x6b8] sm:$0xff] }
 0x389   : > { %v5972_v15 = vpop.eup %5971  ;;  %v8331_v13 = vpop.f32.mrf.mxu3  ;;  %5158 = vmatpush.msra.mxu2 %v3342_v37  ;;  %v3295_v37 = vld [vmem:[#allocation7 + $0x638] sm:$0xff] }
 0x38a   : > { %v3191_v52 = vmul.f32 %v5972_v15, %v3187_v46  ;;  %3369 = vadd.xlane.f32.xlu1 %v3363_v19  ;;  %v3303_v46 = vld [vmem:[#allocation7 + $0x678] sm:$0xff] }
 0x38b   : > { %5159 = vmatpush.msra.mxu2 %v3338_v4  ;;  %v3299_v19 = vld [vmem:[#allocation7 + $0x658] sm:$0xff] }
 0x38c   : > { %v8334_v31 = vadd.f32 %v3195_v42, %v3191_v52  ;;  %v3291_v52 = vld [vmem:[#allocation7 + $0x618] sm:$0xff] }
 0x38d   : > { %5160 = vmatpush.msra.mxu2 %v3334_v47 }
 0x38e   : > { %9727 = vst [vmem:[#allocation30_spill] sm:$0xff] %v8334_v31  ;;  %5065 = vmatmul.f32.gmra.mxu2 %v8334_v31  ;;  %v3357_v43 = vmax.f32 %v8334_v31, 0.0 }
 0x38f   : > { %5161 = vmatpush.msra.mxu2 %v3330_v55 }
 0x390   : > { %v3364_v26 = vmul.f32 %v8261_v21, %v3357_v43  ;;  %v3306_v21 = vld [vmem:[#allocation7 + $0x690] sm:$0xff] }
 0x391   : > { %v8339_v45 = vpop.f32.mrf.mxu3  ;;  %5162 = vmatpush.msra.mxu2 %v3326_v53 }
 0x392   : > { %3371 = vadd.xlane.f32.xlu0 %v3364_v26 }
 0x393   : > { %5163 = vmatpush.msra.mxu2 %v3322_v17 }
 0x395   : > { %5164 = vmatpush.msra.mxu2 %v3318_v8 }
 0x396   : > { %5114 = vmatmul.f32.vlgmr.msrb.gmra.mxu2 %v8257_v38 }
 0x397   : > { %5165 = vmatpush.msra.mxu2 %v3314_v27 }
 0x399   : > { %v8342_v54 = vpop.f32.mrf.mxu3  ;;  %5166 = vmatpush.msra.mxu2 %v3310_v32 }
 0x39b   : > { %5167 = vmatpush.msra.mxu2 %v3306_v21 }
 0x39d   : > { %5168 = vmatpush.msra.mxu2 %v3302_v18 }
 0x39e   : > { %5117 = vmatmul.f32.gmra.mxu2 %v8301_v24 }
 0x39f   : > { %5169 = vmatpush.msra.mxu2 %v3298_v29  ;;  %v8373_v29 = vpop.permute.xlu1 %3623 }
 0x3a1   : > { %v8345_v1 = vpop.f32.mrf.mxu3  ;;  %5170 = vmatpush.msra.mxu2 %v3294_v35 }
 0x3a3   : > { %5171 = vmatpush.msra.mxu2 %v3290_v30 }
 0x3a5   : > { %5214 = vmatpush.msrb.mxu2 %v3351_v57 }
 0x3a6   : > { %5120 = vmatmul.f32.gmra.mxu2 %v8326_v40 }
 0x3a7   : > { %5215 = vmatpush.msrb.mxu2 %v3347_v34 }
 0x3a9   : > { %v8348_v36 = vpop.f32.mrf.mxu3  ;;  %5216 = vmatpush.msrb.mxu2 %v3343_v20 }
 0x3ab   : > { %5217 = vmatpush.msrb.mxu2 %v3339_v14 }
 0x3ad   : > { %5218 = vmatpush.msrb.mxu2 %v3335_v48 }
 0x3ae   : > { %5123 = vmatmul.f32.gmra.mxu2 %v8334_v31 }
 0x3af   : > { %5219 = vmatpush.msrb.mxu2 %v3331_v33 }
 0x3b1   : > { %v8351_v3 = vpop.f32.mrf.mxu3  ;;  %5220 = vmatpush.msrb.mxu2 %v3327_v25 }
 0x3b3   : > { %5221 = vmatpush.msrb.mxu2 %v3323_v12 }
 0x3b5   : > { %5222 = vmatpush.msrb.mxu2 %v3319_v41 }
 0x3b6   : > { %5172 = vmatmul.f32.vlgmr.msra.gmra.mxu2 %v8257_v38 }
 0x3b7   : > { %5223 = vmatpush.msrb.mxu2 %v3315_v49 }
 0x3b9   : > { %v8354_v11 = vpop.f32.mrf.mxu3  ;;  %5224 = vmatpush.msrb.mxu2 %v3311_v50 }
 0x3bb   : > { %5225 = vmatpush.msrb.mxu2 %v3307_v5 }
 0x3bd   : > { %5226 = vmatpush.msrb.mxu2 %v3303_v46 }
 0x3be   : > { %5175 = vmatmul.f32.gmra.mxu2 %v8301_v24 }
 0x3bf   : > { %5227 = vmatpush.msrb.mxu2 %v3299_v19 }
 0x3c1   : > { %v8357_v15 = vpop.f32.mrf.mxu3  ;;  %5228 = vmatpush.msrb.mxu2 %v3295_v37 }
 0x3c3   : > { %5229 = vmatpush.msrb.mxu2 %v3291_v52 }
 0x3c6   : > { %5178 = vmatmul.f32.gmra.mxu2 %v8326_v40 }
 0x3c9   : > { %v8360_v42 = vpop.f32.mrf.mxu3 }
 0x3ce   : > { %5181 = vmatmul.f32.gmra.mxu2 %v8334_v31 }
 0x3d1   : > { %v8363_v4 = vpop.f32.mrf.mxu3 }
 0x3d6   : > { %5230 = vmatmul.f32.vlgmr.msrb.gmra.mxu2 %v8257_v38 }
 0x3d9   : > { %v8367_v43 = vpop.f32.mrf.mxu3 }
 0x3de   : > { %5233 = vmatmul.f32.gmra.mxu2 %v8301_v24 }
 0x3e1   : > { %v8370_v47 = vpop.f32.mrf.mxu3 }
 0x3e6   : > { %5236 = vmatmul.f32.gmra.mxu2 %v8326_v40 }
 0x3e9   : > { %v8381_v48 = vpop.f32.mrf.mxu3 }
 0x3ed   : > { %v3366_v26 = vpop.xlane.xlu0 %3365 }
 0x3ee   : > { %v3525_v55 = vperm.slane %v3366_v26, 0  ;;  %v3526_v53 = vperm.slane %v3366_v26, 1  ;;  %v3527_v17 = vperm.slane %v3366_v26, 2  ;;  %v3528_v8 = vperm.slane %v3366_v26, 3  ;;  %5239 = vmatmul.f32.gmra.mxu2 %v8334_v31  ;;  %v9730_v31 = vld [vmem:[#allocation29_spill] sm:$0xff] }
 0x3ef   : > { %v3529_v27 = vperm.slane %v3366_v26, 4  ;;  %v3530_v32 = vperm.slane %v3366_v26, 5  ;;  %v3531_v21 = vperm.slane %v3366_v26, 6  ;;  %v3532_v18 = vperm.slane %v3366_v26, 7 }
 0x3f0   : > { %v3591_v35 = vadd.f32 %v3527_v17, %v8021_v7  ;;  %v3589_v30 = vadd.f32 %v3525_v55, %v8013_v39  ;;  %v3590_v57 = vadd.f32 %v3526_v53, %v8016_v63  ;;  %v3592_v14 = vadd.f32 %v3528_v8, %v8026_v22 }
 0x3f1   : > { %v3594_v34 = vadd.f32 %v3530_v32, %v8041_v56  ;;  %v3593_v20 = vadd.f32 %v3529_v27, %v8031_v23  ;;  %v3596_v41 = vadd.f32 %v3532_v18, %v8052_v2  ;;  %v8389_v50 = vadd.f32 %v3531_v21, %v8047_v6  ;;  %v9731_v27 = vld [vmem:[#allocation39_spill] sm:$0xff] }
 0x3f2   : > { %v3628_v33 = vadd.f32 %v8373_v29, %v3591_v35  ;;  %v3626_v25 = vadd.f32 %v8373_v29, %v3589_v30  ;;  %v3627_v12 = vadd.f32 %v8373_v29, %v3590_v57  ;;  %v3629_v53 = vadd.f32 %v8373_v29, %v3592_v14  ;;  %v9729_v14 = vld [vmem:[#allocation42_spill] sm:$0xff] }
 0x3f3   : > { %v3631_v49 = vadd.f32 %v8373_v29, %v3594_v34  ;;  %v3630_v55 = vadd.f32 %v8373_v29, %v3593_v20  ;;  %v8397_v17 = vadd.f32 %v8373_v29, %v3596_v41  ;;  %v9728_v34 = vld [vmem:[#allocation38_spill] sm:$0xff] }
 0x3f4   : > { %vm3660_vm7 = vcmp.gt.f32.partialorder %v3628_v33, 0.0  ;;  %v3692_v5 = vmul.f32 0.01, %v3628_v33  ;;  %vm3658_vm8 = vcmp.gt.f32.partialorder %v3626_v25, 0.0  ;;  %v3690_v46 = vmul.f32 0.01, %v3626_v25 }
 0x3f5   : > { %v8391_v19 = vpop.xlane.xlu2 %3367  ;;  %vm3659_vm10 = vcmp.gt.f32.partialorder %v3627_v12, 0.0  ;;  %v3691_v37 = vmul.f32 0.01, %v3627_v12  ;;  %vm3663_vm11 = vcmp.gt.f32.partialorder %v3631_v49, 0.0  ;;  %v3695_v52 = vmul.f32 0.01, %v3631_v49 }
 0x3f6   : > { %v3533_v26 = vperm.slane %v8391_v19, 0  ;;  %v3724_v18 = vsel %vm3660_vm7, %v3628_v33, %v3692_v5  ;;  %v3722_v35 = vsel %vm3658_vm8, %v3626_v25, %v3690_v46  ;;  %vm3662_vm12 = vcmp.gt.f32.partialorder %v3630_v55, 0.0  ;;  %v8427_v46 = vpop.f32.mrf.mxu3 }
 0x3f7   : > { %v3723_v30 = vsel %vm3659_vm10, %v3627_v12, %v3691_v37  ;;  %v3727_v57 = vsel %vm3663_vm11, %v3631_v49, %v3695_v52  ;;  %v8406_v20 = vadd.f32 %v3724_v18, %v9728_v34  ;;  %v8409_v41 = vadd.f32 %v3722_v35, %v9729_v14 }
 0x3f8   : > { %v8412_v8 = vadd.f32 %v3723_v30, %v9730_v31  ;;  %v8415_v40 = vadd.f32 %v3727_v57, %v9731_v27  ;;  %v3694_v25 = vmul.f32 0.01, %v3630_v55  ;;  %vm3661_vm13 = vcmp.gt.f32.partialorder %v3629_v53, 0.0 }
 0x3f9   : > { %v3800_v12 = vsel %vm1498_vm9, %v8406_v20, -inf  ;;  %v3786_v49 = vsel %vm1498_vm9, %v8409_v41, -inf  ;;  %v3693_v57 = vmul.f32 0.01, %v3629_v53  ;;  %v3597_v34 = vadd.f32 %v3533_v26, %v8063_v0  ;;  %v9732_v0 = vld [vmem:[#allocation41_spill] sm:$0xff] }
 0x3fa   : > { %v3793_v5 = vsel %vm1498_vm9, %v8412_v8, -inf  ;;  %v3821_v31 = vsel %vm1498_vm9, %v8415_v40, -inf  ;;  %v3801_v37 = vrot.slane %v3800_v12, 4  ;;  %v3787_v52 = vrot.slane %v3786_v49, 4 }
 0x3fb   : > { %v3794_v27 = vrot.slane %v3793_v5, 4  ;;  %v3822_v18 = vrot.slane %v3821_v31, 4  ;;  %v3726_v33 = vsel %vm3662_vm12, %v3630_v55, %v3694_v25  ;;  %vm3665_vm14 = vcmp.gt.f32.partialorder %v8397_v17, 0.0 }
 0x3fc   : > { %v3802_v2 = vmax.f32 %v3800_v12, %v3801_v37  ;;  %v3788_v6 = vmax.f32 %v3786_v49, %v3787_v52  ;;  %v8442_v14 = vadd.f32 %v3726_v33, %v9732_v0  ;;  %v3725_v21 = vsel %vm3661_vm13, %v3629_v53, %v3693_v57  ;;  %v9733_v12 = vld [vmem:[#allocation40_spill] sm:$0xff] }
 0x3fd   : > { %v8430_v30 = vpop.xlane.xlu1 %3369  ;;  %v3795_v56 = vmax.f32 %v3793_v5, %v3794_v27  ;;  %v3823_v26 = vmax.f32 %v3821_v31, %v3822_v18  ;;  %v3634_v55 = vadd.f32 %v8373_v29, %v3597_v34  ;;  %v3697_v25 = vmul.f32 0.01, %v8397_v17 }
 0x3fe   : > { %v3803_v32 = vrot.slane %v3802_v2, 2  ;;  %v3789_v22 = vrot.slane %v3788_v6, 2  ;;  %v3814_v38 = vsel %vm1498_vm9, %v8442_v14, -inf  ;;  %v8450_v49 = vadd.f32 %v3725_v21, %v9733_v12  ;;  %v8460_v12 = vpop.f32.mrf.mxu3 }
 0x3ff   : > { %v3796_v24 = vrot.slane %v3795_v56, 2  ;;  %v3824_v23 = vrot.slane %v3823_v26, 2  ;;  %vm3666_vm15 = vcmp.gt.f32.partialorder %v3634_v55, 0.0  ;;  %v3698_v5 = vmul.f32 0.01, %v3634_v55  ;;  %9734 = vst [vmem:[#allocation31_spill] sm:$0xff] %v8460_v12 }
 0x400   : > { %v3804_v0 = vmax.f32 %v3802_v2, %v3803_v32  ;;  %v3790_v33 = vmax.f32 %v3788_v6, %v3789_v22  ;;  %v3815_v18 = vrot.slane %v3814_v38, 4  ;;  %v3807_v57 = vsel %vm1498_vm9, %v8450_v49, -inf }
 0x401   : > { %v3797_v31 = vmax.f32 %v3795_v56, %v3796_v24  ;;  %v3825_v53 = vmax.f32 %v3823_v26, %v3824_v23  ;;  %v3730_v2 = vsel %vm3666_vm15, %v3634_v55, %v3698_v5  ;;  %v3729_v22 = vsel %vm3665_vm14, %v8397_v17, %v3697_v25  ;;  %v9735_v5 = vld [vmem:[#allocation44_spill] sm:$0xff] }
 0x402   : > { %v3805_v32 = vrot.slane %v3804_v0, 1  ;;  %v3791_v26 = vrot.slane %v3790_v33, 1  ;;  %v3816_v52 = vmax.f32 %v3814_v38, %v3815_v18  ;;  %v3808_v55 = vrot.slane %v3807_v57, 4 }
 0x403   : > { %v3798_v34 = vrot.slane %v3797_v31, 1  ;;  %v3826_v37 = vrot.slane %v3825_v53, 1  ;;  %v8471_v35 = vadd.f32 %v3730_v2, %v9735_v5 }
 0x404   : > { %v3806_v17 = vmax.f32 %v3804_v0, %v3805_v32  ;;  %v3792_v25 = vmax.f32 %v3790_v33, %v3791_v26  ;;  %v3817_v6 = vrot.slane %v3816_v52, 2  ;;  %v3809_v7 = vmax.f32 %v3807_v57, %v3808_v55 }
 0x405   : > { %v8454_v27 = vpop.xlane.xlu0 %3371  ;;  %v3799_v23 = vmax.f32 %v3797_v31, %v3798_v34  ;;  %v3827_v63 = vmax.f32 %v3825_v53, %v3826_v37  ;;  %v3842_v39 = vsel %vm1498_vm9, %v8471_v35, -inf }
 0x406   : > { %v3556_v24 = vperm.slane %v8454_v27, 7  ;;  %v4012_v61 = vsub.f32 %v8406_v20, %v3806_v17  ;;  %v3818_v33 = vmax.f32 %v3816_v52, %v3817_v6  ;;  %v3810_v31 = vrot.slane %v3809_v7, 2 }
 0x407   : > { %v4011_v38 = vsub.f32 %v8412_v8, %v3799_v23  ;;  %v4015_v18 = vsub.f32 %v8415_v40, %v3827_v63  ;;  %v3843_v8 = vrot.slane %v3842_v39, 4 }
 0x408   : > { %v3620_v21 = vadd.f32 %v3556_v24, %v8460_v12  ;;  %v4010_v24 = vsub.f32 %v8409_v41, %v3792_v25  ;;  %v4046_v53 = vmul.f32 1.442695, %v4012_v61  ;;  %v3819_v26 = vrot.slane %v3818_v33, 1 }
 0x409   : > { %v4044_v34 = vmul.f32 1.442695, %v4011_v38  ;;  %v4052_v32 = vmul.f32 1.442695, %v4015_v18  ;;  %v3811_v20 = vmax.f32 %v3809_v7, %v3810_v31  ;;  %v3844_v23 = vmax.f32 %v3842_v39, %v3843_v8 }
 0x40a   : > { %v3657_v56 = vadd.f32 %v8373_v29, %v3620_v21  ;;  %v4042_v37 = vmul.f32 1.442695, %v4010_v24  ;;  %v9736_v21 = vld [vmem:[#allocation47_spill] sm:$0xff]  ;;  %5973 = vpow2.f32 %v4046_v53  ;;  %v3820_v40 = vmax.f32 %v3818_v33, %v3819_v26 }
 0x40b   : > { %v8481_v57 = vadd.f32 %v3729_v22, %v9736_v21  ;;  %v3812_v61 = vrot.slane %v3811_v20, 1  ;;  %v3632_v7 = vadd.f32 %v8373_v29, %v8389_v50  ;;  %v3845_v17 = vrot.slane %v3844_v23, 2 }
 0x40c   : > { %vm3689_vm7 = vcmp.gt.f32.partialorder %v3657_v56, 0.0  ;;  %v3721_v0 = vmul.f32 0.01, %v3657_v56  ;;  %5975 = vpow2.f32 %v4042_v37 }
 0x40d   : > { %v3835_v63 = vsel %vm1498_vm9, %v8481_v57, -inf  ;;  %5977 = vpow2.f32 %v4044_v34  ;;  %v3813_v6 = vmax.f32 %v3811_v20, %v3812_v61  ;;  %vm3664_vm8 = vcmp.gt.f32.partialorder %v3632_v7, 0.0 }
 0x40e   : > { %v3753_v2 = vsel %vm3689_vm7, %v3657_v56, %v3721_v0  ;;  %v3836_v52 = vrot.slane %v3835_v63, 4  ;;  %5979 = vpow2.f32 %v4052_v32  ;;  %v3846_v0 = vmax.f32 %v3844_v23, %v3845_v17 }
 0x40f   : > { %v8484_v41 = vadd.f32 %v3753_v2, %v9679_v60  ;;  %v4014_v60 = vsub.f32 %v8442_v14, %v3820_v40  ;;  %v4013_v18 = vsub.f32 %v8450_v49, %v3813_v6  ;;  %v3696_v33 = vmul.f32 0.01, %v3632_v7 }
 0x410   : > { %v3837_v25 = vmax.f32 %v3835_v63, %v3836_v52  ;;  %v8496_v39 = vpop.eup %5973  ;;  %v9737_v14 = vperm.slane %v8391_v19, 3  ;;  %v3847_v26 = vrot.slane %v3846_v0, 1 }
 0x411   : > { %v4003_v22 = vsel %vm1498_vm9, %v8484_v41, -inf  ;;  %v4050_v38 = vmul.f32 1.442695, %v4014_v60  ;;  %v4120_v34 = vsel %vm1498_vm9, %v8496_v39, 0.0  ;;  %v4048_v21 = vmul.f32 1.442695, %v4013_v18 }
 0x412   : > { %v4004_v56 = vrot.slane %v4003_v22, 4  ;;  %v3838_v50 = vrot.slane %v3837_v25, 2  ;;  %v8501_v31 = vadd.f32 %v9737_v14, %v8109_v51  ;;  %v8503_v53 = vpop.eup %5975  ;;  %v4121_v2 = vrot.slane %v4120_v34, 4 }
 0x413   : > { %5981 = vpow2.f32 %v4050_v38  ;;  %v8507_v49 = vpop.eup %5977  ;;  %v4106_v32 = vsel %vm1498_vm9, %v8503_v53, 0.0  ;;  %v3728_v38 = vsel %vm3664_vm8, %v3632_v7, %v3696_v33 }
 0x414   : > { %v4005_v24 = vmax.f32 %v4003_v22, %v4004_v56  ;;  %v3839_v20 = vmax.f32 %v3837_v25, %v3838_v50  ;;  %v8511_v8 = vpop.eup %5979  ;;  %v4107_v40 = vrot.slane %v4106_v32, 4  ;;  %v4113_v61 = vsel %vm1498_vm9, %v8507_v49, 0.0 }
 0x415   : > { %5983 = vpow2.f32 %v4048_v21  ;;  %v4122_v52 = vadd.f32 %v4121_v2, %v4120_v34  ;;  %v4114_v22 = vrot.slane %v4113_v61, 4  ;;  %v4141_v23 = vsel %vm1498_vm9, %v8511_v8, 0.0 }
 0x416   : > { %v4006_v37 = vrot.slane %v4005_v24, 2  ;;  %v3848_v56 = vmax.f32 %v3846_v0, %v3847_v26  ;;  %v4108_v60 = vadd.f32 %v4107_v40, %v4106_v32  ;;  %v4142_v6 = vrot.slane %v4141_v23, 4 }
 0x417   : > { %v3840_v17 = vrot.slane %v3839_v20, 1  ;;  %v4123_v25 = vrot.slane %v4122_v52, 2  ;;  %v4115_v18 = vadd.f32 %v4114_v22, %v4113_v61  ;;  %v9738_v50 = vperm.slane %v8391_v19, 2  ;;  %v9739_v22 = vld [vmem:[#allocation43_spill] sm:$0xff] }
 0x418   : > { %v4007_v63 = vmax.f32 %v4005_v24, %v4006_v37  ;;  %v4018_v24 = vsub.f32 %v8471_v35, %v3848_v56  ;;  %v4109_v21 = vrot.slane %v4108_v60, 2  ;;  %v4143_v2 = vadd.f32 %v4142_v6, %v4141_v23 }
 0x419   : > { %v3599_v14 = vadd.f32 %v9738_v50, %v8088_v58  ;;  %v8522_v37 = vpop.eup %5981  ;;  %v3841_v5 = vmax.f32 %v3839_v20, %v3840_v17  ;;  %v4124_v0 = vadd.f32 %v4123_v25, %v4122_v52  ;;  %v4116_v32 = vrot.slane %v4115_v18, 2 }
 0x41a   : > { %v4008_v34 = vrot.slane %v4007_v63, 1  ;;  %v4134_v26 = vsel %vm1498_vm9, %v8522_v37, 0.0  ;;  %v4058_v7 = vmul.f32 1.442695, %v4018_v24  ;;  %v4110_v40 = vadd.f32 %v4109_v21, %v4108_v60 }
 0x41b   : > { %v8526_v33 = vpop.eup %5983  ;;  %v4144_v35 = vrot.slane %v4143_v2, 2  ;;  %v4135_v61 = vrot.slane %v4134_v26, 4  ;;  %v8529_v56 = vadd.f32 %v3728_v38, %v9739_v22  ;;  %v4125_v50 = vrot.slane %v4124_v0, 1 }
 0x41c   : > { %v4117_v55 = vadd.f32 %v4116_v32, %v4115_v18  ;;  %v4127_v23 = vsel %vm1498_vm9, %v8526_v33, 0.0  ;;  %5985 = vpow2.f32 %v4058_v7  ;;  %v8533_v20 = vmax.f32 %v4007_v63, %v4008_v34 }
 0x41d   : > { %v4111_v52 = vrot.slane %v4110_v40, 1  ;;  %v4145_v6 = vadd.f32 %v4144_v35, %v4143_v2  ;;  %v4136_v17 = vadd.f32 %v4135_v61, %v4134_v26  ;;  %v4126_v25 = vadd.f32 %v4125_v50, %v4124_v0 }
 0x41e   : > { %v4118_v24 = vrot.slane %v4117_v55, 1  ;;  %v4128_v12 = vrot.slane %v4127_v23, 4  ;;  %v4017_v60 = vsub.f32 %v8481_v57, %v3841_v5  ;;  %v3828_v18 = vsel %vm1498_vm9, %v8529_v56, -inf }
 0x41f   : > { %v4112_v21 = vadd.f32 %v4111_v52, %v4110_v40  ;;  %v4146_v51 = vrot.slane %v4145_v6, 1  ;;  %v4137_v38 = vrot.slane %v4136_v17, 2  ;;  %5987 = vrcp.f32 %v4126_v25 }
 0x420   : > { %v4119_v32 = vadd.f32 %v4118_v24, %v4117_v55  ;;  %v4129_v22 = vadd.f32 %v4128_v12, %v4127_v23  ;;  %v4056_v7 = vmul.f32 1.442695, %v4017_v60  ;;  %v3829_v2 = vrot.slane %v3828_v18, 4 }
 0x421   : > { %5989 = vrcp.f32 %v4112_v21  ;;  %v4147_v63 = vadd.f32 %v4146_v51, %v4145_v6  ;;  %v4138_v34 = vadd.f32 %v4137_v38, %v4136_v17  ;;  %v3637_v57 = vadd.f32 %v8373_v29, %v8501_v31 }
 0x422   : > { %v8538_v26 = vpop.eup %5985  ;;  %5991 = vrcp.f32 %v4119_v32  ;;  %v4130_v0 = vrot.slane %v4129_v22, 2  ;;  %v3636_v5 = vadd.f32 %v8373_v29, %v3599_v14  ;;  %v3830_v12 = vmax.f32 %v3828_v18, %v3829_v2 }
 0x423   : > { %5993 = vrcp.f32 %v4147_v63  ;;  %v4139_v40 = vrot.slane %v4138_v34, 1  ;;  %v4162_v55 = vsel %vm1498_vm9, %v8538_v26, 0.0  ;;  %vm3669_vm10 = vcmp.gt.f32.partialorder %v3637_v57, 0.0  ;;  %v9741_v63 = vld [vmem:[#allocation52_spill] sm:$0xff] }
 0x424   : > { %v4131_v35 = vadd.f32 %v4130_v0, %v4129_v22  ;;  %v4163_v61 = vrot.slane %v4162_v55, 4  ;;  %5995 = vpow2.f32 %v4056_v7  ;;  %v3831_v50 = vrot.slane %v3830_v12, 2 }
 0x425   : > { %v4140_v51 = vadd.f32 %v4139_v40, %v4138_v34  ;;  %v3701_v23 = vmul.f32 0.01, %v3637_v57  ;;  %vm3668_vm11 = vcmp.gt.f32.partialorder %v3636_v5, 0.0  ;;  %v5988_v52 = vpop.eup %5987  ;;  %v3700_v31 = vmul.f32 0.01, %v3636_v5 }
 0x426   : > { %v4132_v6 = vrot.slane %v4131_v35, 1  ;;  %v4164_v17 = vadd.f32 %v4163_v61, %v4162_v55  ;;  %v9740_v14 = vperm.slane %v8391_v19, 1  ;;  %v4364_v60 = vmul.f32 %v5988_v52, %v8496_v39 }
 0x427   : > { %v5990_v24 = vpop.eup %5989  ;;  %5997 = vrcp.f32 %v4140_v51  ;;  %v3832_v21 = vmax.f32 %v3830_v12, %v3831_v50  ;;  %v3733_v38 = vsel %vm3669_vm10, %v3637_v57, %v3701_v23  ;;  %v3732_v55 = vsel %vm3668_vm11, %v3636_v5, %v3700_v31  ;;  %v9742_v50 = vld [vmem:[#allocation45_spill] sm:$0xff] }
 0x428   : > { %v3598_v25 = vadd.f32 %v9740_v14, %v8070_v10  ;;  %v5992_v18 = vpop.eup %5991  ;;  %v4362_v32 = vmul.f32 %v5990_v24, %v8503_v53  ;;  %v4133_v22 = vadd.f32 %v4132_v6, %v4131_v35  ;;  %v4165_v7 = vrot.slane %v4164_v17, 2  ;;  %4406 = vperm.xlu1 %5733, %v4364_v60  }
 0x429   : > { %v8551_v34 = vadd.f32 %v3733_v38, %v9741_v63  ;;  %v5994_v2 = vpop.eup %5993  ;;  %v4363_v0 = vmul.f32 %v5992_v18, %v8507_v49  ;;  %v3833_v40 = vrot.slane %v3832_v21, 1  ;;  %v8564_v5 = vadd.f32 %v3732_v55, %v9742_v50 }
 0x42a   : > { %v3635_v39 = vadd.f32 %v8373_v29, %v3598_v25  ;;  %v8556_v61 = vpop.eup %5995  ;;  %4396 = vperm.xlu2 %5734, %v4362_v32   ;;  %v4367_v57 = vmul.f32 %v5994_v2, %v8511_v8  ;;  %5999 = vrcp.f32 %v4133_v22  ;;  %v4166_v53 = vadd.f32 %v4165_v7, %v4164_v17 }
 0x42b   : > { %v3863_v12 = vsel %vm1498_vm9, %v8551_v34, -inf  ;;  %4401 = vperm.xlu0 %5732, %v4363_v0   ;;  %v4155_v35 = vsel %vm1498_vm9, %v8556_v61, 0.0  ;;  %v3834_v49 = vmax.f32 %v3832_v21, %v3833_v40  ;;  %v3856_v14 = vsel %vm1498_vm9, %v8564_v5, -inf  ;;  %v9744_v40 = vld [vmem:[#allocation50_spill] sm:$0xff] }
 0x42c   : > { %v3864_v51 = vrot.slane %v3863_v12, 4  ;;  %v4167_v23 = vrot.slane %v4166_v53, 1  ;;  %v4156_v52 = vrot.slane %v4155_v35, 4  ;;  %vm3667_vm12 = vcmp.gt.f32.partialorder %v3635_v39, 0.0 }
 0x42d   : > { %v3699_v6 = vmul.f32 0.01, %v3635_v39  ;;  %v5998_v31 = vpop.eup %5997  ;;  %v4016_v8 = vsub.f32 %v8529_v56, %v3834_v49  ;;  %v9743_v25 = vperm.slane %v8391_v19, 6  ;;  %v3857_v18 = vrot.slane %v3856_v14, 4 }
 0x42e   : > { %v3865_v17 = vmax.f32 %v3863_v12, %v3864_v51  ;;  %v4366_v60 = vmul.f32 %v5998_v31, %v8522_v37  ;;  %v4168_v21 = vadd.f32 %v4167_v23, %v4166_v53  ;;  %v4157_v38 = vadd.f32 %v4156_v52, %v4155_v35 }
 0x42f   : > { %v3603_v24 = vadd.f32 %v9743_v25, %v8245_v59  ;;  %v4054_v32 = vmul.f32 1.442695, %v4016_v8  ;;  %v3731_v7 = vsel %vm3667_vm12, %v3635_v39, %v3699_v6  ;;  %v3858_v0 = vmax.f32 %v3856_v14, %v3857_v18 }
 0x430   : > { %v3866_v22 = vrot.slane %v3865_v17, 2  ;;  %v6000_v2 = vpop.eup %5999  ;;  %6001 = vrcp.f32 %v4168_v21  ;;  %v4158_v56 = vrot.slane %v4157_v38, 2  ;;  %v8575_v55 = vadd.f32 %v3731_v7, %v9744_v40  ;;  %4421 = vperm.xlu1 %5733, %v4367_v57  }
 0x431   : > { %v3640_v63 = vadd.f32 %v8373_v29, %v3603_v24  ;;  %v4365_v12 = vmul.f32 %v6000_v2, %v8526_v33  ;;  %6003 = vpow2.f32 %v4054_v32  ;;  %v3859_v35 = vrot.slane %v3858_v0, 2 }
 0x432   : > { %v3867_v37 = vmax.f32 %v3865_v17, %v3866_v22  ;;  %4416 = vperm.xlu2 %5734, %v4366_v60   ;;  %v4159_v53 = vadd.f32 %v4158_v56, %v4157_v38  ;;  %v3849_v39 = vsel %vm1498_vm9, %v8575_v55, -inf  ;;  %v9745_v23 = vperm.slane %v8391_v19, 5  ;;  %v9748_v60 = vld [vmem:[#allocation48_spill] sm:$0xff] }
 0x433   : > { %vm3672_vm13 = vcmp.gt.f32.partialorder %v3640_v63, 0.0  ;;  %v3704_v49 = vmul.f32 0.01, %v3640_v63  ;;  %4411 = vperm.xlu0 %5732, %v4365_v12   ;;  %v3850_v50 = vrot.slane %v3849_v39, 4  ;;  %v9746_v33 = vperm.slane %v8391_v19, 4 }
 0x434   : > { %v3868_v51 = vrot.slane %v3867_v37, 1  ;;  %v3602_v52 = vadd.f32 %v9745_v23, %v8198_v62  ;;  %v4160_v6 = vrot.slane %v4159_v53, 1  ;;  %v3860_v31 = vmax.f32 %v3858_v0, %v3859_v35 }
 0x435   : > { %v3601_v57 = vadd.f32 %v9746_v33, %v8146_v9  ;;  %v3736_v8 = vsel %vm3672_vm13, %v3640_v63, %v3704_v49  ;;  %v9747_v17 = vperm.slane %v8430_v30, 1  ;;  %v3851_v24 = vmax.f32 %v3849_v39, %v3850_v50 }
 0x436   : > { %v3869_v25 = vmax.f32 %v3867_v37, %v3868_v51  ;;  %v8590_v21 = vadd.f32 %v3736_v8, %v9748_v60  ;;  %v3639_v38 = vadd.f32 %v8373_v29, %v3602_v52  ;;  %v6002_v18 = vpop.eup %6001  ;;  %v4161_v32 = vadd.f32 %v4160_v6, %v4159_v53 }
 0x437   : > { %v3606_v14 = vadd.f32 %v9747_v17, %v8331_v13  ;;  %v3861_v22 = vrot.slane %v3860_v31, 1  ;;  %v3638_v7 = vadd.f32 %v8373_v29, %v3601_v57  ;;  %v8595_v56 = vpop.eup %6003  ;;  %v4370_v63 = vmul.f32 %v6002_v18, %v8538_v26  ;;  %v9750_v18 = vld [vmem:[#allocation46_spill] sm:$0xff] }
 0x438   : > { %v4021_v0 = vsub.f32 %v8551_v34, %v3869_v25  ;;  %v3852_v40 = vrot.slane %v3851_v24, 2  ;;  %v3884_v12 = vsel %vm1498_vm9, %v8590_v21, -inf  ;;  %6005 = vrcp.f32 %v4161_v32 }
 0x439   : > { %v3643_v2 = vadd.f32 %v8373_v29, %v3606_v14  ;;  %v4148_v37 = vsel %vm1498_vm9, %v8595_v56, 0.0  ;;  %v3862_v53 = vmax.f32 %v3860_v31, %v3861_v22  ;;  %v3885_v35 = vrot.slane %v3884_v12, 4  ;;  %4436 = vperm.xlu1 %5733, %v4370_v63   ;;  %v9749_v14 = vld [vmem:[#allocation55_spill] sm:$0xff] }
 0x43a   : > { %v4149_v39 = vrot.slane %v4148_v37, 4  ;;  %v4064_v49 = vmul.f32 1.442695, %v4021_v0  ;;  %v3853_v51 = vmax.f32 %v3851_v24, %v3852_v40  ;;  %vm3671_vm14 = vcmp.gt.f32.partialorder %v3639_v38, 0.0 }
 0x43b   : > { %v4020_v50 = vsub.f32 %v8564_v5, %v3862_v53  ;;  %v3886_v26 = vmax.f32 %v3884_v12, %v3885_v35  ;;  %v3703_v23 = vmul.f32 0.01, %v3639_v38  ;;  %vm3670_vm15 = vcmp.gt.f32.partialorder %v3638_v7, 0.0 }
 0x43c   : > { %v4150_v34 = vadd.f32 %v4149_v39, %v4148_v37  ;;  %6007 = vpow2.f32 %v4064_v49  ;;  %v3854_v52 = vrot.slane %v3853_v51, 1  ;;  %v3702_v33 = vmul.f32 0.01, %v3638_v7 }
 0x43d   : > { %v4062_v57 = vmul.f32 1.442695, %v4020_v50  ;;  %v3887_v6 = vrot.slane %v3886_v26, 2  ;;  %v3735_v8 = vsel %vm3671_vm14, %v3639_v38, %v3703_v23  ;;  %vm3675_vm7 = vcmp.gt.f32.partialorder %v3643_v2, 0.0 }
 0x43e   : > { %v4151_v31 = vrot.slane %v4150_v34, 2  ;;  %v3855_v17 = vmax.f32 %v3853_v51, %v3854_v52  ;;  %v8605_v25 = vadd.f32 %v3735_v8, %v9749_v14  ;;  %v3734_v24 = vsel %vm3670_vm15, %v3638_v7, %v3702_v33  ;;  %v6006_v60 = vpop.eup %6005 }
 0x43f   : > { %6009 = vpow2.f32 %v4062_v57  ;;  %v3888_v5 = vmax.f32 %v3886_v26, %v3887_v6  ;;  %v8608_v32 = vadd.f32 %v3734_v24, %v9750_v18  ;;  %v3707_v22 = vmul.f32 0.01, %v3643_v2 }
 0x440   : > { %v4369_v63 = vmul.f32 %v6006_v60, %v8556_v61  ;;  %v4152_v0 = vadd.f32 %v4151_v31, %v4150_v34  ;;  %v4019_v40 = vsub.f32 %v8575_v55, %v3855_v17  ;;  %v3877_v38 = vsel %vm1498_vm9, %v8605_v25, -inf  ;;  %v9751_v61 = vld [vmem:[#allocation51_spill] sm:$0xff] }
 0x441   : > { %v3889_v12 = vrot.slane %v3888_v5, 1  ;;  %v3878_v37 = vrot.slane %v3877_v38, 4  ;;  %v3870_v7 = vsel %vm1498_vm9, %v8608_v32, -inf  ;;  %v3739_v53 = vsel %vm3675_vm7, %v3643_v2, %v3707_v22 }
 0x442   : > { %v8617_v35 = vpop.eup %6007  ;;  %4431 = vperm.xlu2 %5734, %v4369_v63   ;;  %v4153_v39 = vrot.slane %v4152_v0, 1  ;;  %v4060_v49 = vmul.f32 1.442695, %v4019_v40  ;;  %v3871_v51 = vrot.slane %v3870_v7, 4  ;;  %v8620_v50 = vadd.f32 %v3739_v53, %v9751_v61 }
 0x443   : > { %v4183_v55 = vsel %vm1498_vm9, %v8617_v35, 0.0  ;;  %v3890_v26 = vmax.f32 %v3888_v5, %v3889_v12  ;;  %v3879_v23 = vmax.f32 %v3877_v38, %v3878_v37  ;;  %v9752_v34 = vperm.slane %v8430_v30, 0 }
 0x444   : > { %v4154_v33 = vadd.f32 %v4153_v39, %v4152_v0  ;;  %v4184_v2 = vrot.slane %v4183_v55, 4  ;;  %6011 = vpow2.f32 %v4060_v49  ;;  %v3872_v57 = vmax.f32 %v3870_v7, %v3871_v51 }
 0x445   : > { %v3605_v52 = vadd.f32 %v9752_v34, %v8320_v16  ;;  %v8627_v6 = vpop.eup %6009  ;;  %v4024_v8 = vsub.f32 %v8590_v21, %v3890_v26  ;;  %v3880_v31 = vrot.slane %v3879_v23, 2  ;;  %v3905_v17 = vsel %vm1498_vm9, %v8620_v50, -inf }
 0x446   : > { %6013 = vrcp.f32 %v4154_v33  ;;  %v4185_v24 = vadd.f32 %v4184_v2, %v4183_v55  ;;  %v4176_v60 = vsel %vm1498_vm9, %v8627_v6, 0.0  ;;  %v3873_v5 = vrot.slane %v3872_v57, 2 }
 0x447   : > { %v3642_v14 = vadd.f32 %v8373_v29, %v3605_v52  ;;  %v4177_v18 = vrot.slane %v4176_v60, 4  ;;  %v4070_v22 = vmul.f32 1.442695, %v4024_v8  ;;  %v3881_v63 = vmax.f32 %v3879_v23, %v3880_v31  ;;  %v9754_v31 = vld [vmem:[#allocation58_spill] sm:$0xff] }
 0x448   : > { %v3906_v0 = vrot.slane %v3905_v17, 4  ;;  %v4186_v40 = vrot.slane %v4185_v24, 2  ;;  %v3874_v38 = vmax.f32 %v3872_v57, %v3873_v5  ;;  %v9753_v61 = vperm.slane %v8391_v19, 7 }
 0x449   : > { %vm3674_vm8 = vcmp.gt.f32.partialorder %v3642_v14, 0.0  ;;  %v3706_v21 = vmul.f32 0.01, %v3642_v14  ;;  %v4178_v12 = vadd.f32 %v4177_v18, %v4176_v60  ;;  %6015 = vpow2.f32 %v4070_v22 }
 0x44a   : > { %v3882_v37 = vrot.slane %v3881_v63, 1  ;;  %v3907_v7 = vmax.f32 %v3905_v17, %v3906_v0  ;;  %v8635_v53 = vpop.eup %6011  ;;  %v4187_v39 = vadd.f32 %v4186_v40, %v4185_v24  ;;  %v3875_v49 = vrot.slane %v3874_v38, 1 }
 0x44b   : > { %v3738_v51 = vsel %vm3674_vm8, %v3642_v14, %v3706_v21  ;;  %v3604_v55 = vadd.f32 %v9753_v61, %v8284_v44  ;;  %v4179_v26 = vrot.slane %v4178_v12, 2  ;;  %v4169_v23 = vsel %vm1498_vm9, %v8635_v53, 0.0 }
 0x44c   : > { %v3883_v34 = vmax.f32 %v3881_v63, %v3882_v37  ;;  %v3908_v52 = vrot.slane %v3907_v7, 2  ;;  %v6014_v33 = vpop.eup %6013  ;;  %v4188_v2 = vrot.slane %v4187_v39, 1  ;;  %v4170_v57 = vrot.slane %v4169_v23, 4 }
 0x44d   : > { %v3876_v8 = vmax.f32 %v3874_v38, %v3875_v49  ;;  %v8643_v17 = vadd.f32 %v3738_v51, %v9754_v31  ;;  %v4368_v24 = vmul.f32 %v6014_v33, %v8595_v56  ;;  %v4180_v14 = vadd.f32 %v4179_v26, %v4178_v12 }
 0x44e   : > { %v4023_v60 = vsub.f32 %v8605_v25, %v3883_v34  ;;  %v3909_v19 = vmax.f32 %v3907_v7, %v3908_v52  ;;  %v4189_v5 = vadd.f32 %v4188_v2, %v4187_v39  ;;  %v4171_v18 = vadd.f32 %v4170_v57, %v4169_v23 }
 0x44f   : > { %v4022_v22 = vsub.f32 %v8608_v32, %v3876_v8  ;;  %v3898_v63 = vsel %vm1498_vm9, %v8643_v17, -inf  ;;  %v8650_v0 = vpop.eup %6015  ;;  %4426 = vperm.xlu0 %5732, %v4368_v24   ;;  %v4181_v40 = vrot.slane %v4180_v14, 1  ;;  %v3641_v61 = vadd.f32 %v8373_v29, %v3604_v55 }
 0x450   : > { %v4068_v38 = vmul.f32 1.442695, %v4023_v60  ;;  %v3910_v21 = vrot.slane %v3909_v19, 1  ;;  %v3899_v37 = vrot.slane %v3898_v63, 4  ;;  %6017 = vrcp.f32 %v4189_v5 }
 0x451   : > { %v4172_v56 = vrot.slane %v4171_v18, 2  ;;  %v4204_v25 = vsel %vm1498_vm9, %v8650_v0, 0.0  ;;  %v4066_v12 = vmul.f32 1.442695, %v4022_v22  ;;  %v4182_v7 = vadd.f32 %v4181_v40, %v4180_v14 }
 0x452   : > { %v4205_v39 = vrot.slane %v4204_v25, 4  ;;  %6019 = vpow2.f32 %v4068_v38  ;;  %v3911_v32 = vmax.f32 %v3909_v19, %v3910_v21  ;;  %v3900_v51 = vmax.f32 %v3898_v63, %v3899_v37  ;;  %v9758_v21 = vld [vmem:[#allocation49_spill] sm:$0xff] }
 0x453   : > { %v4173_v49 = vadd.f32 %v4172_v56, %v4171_v18  ;;  %6021 = vpow2.f32 %v4066_v12  ;;  %v9755_v34 = vperm.slane %v8430_v30, 4  ;;  %vm3673_vm10 = vcmp.gt.f32.partialorder %v3641_v61, 0.0 }
 0x454   : > { %6023 = vrcp.f32 %v4182_v7  ;;  %v4206_v26 = vadd.f32 %v4205_v39, %v4204_v25  ;;  %v4027_v23 = vsub.f32 %v8620_v50, %v3911_v32  ;;  %v3901_v2 = vrot.slane %v3900_v51, 2 }
 0x455   : > { %v3609_v52 = vadd.f32 %v9755_v34, %v8345_v1  ;;  %v4174_v33 = vrot.slane %v4173_v49, 1  ;;  %v3705_v57 = vmul.f32 0.01, %v3641_v61  ;;  %v9756_v14 = vperm.slane %v8430_v30, 3 }
 0x456   : > { %v4207_v8 = vrot.slane %v4206_v26, 2  ;;  %v4076_v31 = vmul.f32 1.442695, %v4027_v23  ;;  %v6018_v60 = vpop.eup %6017  ;;  %v3902_v5 = vmax.f32 %v3900_v51, %v3901_v2  ;;  %v9757_v18 = vperm.slane %v8430_v30, 2 }
 0x457   : > { %v3646_v24 = vadd.f32 %v8373_v29, %v3609_v52  ;;  %v3608_v55 = vadd.f32 %v9756_v14, %v8342_v54  ;;  %v4175_v19 = vadd.f32 %v4174_v33, %v4173_v49  ;;  %v3737_v50 = vsel %vm3673_vm10, %v3641_v61, %v3705_v57 }
 0x458   : > { %v3607_v22 = vadd.f32 %v9757_v18, %v8339_v45  ;;  %v8666_v63 = vpop.eup %6019  ;;  %v4373_v40 = vmul.f32 %v6018_v60, %v8617_v35  ;;  %v4208_v38 = vadd.f32 %v4207_v8, %v4206_v26  ;;  %6025 = vpow2.f32 %v4076_v31 }
 0x459   : > { %v8670_v37 = vadd.f32 %v3737_v50, %v9758_v21  ;;  %v8672_v56 = vpop.eup %6021  ;;  %6027 = vrcp.f32 %v4175_v19  ;;  %v4197_v25 = vsel %vm1498_vm9, %v8666_v63, 0.0  ;;  %v3903_v12 = vrot.slane %v3902_v5, 1 }
 0x45a   : > { %vm3678_vm11 = vcmp.gt.f32.partialorder %v3646_v24, 0.0  ;;  %v6024_v7 = vpop.eup %6023  ;;  %4451 = vperm.xlu1 %5733, %v4373_v40   ;;  %v4209_v39 = vrot.slane %v4208_v38, 1  ;;  %v4198_v32 = vrot.slane %v4197_v25, 4  ;;  %v4190_v35 = vsel %vm1498_vm9, %v8672_v56, 0.0 }
 0x45b   : > { %v3891_v49 = vsel %vm1498_vm9, %v8670_v37, -inf  ;;  %v4372_v51 = vmul.f32 %v6024_v7, %v8627_v6  ;;  %v4191_v61 = vrot.slane %v4190_v35, 4  ;;  %v3904_v26 = vmax.f32 %v3902_v5, %v3903_v12 }
 0x45c   : > { %v3892_v23 = vrot.slane %v3891_v49, 4  ;;  %v4210_v34 = vadd.f32 %v4209_v39, %v4208_v38  ;;  %v4199_v52 = vadd.f32 %v4198_v32, %v4197_v25  ;;  %v3710_v33 = vmul.f32 0.01, %v3646_v24  ;;  %v9759_v25 = vld [vmem:[#allocation60_spill] sm:$0xff] }
 0x45d   : > { %v3645_v2 = vadd.f32 %v8373_v29, %v3608_v55  ;;  %4446 = vperm.xlu2 %5734, %v4372_v51   ;;  %v4192_v57 = vadd.f32 %v4191_v61, %v4190_v35  ;;  %v4026_v8 = vsub.f32 %v8643_v17, %v3904_v26  ;;  %v3644_v14 = vadd.f32 %v8373_v29, %v3607_v22 }
 0x45e   : > { %v3893_v31 = vmax.f32 %v3891_v49, %v3892_v23  ;;  %v8684_v60 = vpop.eup %6025  ;;  %6029 = vrcp.f32 %v4210_v34  ;;  %v4200_v19 = vrot.slane %v4199_v52, 2  ;;  %v3742_v6 = vsel %vm3678_vm11, %v3646_v24, %v3710_v33 }
 0x45f   : > { %vm3677_vm12 = vcmp.gt.f32.partialorder %v3645_v2, 0.0  ;;  %v6028_v5 = vpop.eup %6027  ;;  %v4193_v50 = vrot.slane %v4192_v57, 2  ;;  %v4225_v18 = vsel %vm1498_vm9, %v8684_v60, 0.0  ;;  %v4074_v55 = vmul.f32 1.442695, %v4026_v8 }
 0x460   : > { %v3894_v40 = vrot.slane %v3893_v31, 2  ;;  %v4371_v38 = vmul.f32 %v6028_v5, %v8635_v53  ;;  %v4201_v17 = vadd.f32 %v4200_v19, %v4199_v52  ;;  %v4226_v21 = vrot.slane %v4225_v18, 4  ;;  %v9760_v52 = vld [vmem:[#allocation54_spill] sm:$0xff] }
 0x461   : > { %v8691_v22 = vadd.f32 %v3742_v6, %v9759_v25  ;;  %v4194_v12 = vadd.f32 %v4193_v50, %v4192_v57  ;;  %6031 = vpow2.f32 %v4074_v55  ;;  %v3709_v39 = vmul.f32 0.01, %v3645_v2 }
 0x462   : > { %v3895_v7 = vmax.f32 %v3893_v31, %v3894_v40  ;;  %4441 = vperm.xlu0 %5732, %v4371_v38   ;;  %v4202_v24 = vrot.slane %v4201_v17, 1  ;;  %v4227_v32 = vadd.f32 %v4226_v21, %v4225_v18  ;;  %vm3676_vm13 = vcmp.gt.f32.partialorder %v3644_v14, 0.0  ;;  %v9761_v21 = vld [vmem:[#allocation53_spill] sm:$0xff] }
 0x463   : > { %v3926_v35 = vsel %vm1498_vm9, %v8691_v22, -inf  ;;  %v4195_v49 = vrot.slane %v4194_v12, 1  ;;  %v3741_v53 = vsel %vm3677_vm12, %v3645_v2, %v3709_v39  ;;  %v3708_v57 = vmul.f32 0.01, %v3644_v14 }
 0x464   : > { %v3896_v51 = vrot.slane %v3895_v7, 1  ;;  %v3927_v61 = vrot.slane %v3926_v35, 4  ;;  %v6030_v26 = vpop.eup %6029  ;;  %v4203_v23 = vadd.f32 %v4202_v24, %v4201_v17  ;;  %v4228_v34 = vrot.slane %v4227_v32, 2 }
 0x465   : > { %v8697_v33 = vadd.f32 %v3741_v53, %v9760_v52  ;;  %v4376_v8 = vmul.f32 %v6030_v26, %v8650_v0  ;;  %v4196_v31 = vadd.f32 %v4195_v49, %v4194_v12  ;;  %v3740_v18 = vsel %vm3676_vm13, %v3644_v14, %v3708_v57 }
 0x466   : > { %v3897_v19 = vmax.f32 %v3895_v7, %v3896_v51  ;;  %v3928_v6 = vmax.f32 %v3926_v35, %v3927_v61  ;;  %6033 = vrcp.f32 %v4203_v23  ;;  %v4229_v5 = vadd.f32 %v4228_v34, %v4227_v32 }
 0x467   : > { %v3919_v50 = vsel %vm1498_vm9, %v8697_v33, -inf  ;;  %v8703_v2 = vpop.eup %6031  ;;  %4466 = vperm.xlu1 %5733, %v4376_v8   ;;  %6035 = vrcp.f32 %v4196_v31  ;;  %v8709_v25 = vadd.f32 %v3740_v18, %v9761_v21  ;;  %v9762_v12 = vperm.slane %v8430_v30, 7  ;;  %v9764_v21 = vld [vmem:[#allocation71_spill] sm:$0xff] }
 0x468   : > { %v4025_v55 = vsub.f32 %v8670_v37, %v3897_v19  ;;  %v3929_v40 = vrot.slane %v3928_v6, 2  ;;  %v3920_v38 = vrot.slane %v3919_v50, 4  ;;  %v4230_v17 = vrot.slane %v4229_v5, 1 }
 0x469   : > { %v4218_v0 = vsel %vm1498_vm9, %v8703_v2, 0.0  ;;  %v3612_v7 = vadd.f32 %v9762_v12, %v8354_v11  ;;  %v3912_v37 = vsel %vm1498_vm9, %v8709_v25, -inf  ;;  %v9763_v51 = vperm.slane %v8430_v30, 6 }
 0x46a   : > { %v4219_v14 = vrot.slane %v4218_v0, 4  ;;  %v4072_v39 = vmul.f32 1.442695, %v4025_v55  ;;  %v3930_v24 = vmax.f32 %v3928_v6, %v3929_v40  ;;  %v3921_v32 = vmax.f32 %v3919_v50, %v3920_v38 }
 0x46b   : > { %v4231_v35 = vadd.f32 %v4230_v17, %v4229_v5  ;;  %v3649_v49 = vadd.f32 %v8373_v29, %v3612_v7  ;;  %v3611_v61 = vadd.f32 %v9763_v51, %v8351_v3  ;;  %v3913_v52 = vrot.slane %v3912_v37, 4 }
 0x46c   : > { %v4220_v53 = vadd.f32 %v4219_v14, %v4218_v0  ;;  %6037 = vpow2.f32 %v4072_v39  ;;  %v3931_v26 = vrot.slane %v3930_v24, 1  ;;  %v3922_v23 = vrot.slane %v3921_v32, 2  ;;  %v6034_v34 = vpop.eup %6033 }
 0x46d   : > { %6039 = vrcp.f32 %v4231_v35  ;;  %vm3681_vm14 = vcmp.gt.f32.partialorder %v3649_v49, 0.0  ;;  %v3713_v57 = vmul.f32 0.01, %v3649_v49  ;;  %v6036_v8 = vpop.eup %6035  ;;  %v4375_v31 = vmul.f32 %v6034_v34, %v8666_v63 }
 0x46e   : > { %v4221_v19 = vrot.slane %v4220_v53, 2  ;;  %v3932_v6 = vmax.f32 %v3930_v24, %v3931_v26  ;;  %v3923_v5 = vmax.f32 %v3921_v32, %v3922_v23  ;;  %v4374_v50 = vmul.f32 %v6036_v8, %v8672_v56  ;;  %v9766_v8 = vld [vmem:[#allocation63_spill] sm:$0xff] }
 0x46f   : > { %v3914_v18 = vmax.f32 %v3912_v37, %v3913_v52  ;;  %v3745_v55 = vsel %vm3681_vm14, %v3649_v49, %v3713_v57  ;;  %v3648_v40 = vadd.f32 %v8373_v29, %v3611_v61  ;;  %4461 = vperm.xlu2 %5734, %v4375_v31   ;;  %v9765_v14 = vperm.slane %v8430_v30, 5 }
 0x470   : > { %v4222_v38 = vadd.f32 %v4221_v19, %v4220_v53  ;;  %v4030_v17 = vsub.f32 %v8691_v22, %v3932_v6  ;;  %v3924_v0 = vrot.slane %v3923_v5, 1  ;;  %v8725_v12 = vadd.f32 %v3745_v55, %v9764_v21  ;;  %4456 = vperm.xlu0 %5732, %v4374_v50  }
 0x471   : > { %v3915_v7 = vrot.slane %v3914_v18, 2  ;;  %vm3680_vm15 = vcmp.gt.f32.partialorder %v3648_v40, 0.0  ;;  %v3712_v63 = vmul.f32 0.01, %v3648_v40  ;;  %v3610_v56 = vadd.f32 %v9765_v14, %v8348_v36 }
 0x472   : > { %v8730_v39 = vpop.eup %6037  ;;  %v4223_v24 = vrot.slane %v4222_v38, 1  ;;  %v4082_v32 = vmul.f32 1.442695, %v4030_v17  ;;  %v3925_v35 = vmax.f32 %v3923_v5, %v3924_v0  ;;  %v3947_v22 = vsel %vm1498_vm9, %v8725_v12, -inf }
 0x473   : > { %v6040_v37 = vpop.eup %6039  ;;  %v4211_v49 = vsel %vm1498_vm9, %v8730_v39, 0.0  ;;  %v3916_v51 = vmax.f32 %v3914_v18, %v3915_v7  ;;  %v3948_v61 = vrot.slane %v3947_v22, 4  ;;  %v3744_v53 = vsel %vm3680_vm15, %v3648_v40, %v3712_v63 }
 0x474   : > { %v4379_v26 = vmul.f32 %v6040_v37, %v8684_v60  ;;  %v4224_v23 = vadd.f32 %v4223_v24, %v4222_v38  ;;  %v4212_v30 = vrot.slane %v4211_v49, 4  ;;  %6041 = vpow2.f32 %v4082_v32 }
 0x475   : > { %v4029_v34 = vsub.f32 %v8697_v33, %v3925_v35  ;;  %v3917_v52 = vrot.slane %v3916_v51, 1  ;;  %v3949_v57 = vmax.f32 %v3947_v22, %v3948_v61  ;;  %v8739_v31 = vadd.f32 %v3744_v53, %v9766_v8 }
 0x476   : > { %4481 = vperm.xlu1 %5733, %v4379_v26   ;;  %6043 = vrcp.f32 %v4224_v23  ;;  %v4213_v19 = vadd.f32 %v4212_v30, %v4211_v49  ;;  %v3647_v6 = vadd.f32 %v8373_v29, %v3610_v56  ;;  %v9767_v5 = vperm.slane %v8454_v27, 2 }
 0x477   : > { %v4080_v60 = vmul.f32 1.442695, %v4029_v34  ;;  %v3918_v18 = vmax.f32 %v3916_v51, %v3917_v52  ;;  %v3950_v55 = vrot.slane %v3949_v57, 2  ;;  %v3940_v33 = vsel %vm1498_vm9, %v8739_v31, -inf  ;;  %v9769_v51 = vld [vmem:[#allocation56_spill] sm:$0xff] }
 0x478   : > { %v3615_v50 = vadd.f32 %v9767_v5, %v8363_v4  ;;  %v4214_v40 = vrot.slane %v4213_v19, 2  ;;  %v3941_v38 = vrot.slane %v3940_v33, 4  ;;  %vm3679_vm7 = vcmp.gt.f32.partialorder %v3647_v6, 0.0 }
 0x479   : > { %v3711_v17 = vmul.f32 0.01, %v3647_v6  ;;  %6045 = vpow2.f32 %v4080_v60  ;;  %v4028_v0 = vsub.f32 %v8709_v25, %v3918_v18  ;;  %v3951_v21 = vmax.f32 %v3949_v57, %v3950_v55 }
 0x47a   : > { %v3652_v7 = vadd.f32 %v8373_v29, %v3615_v50  ;;  %v8749_v63 = vpop.eup %6041  ;;  %v4215_v14 = vadd.f32 %v4214_v40, %v4213_v19  ;;  %v3942_v56 = vmax.f32 %v3940_v33, %v3941_v38  ;;  %v9768_v32 = vperm.slane %v8454_v27, 1 }
 0x47b   : > { %v3743_v24 = vsel %vm3679_vm7, %v3647_v6, %v3711_v17  ;;  %v4246_v22 = vsel %vm1498_vm9, %v8749_v63, 0.0  ;;  %v4078_v37 = vmul.f32 1.442695, %v4028_v0  ;;  %v3952_v49 = vrot.slane %v3951_v21, 1 }
 0x47c   : > { %v3614_v35 = vadd.f32 %v9768_v32, %v8360_v42  ;;  %v8757_v61 = vadd.f32 %v3743_v24, %v9769_v51  ;;  %v6044_v25 = vpop.eup %6043  ;;  %v4216_v53 = vrot.slane %v4215_v14, 1  ;;  %v4247_v26 = vrot.slane %v4246_v22, 4  ;;  %v9771_v24 = vld [vmem:[#allocation61_spill] sm:$0xff] }
 0x47d   : > { %v3943_v23 = vrot.slane %v3942_v56, 2  ;;  %vm3684_vm8 = vcmp.gt.f32.partialorder %v3652_v7, 0.0  ;;  %v4378_v30 = vmul.f32 %v6044_v25, %v8703_v2  ;;  %6047 = vpow2.f32 %v4078_v37 }
 0x47e   : > { %v3953_v34 = vmax.f32 %v3951_v21, %v3952_v49  ;;  %v3933_v52 = vsel %vm1498_vm9, %v8757_v61, -inf  ;;  %v4217_v57 = vadd.f32 %v4216_v53, %v4215_v14  ;;  %v4248_v8 = vadd.f32 %v4247_v26, %v4246_v22 }
 0x47f   : > { %v3944_v19 = vmax.f32 %v3942_v56, %v3943_v23  ;;  %v3934_v6 = vrot.slane %v3933_v52, 4  ;;  %v8762_v5 = vpop.eup %6045  ;;  %4476 = vperm.xlu2 %5734, %v4378_v30   ;;  %v3716_v60 = vmul.f32 0.01, %v3652_v7  ;;  %v3651_v18 = vadd.f32 %v8373_v29, %v3614_v35 }
 0x480   : > { %v4033_v50 = vsub.f32 %v8725_v12, %v3953_v34  ;;  %v9770_v2 = vperm.slane %v8454_v27, 0  ;;  %6049 = vrcp.f32 %v4217_v57  ;;  %v4249_v33 = vrot.slane %v4248_v8, 2 }
 0x481   : > { %v4239_v40 = vsel %vm1498_vm9, %v8762_v5, 0.0  ;;  %v3945_v38 = vrot.slane %v3944_v19, 1  ;;  %v3935_v21 = vmax.f32 %v3933_v52, %v3934_v6  ;;  %v3748_v14 = vsel %vm3684_vm8, %v3652_v7, %v3716_v60 }
 0x482   : > { %v3613_v55 = vadd.f32 %v9770_v2, %v8357_v15  ;;  %v4240_v17 = vrot.slane %v4239_v40, 4  ;;  %v4088_v0 = vmul.f32 1.442695, %v4033_v50  ;;  %v4250_v56 = vadd.f32 %v4249_v33, %v4248_v8 }
 0x483   : > { %v3946_v12 = vmax.f32 %v3944_v19, %v3945_v38  ;;  %v8773_v32 = vadd.f32 %v3748_v14, %v9771_v24  ;;  %vm3683_vm10 = vcmp.gt.f32.partialorder %v3651_v18, 0.0  ;;  %v8775_v35 = vpop.eup %6047  ;;  %v3936_v37 = vrot.slane %v3935_v21, 2 }
 0x484   : > { %v4241_v22 = vadd.f32 %v4240_v17, %v4239_v40  ;;  %6051 = vpow2.f32 %v4088_v0  ;;  %v3715_v49 = vmul.f32 0.01, %v3651_v18  ;;  %v4251_v51 = vrot.slane %v4250_v56, 1  ;;  %v9772_v40 = vld [vmem:[#allocation67_spill] sm:$0xff] }
 0x485   : > { %v4232_v25 = vsel %vm1498_vm9, %v8775_v35, 0.0  ;;  %v4032_v53 = vsub.f32 %v8739_v31, %v3946_v12  ;;  %v3968_v7 = vsel %vm1498_vm9, %v8773_v32, -inf  ;;  %v3937_v30 = vmax.f32 %v3935_v21, %v3936_v37 }
 0x486   : > { %v4242_v26 = vrot.slane %v4241_v22, 2  ;;  %v4233_v23 = vrot.slane %v4232_v25, 4  ;;  %v3969_v34 = vrot.slane %v3968_v7, 4  ;;  %v6050_v52 = vpop.eup %6049  ;;  %v4252_v57 = vadd.f32 %v4251_v51, %v4250_v56 }
 0x487   : > { %v4086_v8 = vmul.f32 1.442695, %v4032_v53  ;;  %v3747_v19 = vsel %vm3683_vm10, %v3651_v18, %v3715_v49  ;;  %v3650_v6 = vadd.f32 %v8373_v29, %v3613_v55  ;;  %v4377_v50 = vmul.f32 %v6050_v52, %v8730_v39 }
 0x488   : > { %v4243_v60 = vadd.f32 %v4242_v26, %v4241_v22  ;;  %v4234_v2 = vadd.f32 %v4233_v23, %v4232_v25  ;;  %v3938_v33 = vrot.slane %v3937_v30, 1  ;;  %6053 = vrcp.f32 %v4252_v57 }
 0x489   : > { %v3970_v31 = vmax.f32 %v3968_v7, %v3969_v34  ;;  %v8786_v38 = vadd.f32 %v3747_v19, %v9772_v40  ;;  %vm3682_vm11 = vcmp.gt.f32.partialorder %v3650_v6, 0.0  ;;  %4471 = vperm.xlu0 %5732, %v4377_v50   ;;  %6055 = vpow2.f32 %v4086_v8  ;;  %v9774_v8 = vld [vmem:[#allocation59_spill] sm:$0xff] }
 0x48a   : > { %v8788_v17 = vpop.eup %6051  ;;  %v4244_v0 = vrot.slane %v4243_v60, 1  ;;  %v4235_v21 = vrot.slane %v4234_v2, 2  ;;  %v3939_v18 = vmax.f32 %v3937_v30, %v3938_v33  ;;  %v3714_v56 = vmul.f32 0.01, %v3650_v6 }
 0x48b   : > { %v4267_v55 = vsel %vm1498_vm9, %v8788_v17, 0.0  ;;  %v3971_v39 = vrot.slane %v3970_v31, 2  ;;  %v3961_v14 = vsel %vm1498_vm9, %v8786_v38, -inf  ;;  %v9773_v53 = vperm.slane %v8454_v27, 5 }
 0x48c   : > { %v4245_v12 = vadd.f32 %v4244_v0, %v4243_v60  ;;  %v4236_v24 = vadd.f32 %v4235_v21, %v4234_v2  ;;  %v4268_v22 = vrot.slane %v4267_v55, 4  ;;  %v4031_v37 = vsub.f32 %v8757_v61, %v3939_v18 }
 0x48d   : > { %v3972_v49 = vmax.f32 %v3970_v31, %v3971_v39  ;;  %v3962_v51 = vrot.slane %v3961_v14, 4  ;;  %v3746_v25 = vsel %vm3682_vm11, %v3650_v6, %v3714_v56  ;;  %v3618_v7 = vadd.f32 %v9773_v53, %v8381_v48 }
 0x48e   : > { %6057 = vrcp.f32 %v4245_v12  ;;  %v4237_v26 = vrot.slane %v4236_v24, 1  ;;  %v4269_v23 = vadd.f32 %v4268_v22, %v4267_v55  ;;  %v4084_v30 = vmul.f32 1.442695, %v4031_v37  ;;  %v6054_v34 = vpop.eup %6053 }
 0x48f   : > { %v3973_v52 = vrot.slane %v3972_v49, 1  ;;  %v3963_v57 = vmax.f32 %v3961_v14, %v3962_v51  ;;  %v8800_v19 = vadd.f32 %v3746_v25, %v9774_v8  ;;  %v3655_v61 = vadd.f32 %v8373_v29, %v3618_v7  ;;  %v8803_v50 = vpop.eup %6055 }
 0x490   : > { %v4382_v6 = vmul.f32 %v6054_v34, %v8749_v63  ;;  %v4238_v60 = vadd.f32 %v4237_v26, %v4236_v24  ;;  %v4270_v2 = vrot.slane %v4269_v23, 2  ;;  %6059 = vpow2.f32 %v4084_v30 }
 0x491   : > { %v4260_v33 = vsel %vm1498_vm9, %v8803_v50, 0.0  ;;  %v3974_v31 = vmax.f32 %v3972_v49, %v3973_v52  ;;  %v3964_v40 = vrot.slane %v3963_v57, 2  ;;  %v3954_v0 = vsel %vm1498_vm9, %v8800_v19, -inf }
 0x492   : > { %4496 = vperm.xlu1 %5733, %v4382_v6   ;;  %6061 = vrcp.f32 %v4238_v60  ;;  %v4271_v21 = vadd.f32 %v4270_v2, %v4269_v23  ;;  %v4261_v18 = vrot.slane %v4260_v33, 4  ;;  %v3955_v55 = vrot.slane %v3954_v0, 4 }
 0x493   : > { %v4036_v39 = vsub.f32 %v8773_v32, %v3974_v31  ;;  %v3965_v14 = vmax.f32 %v3963_v57, %v3964_v40  ;;  %vm3687_vm12 = vcmp.gt.f32.partialorder %v3655_v61, 0.0  ;;  %v3719_v63 = vmul.f32 0.01, %v3655_v61 }
 0x494   : > { %v6058_v56 = vpop.eup %6057  ;;  %v4272_v12 = vrot.slane %v4271_v21, 1  ;;  %v4262_v24 = vadd.f32 %v4261_v18, %v4260_v33  ;;  %v3956_v22 = vmax.f32 %v3954_v0, %v3955_v55  ;;  %v9775_v37 = vperm.slane %v8454_v27, 4 }
 0x495   : > { %v4381_v51 = vmul.f32 %v6058_v56, %v8762_v5  ;;  %v4094_v25 = vmul.f32 1.442695, %v4036_v39  ;;  %v3966_v53 = vrot.slane %v3965_v14, 1  ;;  %v3751_v7 = vsel %vm3687_vm12, %v3655_v61, %v3719_v63 }
 0x496   : > { %v3617_v49 = vadd.f32 %v9775_v37, %v8370_v47  ;;  %v8815_v26 = vpop.eup %6059  ;;  %v4273_v23 = vadd.f32 %v4272_v12, %v4271_v21  ;;  %v4263_v32 = vrot.slane %v4262_v24, 2  ;;  %v3957_v30 = vrot.slane %v3956_v22, 2 }
 0x497   : > { %v8818_v34 = vadd.f32 %v3751_v7, %v7355_v28  ;;  %4491 = vperm.xlu2 %5734, %v4381_v51   ;;  %v4253_v52 = vsel %vm1498_vm9, %v8815_v26, 0.0  ;;  %6063 = vpow2.f32 %v4094_v25  ;;  %v3967_v57 = vmax.f32 %v3965_v14, %v3966_v53 }
 0x498   : > { %v3654_v8 = vadd.f32 %v8373_v29, %v3617_v49  ;;  %v6062_v5 = vpop.eup %6061  ;;  %6065 = vrcp.f32 %v4273_v23  ;;  %v4264_v6 = vadd.f32 %v4263_v32, %v4262_v24  ;;  %v4254_v61 = vrot.slane %v4253_v52, 4 }
 0x499   : > { %v3958_v60 = vmax.f32 %v3956_v22, %v3957_v30  ;;  %v4380_v2 = vmul.f32 %v6062_v5, %v8775_v35  ;;  %v4035_v33 = vsub.f32 %v8786_v38, %v3967_v57  ;;  %v3989_v28 = vsel %vm1498_vm9, %v8818_v34, -inf  ;;  %v9778_v30 = vld [vmem:[#allocation64_spill] sm:$0xff] }
 0x49a   : > { %vm3686_vm13 = vcmp.gt.f32.partialorder %v3654_v8, 0.0  ;;  %v4265_v31 = vrot.slane %v4264_v6, 1  ;;  %v4255_v40 = vadd.f32 %v4254_v61, %v4253_v52  ;;  %v3990_v21 = vrot.slane %v3989_v28, 4 }
 0x49b   : > { %v3959_v0 = vrot.slane %v3958_v60, 1  ;;  %v4041_v18 = vsub.f32 %v8484_v41, %v8533_v20  ;;  %4486 = vperm.xlu0 %5732, %v4380_v2   ;;  %v4092_v55 = vmul.f32 1.442695, %v4035_v33  ;;  %v3718_v39 = vmul.f32 0.01, %v3654_v8 }
 0x49c   : > { %v9776_v14 = vperm.slane %v8454_v27, 3  ;;  %v4266_v63 = vadd.f32 %v4265_v31, %v4264_v6  ;;  %v4256_v38 = vrot.slane %v4255_v40, 2  ;;  %v3991_v12 = vmax.f32 %v3989_v28, %v3990_v21 }
 0x49d   : > { %v3960_v56 = vmax.f32 %v3958_v60, %v3959_v0  ;;  %v8832_v24 = vpop.eup %6063  ;;  %6067 = vpow2.f32 %v4092_v55  ;;  %v3750_v22 = vsel %vm3686_vm13, %v3654_v8, %v3718_v39  ;;  %v9777_v41 = vperm.slane %v8454_v27, 6 }
 0x49e   : > { %v3616_v35 = vadd.f32 %v9776_v14, %v8367_v43  ;;  %v6066_v49 = vpop.eup %6065  ;;  %6069 = vrcp.f32 %v4266_v63  ;;  %v4257_v51 = vadd.f32 %v4256_v38, %v4255_v40  ;;  %v4288_v25 = vsel %vm1498_vm9, %v8832_v24, 0.0  ;;  %v9779_v40 = vld [vmem:[#allocation70_spill] sm:$0xff] }
 0x49f   : > { %v3619_v20 = vadd.f32 %v9777_v41, %v8427_v46  ;;  %v4034_v53 = vsub.f32 %v8800_v19, %v3960_v56  ;;  %v4385_v7 = vmul.f32 %v6066_v49, %v8788_v17  ;;  %v4289_v23 = vrot.slane %v4288_v25, 4 }
 0x4a0   : > { %v3653_v37 = vadd.f32 %v8373_v29, %v3616_v35  ;;  %v3992_v32 = vrot.slane %v3991_v12, 2  ;;  %v8844_v52 = vadd.f32 %v3750_v22, %v9778_v30  ;;  %v4258_v57 = vrot.slane %v4257_v51, 1 }
 0x4a1   : > { %v4090_v8 = vmul.f32 1.442695, %v4034_v53  ;;  %v4104_v5 = vmul.f32 1.442695, %v4041_v18  ;;  %4511 = vperm.xlu1 %5733, %v4385_v7   ;;  %v4290_v6 = vadd.f32 %v4289_v23, %v4288_v25  ;;  %v3656_v39 = vadd.f32 %v8373_v29, %v3619_v20 }
 0x4a2   : > { %vm3685_vm14 = vcmp.gt.f32.partialorder %v3653_v37, 0.0  ;;  %v3717_v27 = vmul.f32 0.01, %v3653_v37  ;;  %v3993_v61 = vmax.f32 %v3991_v12, %v3992_v32  ;;  %v3982_v60 = vsel %vm1498_vm9, %v8844_v52, -inf }
 0x4a3   : > { %v4259_v2 = vadd.f32 %v4258_v57, %v4257_v51  ;;  %6071 = vpow2.f32 %v4090_v8  ;;  %v3983_v19 = vrot.slane %v3982_v60, 4  ;;  %v8848_v33 = vpop.eup %6067  ;;  %v4291_v28 = vrot.slane %v4290_v6, 2 }
 0x4a4   : > { %v3749_v17 = vsel %vm3685_vm14, %v3653_v37, %v3717_v27  ;;  %v3994_v31 = vrot.slane %v3993_v61, 1  ;;  %v6070_v21 = vpop.eup %6069  ;;  %v4281_v18 = vsel %vm1498_vm9, %v8848_v33, 0.0  ;;  %vm3688_vm15 = vcmp.gt.f32.partialorder %v3656_v39, 0.0 }
 0x4a5   : > { %v8851_v0 = vadd.f32 %v3749_v17, %v9779_v40  ;;  %6073 = vrcp.f32 %v4259_v2  ;;  %v3984_v55 = vmax.f32 %v3982_v60, %v3983_v19  ;;  %v4384_v14 = vmul.f32 %v6070_v21, %v8803_v50  ;;  %v9780_v19 = vld [vmem:[#allocation73_spill] sm:$0xff] }
 0x4a6   : > { %v4292_v35 = vadd.f32 %v4291_v28, %v4290_v6  ;;  %v4282_v63 = vrot.slane %v4281_v18, 4  ;;  %v3995_v38 = vmax.f32 %v3993_v61, %v3994_v31  ;;  %6075 = vpow2.f32 %v4104_v5 }
 0x4a7   : > { %v3985_v56 = vrot.slane %v3984_v55, 2  ;;  %v3975_v12 = vsel %vm1498_vm9, %v8851_v0, -inf  ;;  %4506 = vperm.xlu2 %5734, %v4384_v14   ;;  %v3720_v29 = vmul.f32 0.01, %v3656_v39 }
 0x4a8   : > { %v4293_v22 = vrot.slane %v4292_v35, 1  ;;  %v4283_v37 = vadd.f32 %v4282_v63, %v4281_v18  ;;  %v4039_v41 = vsub.f32 %v8818_v34, %v3995_v38  ;;  %v3976_v49 = vrot.slane %v3975_v12, 4 }
 0x4a9   : > { %v8860_v51 = vpop.eup %6071  ;;  %v3986_v25 = vmax.f32 %v3984_v55, %v3985_v56  ;;  %v3752_v27 = vsel %vm3688_vm15, %v3656_v39, %v3720_v29 }
 0x4aa   : > { %v4294_v50 = vadd.f32 %v4293_v22, %v4292_v35  ;;  %v4284_v20 = vrot.slane %v4283_v37, 2  ;;  %v4274_v53 = vsel %vm1498_vm9, %v8860_v51, 0.0  ;;  %v4100_v7 = vmul.f32 1.442695, %v4039_v41 }
 0x4ab   : > { %v6074_v23 = vpop.eup %6073  ;;  %v4275_v32 = vrot.slane %v4274_v53, 4  ;;  %v3987_v30 = vrot.slane %v3986_v25, 1  ;;  %v3977_v57 = vmax.f32 %v3975_v12, %v3976_v49  ;;  %v3784_v17 = vadd.f32 %v3752_v27, %v9780_v19 }
 0x4ac   : > { %v4383_v8 = vmul.f32 %v6074_v23, %v8815_v26  ;;  %6077 = vrcp.f32 %v4294_v50  ;;  %v4285_v34 = vadd.f32 %v4284_v20, %v4283_v37  ;;  %v8865_v5 = vpop.eup %6075 }
 0x4ad   : > { %v4276_v6 = vadd.f32 %v4275_v32, %v4274_v53  ;;  %6079 = vpow2.f32 %v4100_v7  ;;  %v3988_v61 = vmax.f32 %v3986_v25, %v3987_v30  ;;  %v3978_v60 = vrot.slane %v3977_v57, 2 }
 0x4ae   : > { %4501 = vperm.xlu0 %5732, %v4383_v8   ;;  %v4286_v2 = vrot.slane %v4285_v34, 1  ;;  %v4323_v26 = vsel %vm1498_vm9, %v8865_v5, 0.0  ;;  %v3996_v18 = vsel %vm1498_vm9, %v3784_v17, -inf }
 0x4af   : > { %v4277_v28 = vrot.slane %v4276_v6, 2  ;;  %v4038_v31 = vsub.f32 %v8844_v52, %v3988_v61  ;;  %v3979_v40 = vmax.f32 %v3977_v57, %v3978_v60  ;;  %v3997_v35 = vrot.slane %v3996_v18, 4 }
 0x4b0   : > { %v4287_v21 = vadd.f32 %v4286_v2, %v4285_v34  ;;  %v4324_v37 = vrot.slane %v4323_v26, 4 }
 0x4b1   : > { %v4278_v55 = vadd.f32 %v4277_v28, %v4276_v6  ;;  %v4098_v39 = vmul.f32 1.442695, %v4038_v31  ;;  %v3980_v14 = vrot.slane %v3979_v40, 1  ;;  %v3998_v41 = vmax.f32 %v3996_v18, %v3997_v35 }
 0x4b2   : > { %v6078_v63 = vpop.eup %6077  ;;  %6081 = vrcp.f32 %v4287_v21  ;;  %v4325_v23 = vadd.f32 %v4324_v37, %v4323_v26 }
 0x4b3   : > { %v6080_v38 = vpop.eup %6079  ;;  %v4388_v56 = vmul.f32 %v6078_v63, %v8832_v24  ;;  %v4279_v12 = vrot.slane %v4278_v55, 1  ;;  %6083 = vpow2.f32 %v4098_v39  ;;  %v3981_v22 = vmax.f32 %v3979_v40, %v3980_v14 }
 0x4b4   : > { %v4309_v52 = vsel %vm1498_vm9, %v6080_v38, 0.0  ;;  %v3999_v50 = vrot.slane %v3998_v41, 2  ;;  %v4326_v61 = vrot.slane %v4325_v23, 2 }
 0x4b5   : > { %4526 = vperm.xlu1 %5733, %v4388_v56   ;;  %v4280_v49 = vadd.f32 %v4279_v12, %v4278_v55  ;;  %v4310_v25 = vrot.slane %v4309_v52, 4  ;;  %v4037_v29 = vsub.f32 %v8851_v0, %v3981_v22 }
 0x4b6   : > { %v4000_v32 = vmax.f32 %v3998_v41, %v3999_v50  ;;  %v4327_v18 = vadd.f32 %v4326_v61, %v4325_v23 }
 0x4b7   : > { %6085 = vrcp.f32 %v4280_v49  ;;  %v4311_v20 = vadd.f32 %v4310_v25, %v4309_v52  ;;  %v4096_v53 = vmul.f32 1.442695, %v4037_v29 }
 0x4b8   : > { %v6082_v7 = vpop.eup %6081  ;;  %v4001_v34 = vrot.slane %v4000_v32, 1  ;;  %v4328_v56 = vrot.slane %v4327_v18, 1 }
 0x4b9   : > { %v6084_v24 = vpop.eup %6083  ;;  %v4387_v30 = vmul.f32 %v6082_v7, %v8848_v33  ;;  %v4312_v57 = vrot.slane %v4311_v20, 2  ;;  %6087 = vpow2.f32 %v4096_v53 }
 0x4ba   : > { %v4302_v8 = vsel %vm1498_vm9, %v6084_v24, 0.0  ;;  %v4002_v0 = vmax.f32 %v4000_v32, %v4001_v34  ;;  %v4329_v41 = vadd.f32 %v4328_v56, %v4327_v18 }
 0x4bb   : > { %4521 = vperm.xlu2 %5734, %v4387_v30   ;;  %v4313_v27 = vadd.f32 %v4312_v57, %v4311_v20  ;;  %v4303_v6 = vrot.slane %v4302_v8, 4  ;;  %v4397_v20 = vpop.permute.xlu2 %4396  ;;  %v4402_v57 = vpop.permute.xlu0 %4401 }
 0x4bc   : > { %v4040_v31 = vsub.f32 %v3784_v17, %v4002_v0  ;;  %v8883_v0 = vld [vmem:[%s9477_s3 + $0x1] ss:$0 sm:$0xff] }
 0x4bd   : > { %v6086_v60 = vpop.eup %6085  ;;  %v4314_v2 = vrot.slane %v4313_v27, 1  ;;  %v4304_v19 = vadd.f32 %v4303_v6, %v4302_v8 }
 0x4be   : > { %v4386_v28 = vmul.f32 %v6086_v60, %v8860_v51  ;;  %v4102_v55 = vmul.f32 1.442695, %v4040_v31 }
 0x4bf   : > { %v6088_v40 = vpop.eup %6087  ;;  %v4315_v21 = vadd.f32 %v4314_v2, %v4313_v27  ;;  %v4305_v26 = vrot.slane %v4304_v19, 2  ;;  %v3284_v2 = vld [vmem:[#allocation7 + $0x5e0] sm:$0xff] }
 0x4c0   : > { %4516 = vperm.xlu0 %5732, %v4386_v28   ;;  %v4295_v33 = vsel %vm1498_vm9, %v6088_v40, 0.0  ;;  %5011 = vmatpush.msra.mxu1 %v3284_v2  ;;  %v9781_v28 = vld [vmem:[#allocation17_spill] sm:$0xff] }
 0x4c1   : > { %6089 = vrcp.f32 %v4315_v21  ;;  %v4306_v39 = vadd.f32 %v4305_v26, %v4304_v19  ;;  %v4296_v14 = vrot.slane %v4295_v33, 4  ;;  %v3280_v19 = vld [vmem:[#allocation7 + $0x5c0] sm:$0xff]  ;;  %v3489_v31 = vadd.f32 %v8883_v0, %v9781_v28 }
 0x4c2   : > { %6091 = vpow2.f32 %v4102_v55  ;;  %v9782_v21 = vld [vmem:[#allocation19_spill] sm:$0xff]  ;;  %5012 = vmatpush.msra.mxu1 %v3280_v19 }
 0x4c3   : > { %v4307_v35 = vrot.slane %v4306_v39, 1  ;;  %v4297_v63 = vadd.f32 %v4296_v14, %v4295_v33  ;;  %v4417_v61 = vpop.permute.xlu2 %4416  ;;  %v3491_v26 = vadd.f32 %v8883_v0, %v9782_v21  ;;  %v4554_v18 = vmul.f32 %v4397_v20, %v3489_v31  ;;  %v9783_v14 = vld [vmem:[#allocation18_spill] sm:$0xff] }
 0x4c5   : > { %v4308_v12 = vadd.f32 %v4307_v35, %v4306_v39  ;;  %v4298_v22 = vrot.slane %v4297_v63, 2  ;;  %v9784_v35 = vld [vmem:[#allocation23_spill] sm:$0xff] }
 0x4c7   : > { %v6090_v52 = vpop.eup %6089  ;;  %6093 = vrcp.f32 %v4308_v12  ;;  %v4299_v51 = vadd.f32 %v4298_v22, %v4297_v63  ;;  %v3493_v63 = vadd.f32 %v8883_v0, %v9784_v35  ;;  %v4586_v22 = vrot.slane %v4554_v18, 4  ;;  %v3260_v35 = vld [vmem:[#allocation7 + $0x520] sm:$0xff] }
 0x4c8   : > { %v6092_v17 = vpop.eup %6091  ;;  %v4391_v37 = vmul.f32 %v6090_v52, %v6080_v38  ;;  %6095 = vrcp.f32 %v4329_v41  ;;  %v9785_v41 = vld [vmem:[#allocation20_spill] sm:$0xff] }
 0x4c9   : > { %v4300_v49 = vrot.slane %v4299_v51, 1  ;;  %v4316_v25 = vsel %vm1498_vm9, %v6092_v17, 0.0  ;;  %v4558_v52 = vmul.f32 %v4417_v61, %v3493_v63  ;;  %v4587_v20 = vadd.f32 %v4586_v22, %v4554_v18  ;;  %v3256_v63 = vld [vmem:[#allocation7 + $0x500] sm:$0xff] }
 0x4ca   : > { %4541 = vperm.xlu1 %5733, %v4391_v37   ;;  %v4317_v29 = vrot.slane %v4316_v25, 4 }
 0x4cb   : > { %v4301_v50 = vadd.f32 %v4300_v49, %v4299_v51  ;;  %v4432_v56 = vpop.permute.xlu2 %4431  ;;  %v3492_v49 = vadd.f32 %v8883_v0, %v9785_v41  ;;  %v4588_v19 = vrot.slane %v4587_v20, 2 }
 0x4cc   : > { %v4318_v53 = vadd.f32 %v4317_v29, %v4316_v25  ;;  %v3276_v25 = vld [vmem:[#allocation7 + $0x5a0] sm:$0xff] }
 0x4cd   : > { %v6094_v7 = vpop.eup %6093  ;;  %6097 = vrcp.f32 %v4301_v50  ;;  %v3272_v29 = vld [vmem:[#allocation7 + $0x580] sm:$0xff]  ;;  %5013 = vmatpush.msra.mxu1 %v3276_v25 }
 0x4ce   : > { %v4390_v23 = vmul.f32 %v6094_v7, %v6084_v24  ;;  %v4319_v32 = vrot.slane %v4318_v53, 2  ;;  %v6096_v8 = vpop.eup %6095  ;;  %v4407_v24 = vpop.permute.xlu1 %4406  ;;  %v9786_v7 = vld [vmem:[#allocation21_spill] sm:$0xff] }
 0x4cf   : > { %v4393_v60 = vmul.f32 %v6096_v8, %v8865_v5  ;;  %v4556_v39 = vmul.f32 %v4407_v24, %v3491_v26  ;;  %v3490_v5 = vadd.f32 %v8883_v0, %v9783_v14  ;;  %v9787_v8 = vld [vmem:[#allocation22_spill] sm:$0xff]  ;;  %5014 = vmatpush.msra.mxu1 %v3272_v29  ;;  %v4589_v14 = vadd.f32 %v4588_v19, %v4587_v20  ;;  %v3248_v29 = vld [vmem:[#allocation7 + $0x4c0] sm:$0xff] }
 0x4d0   : > { %4536 = vperm.xlu2 %5734, %v4390_v23   ;;  %v4320_v30 = vadd.f32 %v4319_v32, %v4318_v53  ;;  %v4610_v53 = vrot.slane %v4558_v52, 4  ;;  %v3494_v23 = vadd.f32 %v8883_v0, %v9786_v7 }
 0x4d1   : > { %v4555_v12 = vmul.f32 %v4402_v57, %v3490_v5  ;;  %v4598_v37 = vrot.slane %v4556_v39, 4 }
 0x4d2   : > { %v4321_v34 = vrot.slane %v4320_v30, 1  ;;  %v4611_v28 = vadd.f32 %v4610_v53, %v4558_v52 }
 0x4d3   : > { %v6098_v38 = vpop.eup %6097  ;;  %v4599_v57 = vadd.f32 %v4598_v37, %v4556_v39  ;;  %v4447_v21 = vpop.permute.xlu2 %4446  ;;  %v3252_v37 = vld [vmem:[#allocation7 + $0x4e0] sm:$0xff] }
 0x4d4   : > { %v4389_v27 = vmul.f32 %v6098_v38, %v6088_v40  ;;  %v4322_v6 = vadd.f32 %v4321_v34, %v4320_v30  ;;  %v4412_v40 = vpop.permute.xlu0 %4411  ;;  %v3268_v30 = vld [vmem:[#allocation7 + $0x560] sm:$0xff]  ;;  %v3495_v34 = vadd.f32 %v8883_v0, %v9787_v8  ;;  %v4612_v5 = vrot.slane %v4611_v28, 2 }
 0x4d5   : > { %v4557_v50 = vmul.f32 %v4412_v40, %v3492_v49  ;;  %5015 = vmatpush.msra.mxu1 %v3268_v30  ;;  %v4600_v40 = vrot.slane %v4599_v57, 2  ;;  %v4590_v49 = vrot.slane %v4589_v14, 1  ;;  %v3244_v30 = vld [vmem:[#allocation7 + $0x4a0] sm:$0xff] }
 0x4d6   : > { %4531 = vperm.xlu0 %5732, %v4389_v27   ;;  %6099 = vrcp.f32 %v4322_v6  ;;  %v4422_v51 = vpop.permute.xlu1 %4421  ;;  %v3264_v27 = vld [vmem:[#allocation7 + $0x540] sm:$0xff]  ;;  %v9788_v6 = vld [vmem:[#allocation24_spill] sm:$0xff]  ;;  %v4613_v25 = vadd.f32 %v4612_v5, %v4611_v28 }
 0x4d7   : > { %v4559_v38 = vmul.f32 %v4422_v51, %v3494_v23  ;;  %v3496_v61 = vadd.f32 %v8883_v0, %v9788_v6  ;;  %v4604_v24 = vrot.slane %v4557_v50, 4  ;;  %5016 = vmatpush.msra.mxu1 %v3264_v27  ;;  %v8904_v8 = vadd.f32 %v4590_v49, %v4589_v14  ;;  %v3240_v27 = vld [vmem:[#allocation7 + $0x480] sm:$0xff] }
 0x4d8   : > { %4551 = vperm.xlu2 %5734, %v4393_v60  }
 0x4d9   : > { %v4561_v31 = vmul.f32 %v4432_v56, %v3496_v61  ;;  %v4616_v26 = vrot.slane %v4559_v38, 4  ;;  %5017 = vmatpush.msra.mxu1 %v3260_v35  ;;  %vm4778_vm9 = vcmp.gt.f32.partialorder %v8904_v8, 0.0 }
 0x4db   : > { %v4628_v22 = vrot.slane %v4561_v31, 4  ;;  %v4617_v51 = vadd.f32 %v4616_v26, %v4559_v38  ;;  %5018 = vmatpush.msra.mxu1 %v3256_v63  ;;  %v4462_v7 = vpop.permute.xlu2 %4461  ;;  %v4810_v26 = vmul.f32 1.442695, %v8904_v8 }
 0x4dc   : > { %v6100_v33 = vpop.eup %6099  ;;  %v4427_v32 = vpop.permute.xlu0 %4426 }
 0x4dd   : > { %v4392_v55 = vmul.f32 %v6100_v33, %v6092_v17  ;;  %v4592_v17 = vrot.slane %v4555_v12, 4  ;;  %v4560_v2 = vmul.f32 %v4427_v32, %v3495_v34  ;;  %5019 = vmatpush.msra.mxu1 %v3252_v37  ;;  %v4614_v34 = vrot.slane %v4613_v25, 1 }
 0x4de   : > { %v4437_v33 = vpop.permute.xlu1 %4436  ;;  %v3502_v37 = vadd.f32 %v8883_v0, %v8198_v62  ;;  %6101 = vpow2.f32 %v4810_v26 }
 0x4df   : > { %4546 = vperm.xlu0 %5732, %v4392_v55   ;;  %v4593_v60 = vadd.f32 %v4592_v17, %v4555_v12  ;;  %v4605_v55 = vadd.f32 %v4604_v24, %v4557_v50  ;;  %v4622_v39 = vrot.slane %v4560_v2, 4  ;;  %v4601_v12 = vadd.f32 %v4600_v40, %v4599_v57  ;;  %5020 = vmatpush.msra.mxu1 %v3248_v29  ;;  %v9789_v40 = vld [vmem:[#allocation25_spill] sm:$0xff] }
 0x4e0   : > { %v4629_v17 = vadd.f32 %v4628_v22, %v4561_v31  ;;  %v4618_v50 = vrot.slane %v4617_v51, 2  ;;  %v3499_v57 = vadd.f32 %v8883_v0, %v8088_v58  ;;  %v3497_v58 = vadd.f32 %v8883_v0, %v9789_v40 }
 0x4e1   : > { %v4594_v18 = vrot.slane %v4593_v60, 2  ;;  %v4606_v52 = vrot.slane %v4605_v55, 2  ;;  %v4623_v56 = vadd.f32 %v4622_v39, %v4560_v2  ;;  %v4602_v53 = vrot.slane %v4601_v12, 1  ;;  %5021 = vmatpush.msra.mxu1 %v3244_v30  ;;  %v3236_v2 = vld [vmem:[#allocation7 + $0x460] sm:$0xff] }
 0x4e2   : > { %v4630_v6 = vrot.slane %v4629_v17, 2  ;;  %v4619_v24 = vadd.f32 %v4618_v50, %v4617_v51  ;;  %v4562_v35 = vmul.f32 %v4437_v33, %v3497_v58  ;;  %v4567_v33 = vmul.f32 %v4462_v7, %v3502_v37 }
 0x4e3   : > { %v4595_v41 = vadd.f32 %v4594_v18, %v4593_v60  ;;  %v4607_v23 = vadd.f32 %v4606_v52, %v4605_v55  ;;  %v4624_v32 = vrot.slane %v4623_v56, 2  ;;  %v8906_v61 = vadd.f32 %v4602_v53, %v4601_v12  ;;  %5022 = vmatpush.msra.mxu1 %v3240_v27  ;;  %v3232_v55 = vld [vmem:[#allocation7 + $0x440] sm:$0xff]  ;;  %v9790_v53 = vld [vmem:[#allocation26_spill] sm:$0xff] }
 0x4e4   : > { %v4564_v60 = vmul.f32 %v4447_v21, %v3499_v57  ;;  %v8913_v18 = vadd.f32 %v4614_v34, %v4613_v25  ;;  %v4631_v39 = vadd.f32 %v4630_v6, %v4629_v17  ;;  %v4620_v5 = vrot.slane %v4619_v24, 1  ;;  %v4442_v51 = vpop.permute.xlu0 %4441  ;;  %v6102_v34 = vpop.eup %6101 }
 0x4e5   : > { %v4596_v20 = vrot.slane %v4595_v41, 1  ;;  %v4608_v28 = vrot.slane %v4607_v23, 1  ;;  %v4625_v31 = vadd.f32 %v4624_v32, %v4623_v56  ;;  %v4814_v14 = vmul.f32 1.442695, %v8906_v61  ;;  %5023 = vmatpush.msra.mxu1 %v3236_v2  ;;  %v4477_v56 = vpop.permute.xlu2 %4476 }
 0x4e6   : > { %v4452_v38 = vpop.permute.xlu1 %4451  ;;  %v4646_v21 = vrot.slane %v4564_v60, 4  ;;  %v4632_v52 = vrot.slane %v4631_v39, 1  ;;  %v8922_v25 = vadd.f32 %v4620_v5, %v4619_v24  ;;  %v4634_v29 = vrot.slane %v4562_v35, 4 }
 0x4e7   : > { %v8908_v19 = vadd.f32 %v4596_v20, %v4595_v41  ;;  %v8917_v22 = vadd.f32 %v4608_v28, %v4607_v23  ;;  %v4626_v12 = vrot.slane %v4625_v31, 1  ;;  %5024 = vmatpush.msra.mxu1 %v3232_v55  ;;  %v4818_v41 = vmul.f32 1.442695, %v8913_v18 }
 0x4e8   : > { %6103 = vpow2.f32 %v4814_v14  ;;  %v4647_v49 = vadd.f32 %v4646_v21, %v4564_v60  ;;  %v3500_v50 = vadd.f32 %v8883_v0, %v9790_v53  ;;  %v3498_v23 = vadd.f32 %v8883_v0, %v8070_v10 }
 0x4e9   : > { %v4812_v63 = vmul.f32 1.442695, %v8908_v19  ;;  %v4816_v20 = vmul.f32 1.442695, %v8917_v22  ;;  %v8929_v62 = vadd.f32 %v4626_v12, %v4625_v31  ;;  %v3501_v32 = vadd.f32 %v8883_v0, %v8146_v9 }
 0x4ea   : > { %v3503_v7 = vadd.f32 %v8883_v0, %v8245_v59  ;;  %v8937_v30 = vadd.f32 %v4632_v52, %v4631_v39  ;;  %v4565_v57 = vmul.f32 %v4452_v38, %v3500_v50  ;;  %v4648_v27 = vrot.slane %v4647_v49, 2 }
 0x4eb   : > { %6105 = vpow2.f32 %v4812_v63  ;;  %v4820_v6 = vmul.f32 1.442695, %v8922_v25  ;;  %v4664_v60 = vrot.slane %v4567_v33, 4  ;;  %v4635_v24 = vadd.f32 %v4634_v29, %v4562_v35 }
 0x4ec   : > { %6107 = vpow2.f32 %v4818_v41  ;;  %v8942_v10 = vadd.f32 %v8883_v0, %v8284_v44  ;;  %v4822_v9 = vmul.f32 1.442695, %v8929_v62  ;;  %v4563_v28 = vmul.f32 %v4442_v51, %v3498_v23  ;;  %v4457_v39 = vpop.permute.xlu0 %4456 }
 0x4ed   : > { %6109 = vpow2.f32 %v4816_v20  ;;  %v3505_v59 = vadd.f32 %v8883_v0, %v8320_v16  ;;  %v3506_v38 = vadd.f32 %v8883_v0, %v8331_v13  ;;  %v8951_v31 = vadd.f32 %v8883_v0, %v8342_v54 }
 0x4ee   : > { %v8924_v17 = vpop.permute.xlu1 %4466  ;;  %v6104_v2 = vpop.eup %6103  ;;  %v8955_v40 = vadd.f32 %v8883_v0, %v8345_v1  ;;  %v8959_v58 = vadd.f32 %v8883_v0, %v8351_v3  ;;  %v5606_v26 = vadd.f32 -1.0, %v6102_v34  ;;  %v4824_v55 = vmul.f32 1.442695, %v8937_v30 }
 0x4ef   : > { %v4652_v16 = vrot.slane %v4565_v57, 4  ;;  %v4649_v13 = vadd.f32 %v4648_v27, %v4647_v49  ;;  %6111 = vpow2.f32 %v4820_v6  ;;  %v4665_v21 = vadd.f32 %v4664_v60, %v4567_v33 }
 0x4f0   : > { %v4636_v54 = vrot.slane %v4635_v24, 2  ;;  %v5608_v5 = vadd.f32 -1.0, %v6104_v2  ;;  %6113 = vpow2.f32 %v4822_v9  ;;  %v4640_v35 = vrot.slane %v4563_v28, 4 }
 0x4f1   : > { %v6106_v44 = vpop.eup %6105  ;;  %v4492_v1 = vpop.permute.xlu2 %4491  ;;  %vm4782_vm7 = vcmp.gt.f32.partialorder %v8913_v18, 0.0  ;;  %vm4780_vm8 = vcmp.gt.f32.partialorder %v8906_v61, 0.0  ;;  %v4566_v63 = vmul.f32 %v4457_v39, %v3501_v32  ;;  %6115 = vpow2.f32 %v4824_v55  ;;  %v3224_v55 = vld [vmem:[#allocation7 + $0x400] sm:$0xff] }
 0x4f2   : > { %v6108_v14 = vpop.eup %6107  ;;  %v5607_v3 = vadd.f32 -1.0, %v6106_v44  ;;  %v4570_v41 = vmul.f32 %v4477_v56, %v3505_v59  ;;  %v4653_v52 = vadd.f32 %v4652_v16, %v4565_v57  ;;  %v4906_v49 = vsel %vm4778_vm9, %v8904_v8, %v5606_v26 }
 0x4f3   : > { %v6110_v51 = vpop.eup %6109  ;;  %v5610_v37 = vadd.f32 -1.0, %v6108_v14  ;;  %v4650_v33 = vrot.slane %v4649_v13, 1  ;;  %v4666_v29 = vrot.slane %v4665_v21, 2  ;;  %v8966_v53 = vadd.f32 %v4636_v54, %v4635_v24 }
 0x4f4   : > { %v4908_v50 = vsel %vm4780_vm8, %v8906_v61, %v5608_v5  ;;  %vm4779_vm10 = vcmp.gt.f32.partialorder %v8908_v19, 0.0  ;;  %v4641_v20 = vadd.f32 %v4640_v35, %v4563_v28  ;;  %vm4783_vm11 = vcmp.gt.f32.partialorder %v8922_v25, 0.0 }
 0x4f5   : > { %v6112_v34 = vpop.eup %6111  ;;  %v4907_v32 = vsel %vm4779_vm10, %v8908_v19, %v5607_v3  ;;  %v5609_v27 = vadd.f32 -1.0, %v6110_v51  ;;  %v4658_v56 = vrot.slane %v4566_v63, 4  ;;  %v4910_v8 = vsel %vm4782_vm7, %v8913_v18, %v5610_v37  ;;  %v3228_v18 = vld [vmem:[#allocation7 + $0x420] sm:$0xff] }
 0x4f6   : > { %v4482_v12 = vpop.permute.xlu1 %4481  ;;  %v6114_v57 = vpop.eup %6113  ;;  %v4682_v6 = vrot.slane %v4570_v41, 4  ;;  %v4654_v60 = vrot.slane %v4653_v52, 2  ;;  %v4568_v61 = vmul.f32 %v8924_v17, %v3503_v7  ;;  %v8976_v24 = vadd.f32 %v4650_v33, %v4649_v13  ;;  %5025 = vmatpush.msra.mxu1 %v3228_v18 }
 0x4f7   : > { %v4571_v23 = vmul.f32 %v4482_v12, %v3506_v38  ;;  %v8978_v2 = vadd.f32 %v4666_v29, %v4665_v21  ;;  %vm4781_vm12 = vcmp.gt.f32.partialorder %v8917_v22, 0.0  ;;  %v4638_v19 = vrot.slane %v8966_v53, 1  ;;  %v6116_v9 = vpop.eup %6115 }
 0x4f8   : > { %v4970_v28 = vsel %vm883_vm0, %v4907_v32, %v4906_v49  ;;  %v5611_v59 = vadd.f32 -1.0, %v6112_v34  ;;  %v4642_v38 = vrot.slane %v4641_v20, 2  ;;  %v4909_v16 = vsel %vm4781_vm12, %v8917_v22, %v5609_v27  ;;  %5026 = vmatpush.msra.mxu1 %v3224_v55 }
 0x4f9   : > { %v4688_v44 = vrot.slane %v4571_v23, 4  ;;  %v4659_v17 = vadd.f32 %v4658_v56, %v4566_v63  ;;  %v5612_v39 = vadd.f32 -1.0, %v6114_v57  ;;  %v4683_v14 = vadd.f32 %v4682_v6, %v4570_v41 }
 0x4fa   : > { %v4655_v13 = vadd.f32 %v4654_v60, %v4653_v52  ;;  %v4573_v21 = vmul.f32 %v4492_v1, %v8951_v31  ;;  %v4670_v54 = vrot.slane %v4568_v61, 4  ;;  %vm4784_vm13 = vcmp.gt.f32.partialorder %v8929_v62, 0.0 }
 0x4fb   : > { %v4472_v26 = vpop.permute.xlu0 %4471  ;;  %v5613_v3 = vadd.f32 -1.0, %v6116_v9  ;;  %v4971_v12 = vsel %vm886_vm1, %v4908_v50, %v4970_v28  ;;  %v4643_v51 = vadd.f32 %v4642_v38, %v4641_v20  ;;  %v4689_v22 = vadd.f32 %v4688_v44, %v4571_v23 }
 0x4fc   : > { %v4569_v7 = vmul.f32 %v4472_v26, %v8942_v10  ;;  %v4912_v63 = vsel %vm4784_vm13, %v8929_v62, %v5612_v39  ;;  %v4972_v10 = vsel %vm889_vm2, %v4909_v16, %v4971_v12  ;;  %v4660_v41 = vrot.slane %v4659_v17, 2 }
 0x4fd   : > { %v4911_v31 = vsel %vm4783_vm11, %v8922_v25, %v5611_v59  ;;  %v4973_v1 = vsel %vm892_vm3, %v4910_v8, %v4972_v10  ;;  %v4684_v52 = vrot.slane %v4683_v14, 2  ;;  %vm4785_vm14 = vcmp.gt.f32.partialorder %v8937_v30, 0.0 }
 0x4fe   : > { %v4676_v35 = vrot.slane %v4569_v7, 4  ;;  %v4974_v33 = vsel %vm895_vm4, %v4911_v31, %v4973_v1  ;;  %v4656_v50 = vrot.slane %v4655_v13, 1  ;;  %v4671_v62 = vadd.f32 %v4670_v54, %v4568_v61 }
 0x4ff   : > { %v4913_v20 = vsel %vm4785_vm14, %v8937_v30, %v5613_v3  ;;  %v4700_v23 = vrot.slane %v4573_v21, 4  ;;  %v4644_v34 = vrot.slane %v4643_v51, 1  ;;  %v4661_v27 = vadd.f32 %v4660_v41, %v4659_v17 }
 0x500   : > { %v4677_v49 = vadd.f32 %v4676_v35, %v4569_v7  ;;  %v4690_v56 = vrot.slane %v4689_v22, 2  ;;  %v4830_v8 = vmul.f32 1.442695, %v8976_v24  ;;  %v9006_v6 = vadd.f32 %v4638_v19, %v8966_v53 }
 0x501   : > { %v4507_v5 = vpop.permute.xlu2 %4506  ;;  %v4685_v30 = vadd.f32 %v4684_v52, %v4683_v14  ;;  %v4668_v61 = vrot.slane %v8978_v2, 1  ;;  %v9009_v9 = vadd.f32 %v4656_v50, %v4655_v13  ;;  %v4672_v28 = vrot.slane %v4671_v62, 2 }
 0x502   : > { %v4576_v37 = vmul.f32 %v4507_v5, %v8959_v58  ;;  %v4975_v58 = vsel %vm898_vm5, %v4912_v63, %v4974_v33  ;;  %v4678_v60 = vrot.slane %v4677_v49, 2  ;;  %v3507_v59 = vadd.f32 %v8883_v0, %v8339_v45 }
 0x503   : > { %v9000_v32 = vsel %vm901_vm6, %v4913_v20, %v4975_v58  ;;  %v4701_v38 = vadd.f32 %v4700_v23, %v4573_v21  ;;  %v9013_v44 = vadd.f32 %v4644_v34, %v4643_v51  ;;  %v4691_v18 = vadd.f32 %v4690_v56, %v4689_v22 }
 0x504   : > { %v4497_v29 = vpop.permute.xlu1 %4496  ;;  %v4718_v25 = vrot.slane %v4576_v37, 4  ;;  %5027 = vmatmul.f32.vlgmr.msra.gmra.mxu1 %v9000_v32  ;;  %6117 = vpow2.f32 %v4830_v8  ;;  %v4826_v53 = vmul.f32 1.442695, %v9006_v6  ;;  %v4686_v19 = vrot.slane %v4685_v30, 1 }
 0x505   : > { %v4574_v57 = vmul.f32 %v4497_v29, %v8955_v40  ;;  %v4662_v40 = vrot.slane %v4661_v27, 1  ;;  %v4679_v16 = vadd.f32 %v4678_v60, %v4677_v49  ;;  %v9018_v17 = vadd.f32 %v8883_v0, %v8348_v36 }
 0x506   : > { %v4719_v26 = vadd.f32 %v4718_v25, %v4576_v37  ;;  %v9021_v7 = vadd.f32 %v4668_v61, %v8978_v2  ;;  %v4832_v45 = vmul.f32 1.442695, %v9009_v9  ;;  %v4673_v39 = vadd.f32 %v4672_v28, %v4671_v62  ;;  %v9791_v62 = vld [vmem:[#allocation31_spill] sm:$0xff] }
 0x507   : > { %v4706_v55 = vrot.slane %v4574_v57, 4  ;;  %v3512_v14 = vadd.f32 %v8883_v0, %v8354_v11  ;;  %v9028_v13 = vadd.f32 %v8883_v0, %v8357_v15  ;;  %v4702_v21 = vrot.slane %v4701_v38, 2 }
 0x508   : > { %v4828_v54 = vmul.f32 1.442695, %v9013_v44  ;;  %v4720_v5 = vrot.slane %v4719_v26, 2  ;;  %v9031_v35 = vadd.f32 %v4662_v40, %v4661_v27  ;;  %v4692_v36 = vrot.slane %v4691_v18, 1 }
 0x509   : > { %v4707_v3 = vadd.f32 %v4706_v55, %v4574_v57  ;;  %v9035_v2 = vadd.f32 %v8883_v0, %v8360_v42  ;;  %6119 = vpow2.f32 %v4826_v53  ;;  %v9037_v12 = vadd.f32 %v4686_v19, %v4685_v30 }
 0x50a   : > { %v4680_v11 = vrot.slane %v4679_v16, 1  ;;  %v9041_v15 = vadd.f32 %v8883_v0, %v8363_v4  ;;  %v4836_v51 = vmul.f32 1.442695, %v9021_v7  ;;  %6121 = vpow2.f32 %v4832_v45  ;;  %v6118_v63 = vpop.eup %6117 }
 0x50b   : > { %v4674_v22 = vrot.slane %v4673_v39, 1  ;;  %v9046_v10 = vadd.f32 %v8883_v0, %v8370_v47  ;;  %v9050_v42 = vadd.f32 %v8883_v0, %v8381_v48  ;;  %v4703_v37 = vadd.f32 %v4702_v21, %v4701_v38 }
 0x50c   : > { %6123 = vpow2.f32 %v4828_v54  ;;  %v4721_v41 = vadd.f32 %v4720_v5, %v4719_v26  ;;  %v4834_v31 = vmul.f32 1.442695, %v9031_v35  ;;  %v9053_v4 = vadd.f32 %v4692_v36, %v4691_v18 }
 0x50d   : > { %v4708_v1 = vrot.slane %v4707_v3, 2  ;;  %v4487_v52 = vpop.permute.xlu0 %4486  ;;  %v4842_v33 = vmul.f32 1.442695, %v9037_v12  ;;  %v9056_v29 = vadd.f32 %v4680_v11, %v4679_v16  ;;  %v9060_v48 = vadd.f32 %v8883_v0, %v9791_v62 }
 0x50e   : > { %v4572_v47 = vmul.f32 %v4487_v52, %v3507_v59  ;;  %v5616_v20 = vadd.f32 -1.0, %v6118_v63  ;;  %6125 = vpow2.f32 %v4836_v51  ;;  %v9062_v58 = vadd.f32 %v4674_v22, %v4673_v39 }
 0x50f   : > { %v6120_v23 = vpop.eup %6119  ;;  %vm4788_vm15 = vcmp.gt.f32.partialorder %v8976_v24, 0.0  ;;  %v4704_v34 = vrot.slane %v4703_v37, 1  ;;  %v4722_v8 = vrot.slane %v4721_v41, 1  ;;  %6127 = vpow2.f32 %v4834_v31 }
 0x510   : > { %v4694_v27 = vrot.slane %v4572_v47, 4  ;;  %v6122_v57 = vpop.eup %6121  ;;  %v4844_v30 = vmul.f32 1.442695, %v9053_v4  ;;  %v4709_v60 = vadd.f32 %v4708_v1, %v4707_v3  ;;  %6129 = vpow2.f32 %v4842_v33 }
 0x511   : > { %v4840_v28 = vmul.f32 1.442695, %v9056_v29  ;;  %v9068_v26 = vsel %vm4788_vm15, %v8976_v24, %v5616_v20  ;;  %vm4786_vm9 = vcmp.gt.f32.partialorder %v9006_v6, 0.0  ;;  %v5614_v40 = vadd.f32 -1.0, %v6120_v23 }
 0x512   : > { %v6124_v61 = vpop.eup %6123  ;;  %v4695_v59 = vadd.f32 %v4694_v27, %v4572_v47  ;;  %v4838_v18 = vmul.f32 1.442695, %v9062_v58  ;;  %vm4789_vm7 = vcmp.gt.f32.partialorder %v9009_v9, 0.0  ;;  %v9073_v55 = vadd.f32 %v4704_v34, %v4703_v37 }
 0x513   : > { %v4512_v49 = vpop.permute.xlu1 %4511  ;;  %v5617_v45 = vadd.f32 -1.0, %v6122_v57  ;;  %v9075_v39 = vadd.f32 %v4722_v8, %v4721_v41  ;;  %6131 = vpow2.f32 %v4844_v30  ;;  %v5615_v24 = vadd.f32 -1.0, %v6124_v61 }
 0x514   : > { %v4577_v50 = vmul.f32 %v4512_v49, %v3512_v14  ;;  %v4696_v53 = vrot.slane %v4695_v59, 2  ;;  %v6126_v16 = vpop.eup %6125  ;;  %v4710_v14 = vrot.slane %v4709_v60, 1  ;;  %6133 = vpow2.f32 %v4840_v28 }
 0x515   : > { %v4522_v25 = vpop.permute.xlu2 %4521  ;;  %v6128_v36 = vpop.eup %6127  ;;  %v4914_v3 = vsel %vm4786_vm9, %v9006_v6, %v5614_v40  ;;  %6135 = vpow2.f32 %v4838_v18  ;;  %v5619_v63 = vadd.f32 -1.0, %v6126_v16  ;;  %v4848_v37 = vmul.f32 1.442695, %v9073_v55 }
 0x516   : > { %v4724_v56 = vrot.slane %v4577_v50, 4  ;;  %v4697_v54 = vadd.f32 %v4696_v53, %v4695_v59  ;;  %v4579_v11 = vmul.f32 %v4522_v25, %v9035_v2  ;;  %v6130_v22 = vpop.eup %6129  ;;  %vm4791_vm8 = vcmp.gt.f32.partialorder %v9021_v7, 0.0 }
 0x517   : > { %vm4787_vm10 = vcmp.gt.f32.partialorder %v9013_v44, 0.0  ;;  %v4854_v52 = vmul.f32 1.442695, %v9075_v39  ;;  %v9086_v49 = vadd.f32 %v4710_v14, %v4709_v60  ;;  %v5618_v33 = vadd.f32 -1.0, %v6128_v36 }
 0x518   : > { %v4725_v38 = vadd.f32 %v4724_v56, %v4577_v50  ;;  %v4698_v41 = vrot.slane %v4697_v54, 1  ;;  %v4915_v2 = vsel %vm4787_vm10, %v9013_v44, %v5615_v24  ;;  %v9094_v20 = vadd.f32 -1.0, %v6130_v22 }
 0x519   : > { %v6132_v62 = vpop.eup %6131  ;;  %v4736_v23 = vrot.slane %v4579_v11, 4  ;;  %6137 = vpow2.f32 %v4848_v37  ;;  %vm4790_vm11 = vcmp.gt.f32.partialorder %v9031_v35, 0.0  ;;  %v4977_v57 = vsel %vm883_vm0, %v4915_v2, %v4914_v3 }
 0x51a   : > { %v4726_v19 = vrot.slane %v4725_v38, 2  ;;  %v9092_v50 = vadd.f32 %v4698_v41, %v4697_v54  ;;  %v6134_v27 = vpop.eup %6133  ;;  %6139 = vpow2.f32 %v4854_v52  ;;  %vm4795_vm12 = vcmp.gt.f32.partialorder %v9053_v4, 0.0 }
 0x51b   : > { %v6136_v44 = vpop.eup %6135  ;;  %v4850_v8 = vmul.f32 1.442695, %v9086_v49  ;;  %v5623_v61 = vadd.f32 -1.0, %v6132_v62  ;;  %v4737_v59 = vadd.f32 %v4736_v23, %v4579_v11  ;;  %v5621_v18 = vadd.f32 -1.0, %v6134_v27 }
 0x51c   : > { %v4727_v5 = vadd.f32 %v4726_v19, %v4725_v38  ;;  %v4846_v56 = vmul.f32 1.442695, %v9092_v50  ;;  %v5620_v16 = vadd.f32 -1.0, %v6136_v44  ;;  %vm4793_vm13 = vcmp.gt.f32.partialorder %v9056_v29, 0.0 }
 0x51d   : > { %vm4792_vm14 = vcmp.gt.f32.partialorder %v9062_v58, 0.0  ;;  %vm4796_vm15 = vcmp.gt.f32.partialorder %v9092_v50, 0.0  ;;  %vm4794_vm9 = vcmp.gt.f32.partialorder %v9037_v12, 0.0 }
 0x51e   : > { %v4728_v31 = vrot.slane %v4727_v5, 1  ;;  %6141 = vpow2.f32 %v4846_v56  ;;  %v4920_v41 = vsel %vm4792_vm14, %v9062_v58, %v5620_v16  ;;  %v4922_v23 = vsel %vm4794_vm9, %v9037_v12, %v9094_v20 }
 0x51f   : > { %6143 = vpow2.f32 %v4850_v8  ;;  %v6138_v24 = vpop.eup %6137 }
 0x520   : > { %v4502_v21 = vpop.permute.xlu0 %4501  ;;  %v6140_v36 = vpop.eup %6139 }
 0x521   : > { %v4575_v51 = vmul.f32 %v4502_v21, %v9018_v17  ;;  %v4917_v17 = vsel %vm4789_vm7, %v9009_v9, %v5617_v45  ;;  %v9099_v9 = vadd.f32 %v4728_v31, %v4727_v5  ;;  %v4978_v45 = vsel %vm886_vm1, %v9068_v26, %v4977_v57 }
 0x522   : > { %vm4797_vm7 = vcmp.gt.f32.partialorder %v9073_v55, 0.0 }
 0x523   : > { %v4712_v6 = vrot.slane %v4575_v51, 4  ;;  %v4856_v53 = vmul.f32 1.442695, %v9099_v9 }
 0x524   : > { %v6142_v11 = vpop.eup %6141 }
 0x525   : > { %v4713_v34 = vadd.f32 %v4712_v6, %v4575_v51  ;;  %v4738_v51 = vrot.slane %v4737_v59, 2  ;;  %6145 = vpow2.f32 %v4856_v53  ;;  %v5624_v31 = vadd.f32 -1.0, %v6142_v11  ;;  %v6144_v2 = vpop.eup %6143 }
 0x526   : > { %v5626_v44 = vadd.f32 -1.0, %v6144_v2 }
 0x527   : > { %v4527_v1 = vpop.permute.xlu1 %4526  ;;  %v4714_v30 = vrot.slane %v4713_v34, 2  ;;  %v4924_v62 = vsel %vm4796_vm15, %v9092_v50, %v5624_v31  ;;  %v3516_v50 = vadd.f32 %v8883_v0, %v8367_v43 }
 0x528   : > { %v4580_v25 = vmul.f32 %v4527_v1, %v9041_v15  ;;  %v4918_v15 = vsel %vm4790_vm11, %v9031_v35, %v5618_v33  ;;  %v4979_v35 = vsel %vm889_vm2, %v4917_v17, %v4978_v45  ;;  %vm4800_vm11 = vcmp.gt.f32.partialorder %v9075_v39, 0.0 }
 0x529   : > { %v4715_v38 = vadd.f32 %v4714_v30, %v4713_v34  ;;  %v4980_v5 = vsel %vm892_vm3, %v4918_v15, %v4979_v35  ;;  %v4739_v34 = vadd.f32 %v4738_v51, %v4737_v59  ;;  %v3285_v30 = vld [vmem:[#allocation7 + $0x5e8] sm:$0xff]  ;;  %v5628_v59 = vadd.f32 -1.0, %v6140_v36 }
 0x52a   : > { %v4537_v47 = vpop.permute.xlu2 %4536  ;;  %v4742_v40 = vrot.slane %v4580_v25, 4  ;;  %5069 = vmatpush.msrb.mxu1 %v3285_v30 }
 0x52b   : > { %v4582_v14 = vmul.f32 %v4537_v47, %v9046_v10  ;;  %v4716_v21 = vrot.slane %v4715_v38, 1  ;;  %v4921_v10 = vsel %vm4793_vm13, %v9056_v29, %v5621_v18  ;;  %v4923_v29 = vsel %vm4795_vm12, %v9053_v4, %v5623_v61  ;;  %v6146_v27 = vpop.eup %6145 }
 0x52c   : > { %v4743_v37 = vadd.f32 %v4742_v40, %v4580_v25  ;;  %v5625_v47 = vadd.f32 -1.0, %v6138_v24  ;;  %v4740_v61 = vrot.slane %v4739_v34, 1  ;;  %v5629_v53 = vadd.f32 -1.0, %v6146_v27 }
 0x52d   : > { %v9116_v3 = vadd.f32 %v4716_v21, %v4715_v38  ;;  %v4754_v6 = vrot.slane %v4582_v14, 4  ;;  %v3277_v38 = vld [vmem:[#allocation7 + $0x5a8] sm:$0xff]  ;;  %vm4801_vm12 = vcmp.gt.f32.partialorder %v9099_v9, 0.0 }
 0x52e   : > { %v4744_v4 = vrot.slane %v4743_v37, 2  ;;  %v4925_v12 = vsel %vm4797_vm7, %v9073_v55, %v5625_v47  ;;  %v3273_v55 = vld [vmem:[#allocation7 + $0x588] sm:$0xff] }
 0x52f   : > { %v4755_v57 = vadd.f32 %v4754_v6, %v4582_v14  ;;  %vm4799_vm10 = vcmp.gt.f32.partialorder %v9116_v3, 0.0 }
 0x530   : > { %v4745_v20 = vadd.f32 %v4744_v4, %v4743_v37 }
 0x531   : > { %v4756_v43 = vrot.slane %v4755_v57, 2 }
 0x532   : > { %v4517_v60 = vpop.permute.xlu0 %4516  ;;  %v4552_v22 = vpop.permute.xlu2 %4551  ;;  %v4746_v14 = vrot.slane %v4745_v20, 1 }
 0x533   : > { %v4578_v28 = vmul.f32 %v4517_v60, %v9028_v13  ;;  %v4919_v13 = vsel %vm4791_vm8, %v9021_v7, %v5619_v63  ;;  %v4852_v7 = vmul.f32 1.442695, %v9116_v3  ;;  %v4585_v58 = vmul.f32 %v4552_v22, %v9060_v48  ;;  %v3281_v60 = vld [vmem:[#allocation7 + $0x5c8] sm:$0xff] }
 0x534   : > { %v4981_v26 = vsel %vm895_vm4, %v4919_v13, %v4980_v5  ;;  %v4984_v48 = vsel %vm883_vm0, %v4923_v29, %v4922_v23  ;;  %vm4798_vm8 = vcmp.gt.f32.partialorder %v9086_v49, 0.0  ;;  %5070 = vmatpush.msrb.mxu1 %v3281_v60  ;;  %v4757_v11 = vadd.f32 %v4756_v43, %v4755_v57 }
 0x535   : > { %v4730_v19 = vrot.slane %v4578_v28, 4  ;;  %v4982_v1 = vsel %vm898_vm5, %v4920_v41, %v4981_v26  ;;  %6147 = vpow2.f32 %v4852_v7  ;;  %v4772_v8 = vrot.slane %v4585_v58, 4 }
 0x536   : > { %v9128_v17 = vsel %vm901_vm6, %v4921_v10, %v4982_v1  ;;  %v4926_v16 = vsel %vm4798_vm8, %v9086_v49, %v5626_v44  ;;  %5071 = vmatpush.msrb.mxu1 %v3277_v38  ;;  %v4928_v49 = vsel %vm4800_vm11, %v9075_v39, %v5628_v59  ;;  %v4929_v10 = vsel %vm4801_vm12, %v9099_v9, %v5629_v53  ;;  %v3265_v39 = vld [vmem:[#allocation7 + $0x548] sm:$0xff] }
 0x537   : > { %v4731_v54 = vadd.f32 %v4730_v19, %v4578_v28  ;;  %5030 = vmatmul.f32.gmra.mxu1 %v9128_v17  ;;  %v4773_v45 = vadd.f32 %v4772_v8, %v4585_v58  ;;  %v9161_v22 = vadd.f32 %v4740_v61, %v4739_v34  ;;  %v9164_v31 = vadd.f32 %v4746_v14, %v4745_v20  ;;  %v3261_v1 = vld [vmem:[#allocation7 + $0x528] sm:$0xff] }
 0x538   : > { %5072 = vmatpush.msrb.mxu1 %v3273_v55  ;;  %v3257_v58 = vld [vmem:[#allocation7 + $0x508] sm:$0xff] }
 0x539   : > { %v4732_v63 = vrot.slane %v4731_v54, 2  ;;  %v4774_v37 = vrot.slane %v4773_v45, 2  ;;  %v4860_v29 = vmul.f32 1.442695, %v9161_v22  ;;  %v4862_v47 = vmul.f32 1.442695, %v9164_v31 }
 0x53a   : > { %v3253_v34 = vld [vmem:[#allocation7 + $0x4e8] sm:$0xff]  ;;  %vm4803_vm14 = vcmp.gt.f32.partialorder %v9161_v22, 0.0  ;;  %vm4804_vm15 = vcmp.gt.f32.partialorder %v9164_v31, 0.0 }
 0x53b   : > { %v4733_v25 = vadd.f32 %v4732_v63, %v4731_v54  ;;  %v6148_v15 = vpop.eup %6147  ;;  %v4775_v6 = vadd.f32 %v4774_v37, %v4773_v45  ;;  %v3249_v44 = vld [vmem:[#allocation7 + $0x4c8] sm:$0xff] }
 0x53c   : > { %v4542_v52 = vpop.permute.xlu1 %4541  ;;  %v5627_v40 = vadd.f32 -1.0, %v6148_v15  ;;  %v3241_v20 = vld [vmem:[#allocation7 + $0x488] sm:$0xff] }
 0x53d   : > { %v4583_v33 = vmul.f32 %v4542_v52, %v9050_v42  ;;  %v4985_v42 = vsel %vm886_vm1, %v4924_v62, %v4984_v48  ;;  %v4734_v28 = vrot.slane %v4733_v25, 1  ;;  %v4758_v52 = vrot.slane %v4757_v11, 1  ;;  %v3237_v59 = vld [vmem:[#allocation7 + $0x468] sm:$0xff] }
 0x53e   : > { %v4986_v19 = vsel %vm889_vm2, %v4925_v12, %v4985_v42  ;;  %v4927_v21 = vsel %vm4799_vm10, %v9116_v3, %v5627_v40  ;;  %v3269_v3 = vld [vmem:[#allocation7 + $0x568] sm:$0xff]  ;;  %v4776_v48 = vrot.slane %v4775_v6, 1 }
 0x53f   : > { %v4760_v56 = vrot.slane %v4583_v33, 4  ;;  %v4987_v35 = vsel %vm892_vm3, %v4926_v16, %v4986_v19  ;;  %v9151_v24 = vadd.f32 %v4734_v28, %v4733_v25  ;;  %5073 = vmatpush.msrb.mxu1 %v3269_v3  ;;  %v9171_v25 = vadd.f32 %v4758_v52, %v4757_v11  ;;  %v3245_v42 = vld [vmem:[#allocation7 + $0x4a8] sm:$0xff]  ;;  %v3282_v11 = vld [vmem:[#allocation7 + $0x5d0] sm:$0xff] }
 0x540   : > { %v4988_v13 = vsel %vm895_vm4, %v4927_v21, %v4987_v35  ;;  %v3233_v19 = vld [vmem:[#allocation7 + $0x448] sm:$0xff] }
 0x541   : > { %v4761_v18 = vadd.f32 %v4760_v56, %v4583_v33  ;;  %v4989_v26 = vsel %vm898_vm5, %v4928_v49, %v4988_v13  ;;  %v4858_v9 = vmul.f32 1.442695, %v9151_v24  ;;  %5074 = vmatpush.msrb.mxu1 %v3265_v39  ;;  %v3519_v33 = vadd.f32 %v8883_v0, %v8427_v46  ;;  %v3229_v55 = vld [vmem:[#allocation7 + $0x428] sm:$0xff]  ;;  %v3278_v39 = vld [vmem:[#allocation7 + $0x5b0] sm:$0xff] }
 0x542   : > { %v9159_v51 = vsel %vm901_vm6, %v4929_v10, %v4989_v26  ;;  %v4866_v8 = vmul.f32 1.442695, %v9171_v25  ;;  %vm4802_vm13 = vcmp.gt.f32.partialorder %v9151_v24, 0.0  ;;  %v3286_v10 = vld [vmem:[#allocation7 + $0x5f0] sm:$0xff]  ;;  %vm4806_vm7 = vcmp.gt.f32.partialorder %v9171_v25, 0.0 }
 0x543   : > { %v4762_v5 = vrot.slane %v4761_v18, 2  ;;  %5033 = vmatmul.f32.gmra.mxu1 %v9159_v51  ;;  %6149 = vpow2.f32 %v4858_v9 }
 0x544   : > { %5075 = vmatpush.msrb.mxu1 %v3261_v1  ;;  %6151 = vpow2.f32 %v4860_v29 }
 0x545   : > { %v4763_v7 = vadd.f32 %v4762_v5, %v4761_v18  ;;  %6153 = vpow2.f32 %v4862_v47  ;;  %v3266_v47 = vld [vmem:[#allocation7 + $0x550] sm:$0xff] }
 0x546   : > { %5076 = vmatpush.msrb.mxu1 %v3257_v58 }
 0x547   : > { %v4764_v62 = vrot.slane %v4763_v7, 1 }
 0x548   : > { %v4532_v54 = vpop.permute.xlu0 %4531  ;;  %5077 = vmatpush.msrb.mxu1 %v3253_v34 }
 0x549   : > { %v4581_v36 = vmul.f32 %v4532_v54, %v3516_v50  ;;  %v9173_v46 = vadd.f32 %v4764_v62, %v4763_v7  ;;  %v6150_v60 = vpop.eup %6149  ;;  %v9176_v50 = vadd.f32 %v4776_v48, %v4775_v6  ;;  %v3225_v54 = vld [vmem:[#allocation7 + $0x408] sm:$0xff]  ;;  %v3258_v48 = vld [vmem:[#allocation7 + $0x510] sm:$0xff] }
 0x54a   : > { %5078 = vmatpush.msrb.mxu1 %v3249_v44  ;;  %v6152_v61 = vpop.eup %6151  ;;  %v5630_v40 = vadd.f32 -1.0, %v6150_v60  ;;  %v3250_v44 = vld [vmem:[#allocation7 + $0x4d0] sm:$0xff]  ;;  %v3287_v60 = vld [vmem:[#allocation7 + $0x5f8] sm:$0xff] }
 0x54b   : > { %v4748_v41 = vrot.slane %v4581_v36, 4  ;;  %v4868_v28 = vmul.f32 1.442695, %v9173_v46  ;;  %v6154_v38 = vpop.eup %6153  ;;  %v4872_v53 = vmul.f32 1.442695, %v9176_v50  ;;  %v5631_v16 = vadd.f32 -1.0, %v6152_v61 }
 0x54c   : > { %5079 = vmatpush.msrb.mxu1 %v3245_v42  ;;  %v5632_v45 = vadd.f32 -1.0, %v6154_v38  ;;  %v4930_v14 = vsel %vm4802_vm13, %v9151_v24, %v5630_v40  ;;  %v3234_v42 = vld [vmem:[#allocation7 + $0x450] sm:$0xff]  ;;  %v3267_v61 = vld [vmem:[#allocation7 + $0x558] sm:$0xff]  ;;  %v9209_v38 = vld [vmem:[%s9481_s7 + $0x4] sm:$0xf] }
 0x54d   : > { %v4749_v63 = vadd.f32 %v4748_v41, %v4581_v36  ;;  %v4931_v13 = vsel %vm4803_vm14, %v9161_v22, %v5631_v16  ;;  %v3255_v40 = vld [vmem:[#allocation7 + $0x4f8] sm:$0xff] }
 0x54e   : > { %5080 = vmatpush.msrb.mxu1 %v3241_v20  ;;  %v4932_v26 = vsel %vm4804_vm15, %v9164_v31, %v5632_v45  ;;  %v4991_v24 = vsel %vm883_vm0, %v4931_v13, %v4930_v14  ;;  %vm4807_vm0 = vcmp.gt.f32.partialorder %v9173_v46, 0.0  ;;  %v3275_v20 = vld [vmem:[#allocation7 + $0x598] sm:$0xff] }
 0x54f   : > { %v4750_v2 = vrot.slane %v4749_v63, 2  ;;  %v4992_v22 = vsel %vm886_vm1, %v4932_v26, %v4991_v24  ;;  %v3243_v45 = vld [vmem:[#allocation7 + $0x498] sm:$0xff] }
 0x550   : > { %5081 = vmatpush.msrb.mxu1 %v3237_v59  ;;  %v3259_v59 = vld [vmem:[#allocation7 + $0x518] sm:$0xff] }
 0x551   : > { %v4751_v4 = vadd.f32 %v4750_v2, %v4749_v63  ;;  %v4547_v23 = vpop.permute.xlu0 %4546  ;;  %v3274_v63 = vld [vmem:[#allocation7 + $0x590] sm:$0xff] }
 0x552   : > { %v4584_v27 = vmul.f32 %v4547_v23, %v3519_v33  ;;  %5082 = vmatpush.msrb.mxu1 %v3233_v19  ;;  %v3270_v2 = vld [vmem:[#allocation7 + $0x570] sm:$0xff]  ;;  %v3247_v19 = vld [vmem:[#allocation7 + $0x4b8] sm:$0xff] }
 0x553   : > { %v4752_v56 = vrot.slane %v4751_v4, 1 }
 0x554   : > { %v4766_v57 = vrot.slane %v4584_v27, 4  ;;  %5083 = vmatpush.msrb.mxu1 %v3229_v55  ;;  %v5057_v55 = vpop.f32.mrf.mxu2 }
 0x555   : > { %v4753_v0 = vadd.f32 %v4752_v56, %v4751_v4  ;;  %v3254_v56 = vld [vmem:[#allocation7 + $0x4f0] sm:$0xff] }
 0x556   : > { %v4767_v30 = vadd.f32 %v4766_v57, %v4584_v27  ;;  %5084 = vmatpush.msrb.mxu1 %v3225_v54  ;;  %v3246_v57 = vld [vmem:[#allocation7 + $0x4b0] sm:$0xff]  ;;  %v3231_v54 = vld [vmem:[#allocation7 + $0x438] sm:$0xff] }
 0x557   : > { %v4864_v12 = vmul.f32 1.442695, %v4753_v0  ;;  %vm4805_vm9 = vcmp.gt.f32.partialorder %v4753_v0, 0.0 }
 0x558   : > { %v4768_v15 = vrot.slane %v4767_v30, 2  ;;  %5127 = vmatpush.msra.mxu1 %v3286_v10 }
 0x559   : > { %6155 = vpow2.f32 %v4864_v12  ;;  %v3279_v12 = vld [vmem:[#allocation7 + $0x5b8] sm:$0xff] }
 0x55a   : > { %6157 = vpow2.f32 %v4866_v8  ;;  %v4769_v18 = vadd.f32 %v4768_v15, %v4767_v30  ;;  %5128 = vmatpush.msra.mxu1 %v3282_v11  ;;  %v3230_v8 = vld [vmem:[#allocation7 + $0x430] sm:$0xff]  ;;  %v3271_v15 = vld [vmem:[#allocation7 + $0x578] sm:$0xff] }
 0x55b   : > { %6159 = vpow2.f32 %v4868_v28  ;;  %v3226_v30 = vld [vmem:[#allocation7 + $0x410] sm:$0xff]  ;;  %v3263_v28 = vld [vmem:[#allocation7 + $0x538] sm:$0xff] }
 0x55c   : > { %v4770_v43 = vrot.slane %v4769_v18, 1  ;;  %6161 = vpow2.f32 %v4872_v53  ;;  %5129 = vmatpush.msra.mxu1 %v3278_v39  ;;  %v5003_v53 = vperm.slane %v9209_v38, 0 }
 0x55e   : > { %v4771_v21 = vadd.f32 %v4770_v43, %v4769_v18  ;;  %5130 = vmatpush.msra.mxu1 %v3274_v63  ;;  %v3251_v18 = vld [vmem:[#allocation7 + $0x4d8] sm:$0xff] }
 0x55f   : > { %v6156_v35 = vpop.eup %6155 }
 0x560   : > { %v6158_v49 = vpop.eup %6157  ;;  %v5633_v5 = vadd.f32 -1.0, %v6156_v35  ;;  %v4870_v36 = vmul.f32 1.442695, %v4771_v21  ;;  %vm4808_vm1 = vcmp.gt.f32.partialorder %v4771_v21, 0.0  ;;  %5131 = vmatpush.msra.mxu1 %v3270_v2  ;;  %v3235_v35 = vld [vmem:[#allocation7 + $0x458] sm:$0xff] }
 0x561   : > { %v6160_v37 = vpop.eup %6159  ;;  %v5634_v41 = vadd.f32 -1.0, %v6158_v49  ;;  %v3227_v49 = vld [vmem:[#allocation7 + $0x418] sm:$0xff] }
 0x562   : > { %v4933_v3 = vsel %vm4805_vm9, %v4753_v0, %v5633_v5  ;;  %6163 = vpow2.f32 %v4870_v36  ;;  %v6162_v9 = vpop.eup %6161  ;;  %v5635_v31 = vadd.f32 -1.0, %v6160_v37  ;;  %5132 = vmatpush.msra.mxu1 %v3266_v47  ;;  %v3238_v0 = vld [vmem:[#allocation7 + $0x470] sm:$0xff]  ;;  %v5060_v36 = vpop.f32.mrf.mxu2 }
 0x563   : > { %v4993_v7 = vsel %vm889_vm2, %v4933_v3, %v4992_v22  ;;  %v4934_v1 = vsel %vm4806_vm7, %v9171_v25, %v5634_v41  ;;  %v5637_v29 = vadd.f32 -1.0, %v6162_v9  ;;  %vm4809_vm2 = vcmp.gt.f32.partialorder %v9176_v50, 0.0  ;;  %v3262_v25 = vld [vmem:[#allocation7 + $0x530] sm:$0xff] }
 0x564   : > { %v4994_v6 = vsel %vm892_vm3, %v4934_v1, %v4993_v7  ;;  %v4935_v33 = vsel %vm4807_vm0, %v9173_v46, %v5635_v31  ;;  %5133 = vmatpush.msra.mxu1 %v3262_v25  ;;  %v3242_v46 = vld [vmem:[#allocation7 + $0x490] sm:$0xff] }
 0x565   : > { %v4995_v4 = vsel %vm895_vm4, %v4935_v33, %v4994_v6  ;;  %v4937_v23 = vsel %vm4809_vm2, %v9176_v50, %v5637_v29  ;;  %v3283_v50 = vld [vmem:[#allocation7 + $0x5d8] sm:$0xff] }
 0x566   : > { %5134 = vmatpush.msra.mxu1 %v3258_v48 }
 0x568   : > { %v6164_v52 = vpop.eup %6163  ;;  %5135 = vmatpush.msra.mxu1 %v3254_v56 }
 0x569   : > { %v5636_v58 = vadd.f32 -1.0, %v6164_v52  ;;  %v5004_v52 = vperm.slane %v9209_v38, 1 }
 0x56a   : > { %5136 = vmatpush.msra.mxu1 %v3250_v44  ;;  %v5063_v3 = vpop.f32.mrf.mxu2 }
 0x56b   : > { %v4936_v62 = vsel %vm4808_vm1, %v4771_v21, %v5636_v58  ;;  %v3239_v21 = vld [vmem:[#allocation7 + $0x478] sm:$0xff] }
 0x56c   : > { %v4996_v34 = vsel %vm898_vm5, %v4936_v62, %v4995_v4  ;;  %5137 = vmatpush.msra.mxu1 %v3246_v57 }
 0x56d   : > { %v9199_v27 = vsel %vm901_vm6, %v4937_v23, %v4996_v34 }
 0x56e   : > { %5036 = vmatmul.f32.gmra.mxu1 %v9199_v27 }
 0x56f   : > { %5138 = vmatpush.msra.mxu1 %v3242_v46 }
 0x571   : > { %5139 = vmatpush.msra.mxu1 %v3238_v0 }
 0x572   : > { %v5066_v37 = vpop.f32.mrf.mxu2 }
 0x573   : > { %5140 = vmatpush.msra.mxu1 %v3234_v42 }
 0x575   : > { %5141 = vmatpush.msra.mxu1 %v3230_v8 }
 0x576   : > { %5085 = vmatmul.f32.vlgmr.msrb.gmra.mxu1 %v9000_v32 }
 0x577   : > { %5142 = vmatpush.msra.mxu1 %v3226_v30 }
 0x579   : > { %5185 = vmatpush.msrb.mxu1 %v3287_v60 }
 0x57a   : > { %v5115_v41 = vpop.f32.mrf.mxu2 }
 0x57b   : > { %5186 = vmatpush.msrb.mxu1 %v3283_v50 }
 0x57d   : > { %5187 = vmatpush.msrb.mxu1 %v3279_v12 }
 0x57e   : > { %5088 = vmatmul.f32.gmra.mxu1 %v9128_v17 }
 0x57f   : > { %5188 = vmatpush.msrb.mxu1 %v3275_v20 }
 0x581   : > { %5189 = vmatpush.msrb.mxu1 %v3271_v15  ;;  %v5028_v16 = vpop.f32.mrf.mxu1 }
 0x582   : > { %v5029_v43 = vadd.f32 %v5028_v16, %v5003_v53  ;;  %v5118_v22 = vpop.f32.mrf.mxu2 }
 0x583   : > { %5190 = vmatpush.msrb.mxu1 %v3267_v61 }
 0x584   : > { %v5058_v14 = vadd.f32 %v5057_v55, %v5029_v43 }
 0x585   : > { %5191 = vmatpush.msrb.mxu1 %v3263_v28 }
 0x586   : > { %5091 = vmatmul.f32.gmra.mxu1 %v9159_v51  ;;  %v5638_v6 = vmul.f32 -1.442695, %v5058_v14 }
 0x587   : > { %5192 = vmatpush.msrb.mxu1 %v3259_v59 }
 0x588   : > { %6165 = vpow2.f32 %v5638_v6 }
 0x589   : > { %5193 = vmatpush.msrb.mxu1 %v3255_v40 }
 0x58a   : > { %v5121_v7 = vpop.f32.mrf.mxu2 }
 0x58b   : > { %5194 = vmatpush.msrb.mxu1 %v3251_v18 }
 0x58d   : > { %5195 = vmatpush.msrb.mxu1 %v3247_v19 }
 0x58e   : > { %5094 = vmatmul.f32.gmra.mxu1 %v9199_v27  ;;  %v6166_v34 = vpop.eup %6165 }
 0x58f   : > { %5196 = vmatpush.msrb.mxu1 %v3243_v45 }
 0x591   : > { %5197 = vmatpush.msrb.mxu1 %v3239_v21 }
 0x592   : > { %v5124_v1 = vpop.f32.mrf.mxu2 }
 0x593   : > { %5198 = vmatpush.msrb.mxu1 %v3235_v35 }
 0x595   : > { %5199 = vmatpush.msrb.mxu1 %v3231_v54 }
 0x596   : > { %5143 = vmatmul.f32.vlgmr.msra.gmra.mxu1 %v9000_v32 }
 0x597   : > { %5200 = vmatpush.msrb.mxu1 %v3227_v49 }
 0x59e   : > { %5146 = vmatmul.f32.gmra.mxu1 %v9128_v17 }
 0x5a6   : > { %5149 = vmatmul.f32.gmra.mxu1 %v9159_v51 }
 0x5ae   : > { %5152 = vmatmul.f32.gmra.mxu1 %v9199_v27 }
 0x5b4   : > { %v5031_v13 = vpop.f32.mrf.mxu1 }
 0x5b5   : > { %v5032_v5 = vadd.f32 %v5031_v13, %v5003_v53 }
 0x5b6   : > { %5201 = vmatmul.f32.vlgmr.msrb.gmra.mxu1 %v9000_v32 }
 0x5b7   : > { %v5061_v10 = vadd.f32 %v5060_v36, %v5032_v5 }
 0x5b9   : > { %v5639_v62 = vmul.f32 -1.442695, %v5061_v10 }
 0x5be   : > { %5204 = vmatmul.f32.gmra.mxu1 %v9128_v17 }
 0x5c0   : > { %v5034_v26 = vpop.f32.mrf.mxu1 }
 0x5c1   : > { %v5035_v24 = vadd.f32 %v5034_v26, %v5003_v53 }
 0x5c3   : > { %v5064_v11 = vadd.f32 %v5063_v3, %v5035_v24  ;;  %v9270_v3 = vperm.slane %v9209_v38, 2 }
 0x5c5   : > { %v5640_v57 = vmul.f32 -1.442695, %v5064_v11 }
 0x5c6   : > { %5207 = vmatmul.f32.gmra.mxu1 %v9159_v51  ;;  %v9221_v51 = vpop.f32.mrf.mxu2 }
 0x5ce   : > { %5210 = vmatmul.f32.gmra.mxu1 %v9199_v27  ;;  %v9223_v47 = vpop.f32.mrf.mxu2  ;;  %v9227_v27 = vadd.f32 1.0, %v6166_v34 }
 0x5d0   : > { %vm5264_vm4 = vweird.f32 %v9227_v27 }
 0x5d6   : > { %v9229_v0 = vpop.f32.mrf.mxu2 }
 0x5eb   : > { %v5037_v39 = vpop.f32.mrf.mxu1 }
 0x5ec   : > { %v5038_v9 = vadd.f32 %v5037_v39, %v5003_v53  ;;  %v9246_v53 = vpop.f32.mrf.mxu2 }
 0x5ee   : > { %v5067_v32 = vadd.f32 %v5066_v37, %v5038_v9  ;;  %v5270_v9 = vand.u32 2147483648, %v9227_v27 }
 0x5f0   : > { %v5641_v15 = vmul.f32 -1.442695, %v5067_v32 }
 0x5f3   : > { %v5086_v31 = vpop.f32.mrf.mxu1 }
 0x5f4   : > { %v5087_v29 = vadd.f32 %v5086_v31, %v5004_v52  ;;  %v5231_v26 = vpop.f32.mrf.mxu2  ;;  %v5268_v31 = vand.u32 2147483647, %v9227_v27 }
 0x5f6   : > { %v5116_v58 = vadd.f32 %v5115_v41, %v5087_v29  ;;  %v9276_v41 = vperm.slane %v9209_v38, 3  ;;  %vm5269_vm8 = vcmp.eq.f32.partialorder %v5268_v31, 8.507059e+37 }
 0x5f8   : > { %v5642_v33 = vmul.f32 -1.442695, %v5116_v58 }
 0x5fa   : > { %6167 = vpow2.f32 %v5642_v33 }
 0x5fb   : > { %v5089_v63 = vpop.f32.mrf.mxu1  ;;  %6169 = vpow2.f32 %v5639_v62 }
 0x5fc   : > { %v5090_v4 = vadd.f32 %v5089_v63, %v5004_v52  ;;  %6171 = vrcp.f32 %v9227_v27 }
 0x5fe   : > { %v5119_v25 = vadd.f32 %v5118_v22, %v5090_v4  ;;  %v5271_v4 = vor.u32 1.1754944e-38, %v5270_v9 }
 0x600   : > { %v5643_v56 = vmul.f32 -1.442695, %v5119_v25  ;;  %v6168_v44 = vpop.eup %6167 }
 0x601   : > { %v6170_v46 = vpop.eup %6169  ;;  %v9234_v30 = vadd.f32 1.0, %v6168_v44 }
 0x602   : > { %6173 = vpow2.f32 %v5643_v56  ;;  %v9236_v60 = vadd.f32 1.0, %v6170_v46  ;;  %v9238_v20 = vpop.eup %6171 }
 0x603   : > { %v5092_v17 = vpop.f32.mrf.mxu1  ;;  %6175 = vpow2.f32 %v5640_v57  ;;  %v5260_v18 = vmul.f32 %v9238_v20, %v9227_v27  ;;  %vm5265_vm3 = vweird.f32 %v9238_v20  ;;  %v5344_v58 = vand.u32 2147483647, %v9234_v30 }
 0x604   : > { %v5093_v48 = vadd.f32 %v5092_v17, %v5004_v52  ;;  %6177 = vrcp.f32 %v9234_v30  ;;  %vm9289_vm5 = vmor %vm5264_vm4, %vm5265_vm3  ;;  %v5346_v33 = vand.u32 2147483648, %v9234_v30  ;;  %vm5340_vm11 = vweird.f32 %v9234_v30 }
 0x605   : > { %6179 = vrcp.f32 %v9236_v60  ;;  %v5261_v14 = vsub.f32 1.0, %v5260_v18  ;;  %vm5279_vm13 = vweird.f32 %v9236_v60  ;;  %vm9325_vm14 = vcmp.eq.f32.partialorder %v5344_v58, 8.507059e+37 }
 0x606   : > { %v5122_v42 = vadd.f32 %v5121_v7, %v5093_v48 }
 0x607   : > { %v5262_v36 = vmul.f32 %v9238_v20, %v5261_v14 }
 0x608   : > { %v5644_v50 = vmul.f32 -1.442695, %v5122_v42  ;;  %v6174_v61 = vpop.eup %6173 }
 0x609   : > { %v6176_v59 = vpop.eup %6175  ;;  %v9248_v19 = vadd.f32 1.0, %v6174_v61  ;;  %v5263_v22 = vadd.f32 %v9238_v20, %v5262_v36 }
 0x60a   : > { %6181 = vpow2.f32 %v5644_v50  ;;  %v9250_v16 = vpop.eup %6177  ;;  %v9252_v43 = vadd.f32 1.0, %v6176_v59  ;;  %v5234_v50 = vpop.f32.mrf.mxu2 }
 0x60b   : > { %v5095_v2 = vpop.f32.mrf.mxu1  ;;  %6183 = vpow2.f32 %v5641_v15  ;;  %v9254_v45 = vpop.eup %6179  ;;  %v5336_v35 = vmul.f32 %v9250_v16, %v9234_v30  ;;  %v5267_v6 = vsel %vm9289_vm5, %v9238_v20, %v5263_v22  ;;  %vm5341_vm6 = vweird.f32 %v9250_v16 }
 0x60c   : > { %v5096_v12 = vadd.f32 %v5095_v2, %v5004_v52  ;;  %6185 = vrcp.f32 %v9248_v19  ;;  %v5275_v49 = vmul.f32 %v9254_v45, %v9236_v60  ;;  %v5272_v48 = vsel %vm5269_vm8, %v5271_v4, %v5267_v6  ;;  %vm9316_vm12 = vmor %vm5340_vm11, %vm5341_vm6 }
 0x60d   : > { %6187 = vrcp.f32 %v9252_v43  ;;  %v5337_v10 = vsub.f32 1.0, %v5336_v35  ;;  %vm5280_vm10 = vweird.f32 %v9254_v45  ;;  %v5285_v30 = vand.u32 2147483648, %v9236_v60 }
 0x60e   : > { %v5125_v40 = vadd.f32 %v5124_v1, %v5096_v12  ;;  %v5276_v11 = vsub.f32 1.0, %v5275_v49  ;;  %v5347_v15 = vor.u32 1.1754944e-38, %v5346_v33  ;;  %vm9331_vm15 = vmor %vm5279_vm13, %vm5280_vm10  ;;  %vm5355_vm9 = vweird.f32 %v9248_v19 }
 0x60f   : > { %v5338_v7 = vmul.f32 %v9250_v16, %v5337_v10  ;;  %v5286_v10 = vor.u32 1.1754944e-38, %v5285_v30  ;;  %vm5294_vm3 = vweird.f32 %v9252_v43  ;;  %v5298_v58 = vand.u32 2147483647, %v9252_v43 }
 0x610   : > { %v5645_v55 = vmul.f32 -1.442695, %v5125_v40  ;;  %v6182_v21 = vpop.eup %6181  ;;  %v5277_v17 = vmul.f32 %v9254_v45, %v5276_v11  ;;  %v5283_v40 = vand.u32 2147483647, %v9236_v60 }
 0x611   : > { %v6184_v13 = vpop.eup %6183  ;;  %v9264_v5 = vadd.f32 1.0, %v6182_v21  ;;  %vm5299_vm6 = vcmp.eq.f32.partialorder %v5298_v58, 8.507059e+37 }
 0x612   : > { %6189 = vpow2.f32 %v5645_v55  ;;  %v9267_v24 = vadd.f32 1.0, %v6184_v13  ;;  %v9272_v37 = vpop.eup %6185  ;;  %v5278_v56 = vadd.f32 %v9254_v45, %v5277_v17  ;;  %vm5284_vm7 = vcmp.eq.f32.partialorder %v5283_v40, 8.507059e+37  ;;  %v5237_v33 = vpop.f32.mrf.mxu2 }
 0x613   : > { %v9225_v23 = vpop.f32.mrf.mxu1  ;;  %6191 = vrcp.f32 %v9264_v5  ;;  %v9280_v39 = vpop.eup %6187  ;;  %v5351_v38 = vmul.f32 %v9272_v37, %v9248_v19  ;;  %vm5356_vm0 = vweird.f32 %v9272_v37  ;;  %vm5370_vm11 = vweird.f32 %v9264_v5 }
 0x614   : > { %6193 = vrcp.f32 %v9267_v24  ;;  %v5145_v52 = vadd.f32 %v9225_v23, %v9270_v3  ;;  %v5290_v2 = vmul.f32 %v9280_v39, %v9252_v43  ;;  %v5339_v23 = vadd.f32 %v9250_v16, %v5338_v7  ;;  %vm9368_vm2 = vmor %vm5355_vm9, %vm5356_vm0 }
 0x615   : > { %v5352_v27 = vsub.f32 1.0, %v5351_v38  ;;  %v5282_v35 = vsel %vm9331_vm15, %v9254_v45, %v5278_v56  ;;  %vm5295_vm1 = vweird.f32 %v9280_v39  ;;  %v5374_v59 = vand.u32 2147483647, %v9264_v5 }
 0x616   : > { %v5174_v44 = vadd.f32 %v9221_v51, %v5145_v52  ;;  %v5291_v46 = vsub.f32 1.0, %v5290_v2  ;;  %v5343_v14 = vsel %vm9316_vm12, %v9250_v16, %v5339_v23  ;;  %v5359_v16 = vand.u32 2147483647, %v9248_v19  ;;  %vm9384_vm4 = vmor %vm5294_vm3, %vm5295_vm1 }
 0x617   : > { %v5353_v18 = vmul.f32 %v9272_v37, %v5352_v27  ;;  %v5348_v45 = vsel %vm9325_vm14, %v5347_v15, %v5343_v14  ;;  %v5300_v52 = vand.u32 2147483648, %v9252_v43  ;;  %vm5309_vm13 = vweird.f32 %v9267_v24 }
 0x618   : > { %v6190_v32 = vpop.eup %6189  ;;  %v5292_v13 = vmul.f32 %v9280_v39, %v5291_v46  ;;  %v5407_v17 = vsub.f32 1.0, %v5348_v45  ;;  %vm5360_vm5 = vcmp.eq.f32.partialorder %v5359_v16, 8.507059e+37  ;;  %vm5375_vm15 = vcmp.eq.f32.partialorder %v5374_v59, 8.507059e+37 }
 0x619   : > { %v9304_v62 = vadd.f32 1.0, %v6190_v32  ;;  %v9306_v34 = vpop.eup %6191  ;;  %v5354_v22 = vadd.f32 %v9272_v37, %v5353_v18  ;;  %v5287_v32 = vsel %vm5284_vm7, %v5286_v10, %v5282_v35  ;;  %v5301_v46 = vor.u32 1.1754944e-38, %v5300_v52  ;;  %v9810_v52 = vld [vmem:[#allocation32_spill] sm:$0xff] }
 0x61a   : > { %v9314_v42 = vpop.eup %6193  ;;  %v5366_v20 = vmul.f32 %v9306_v34, %v9264_v5  ;;  %v5293_v31 = vadd.f32 %v9280_v39, %v5292_v13  ;;  %vm5371_vm8 = vweird.f32 %v9306_v34  ;;  %v5315_v18 = vand.u32 2147483648, %v9267_v24 }
 0x61b   : > { %v9232_v8 = vpop.f32.mrf.mxu1  ;;  %6195 = vrcp.f32 %v9304_v62  ;;  %v5305_v60 = vmul.f32 %v9314_v42, %v9267_v24  ;;  %vm5310_vm10 = vweird.f32 %v9314_v42  ;;  %vm9405_vm12 = vmor %vm5370_vm11, %vm5371_vm8  ;;  %vm5385_vm0 = vweird.f32 %v9304_v62 }
 0x61c   : > { %v5148_v55 = vadd.f32 %v9232_v8, %v9270_v3  ;;  %v5361_v8 = vand.u32 2147483648, %v9248_v19  ;;  %v5367_v36 = vsub.f32 1.0, %v5366_v20  ;;  %v5358_v19 = vsel %vm9368_vm2, %v9272_v37, %v5354_v22  ;;  %vm9418_vm14 = vmor %vm5309_vm13, %vm5310_vm10 }
 0x61d   : > { %v5306_v38 = vsub.f32 1.0, %v5305_v60  ;;  %v5376_v37 = vand.u32 2147483648, %v9264_v5  ;;  %v9807_v60 = vld [vmem:[#allocation28_spill] sm:$0xff]  ;;  %v5316_v22 = vor.u32 1.1754944e-38, %v5315_v18 }
 0x61e   : > { %v5177_v9 = vadd.f32 %v9223_v47, %v5148_v55  ;;  %v5368_v1 = vmul.f32 %v9306_v34, %v5367_v36 }
 0x620   : > { %v5369_v20 = vadd.f32 %v9306_v34, %v5368_v1 }
 0x621   : > { %v9355_v11 = vpop.eup %6195 }
 0x622   : > { %v5381_v6 = vmul.f32 %v9355_v11, %v9304_v62  ;;  %v5373_v5 = vsel %vm9405_vm12, %v9306_v34, %v5369_v20  ;;  %vm5386_vm7 = vweird.f32 %v9355_v11 }
 0x623   : > { %v9242_v28 = vpop.f32.mrf.mxu1  ;;  %vm5387_vm1 = vmor %vm5385_vm0, %vm5386_vm7 }
 0x624   : > { %v5151_v4 = vadd.f32 %v9242_v28, %v9270_v3  ;;  %v5297_v28 = vsel %vm9384_vm4, %v9280_v39, %v5293_v31  ;;  %v5382_v30 = vsub.f32 1.0, %v5381_v6 }
 0x625   : > { %v5302_v39 = vsel %vm5299_vm6, %v5301_v46, %v5297_v28 }
 0x626   : > { %v5180_v51 = vadd.f32 %v9229_v0, %v5151_v4  ;;  %v5313_v0 = vand.u32 2147483647, %v9267_v24  ;;  %v9811_v4 = vld [vmem:[#allocation30_spill] sm:$0xff] }
 0x628   : > { %vm5314_vm9 = vcmp.eq.f32.partialorder %v5313_v0, 8.507059e+37 }
 0x62b   : > { %v9260_v54 = vpop.f32.mrf.mxu1 }
 0x62c   : > { %v5154_v24 = vadd.f32 %v9260_v54, %v9270_v3  ;;  %v5391_v3 = vand.u32 2147483648, %v9304_v62 }
 0x62e   : > { %v5392_v6 = vor.u32 1.1754944e-38, %v5391_v3 }
 0x633   : > { %v5202_v63 = vpop.f32.mrf.mxu1 }
 0x634   : > { %v5203_v29 = vadd.f32 %v5202_v63, %v9276_v41  ;;  %v5362_v63 = vor.u32 1.1754944e-38, %v5361_v8 }
 0x636   : > { %v5232_v25 = vadd.f32 %v5231_v26, %v5203_v29 }
 0x638   : > { %v5395_v57 = vmul.f32 %v5272_v48, %v5232_v25  ;;  %v9802_v25 = vld [vmem:[#allocation27_spill] sm:$0xff] }
 0x639   : > { %v5415_v27 = vmul.f32 %v5348_v45, %v9802_v25 }
 0x63a   : > { %v5399_v61 = vadd.f32 %v5395_v57, %v5174_v44  ;;  %v5307_v44 = vmul.f32 %v9314_v42, %v5306_v38 }
 0x63b   : > { %v5205_v21 = vpop.f32.mrf.mxu1 }
 0x63c   : > { %6197 = vtanh.f32 %v5399_v61  ;;  %v5206_v49 = vadd.f32 %v5205_v21, %v9276_v41  ;;  %v5308_v61 = vadd.f32 %v9314_v42, %v5307_v44  ;;  %v5377_v21 = vor.u32 1.1754944e-38, %v5376_v37 }
 0x63e   : > { %v5235_v26 = vadd.f32 %v5234_v50, %v5206_v49  ;;  %v5363_v50 = vsel %vm5360_vm5, %v5362_v63, %v5358_v19  ;;  %v5383_v49 = vmul.f32 %v9355_v11, %v5382_v30  ;;  %v5312_v45 = vsel %vm9418_vm14, %v9314_v42, %v5308_v61 }
 0x63f   : > { %v5408_v40 = vsub.f32 1.0, %v5363_v50  ;;  %v5416_v8 = vmul.f32 %v5363_v50, %v9807_v60  ;;  %v5317_v54 = vsel %vm5314_vm9, %v5316_v22, %v5312_v45  ;;  %v5389_v42 = vand.u32 2147483647, %v9304_v62 }
 0x640   : > { %v5396_v7 = vmul.f32 %v5287_v32, %v5235_v26  ;;  %v5240_v26 = vpop.f32.mrf.mxu2 }
 0x641   : > { %vm5390_vm2 = vcmp.eq.f32.partialorder %v5389_v42, 8.507059e+37 }
 0x642   : > { %v6198_v29 = vpop.eup %6197  ;;  %v5400_v2 = vadd.f32 %v5396_v7, %v5177_v9  ;;  %v5378_v9 = vsel %vm5375_vm15, %v5377_v21, %v5373_v5  ;;  %v5384_v7 = vadd.f32 %v9355_v11, %v5383_v49 }
 0x643   : > { %v5411_v23 = vmul.f32 %v6198_v29, %v5407_v17  ;;  %v5208_v48 = vpop.f32.mrf.mxu1  ;;  %v5409_v38 = vsub.f32 1.0, %v5378_v9  ;;  %v5417_v29 = vmul.f32 %v5378_v9, %v9810_v52 }
 0x644   : > { %6199 = vtanh.f32 %v5400_v2  ;;  %v5209_v43 = vadd.f32 %v5208_v48, %v9276_v41  ;;  %v5388_v47 = vsel %vm5387_vm1, %v9355_v11, %v5384_v7 }
 0x645   : > { %v5419_v57 = vadd.f32 %v5415_v27, %v5411_v23  ;;  %v5393_v2 = vsel %vm5390_vm2, %v5392_v6, %v5388_v47 }
 0x646   : > { %v5238_v12 = vadd.f32 %v5237_v33, %v5209_v43  ;;  %v5410_v62 = vsub.f32 1.0, %v5393_v2  ;;  %v5418_v11 = vmul.f32 %v5393_v2, %v9811_v4 }
 0x647   : > { %5423 = vst [vmem:[%s9396_s22] sm:$0xff] %v5419_v57 }
 0x648   : > { %v5397_v15 = vmul.f32 %v5302_v39, %v5238_v12 }
 0x64a   : > { %v6200_v55 = vpop.eup %6199  ;;  %v5401_v35 = vadd.f32 %v5397_v15, %v5180_v51 }
 0x64b   : > { %v5412_v13 = vmul.f32 %v6200_v55, %v5408_v40  ;;  %v5211_v36 = vpop.f32.mrf.mxu1 }
 0x64c   : > { %6201 = vtanh.f32 %v5401_v35  ;;  %v5212_v16 = vadd.f32 %v5211_v36, %v9276_v41  ;;  %v5183_v41 = vadd.f32 %v9246_v53, %v5154_v24 }
 0x64d   : > { %v5420_v34 = vadd.f32 %v5416_v8, %v5412_v13 }
 0x64e   : > { %v5241_v32 = vadd.f32 %v5240_v26, %v5212_v16 }
 0x64f   : > { %5424 = vst [vmem:[%s9396_s22 + $0x8] sm:$0xff] %v5420_v34 }
 0x650   : > { %v5398_v31 = vmul.f32 %v5317_v54, %v5241_v32 }
 0x652   : > { %v6202_v63 = vpop.eup %6201  ;;  %v5402_v1 = vadd.f32 %v5398_v31, %v5183_v41 }
 0x653   : > { %v5413_v17 = vmul.f32 %v6202_v63, %v5409_v38 }
 0x654   : > { %6203 = vtanh.f32 %v5402_v1 }
 0x655   : > { %v5421_v53 = vadd.f32 %v5417_v29, %v5413_v17 }
 0x657   : > { %5425 = vst [vmem:[%s9396_s22 + $0x10] sm:$0xff] %v5421_v53 }
 0x65a   : > { %v6204_v58 = vpop.eup %6203 }
 0x65b   : > { %v5414_v33 = vmul.f32 %v6204_v58, %v5410_v62 }
 0x65d   : > { %v5422_v23 = vadd.f32 %v5418_v11, %v5414_v33 }
 0x65f   : > { %5426 = vst [vmem:[%s9396_s22 + $0x18] sm:$0xff] %v5422_v23 }
 0x660   : > { %6356 = shalt.err (!%p6353_p8)
}
 0x661   : > { %s6412_s11 = smov 128   ;;  %s6413_s14 = smov 8  }
 0x662   : > { %5664 = dma.vmem_to_hbm [thread:$0]  (%p6497_p5), %s5441_s12, 512, %s5443_s13, %s5428_s18, %s6412_s11, %s6412_s11, %s6413_s14  }
 0x663 PF: > { %p5686_p9 = scmp.ge.s32.totalorder %s6399_s30, 2  ;;  %s5457_s17 = sand.u32 1, %s6387_s27  }
 0x664   : > { %s5458_s9 = scalar_lea.sflag [#allocation4], %s5457_s17 }
 0x665   : > { %p5677_p10 = pnand %p5686_p9, %p6501_p6 }
 0x667   : > { %p5678_p11 = pneg %p5677_p10 }
 0x669   : > { %6382 = dma.done.wait (%p5678_p11), %s5458_s9, 512  }
 0x66a   : > { %6384 = vsyncadd (%p5678_p11), %s5458_s9, 4294966784  ;;  %s9812_s30 = sld [smem:[#allocation13_spill]]  ;;  %s9815_s27 = smov %s6391_s28 }
 0x66b   : > { %s9813_s20 = sld [smem:[#allocation12_spill]] }
 0x66c   : > { %s9814_s29 = sld [smem:[#allocation14_spill]] }
 0x670   : > { %p20_p12 = scmp.ge.s32.totalorder %s9812_s30, 4  }
 0x671   : > { %s9816_s28 = smov %s9813_s20 }
 0x672   :  { %22 = sbr.rel (!%p20_p12) target bundleno = 8 (0x8), region = 109 }
 0x677   :  { %5464 = vsyncpa [#allocation3], 1 }
 0x678   :  { %5466 = vsyncpa [#allocation3 + $0x1], 1 }
 0x679   :  { %5467 = vsyncpa [#allocation6], 1 }
 0x67a   :  { %5468 = vsyncpa [#allocation4], 1 }
 0x67b   :  { %5470 = vsyncpa [#allocation4 + $0x1], 1 }

</bundles_post_ra>
